<compile_context>
chip_gen: v6e
topology: v6e:2x2x1
jax: 0.10.0
libtpu: 0.0.40
codegen_flags: <defaults>
</compile_context>

<pallas_src>
import functools
import math

import jax
import jax.numpy as jnp
from jax.experimental import pallas as pl
from jax.experimental.pallas import tpu as pltpu


def _round_up(x, m):
    return (x + m - 1) // m * m


def _choose_fc_tile(k_dim):
    """fc1 K-tile: as large as practical (review item 9); lane aligned."""
    return min(4096, _round_up(k_dim, 128))


# --------------------------- conv + ReLU kernel ----------------------------- #

def _conv_relu_kernel(x_ref, w_ref, b_ref, o_ref, *, ksize, group, H, W):
    """One batch element: stream conv taps from the resident padded image.

    x_ref : (Hp, Wp, Cin)    bf16  padded NHWC image (batch dim squeezed)
    w_ref : (k*k, Cin, Cout) bf16  tap-major conv weights
    b_ref : (1, Cout)        f32
    o_ref : (H*W, Cout)      bf16

    Taps accumulate into a LOCAL f32 value (no VMEM accumulator RMW); bias +
    ReLU are applied once before the single bf16 writeback.  When `group` > 1
    (Cin lane-aligned), `group` tap windows are concatenated on the lane axis
    so each MXU pass uses K = group*Cin.
    """
    kk, cin, cout = w_ref.shape
    acc = None
    t0 = 0
    while t0 < kk:                                 # static Python loop
        g = min(group, kk - t0)
        wins = []
        for t in range(t0, t0 + g):
            dy, dx = divmod(t, ksize)
            wins.append(x_ref[dy:dy + H, dx:dx + W, :].reshape(H * W, cin))
        if g == 1:
            xg = wins[0]                           # (H*W, Cin)
            wg = w_ref[t0]                         # (Cin, Cout)
        else:
            xg = jnp.concatenate(wins, axis=-1)    # (H*W, g*Cin)
            wg = w_ref[t0:t0 + g].reshape(g * cin, cout)
        contrib = jnp.dot(xg, wg, preferred_element_type=jnp.float32)
        acc = contrib if acc is None else acc + contrib
        t0 += g
    y = jnp.maximum(acc + b_ref[...], 0.0)         # bias + ReLU once
    o_ref[...] = y.astype(o_ref.dtype)             # single writeback


def conv_relu_pallas(x_nhwc, w_taps, b, ksize, pad):
    """Conv2d(stride=1, 'same') + ReLU.  x: (N,H,W,Cin) bf16 -> (N,H,W,Cout) bf16."""
    n, h, w, cin = x_nhwc.shape
    kk, cin_w, cout = w_taps.shape
    assert kk == ksize * ksize and cin_w == cin
    # Lane-aligned tap grouping only (safe concat); conv2 (Cin=64) stays g=1.
    group = max(1, 256 // cin) if cin % 128 == 0 else 1
    hp, wp = h + 2 * pad, w + 2 * pad
    xp = jnp.pad(x_nhwc, ((0, 0), (pad, pad), (pad, pad), (0, 0))) if pad else x_nhwc
    kern = functools.partial(_conv_relu_kernel, ksize=ksize, group=group, H=h, W=w)
    out = pl.pallas_call(
        kern,
        out_shape=jax.ShapeDtypeStruct((n, h * w, cout), jnp.bfloat16),
        grid=(n,),
        in_specs=[
            pl.BlockSpec((None, hp, wp, cin), lambda i: (i, 0, 0, 0)),
            pl.BlockSpec((kk, cin, cout), lambda i: (0, 0, 0)),
            pl.BlockSpec((1, cout), lambda i: (0, 0)),
        ],
        out_specs=pl.BlockSpec((None, h * w, cout), lambda i: (i, 0, 0)),
        compiler_params=pltpu.CompilerParams(
            # grid over batch -> shards images across the 2 TCs on v7x.
            dimension_semantics=("parallel",),
            vmem_limit_bytes=32 * 1024 * 1024),
    )(xp, w_taps, b)
    return out.reshape(n, h, w, cout)


def _stack_conv1_taps(x_nhwc, ksize, pad, kpad):
    """conv1 prep (Cin=1): stack the k*k taps as channels so the kernel runs a
    single MXU matmul instead of 25 VPU broadcast-FMAs (review item 4).
    Padding the tap dim to `kpad` keeps the contraction lane-friendly."""
    n, h, w, _ = x_nhwc.shape
    xp = jnp.pad(x_nhwc[..., 0], ((0, 0), (pad, pad), (pad, pad)))
    taps = [xp[:, dy:dy + h, dx:dx + w]
            for dy in range(ksize) for dx in range(ksize)]
    x_taps = jnp.stack(taps, axis=-1)                       # (N, H, W, k*k)
    return jnp.pad(x_taps, ((0, 0), (0, 0), (0, 0), (0, kpad - ksize * ksize)))


# ------------------------------ maxpool (glue) ------------------------------ #

def maxpool2x2(x):
    """MaxPool2d(2,2) on NHWC; XLA fuses it with the next layer's padding.
    TODO(synk): fuse into the conv kernel finalize at real scale."""
    n, h, w, c = x.shape
    return jnp.max(x.reshape(n, h // 2, 2, w // 2, 2, c), axis=(2, 4))


# --------------------- fused FC stack + heads kernel ------------------------ #

def _fc_stack_kernel(x_ref, w1_ref, b1_ref, w2_ref, b2_ref, w3_ref, b3_ref,
                     wh_ref, bh_ref, feat_ref, head_ref, acc_ref):
    """K-tiled fc1 with fp32 accumulator; fc2/fc3/heads fused into finalize."""
    k = pl.program_id(0)

    @pl.when(k == 0)
    def _():
        acc_ref[...] = jnp.zeros_like(acc_ref)

    acc_ref[...] += jnp.dot(x_ref[...], w1_ref[...],
                            preferred_element_type=jnp.float32)

    @pl.when(k == pl.num_programs(0) - 1)
    def _():
        h1 = jnp.maximum(acc_ref[...] + b1_ref[...], 0.0).astype(jnp.bfloat16)
        h2 = jnp.dot(h1, w2_ref[...], preferred_element_type=jnp.float32)
        h2 = jnp.maximum(h2 + b2_ref[...], 0.0).astype(jnp.bfloat16)
        f = jnp.dot(h2, w3_ref[...], preferred_element_type=jnp.float32)
        f = jnp.maximum(f + b3_ref[...], 0.0)
        feat_ref[...] = f.astype(feat_ref.dtype)
        heads = jnp.dot(f.astype(jnp.bfloat16), wh_ref[...],
                        preferred_element_type=jnp.float32) + bh_ref[...]
        head_ref[...] = heads.astype(head_ref.dtype)


def fc_head_pallas(x_flat, p, num_body_parts):
    """features, merged-head logits from the flattened conv output.

    All weights are already padded / merged at init (review item 8); only the
    activation is padded here (batch rows -> multiple of 8 sublanes).
    Callers should batch both Siamese branches into one call for MXU M-util.
    TODO(synk): on v7x at real scale, split fc1's N over both TensorCores.
    """
    M, K = x_flat.shape
    tk = _choose_fc_tile(K)
    Kp = _round_up(K, tk)
    assert p['fc1_w'].shape[0] == Kp
    Mp = _round_up(max(M, 8), 8)
    xb = jnp.zeros((Mp, Kp), jnp.bfloat16).at[:M, :K].set(
        x_flat.astype(jnp.bfloat16))

    nk = Kp // tk
    if nk > 2:
        w1_spec = pl.BlockSpec((tk, 512), lambda k: (k, 0),
                               pipeline_mode=pl.Buffered(3))
    else:
        w1_spec = pl.BlockSpec((tk, 512), lambda k: (k, 0))

    feats, heads = pl.pallas_call(
        _fc_stack_kernel,
        out_shape=(jax.ShapeDtypeStruct((Mp, 128), jnp.float32),
                   jax.ShapeDtypeStruct((Mp, 128), jnp.float32)),
        grid=(nk,),
        in_specs=[
            pl.BlockSpec((Mp, tk), lambda k: (0, k)),
            w1_spec,
            pl.BlockSpec((1, 512), lambda k: (0, 0)),
            pl.BlockSpec((512, 256), lambda k: (0, 0)),
            pl.BlockSpec((1, 256), lambda k: (0, 0)),
            pl.BlockSpec((256, 128), lambda k: (0, 0)),
            pl.BlockSpec((1, 128), lambda k: (0, 0)),
            pl.BlockSpec((128, 128), lambda k: (0, 0)),
            pl.BlockSpec((1, 128), lambda k: (0, 0)),
        ],
        out_specs=(pl.BlockSpec((Mp, 128), lambda k: (0, 0)),
                   pl.BlockSpec((Mp, 128), lambda k: (0, 0))),
        scratch_shapes=[pltpu.VMEM((Mp, 512), jnp.float32)],
        compiler_params=pltpu.CompilerParams(
            dimension_semantics=("arbitrary",),
            vmem_limit_bytes=32 * 1024 * 1024),
    )(xb, p['fc1_w'], p['fc1_b'], p['fc2_w'], p['fc2_b'],
      p['fc3_w'], p['fc3_b'], p['head_w'], p['head_b'])

    nh = 2 + num_body_parts
    return feats[:M], heads[:M, :2], heads[:M, 2:nh]


# ------------------------------ model params -------------------------------- #

def init_params(key, num_body_parts, cfeat, hf, wf):
    """Synthetic PyTorch-style uniform(-1/sqrt(fan_in)) params, fully
    preprocessed for the kernels (no per-forward weight reshaping):
      * conv weights are tap-major (k*k, Cin, Cout); conv1 is stored as a
        single 32-channel tap-stacked matmul weight (rows 25..31 zero).
      * fc1_w rows are permuted once from PyTorch's NCHW flatten order to the
        NHWC flatten order used at runtime, and zero-padded to the K tile.
      * the two classifier heads are merged into one lane-dense (128, 128)
        matmul (cols 0:2 = normal/abnormal, 2:2+nb = body part).
    """
    def uni(k, shape, fan_in):
        bound = 1.0 / math.sqrt(fan_in)
        return jax.random.uniform(k, shape, jnp.float32, -bound, bound)

    keys = jax.random.split(key, 16)
    p = {}

    c1 = uni(keys[0], (25, 64), 25 * 1).astype(jnp.bfloat16)     # (k*k, Cout), Cin=1
    p['c1_w'] = jnp.zeros((1, 32, 64), jnp.bfloat16).at[0, :25, :].set(c1)
    p['c1_b'] = uni(keys[1], (1, 64), 25 * 1)
    p['c2_w'] = uni(keys[2], (25, 64, 128), 25 * 64).astype(jnp.bfloat16)
    p['c2_b'] = uni(keys[3], (1, 128), 25 * 64)
    p['c3_w'] = uni(keys[4], (9, 128, 256), 9 * 128).astype(jnp.bfloat16)
    p['c3_b'] = uni(keys[5], (1, 256), 9 * 128)

    flat_dim = cfeat * hf * wf
    tk = _choose_fc_tile(flat_dim)
    kp = _round_up(flat_dim, tk)
    w1_pt = uni(keys[6], (flat_dim, 512), flat_dim)              # (c,h,w) row order
    w1_nhwc = (w1_pt.reshape(cfeat, hf, wf, 512)
               .transpose(1, 2, 0, 3)                            # -> (h,w,c) rows
               .reshape(flat_dim, 512).astype(jnp.bfloat16))
    p['fc1_w'] = jnp.zeros((kp, 512), jnp.bfloat16).at[:flat_dim, :].set(w1_nhwc)
    p['fc1_b'] = uni(keys[7], (1, 512), flat_dim)
    p['fc2_w'] = uni(keys[8], (512, 256), 512).astype(jnp.bfloat16)
    p['fc2_b'] = uni(keys[9], (1, 256), 512)
    p['fc3_w'] = uni(keys[10], (256, 128), 256).astype(jnp.bfloat16)
    p['fc3_b'] = uni(keys[11], (1, 128), 256)

    na_w = uni(keys[12], (128, 2), 128)
    na_b = uni(keys[13], (2,), 128)
    bp_w = uni(keys[14], (128, num_body_parts), 128)
    bp_b = uni(keys[15], (num_body_parts,), 128)
    p['head_w'] = (jnp.zeros((128, 128), jnp.bfloat16)
                   .at[:, :2].set(na_w.astype(jnp.bfloat16))
                   .at[:, 2:2 + num_body_parts].set(bp_w.astype(jnp.bfloat16)))
    p['head_b'] = (jnp.zeros((1, 128), jnp.float32)
                   .at[0, :2].set(na_b)
                   .at[0, 2:2 + num_body_parts].set(bp_b))
    return p


# -------------------------------- forward ----------------------------------- #

def siamese_forward(params, x_nchw, num_body_parts):
    """Matches SiameseNetwork.forward: (features, normal_abnormal, body_part)."""
    x = jnp.transpose(x_nchw, (0, 2, 3, 1)).astype(jnp.bfloat16)   # NCHW -> NHWC
    # conv1: tap-stacked single MXU matmul (k=5, pad=2 folded into the stack).
    x1 = _stack_conv1_taps(x, ksize=5, pad=2, kpad=32)
    x = conv_relu_pallas(x1, params['c1_w'], params['c1_b'], ksize=1, pad=0)
    x = maxpool2x2(x)
    x = conv_relu_pallas(x, params['c2_w'], params['c2_b'], ksize=5, pad=2)
    x = maxpool2x2(x)
    x = conv_relu_pallas(x, params['c3_w'], params['c3_b'], ksize=3, pad=1)
    x = maxpool2x2(x)
    n = x.shape[0]
    x_flat = x.reshape(n, -1)        # NHWC flatten; fc1_w rows permuted at init
    return fc_head_pallas(x_flat, params, num_body_parts)


if __name__ == "__main__":
    num_body_parts = 4
    batch, in_ch, hw = 2, 1, 16            # small analogue of (B, 1, 224, 224)
    hf = wf = hw // 8                      # final feature map 2x2 (orig 28x28)

    key = jax.random.PRNGKey(0)
    pkey, xkey = jax.random.split(key)
    params = init_params(pkey, num_body_parts, 256, hf, wf)
    x = jax.random.normal(xkey, (batch, in_ch, hw, hw), jnp.float32)

    fwd = jax.jit(functools.partial(siamese_forward, num_body_parts=num_body_parts))
    feats, na_pred, bp_pred = fwd(params, x)
    jax.block_until_ready((feats, na_pred, bp_pred))

    assert feats.shape == (batch, 128)
    assert na_pred.shape == (batch, 2)
    assert bp_pred.shape == (batch, num_body_parts)
    assert bool(jnp.all(jnp.isfinite(feats)))
    print("KERNEL_OK")
</pallas_src>

<mosaic_0001>
module attributes {stable_mosaic.version = 11 : i64} {
  func.func @_conv_relu_kernel(%arg0: i32, %arg1: memref<1x16x16x32xbf16, #tpu.memory_space<vmem>>, %arg2: memref<1x32x64xbf16, #tpu.memory_space<vmem>>, %arg3: memref<1x64xf32, #tpu.memory_space<vmem>>, %arg4: memref<1x256x64xbf16, #tpu.memory_space<vmem>>) attributes {dimension_semantics = [#tpu.dimension_semantics<parallel>], iteration_bounds = array<i64: 2>, scalar_prefetch = 0 : i64, scratch_operands = 0 : i64, tpu.core_type = #tpu.core_type<tc>, window_params = [{transform_indices = @transform_0, window_bounds = array<i64: 1, 16, 16, 32>}, {pipeline_mode = #tpu.pipeline_mode<synchronous>, transform_indices = @transform_1, window_bounds = array<i64: 1, 32, 64>}, {pipeline_mode = #tpu.pipeline_mode<synchronous>, transform_indices = @transform_2, window_bounds = array<i64: 1, 64>}, {transform_indices = @transform_3, window_bounds = array<i64: 1, 256, 64>}]} {
    %c0 = arith.constant 0 : index
    %c0_0 = arith.constant 0 : index
    %c0_1 = arith.constant 0 : index
    %c0_2 = arith.constant 0 : index
    %0 = vector.load %arg1[%c0, %c0_0, %c0_1, %c0_2] : memref<1x16x16x32xbf16, #tpu.memory_space<vmem>>, vector<1x16x16x32xbf16>
    %1 = vector.shape_cast %0 : vector<1x16x16x32xbf16> to vector<16x16x32xbf16>
    %2 = vector.shape_cast %1 : vector<16x16x32xbf16> to vector<256x32xbf16>
    %c0_3 = arith.constant 0 : index
    %c0_4 = arith.constant 0 : index
    %c0_5 = arith.constant 0 : index
    %3 = vector.load %arg2[%c0_3, %c0_4, %c0_5] : memref<1x32x64xbf16, #tpu.memory_space<vmem>>, vector<1x32x64xbf16>
    %4 = vector.shape_cast %3 : vector<1x32x64xbf16> to vector<32x64xbf16>
    %cst = arith.constant dense<0.000000e+00> : vector<256x64xf32>
    %5 = tpu.matmul %2, %4, %cst {dimension_numbers = #tpu.dot_dimension_numbers<[1], [0], [0], [1], [0, 0, 1, 1], [], []>} : vector<256x32xbf16>, vector<32x64xbf16>, vector<256x64xf32> -> vector<256x64xf32>
    %c0_6 = arith.constant 0 : index
    %c0_7 = arith.constant 0 : index
    %6 = vector.load %arg3[%c0_6, %c0_7] : memref<1x64xf32, #tpu.memory_space<vmem>>, vector<1x64xf32>
    %7 = vector.broadcast %6 : vector<1x64xf32> to vector<256x64xf32>
    %8 = arith.addf %5, %7 : vector<256x64xf32>
    %cst_8 = arith.constant 0.000000e+00 : f32
    %9 = vector.broadcast %cst_8 : f32 to vector<256x64xf32>
    %10 = arith.maximumf %8, %9 : vector<256x64xf32>
    %11 = arith.truncf %10 : vector<256x64xf32> to vector<256x64xbf16>
    %c0_9 = arith.constant 0 : index
    %c0_10 = arith.constant 0 : index
    %c0_11 = arith.constant 0 : index
    %12 = vector.load %arg4[%c0_9, %c0_10, %c0_11] : memref<1x256x64xbf16, #tpu.memory_space<vmem>>, vector<1x256x64xbf16>
    %13 = vector.shape_cast %12 : vector<1x256x64xbf16> to vector<256x64xbf16>
    %14 = vector.shape_cast %11 : vector<256x64xbf16> to vector<1x256x64xbf16>
    tpu.vector_store %arg4[%c0_9, %c0_10, %c0_11], %14 {strides = array<i32>} : memref<1x256x64xbf16, #tpu.memory_space<vmem>>, vector<1x256x64xbf16>,
    return
  }
  func.func @transform_0(%arg0: i32) -> (i32, i32, i32, i32) {
    %c0_i32 = arith.constant 0 : i32
    %c0_i32_0 = arith.constant 0 : i32
    %c0_i32_1 = arith.constant 0 : i32
    %c0_i32_2 = arith.constant 0 : i32
    return %arg0, %c0_i32, %c0_i32_0, %c0_i32_1 : i32, i32, i32, i32
  }
  func.func @transform_1(%arg0: i32) -> (i32, i32, i32) {
    %c0_i32 = arith.constant 0 : i32
    %c0_i32_0 = arith.constant 0 : i32
    %c0_i32_1 = arith.constant 0 : i32
    %c0_i32_2 = arith.constant 0 : i32
    return %c0_i32, %c0_i32_0, %c0_i32_1 : i32, i32, i32
  }
  func.func @transform_2(%arg0: i32) -> (i32, i32) {
    %c0_i32 = arith.constant 0 : i32
    %c0_i32_0 = arith.constant 0 : i32
    %c0_i32_1 = arith.constant 0 : i32
    return %c0_i32, %c0_i32_0 : i32, i32
  }
  func.func @transform_3(%arg0: i32) -> (i32, i32, i32) {
    %c0_i32 = arith.constant 0 : i32
    %c0_i32_0 = arith.constant 0 : i32
    %c0_i32_1 = arith.constant 0 : i32
    return %arg0, %c0_i32, %c0_i32_0 : i32, i32, i32
  }
}

module attributes {stable_mosaic.version = 11 : i64} {
  func.func @_conv_relu_kernel(%arg0: i32, %arg1: memref<1x12x12x64xbf16, #tpu.memory_space<vmem>>, %arg2: memref<25x64x128xbf16, #tpu.memory_space<vmem>>, %arg3: memref<1x128xf32, #tpu.memory_space<vmem>>, %arg4: memref<1x64x128xbf16, #tpu.memory_space<vmem>>) attributes {dimension_semantics = [#tpu.dimension_semantics<parallel>], iteration_bounds = array<i64: 2>, scalar_prefetch = 0 : i64, scratch_operands = 0 : i64, tpu.core_type = #tpu.core_type<tc>, window_params = [{transform_indices = @transform_0, window_bounds = array<i64: 1, 12, 12, 64>}, {pipeline_mode = #tpu.pipeline_mode<synchronous>, transform_indices = @transform_1, window_bounds = array<i64: 25, 64, 128>}, {pipeline_mode = #tpu.pipeline_mode<synchronous>, transform_indices = @transform_2, window_bounds = array<i64: 1, 128>}, {transform_indices = @transform_3, window_bounds = array<i64: 1, 64, 128>}]} {
    %c0 = arith.constant 0 : index
    %c0_0 = arith.constant 0 : index
    %c0_1 = arith.constant 0 : index
    %c0_2 = arith.constant 0 : index
    %0 = vector.load %arg1[%c0, %c0_0, %c0_1, %c0_2] : memref<1x12x12x64xbf16, #tpu.memory_space<vmem>>, vector<1x8x8x64xbf16>
    %1 = vector.shape_cast %0 : vector<1x8x8x64xbf16> to vector<8x8x64xbf16>
    %2 = vector.shape_cast %1 : vector<8x8x64xbf16> to vector<64x64xbf16>
    %c0_3 = arith.constant 0 : index
    %c0_4 = arith.constant 0 : index
    %c0_5 = arith.constant 0 : index
    %3 = vector.load %arg2[%c0_3, %c0_4, %c0_5] : memref<25x64x128xbf16, #tpu.memory_space<vmem>>, vector<1x64x128xbf16>
    %4 = vector.shape_cast %3 : vector<1x64x128xbf16> to vector<64x128xbf16>
    %cst = arith.constant dense<0.000000e+00> : vector<64x128xf32>
    %5 = tpu.matmul %2, %4, %cst {dimension_numbers = #tpu.dot_dimension_numbers<[1], [0], [0], [1], [0, 0, 1, 1], [], []>} : vector<64x64xbf16>, vector<64x128xbf16>, vector<64x128xf32> -> vector<64x128xf32>
    %c0_6 = arith.constant 0 : index
    %c0_7 = arith.constant 0 : index
    %c1 = arith.constant 1 : index
    %c0_8 = arith.constant 0 : index
    %6 = vector.load %arg1[%c0_6, %c0_7, %c1, %c0_8] : memref<1x12x12x64xbf16, #tpu.memory_space<vmem>>, vector<1x8x8x64xbf16>
    %7 = vector.shape_cast %6 : vector<1x8x8x64xbf16> to vector<8x8x64xbf16>
    %8 = vector.shape_cast %7 : vector<8x8x64xbf16> to vector<64x64xbf16>
    %c1_9 = arith.constant 1 : index
    %c0_10 = arith.constant 0 : index
    %c0_11 = arith.constant 0 : index
    %9 = vector.load %arg2[%c1_9, %c0_10, %c0_11] : memref<25x64x128xbf16, #tpu.memory_space<vmem>>, vector<1x64x128xbf16>
    %10 = vector.shape_cast %9 : vector<1x64x128xbf16> to vector<64x128xbf16>
    %cst_12 = arith.constant dense<0.000000e+00> : vector<64x128xf32>
    %11 = tpu.matmul %8, %10, %cst_12 {dimension_numbers = #tpu.dot_dimension_numbers<[1], [0], [0], [1], [0, 0, 1, 1], [], []>} : vector<64x64xbf16>, vector<64x128xbf16>, vector<64x128xf32> -> vector<64x128xf32>
    %12 = arith.addf %5, %11 : vector<64x128xf32>
    %c0_13 = arith.constant 0 : index
    %c0_14 = arith.constant 0 : index
    %c2 = arith.constant 2 : index
    %c0_15 = arith.constant 0 : index
    %13 = vector.load %arg1[%c0_13, %c0_14, %c2, %c0_15] : memref<1x12x12x64xbf16, #tpu.memory_space<vmem>>, vector<1x8x8x64xbf16>
    %14 = vector.shape_cast %13 : vector<1x8x8x64xbf16> to vector<8x8x64xbf16>
    %15 = vector.shape_cast %14 : vector<8x8x64xbf16> to vector<64x64xbf16>
    %c2_16 = arith.constant 2 : index
    %c0_17 = arith.constant 0 : index
    %c0_18 = arith.constant 0 : index
    %16 = vector.load %arg2[%c2_16, %c0_17, %c0_18] : memref<25x64x128xbf16, #tpu.memory_space<vmem>>, vector<1x64x128xbf16>
    %17 = vector.shape_cast %16 : vector<1x64x128xbf16> to vector<64x128xbf16>
    %cst_19 = arith.constant dense<0.000000e+00> : vector<64x128xf32>
    %18 = tpu.matmul %15, %17, %cst_19 {dimension_numbers = #tpu.dot_dimension_numbers<[1], [0], [0], [1], [0, 0, 1, 1], [], []>} : vector<64x64xbf16>, vector<64x128xbf16>, vector<64x128xf32> -> vector<64x128xf32>
    %19 = arith.addf %12, %18 : vector<64x128xf32>
    %c0_20 = arith.constant 0 : index
    %c0_21 = arith.constant 0 : index
    %c3 = arith.constant 3 : index
    %c0_22 = arith.constant 0 : index
    %20 = vector.load %arg1[%c0_20, %c0_21, %c3, %c0_22] : memref<1x12x12x64xbf16, #tpu.memory_space<vmem>>, vector<1x8x8x64xbf16>
    %21 = vector.shape_cast %20 : vector<1x8x8x64xbf16> to vector<8x8x64xbf16>
    %22 = vector.shape_cast %21 : vector<8x8x64xbf16> to vector<64x64xbf16>
    %c3_23 = arith.constant 3 : index
    %c0_24 = arith.constant 0 : index
    %c0_25 = arith.constant 0 : index
    %23 = vector.load %arg2[%c3_23, %c0_24, %c0_25] : memref<25x64x128xbf16, #tpu.memory_space<vmem>>, vector<1x64x128xbf16>
    %24 = vector.shape_cast %23 : vector<1x64x128xbf16> to vector<64x128xbf16>
    %cst_26 = arith.constant dense<0.000000e+00> : vector<64x128xf32>
    %25 = tpu.matmul %22, %24, %cst_26 {dimension_numbers = #tpu.dot_dimension_numbers<[1], [0], [0], [1], [0, 0, 1, 1], [], []>} : vector<64x64xbf16>, vector<64x128xbf16>, vector<64x128xf32> -> vector<64x128xf32>
    %26 = arith.addf %19, %25 : vector<64x128xf32>
    %c0_27 = arith.constant 0 : index
    %c0_28 = arith.constant 0 : index
    %c4 = arith.constant 4 : index
    %c0_29 = arith.constant 0 : index
    %27 = vector.load %arg1[%c0_27, %c0_28, %c4, %c0_29] : memref<1x12x12x64xbf16, #tpu.memory_space<vmem>>, vector<1x8x8x64xbf16>
    %28 = vector.shape_cast %27 : vector<1x8x8x64xbf16> to vector<8x8x64xbf16>
    %29 = vector.shape_cast %28 : vector<8x8x64xbf16> to vector<64x64xbf16>
    %c4_30 = arith.constant 4 : index
    %c0_31 = arith.constant 0 : index
    %c0_32 = arith.constant 0 : index
    %30 = vector.load %arg2[%c4_30, %c0_31, %c0_32] : memref<25x64x128xbf16, #tpu.memory_space<vmem>>, vector<1x64x128xbf16>
    %31 = vector.shape_cast %30 : vector<1x64x128xbf16> to vector<64x128xbf16>
    %cst_33 = arith.constant dense<0.000000e+00> : vector<64x128xf32>
    %32 = tpu.matmul %29, %31, %cst_33 {dimension_numbers = #tpu.dot_dimension_numbers<[1], [0], [0], [1], [0, 0, 1, 1], [], []>} : vector<64x64xbf16>, vector<64x128xbf16>, vector<64x128xf32> -> vector<64x128xf32>
    %33 = arith.addf %26, %32 : vector<64x128xf32>
    %c0_34 = arith.constant 0 : index
    %c1_35 = arith.constant 1 : index
    %c0_36 = arith.constant 0 : index
    %c0_37 = arith.constant 0 : index
    %34 = vector.load %arg1[%c0_34, %c1_35, %c0_36, %c0_37] : memref<1x12x12x64xbf16, #tpu.memory_space<vmem>>, vector<1x8x8x64xbf16>
    %35 = vector.shape_cast %34 : vector<1x8x8x64xbf16> to vector<8x8x64xbf16>
    %36 = vector.shape_cast %35 : vector<8x8x64xbf16> to vector<64x64xbf16>
    %c5 = arith.constant 5 : index
    %c0_38 = arith.constant 0 : index
    %c0_39 = arith.constant 0 : index
    %37 = vector.load %arg2[%c5, %c0_38, %c0_39] : memref<25x64x128xbf16, #tpu.memory_space<vmem>>, vector<1x64x128xbf16>
    %38 = vector.shape_cast %37 : vector<1x64x128xbf16> to vector<64x128xbf16>
    %cst_40 = arith.constant dense<0.000000e+00> : vector<64x128xf32>
    %39 = tpu.matmul %36, %38, %cst_40 {dimension_numbers = #tpu.dot_dimension_numbers<[1], [0], [0], [1], [0, 0, 1, 1], [], []>} : vector<64x64xbf16>, vector<64x128xbf16>, vector<64x128xf32> -> vector<64x128xf32>
    %40 = arith.addf %33, %39 : vector<64x128xf32>
    %c0_41 = arith.constant 0 : index
    %c1_42 = arith.constant 1 : index
    %c1_43 = arith.constant 1 : index
    %c0_44 = arith.constant 0 : index
    %41 = vector.load %arg1[%c0_41, %c1_42, %c1_43, %c0_44] : memref<1x12x12x64xbf16, #tpu.memory_space<vmem>>, vector<1x8x8x64xbf16>
    %42 = vector.shape_cast %41 : vector<1x8x8x64xbf16> to vector<8x8x64xbf16>
    %43 = vector.shape_cast %42 : vector<8x8x64xbf16> to vector<64x64xbf16>
    %c6 = arith.constant 6 : index
    %c0_45 = arith.constant 0 : index
    %c0_46 = arith.constant 0 : index
    %44 = vector.load %arg2[%c6, %c0_45, %c0_46] : memref<25x64x128xbf16, #tpu.memory_space<vmem>>, vector<1x64x128xbf16>
    %45 = vector.shape_cast %44 : vector<1x64x128xbf16> to vector<64x128xbf16>
    %cst_47 = arith.constant dense<0.000000e+00> : vector<64x128xf32>
    %46 = tpu.matmul %43, %45, %cst_47 {dimension_numbers = #tpu.dot_dimension_numbers<[1], [0], [0], [1], [0, 0, 1, 1], [], []>} : vector<64x64xbf16>, vector<64x128xbf16>, vector<64x128xf32> -> vector<64x128xf32>
    %47 = arith.addf %40, %46 : vector<64x128xf32>
    %c0_48 = arith.constant 0 : index
    %c1_49 = arith.constant 1 : index
    %c2_50 = arith.constant 2 : index
    %c0_51 = arith.constant 0 : index
    %48 = vector.load %arg1[%c0_48, %c1_49, %c2_50, %c0_51] : memref<1x12x12x64xbf16, #tpu.memory_space<vmem>>, vector<1x8x8x64xbf16>
    %49 = vector.shape_cast %48 : vector<1x8x8x64xbf16> to vector<8x8x64xbf16>
    %50 = vector.shape_cast %49 : vector<8x8x64xbf16> to vector<64x64xbf16>
    %c7 = arith.constant 7 : index
    %c0_52 = arith.constant 0 : index
    %c0_53 = arith.constant 0 : index
    %51 = vector.load %arg2[%c7, %c0_52, %c0_53] : memref<25x64x128xbf16, #tpu.memory_space<vmem>>, vector<1x64x128xbf16>
    %52 = vector.shape_cast %51 : vector<1x64x128xbf16> to vector<64x128xbf16>
    %cst_54 = arith.constant dense<0.000000e+00> : vector<64x128xf32>
    %53 = tpu.matmul %50, %52, %cst_54 {dimension_numbers = #tpu.dot_dimension_numbers<[1], [0], [0], [1], [0, 0, 1, 1], [], []>} : vector<64x64xbf16>, vector<64x128xbf16>, vector<64x128xf32> -> vector<64x128xf32>
    %54 = arith.addf %47, %53 : vector<64x128xf32>
    %c0_55 = arith.constant 0 : index
    %c1_56 = arith.constant 1 : index
    %c3_57 = arith.constant 3 : index
    %c0_58 = arith.constant 0 : index
    %55 = vector.load %arg1[%c0_55, %c1_56, %c3_57, %c0_58] : memref<1x12x12x64xbf16, #tpu.memory_space<vmem>>, vector<1x8x8x64xbf16>
    %56 = vector.shape_cast %55 : vector<1x8x8x64xbf16> to vector<8x8x64xbf16>
    %57 = vector.shape_cast %56 : vector<8x8x64xbf16> to vector<64x64xbf16>
    %c8 = arith.constant 8 : index
    %c0_59 = arith.constant 0 : index
    %c0_60 = arith.constant 0 : index
    %58 = vector.load %arg2[%c8, %c0_59, %c0_60] : memref<25x64x128xbf16, #tpu.memory_space<vmem>>, vector<1x64x128xbf16>
    %59 = vector.shape_cast %58 : vector<1x64x128xbf16> to vector<64x128xbf16>
    %cst_61 = arith.constant dense<0.000000e+00> : vector<64x128xf32>
    %60 = tpu.matmul %57, %59, %cst_61 {dimension_numbers = #tpu.dot_dimension_numbers<[1], [0], [0], [1], [0, 0, 1, 1], [], []>} : vector<64x64xbf16>, vector<64x128xbf16>, vector<64x128xf32> -> vector<64x128xf32>
    %61 = arith.addf %54, %60 : vector<64x128xf32>
    %c0_62 = arith.constant 0 : index
    %c1_63 = arith.constant 1 : index
    %c4_64 = arith.constant 4 : index
    %c0_65 = arith.constant 0 : index
    %62 = vector.load %arg1[%c0_62, %c1_63, %c4_64, %c0_65] : memref<1x12x12x64xbf16, #tpu.memory_space<vmem>>, vector<1x8x8x64xbf16>
    %63 = vector.shape_cast %62 : vector<1x8x8x64xbf16> to vector<8x8x64xbf16>
    %64 = vector.shape_cast %63 : vector<8x8x64xbf16> to vector<64x64xbf16>
    %c9 = arith.constant 9 : index
    %c0_66 = arith.constant 0 : index
    %c0_67 = arith.constant 0 : index
    %65 = vector.load %arg2[%c9, %c0_66, %c0_67] : memref<25x64x128xbf16, #tpu.memory_space<vmem>>, vector<1x64x128xbf16>
    %66 = vector.shape_cast %65 : vector<1x64x128xbf16> to vector<64x128xbf16>
    %cst_68 = arith.constant dense<0.000000e+00> : vector<64x128xf32>
    %67 = tpu.matmul %64, %66, %cst_68 {dimension_numbers = #tpu.dot_dimension_numbers<[1], [0], [0], [1], [0, 0, 1, 1], [], []>} : vector<64x64xbf16>, vector<64x128xbf16>, vector<64x128xf32> -> vector<64x128xf32>
    %68 = arith.addf %61, %67 : vector<64x128xf32>
    %c0_69 = arith.constant 0 : index
    %c2_70 = arith.constant 2 : index
    %c0_71 = arith.constant 0 : index
    %c0_72 = arith.constant 0 : index
    %69 = vector.load %arg1[%c0_69, %c2_70, %c0_71, %c0_72] : memref<1x12x12x64xbf16, #tpu.memory_space<vmem>>, vector<1x8x8x64xbf16>
    %70 = vector.shape_cast %69 : vector<1x8x8x64xbf16> to vector<8x8x64xbf16>
    %71 = vector.shape_cast %70 : vector<8x8x64xbf16> to vector<64x64xbf16>
    %c10 = arith.constant 10 : index
    %c0_73 = arith.constant 0 : index
    %c0_74 = arith.constant 0 : index
    %72 = vector.load %arg2[%c10, %c0_73, %c0_74] : memref<25x64x128xbf16, #tpu.memory_space<vmem>>, vector<1x64x128xbf16>
    %73 = vector.shape_cast %72 : vector<1x64x128xbf16> to vector<64x128xbf16>
    %cst_75 = arith.constant dense<0.000000e+00> : vector<64x128xf32>
    %74 = tpu.matmul %71, %73, %cst_75 {dimension_numbers = #tpu.dot_dimension_numbers<[1], [0], [0], [1], [0, 0, 1, 1], [], []>} : vector<64x64xbf16>, vector<64x128xbf16>, vector<64x128xf32> -> vector<64x128xf32>
    %75 = arith.addf %68, %74 : vector<64x128xf32>
    %c0_76 = arith.constant 0 : index
    %c2_77 = arith.constant 2 : index
    %c1_78 = arith.constant 1 : index
    %c0_79 = arith.constant 0 : index
    %76 = vector.load %arg1[%c0_76, %c2_77, %c1_78, %c0_79] : memref<1x12x12x64xbf16, #tpu.memory_space<vmem>>, vector<1x8x8x64xbf16>
    %77 = vector.shape_cast %76 : vector<1x8x8x64xbf16> to vector<8x8x64xbf16>
    %78 = vector.shape_cast %77 : vector<8x8x64xbf16> to vector<64x64xbf16>
    %c11 = arith.constant 11 : index
    %c0_80 = arith.constant 0 : index
    %c0_81 = arith.constant 0 : index
    %79 = vector.load %arg2[%c11, %c0_80, %c0_81] : memref<25x64x128xbf16, #tpu.memory_space<vmem>>, vector<1x64x128xbf16>
    %80 = vector.shape_cast %79 : vector<1x64x128xbf16> to vector<64x128xbf16>
    %cst_82 = arith.constant dense<0.000000e+00> : vector<64x128xf32>
    %81 = tpu.matmul %78, %80, %cst_82 {dimension_numbers = #tpu.dot_dimension_numbers<[1], [0], [0], [1], [0, 0, 1, 1], [], []>} : vector<64x64xbf16>, vector<64x128xbf16>, vector<64x128xf32> -> vector<64x128xf32>
    %82 = arith.addf %75, %81 : vector<64x128xf32>
    %c0_83 = arith.constant 0 : index
    %c2_84 = arith.constant 2 : index
    %c2_85 = arith.constant 2 : index
    %c0_86 = arith.constant 0 : index
    %83 = vector.load %arg1[%c0_83, %c2_84, %c2_85, %c0_86] : memref<1x12x12x64xbf16, #tpu.memory_space<vmem>>, vector<1x8x8x64xbf16>
    %84 = vector.shape_cast %83 : vector<1x8x8x64xbf16> to vector<8x8x64xbf16>
    %85 = vector.shape_cast %84 : vector<8x8x64xbf16> to vector<64x64xbf16>
    %c12 = arith.constant 12 : index
    %c0_87 = arith.constant 0 : index
    %c0_88 = arith.constant 0 : index
    %86 = vector.load %arg2[%c12, %c0_87, %c0_88] : memref<25x64x128xbf16, #tpu.memory_space<vmem>>, vector<1x64x128xbf16>
    %87 = vector.shape_cast %86 : vector<1x64x128xbf16> to vector<64x128xbf16>
    %cst_89 = arith.constant dense<0.000000e+00> : vector<64x128xf32>
    %88 = tpu.matmul %85, %87, %cst_89 {dimension_numbers = #tpu.dot_dimension_numbers<[1], [0], [0], [1], [0, 0, 1, 1], [], []>} : vector<64x64xbf16>, vector<64x128xbf16>, vector<64x128xf32> -> vector<64x128xf32>
    %89 = arith.addf %82, %88 : vector<64x128xf32>
    %c0_90 = arith.constant 0 : index
    %c2_91 = arith.constant 2 : index
    %c3_92 = arith.constant 3 : index
    %c0_93 = arith.constant 0 : index
    %90 = vector.load %arg1[%c0_90, %c2_91, %c3_92, %c0_93] : memref<1x12x12x64xbf16, #tpu.memory_space<vmem>>, vector<1x8x8x64xbf16>
    %91 = vector.shape_cast %90 : vector<1x8x8x64xbf16> to vector<8x8x64xbf16>
    %92 = vector.shape_cast %91 : vector<8x8x64xbf16> to vector<64x64xbf16>
    %c13 = arith.constant 13 : index
    %c0_94 = arith.constant 0 : index
    %c0_95 = arith.constant 0 : index
    %93 = vector.load %arg2[%c13, %c0_94, %c0_95] : memref<25x64x128xbf16, #tpu.memory_space<vmem>>, vector<1x64x128xbf16>
    %94 = vector.shape_cast %93 : vector<1x64x128xbf16> to vector<64x128xbf16>
    %cst_96 = arith.constant dense<0.000000e+00> : vector<64x128xf32>
    %95 = tpu.matmul %92, %94, %cst_96 {dimension_numbers = #tpu.dot_dimension_numbers<[1], [0], [0], [1], [0, 0, 1, 1], [], []>} : vector<64x64xbf16>, vector<64x128xbf16>, vector<64x128xf32> -> vector<64x128xf32>
    %96 = arith.addf %89, %95 : vector<64x128xf32>
    %c0_97 = arith.constant 0 : index
    %c2_98 = arith.constant 2 : index
    %c4_99 = arith.constant 4 : index
    %c0_100 = arith.constant 0 : index
    %97 = vector.load %arg1[%c0_97, %c2_98, %c4_99, %c0_100] : memref<1x12x12x64xbf16, #tpu.memory_space<vmem>>, vector<1x8x8x64xbf16>
    %98 = vector.shape_cast %97 : vector<1x8x8x64xbf16> to vector<8x8x64xbf16>
    %99 = vector.shape_cast %98 : vector<8x8x64xbf16> to vector<64x64xbf16>
    %c14 = arith.constant 14 : index
    %c0_101 = arith.constant 0 : index
    %c0_102 = arith.constant 0 : index
    %100 = vector.load %arg2[%c14, %c0_101, %c0_102] : memref<25x64x128xbf16, #tpu.memory_space<vmem>>, vector<1x64x128xbf16>
    %101 = vector.shape_cast %100 : vector<1x64x128xbf16> to vector<64x128xbf16>
    %cst_103 = arith.constant dense<0.000000e+00> : vector<64x128xf32>
    %102 = tpu.matmul %99, %101, %cst_103 {dimension_numbers = #tpu.dot_dimension_numbers<[1], [0], [0], [1], [0, 0, 1, 1], [], []>} : vector<64x64xbf16>, vector<64x128xbf16>, vector<64x128xf32> -> vector<64x128xf32>
    %103 = arith.addf %96, %102 : vector<64x128xf32>
    %c0_104 = arith.constant 0 : index
    %c3_105 = arith.constant 3 : index
    %c0_106 = arith.constant 0 : index
    %c0_107 = arith.constant 0 : index
    %104 = vector.load %arg1[%c0_104, %c3_105, %c0_106, %c0_107] : memref<1x12x12x64xbf16, #tpu.memory_space<vmem>>, vector<1x8x8x64xbf16>
    %105 = vector.shape_cast %104 : vector<1x8x8x64xbf16> to vector<8x8x64xbf16>
    %106 = vector.shape_cast %105 : vector<8x8x64xbf16> to vector<64x64xbf16>
    %c15 = arith.constant 15 : index
    %c0_108 = arith.constant 0 : index
    %c0_109 = arith.constant 0 : index
    %107 = vector.load %arg2[%c15, %c0_108, %c0_109] : memref<25x64x128xbf16, #tpu.memory_space<vmem>>, vector<1x64x128xbf16>
    %108 = vector.shape_cast %107 : vector<1x64x128xbf16> to vector<64x128xbf16>
    %cst_110 = arith.constant dense<0.000000e+00> : vector<64x128xf32>
    %109 = tpu.matmul %106, %108, %cst_110 {dimension_numbers = #tpu.dot_dimension_numbers<[1], [0], [0], [1], [0, 0, 1, 1], [], []>} : vector<64x64xbf16>, vector<64x128xbf16>, vector<64x128xf32> -> vector<64x128xf32>
    %110 = arith.addf %103, %109 : vector<64x128xf32>
    %c0_111 = arith.constant 0 : index
    %c3_112 = arith.constant 3 : index
    %c1_113 = arith.constant 1 : index
    %c0_114 = arith.constant 0 : index
    %111 = vector.load %arg1[%c0_111, %c3_112, %c1_113, %c0_114] : memref<1x12x12x64xbf16, #tpu.memory_space<vmem>>, vector<1x8x8x64xbf16>
    %112 = vector.shape_cast %111 : vector<1x8x8x64xbf16> to vector<8x8x64xbf16>
    %113 = vector.shape_cast %112 : vector<8x8x64xbf16> to vector<64x64xbf16>
    %c16 = arith.constant 16 : index
    %c0_115 = arith.constant 0 : index
    %c0_116 = arith.constant 0 : index
    %114 = vector.load %arg2[%c16, %c0_115, %c0_116] : memref<25x64x128xbf16, #tpu.memory_space<vmem>>, vector<1x64x128xbf16>
    %115 = vector.shape_cast %114 : vector<1x64x128xbf16> to vector<64x128xbf16>
    %cst_117 = arith.constant dense<0.000000e+00> : vector<64x128xf32>
    %116 = tpu.matmul %113, %115, %cst_117 {dimension_numbers = #tpu.dot_dimension_numbers<[1], [0], [0], [1], [0, 0, 1, 1], [], []>} : vector<64x64xbf16>, vector<64x128xbf16>, vector<64x128xf32> -> vector<64x128xf32>
    %117 = arith.addf %110, %116 : vector<64x128xf32>
    %c0_118 = arith.constant 0 : index
    %c3_119 = arith.constant 3 : index
    %c2_120 = arith.constant 2 : index
    %c0_121 = arith.constant 0 : index
    %118 = vector.load %arg1[%c0_118, %c3_119, %c2_120, %c0_121] : memref<1x12x12x64xbf16, #tpu.memory_space<vmem>>, vector<1x8x8x64xbf16>
    %119 = vector.shape_cast %118 : vector<1x8x8x64xbf16> to vector<8x8x64xbf16>
    %120 = vector.shape_cast %119 : vector<8x8x64xbf16> to vector<64x64xbf16>
    %c17 = arith.constant 17 : index
    %c0_122 = arith.constant 0 : index
    %c0_123 = arith.constant 0 : index
    %121 = vector.load %arg2[%c17, %c0_122, %c0_123] : memref<25x64x128xbf16, #tpu.memory_space<vmem>>, vector<1x64x128xbf16>
    %122 = vector.shape_cast %121 : vector<1x64x128xbf16> to vector<64x128xbf16>
    %cst_124 = arith.constant dense<0.000000e+00> : vector<64x128xf32>
    %123 = tpu.matmul %120, %122, %cst_124 {dimension_numbers = #tpu.dot_dimension_numbers<[1], [0], [0], [1], [0, 0, 1, 1], [], []>} : vector<64x64xbf16>, vector<64x128xbf16>, vector<64x128xf32> -> vector<64x128xf32>
    %124 = arith.addf %117, %123 : vector<64x128xf32>
    %c0_125 = arith.constant 0 : index
    %c3_126 = arith.constant 3 : index
    %c3_127 = arith.constant 3 : index
    %c0_128 = arith.constant 0 : index
    %125 = vector.load %arg1[%c0_125, %c3_126, %c3_127, %c0_128] : memref<1x12x12x64xbf16, #tpu.memory_space<vmem>>, vector<1x8x8x64xbf16>
    %126 = vector.shape_cast %125 : vector<1x8x8x64xbf16> to vector<8x8x64xbf16>
    %127 = vector.shape_cast %126 : vector<8x8x64xbf16> to vector<64x64xbf16>
    %c18 = arith.constant 18 : index
    %c0_129 = arith.constant 0 : index
    %c0_130 = arith.constant 0 : index
    %128 = vector.load %arg2[%c18, %c0_129, %c0_130] : memref<25x64x128xbf16, #tpu.memory_space<vmem>>, vector<1x64x128xbf16>
    %129 = vector.shape_cast %128 : vector<1x64x128xbf16> to vector<64x128xbf16>
    %cst_131 = arith.constant dense<0.000000e+00> : vector<64x128xf32>
    %130 = tpu.matmul %127, %129, %cst_131 {dimension_numbers = #tpu.dot_dimension_numbers<[1], [0], [0], [1], [0, 0, 1, 1], [], []>} : vector<64x64xbf16>, vector<64x128xbf16>, vector<64x128xf32> -> vector<64x128xf32>
    %131 = arith.addf %124, %130 : vector<64x128xf32>
    %c0_132 = arith.constant 0 : index
    %c3_133 = arith.constant 3 : index
    %c4_134 = arith.constant 4 : index
    %c0_135 = arith.constant 0 : index
    %132 = vector.load %arg1[%c0_132, %c3_133, %c4_134, %c0_135] : memref<1x12x12x64xbf16, #tpu.memory_space<vmem>>, vector<1x8x8x64xbf16>
    %133 = vector.shape_cast %132 : vector<1x8x8x64xbf16> to vector<8x8x64xbf16>
    %134 = vector.shape_cast %133 : vector<8x8x64xbf16> to vector<64x64xbf16>
    %c19 = arith.constant 19 : index
    %c0_136 = arith.constant 0 : index
    %c0_137 = arith.constant 0 : index
    %135 = vector.load %arg2[%c19, %c0_136, %c0_137] : memref<25x64x128xbf16, #tpu.memory_space<vmem>>, vector<1x64x128xbf16>
    %136 = vector.shape_cast %135 : vector<1x64x128xbf16> to vector<64x128xbf16>
    %cst_138 = arith.constant dense<0.000000e+00> : vector<64x128xf32>
    %137 = tpu.matmul %134, %136, %cst_138 {dimension_numbers = #tpu.dot_dimension_numbers<[1], [0], [0], [1], [0, 0, 1, 1], [], []>} : vector<64x64xbf16>, vector<64x128xbf16>, vector<64x128xf32> -> vector<64x128xf32>
    %138 = arith.addf %131, %137 : vector<64x128xf32>
    %c0_139 = arith.constant 0 : index
    %c4_140 = arith.constant 4 : index
    %c0_141 = arith.constant 0 : index
    %c0_142 = arith.constant 0 : index
    %139 = vector.load %arg1[%c0_139, %c4_140, %c0_141, %c0_142] : memref<1x12x12x64xbf16, #tpu.memory_space<vmem>>, vector<1x8x8x64xbf16>
    %140 = vector.shape_cast %139 : vector<1x8x8x64xbf16> to vector<8x8x64xbf16>
    %141 = vector.shape_cast %140 : vector<8x8x64xbf16> to vector<64x64xbf16>
    %c20 = arith.constant 20 : index
    %c0_143 = arith.constant 0 : index
    %c0_144 = arith.constant 0 : index
    %142 = vector.load %arg2[%c20, %c0_143, %c0_144] : memref<25x64x128xbf16, #tpu.memory_space<vmem>>, vector<1x64x128xbf16>
    %143 = vector.shape_cast %142 : vector<1x64x128xbf16> to vector<64x128xbf16>
    %cst_145 = arith.constant dense<0.000000e+00> : vector<64x128xf32>
    %144 = tpu.matmul %141, %143, %cst_145 {dimension_numbers = #tpu.dot_dimension_numbers<[1], [0], [0], [1], [0, 0, 1, 1], [], []>} : vector<64x64xbf16>, vector<64x128xbf16>, vector<64x128xf32> -> vector<64x128xf32>
    %145 = arith.addf %138, %144 : vector<64x128xf32>
    %c0_146 = arith.constant 0 : index
    %c4_147 = arith.constant 4 : index
    %c1_148 = arith.constant 1 : index
    %c0_149 = arith.constant 0 : index
    %146 = vector.load %arg1[%c0_146, %c4_147, %c1_148, %c0_149] : memref<1x12x12x64xbf16, #tpu.memory_space<vmem>>, vector<1x8x8x64xbf16>
    %147 = vector.shape_cast %146 : vector<1x8x8x64xbf16> to vector<8x8x64xbf16>
    %148 = vector.shape_cast %147 : vector<8x8x64xbf16> to vector<64x64xbf16>
    %c21 = arith.constant 21 : index
    %c0_150 = arith.constant 0 : index
    %c0_151 = arith.constant 0 : index
    %149 = vector.load %arg2[%c21, %c0_150, %c0_151] : memref<25x64x128xbf16, #tpu.memory_space<vmem>>, vector<1x64x128xbf16>
    %150 = vector.shape_cast %149 : vector<1x64x128xbf16> to vector<64x128xbf16>
    %cst_152 = arith.constant dense<0.000000e+00> : vector<64x128xf32>
    %151 = tpu.matmul %148, %150, %cst_152 {dimension_numbers = #tpu.dot_dimension_numbers<[1], [0], [0], [1], [0, 0, 1, 1], [], []>} : vector<64x64xbf16>, vector<64x128xbf16>, vector<64x128xf32> -> vector<64x128xf32>
    %152 = arith.addf %145, %151 : vector<64x128xf32>
    %c0_153 = arith.constant 0 : index
    %c4_154 = arith.constant 4 : index
    %c2_155 = arith.constant 2 : index
    %c0_156 = arith.constant 0 : index
    %153 = vector.load %arg1[%c0_153, %c4_154, %c2_155, %c0_156] : memref<1x12x12x64xbf16, #tpu.memory_space<vmem>>, vector<1x8x8x64xbf16>
    %154 = vector.shape_cast %153 : vector<1x8x8x64xbf16> to vector<8x8x64xbf16>
    %155 = vector.shape_cast %154 : vector<8x8x64xbf16> to vector<64x64xbf16>
    %c22 = arith.constant 22 : index
    %c0_157 = arith.constant 0 : index
    %c0_158 = arith.constant 0 : index
    %156 = vector.load %arg2[%c22, %c0_157, %c0_158] : memref<25x64x128xbf16, #tpu.memory_space<vmem>>, vector<1x64x128xbf16>
    %157 = vector.shape_cast %156 : vector<1x64x128xbf16> to vector<64x128xbf16>
    %cst_159 = arith.constant dense<0.000000e+00> : vector<64x128xf32>
    %158 = tpu.matmul %155, %157, %cst_159 {dimension_numbers = #tpu.dot_dimension_numbers<[1], [0], [0], [1], [0, 0, 1, 1], [], []>} : vector<64x64xbf16>, vector<64x128xbf16>, vector<64x128xf32> -> vector<64x128xf32>
    %159 = arith.addf %152, %158 : vector<64x128xf32>
    %c0_160 = arith.constant 0 : index
    %c4_161 = arith.constant 4 : index
    %c3_162 = arith.constant 3 : index
    %c0_163 = arith.constant 0 : index
    %160 = vector.load %arg1[%c0_160, %c4_161, %c3_162, %c0_163] : memref<1x12x12x64xbf16, #tpu.memory_space<vmem>>, vector<1x8x8x64xbf16>
    %161 = vector.shape_cast %160 : vector<1x8x8x64xbf16> to vector<8x8x64xbf16>
    %162 = vector.shape_cast %161 : vector<8x8x64xbf16> to vector<64x64xbf16>
    %c23 = arith.constant 23 : index
    %c0_164 = arith.constant 0 : index
    %c0_165 = arith.constant 0 : index
    %163 = vector.load %arg2[%c23, %c0_164, %c0_165] : memref<25x64x128xbf16, #tpu.memory_space<vmem>>, vector<1x64x128xbf16>
    %164 = vector.shape_cast %163 : vector<1x64x128xbf16> to vector<64x128xbf16>
    %cst_166 = arith.constant dense<0.000000e+00> : vector<64x128xf32>
    %165 = tpu.matmul %162, %164, %cst_166 {dimension_numbers = #tpu.dot_dimension_numbers<[1], [0], [0], [1], [0, 0, 1, 1], [], []>} : vector<64x64xbf16>, vector<64x128xbf16>, vector<64x128xf32> -> vector<64x128xf32>
    %166 = arith.addf %159, %165 : vector<64x128xf32>
    %c0_167 = arith.constant 0 : index
    %c4_168 = arith.constant 4 : index
    %c4_169 = arith.constant 4 : index
    %c0_170 = arith.constant 0 : index
    %167 = vector.load %arg1[%c0_167, %c4_168, %c4_169, %c0_170] : memref<1x12x12x64xbf16, #tpu.memory_space<vmem>>, vector<1x8x8x64xbf16>
    %168 = vector.shape_cast %167 : vector<1x8x8x64xbf16> to vector<8x8x64xbf16>
    %169 = vector.shape_cast %168 : vector<8x8x64xbf16> to vector<64x64xbf16>
    %c24 = arith.constant 24 : index
    %c0_171 = arith.constant 0 : index
    %c0_172 = arith.constant 0 : index
    %170 = vector.load %arg2[%c24, %c0_171, %c0_172] : memref<25x64x128xbf16, #tpu.memory_space<vmem>>, vector<1x64x128xbf16>
    %171 = vector.shape_cast %170 : vector<1x64x128xbf16> to vector<64x128xbf16>
    %cst_173 = arith.constant dense<0.000000e+00> : vector<64x128xf32>
    %172 = tpu.matmul %169, %171, %cst_173 {dimension_numbers = #tpu.dot_dimension_numbers<[1], [0], [0], [1], [0, 0, 1, 1], [], []>} : vector<64x64xbf16>, vector<64x128xbf16>, vector<64x128xf32> -> vector<64x128xf32>
    %173 = arith.addf %166, %172 : vector<64x128xf32>
    %c0_174 = arith.constant 0 : index
    %c0_175 = arith.constant 0 : index
    %174 = vector.load %arg3[%c0_174, %c0_175] : memref<1x128xf32, #tpu.memory_space<vmem>>, vector<1x128xf32>
    %175 = vector.broadcast %174 : vector<1x128xf32> to vector<64x128xf32>
    %176 = arith.addf %173, %175 : vector<64x128xf32>
    %cst_176 = arith.constant 0.000000e+00 : f32
    %177 = vector.broadcast %cst_176 : f32 to vector<64x128xf32>
    %178 = arith.maximumf %176, %177 : vector<64x128xf32>
    %179 = arith.truncf %178 : vector<64x128xf32> to vector<64x128xbf16>
    %c0_177 = arith.constant 0 : index
    %c0_178 = arith.constant 0 : index
    %c0_179 = arith.constant 0 : index
    %180 = vector.load %arg4[%c0_177, %c0_178, %c0_179] : memref<1x64x128xbf16, #tpu.memory_space<vmem>>, vector<1x64x128xbf16>
    %181 = vector.shape_cast %180 : vector<1x64x128xbf16> to vector<64x128xbf16>
    %182 = vector.shape_cast %179 : vector<64x128xbf16> to vector<1x64x128xbf16>
    tpu.vector_store %arg4[%c0_177, %c0_178, %c0_179], %182 {strides = array<i32>} : memref<1x64x128xbf16, #tpu.memory_space<vmem>>, vector<1x64x128xbf16>,
    return
  }
  func.func @transform_0(%arg0: i32) -> (i32, i32, i32, i32) {
    %c0_i32 = arith.constant 0 : i32
    %c0_i32_0 = arith.constant 0 : i32
    %c0_i32_1 = arith.constant 0 : i32
    %c0_i32_2 = arith.constant 0 : i32
    return %arg0, %c0_i32, %c0_i32_0, %c0_i32_1 : i32, i32, i32, i32
  }
  func.func @transform_1(%arg0: i32) -> (i32, i32, i32) {
    %c0_i32 = arith.constant 0 : i32
    %c0_i32_0 = arith.constant 0 : i32
    %c0_i32_1 = arith.constant 0 : i32
    %c0_i32_2 = arith.constant 0 : i32
    return %c0_i32, %c0_i32_0, %c0_i32_1 : i32, i32, i32
  }
  func.func @transform_2(%arg0: i32) -> (i32, i32) {
    %c0_i32 = arith.constant 0 : i32
    %c0_i32_0 = arith.constant 0 : i32
    %c0_i32_1 = arith.constant 0 : i32
    return %c0_i32, %c0_i32_0 : i32, i32
  }
  func.func @transform_3(%arg0: i32) -> (i32, i32, i32) {
    %c0_i32 = arith.constant 0 : i32
    %c0_i32_0 = arith.constant 0 : i32
    %c0_i32_1 = arith.constant 0 : i32
    return %arg0, %c0_i32, %c0_i32_0 : i32, i32, i32
  }
}

module attributes {stable_mosaic.version = 11 : i64} {
  func.func @_conv_relu_kernel(%arg0: i32, %arg1: memref<1x6x6x128xbf16, #tpu.memory_space<vmem>>, %arg2: memref<9x128x256xbf16, #tpu.memory_space<vmem>>, %arg3: memref<1x256xf32, #tpu.memory_space<vmem>>, %arg4: memref<1x16x256xbf16, #tpu.memory_space<vmem>>) attributes {dimension_semantics = [#tpu.dimension_semantics<parallel>], iteration_bounds = array<i64: 2>, scalar_prefetch = 0 : i64, scratch_operands = 0 : i64, tpu.core_type = #tpu.core_type<tc>, window_params = [{transform_indices = @transform_0, window_bounds = array<i64: 1, 6, 6, 128>}, {pipeline_mode = #tpu.pipeline_mode<synchronous>, transform_indices = @transform_1, window_bounds = array<i64: 9, 128, 256>}, {pipeline_mode = #tpu.pipeline_mode<synchronous>, transform_indices = @transform_2, window_bounds = array<i64: 1, 256>}, {transform_indices = @transform_3, window_bounds = array<i64: 1, 16, 256>}]} {
    %c0 = arith.constant 0 : index
    %c0_0 = arith.constant 0 : index
    %c0_1 = arith.constant 0 : index
    %c0_2 = arith.constant 0 : index
    %0 = vector.load %arg1[%c0, %c0_0, %c0_1, %c0_2] : memref<1x6x6x128xbf16, #tpu.memory_space<vmem>>, vector<1x4x4x128xbf16>
    %1 = vector.shape_cast %0 : vector<1x4x4x128xbf16> to vector<4x4x128xbf16>
    %2 = vector.shape_cast %1 : vector<4x4x128xbf16> to vector<16x128xbf16>
    %c0_3 = arith.constant 0 : index
    %c0_4 = arith.constant 0 : index
    %c1 = arith.constant 1 : index
    %c0_5 = arith.constant 0 : index
    %3 = vector.load %arg1[%c0_3, %c0_4, %c1, %c0_5] : memref<1x6x6x128xbf16, #tpu.memory_space<vmem>>, vector<1x4x4x128xbf16>
    %4 = vector.shape_cast %3 : vector<1x4x4x128xbf16> to vector<4x4x128xbf16>
    %5 = vector.shape_cast %4 : vector<4x4x128xbf16> to vector<16x128xbf16>
    %6 = tpu.concatenate %2, %5 in 1 : vector<16x128xbf16>, vector<16x128xbf16> -> vector<16x256xbf16>
    %c0_6 = arith.constant 0 : index
    %c0_7 = arith.constant 0 : index
    %c0_8 = arith.constant 0 : index
    %7 = vector.load %arg2[%c0_6, %c0_7, %c0_8] : memref<9x128x256xbf16, #tpu.memory_space<vmem>>, vector<2x128x256xbf16>
    %8 = vector.shape_cast %7 : vector<2x128x256xbf16> to vector<256x256xbf16>
    %cst = arith.constant dense<0.000000e+00> : vector<16x256xf32>
    %9 = tpu.matmul %6, %8, %cst {dimension_numbers = #tpu.dot_dimension_numbers<[1], [0], [0], [1], [0, 0, 1, 1], [], []>} : vector<16x256xbf16>, vector<256x256xbf16>, vector<16x256xf32> -> vector<16x256xf32>
    %c0_9 = arith.constant 0 : index
    %c0_10 = arith.constant 0 : index
    %c2 = arith.constant 2 : index
    %c0_11 = arith.constant 0 : index
    %10 = vector.load %arg1[%c0_9, %c0_10, %c2, %c0_11] : memref<1x6x6x128xbf16, #tpu.memory_space<vmem>>, vector<1x4x4x128xbf16>
    %11 = vector.shape_cast %10 : vector<1x4x4x128xbf16> to vector<4x4x128xbf16>
    %12 = vector.shape_cast %11 : vector<4x4x128xbf16> to vector<16x128xbf16>
    %c0_12 = arith.constant 0 : index
    %c1_13 = arith.constant 1 : index
    %c0_14 = arith.constant 0 : index
    %c0_15 = arith.constant 0 : index
    %13 = vector.load %arg1[%c0_12, %c1_13, %c0_14, %c0_15] : memref<1x6x6x128xbf16, #tpu.memory_space<vmem>>, vector<1x4x4x128xbf16>
    %14 = vector.shape_cast %13 : vector<1x4x4x128xbf16> to vector<4x4x128xbf16>
    %15 = vector.shape_cast %14 : vector<4x4x128xbf16> to vector<16x128xbf16>
    %16 = tpu.concatenate %12, %15 in 1 : vector<16x128xbf16>, vector<16x128xbf16> -> vector<16x256xbf16>
    %c2_16 = arith.constant 2 : index
    %c0_17 = arith.constant 0 : index
    %c0_18 = arith.constant 0 : index
    %17 = vector.load %arg2[%c2_16, %c0_17, %c0_18] : memref<9x128x256xbf16, #tpu.memory_space<vmem>>, vector<2x128x256xbf16>
    %18 = vector.shape_cast %17 : vector<2x128x256xbf16> to vector<256x256xbf16>
    %cst_19 = arith.constant dense<0.000000e+00> : vector<16x256xf32>
    %19 = tpu.matmul %16, %18, %cst_19 {dimension_numbers = #tpu.dot_dimension_numbers<[1], [0], [0], [1], [0, 0, 1, 1], [], []>} : vector<16x256xbf16>, vector<256x256xbf16>, vector<16x256xf32> -> vector<16x256xf32>
    %20 = arith.addf %9, %19 : vector<16x256xf32>
    %c0_20 = arith.constant 0 : index
    %c1_21 = arith.constant 1 : index
    %c1_22 = arith.constant 1 : index
    %c0_23 = arith.constant 0 : index
    %21 = vector.load %arg1[%c0_20, %c1_21, %c1_22, %c0_23] : memref<1x6x6x128xbf16, #tpu.memory_space<vmem>>, vector<1x4x4x128xbf16>
    %22 = vector.shape_cast %21 : vector<1x4x4x128xbf16> to vector<4x4x128xbf16>
    %23 = vector.shape_cast %22 : vector<4x4x128xbf16> to vector<16x128xbf16>
    %c0_24 = arith.constant 0 : index
    %c1_25 = arith.constant 1 : index
    %c2_26 = arith.constant 2 : index
    %c0_27 = arith.constant 0 : index
    %24 = vector.load %arg1[%c0_24, %c1_25, %c2_26, %c0_27] : memref<1x6x6x128xbf16, #tpu.memory_space<vmem>>, vector<1x4x4x128xbf16>
    %25 = vector.shape_cast %24 : vector<1x4x4x128xbf16> to vector<4x4x128xbf16>
    %26 = vector.shape_cast %25 : vector<4x4x128xbf16> to vector<16x128xbf16>
    %27 = tpu.concatenate %23, %26 in 1 : vector<16x128xbf16>, vector<16x128xbf16> -> vector<16x256xbf16>
    %c4 = arith.constant 4 : index
    %c0_28 = arith.constant 0 : index
    %c0_29 = arith.constant 0 : index
    %28 = vector.load %arg2[%c4, %c0_28, %c0_29] : memref<9x128x256xbf16, #tpu.memory_space<vmem>>, vector<2x128x256xbf16>
    %29 = vector.shape_cast %28 : vector<2x128x256xbf16> to vector<256x256xbf16>
    %cst_30 = arith.constant dense<0.000000e+00> : vector<16x256xf32>
    %30 = tpu.matmul %27, %29, %cst_30 {dimension_numbers = #tpu.dot_dimension_numbers<[1], [0], [0], [1], [0, 0, 1, 1], [], []>} : vector<16x256xbf16>, vector<256x256xbf16>, vector<16x256xf32> -> vector<16x256xf32>
    %31 = arith.addf %20, %30 : vector<16x256xf32>
    %c0_31 = arith.constant 0 : index
    %c2_32 = arith.constant 2 : index
    %c0_33 = arith.constant 0 : index
    %c0_34 = arith.constant 0 : index
    %32 = vector.load %arg1[%c0_31, %c2_32, %c0_33, %c0_34] : memref<1x6x6x128xbf16, #tpu.memory_space<vmem>>, vector<1x4x4x128xbf16>
    %33 = vector.shape_cast %32 : vector<1x4x4x128xbf16> to vector<4x4x128xbf16>
    %34 = vector.shape_cast %33 : vector<4x4x128xbf16> to vector<16x128xbf16>
    %c0_35 = arith.constant 0 : index
    %c2_36 = arith.constant 2 : index
    %c1_37 = arith.constant 1 : index
    %c0_38 = arith.constant 0 : index
    %35 = vector.load %arg1[%c0_35, %c2_36, %c1_37, %c0_38] : memref<1x6x6x128xbf16, #tpu.memory_space<vmem>>, vector<1x4x4x128xbf16>
    %36 = vector.shape_cast %35 : vector<1x4x4x128xbf16> to vector<4x4x128xbf16>
    %37 = vector.shape_cast %36 : vector<4x4x128xbf16> to vector<16x128xbf16>
    %38 = tpu.concatenate %34, %37 in 1 : vector<16x128xbf16>, vector<16x128xbf16> -> vector<16x256xbf16>
    %c6 = arith.constant 6 : index
    %c0_39 = arith.constant 0 : index
    %c0_40 = arith.constant 0 : index
    %39 = vector.load %arg2[%c6, %c0_39, %c0_40] : memref<9x128x256xbf16, #tpu.memory_space<vmem>>, vector<2x128x256xbf16>
    %40 = vector.shape_cast %39 : vector<2x128x256xbf16> to vector<256x256xbf16>
    %cst_41 = arith.constant dense<0.000000e+00> : vector<16x256xf32>
    %41 = tpu.matmul %38, %40, %cst_41 {dimension_numbers = #tpu.dot_dimension_numbers<[1], [0], [0], [1], [0, 0, 1, 1], [], []>} : vector<16x256xbf16>, vector<256x256xbf16>, vector<16x256xf32> -> vector<16x256xf32>
    %42 = arith.addf %31, %41 : vector<16x256xf32>
    %c0_42 = arith.constant 0 : index
    %c2_43 = arith.constant 2 : index
    %c2_44 = arith.constant 2 : index
    %c0_45 = arith.constant 0 : index
    %43 = vector.load %arg1[%c0_42, %c2_43, %c2_44, %c0_45] : memref<1x6x6x128xbf16, #tpu.memory_space<vmem>>, vector<1x4x4x128xbf16>
    %44 = vector.shape_cast %43 : vector<1x4x4x128xbf16> to vector<4x4x128xbf16>
    %45 = vector.shape_cast %44 : vector<4x4x128xbf16> to vector<16x128xbf16>
    %c8 = arith.constant 8 : index
    %c0_46 = arith.constant 0 : index
    %c0_47 = arith.constant 0 : index
    %46 = vector.load %arg2[%c8, %c0_46, %c0_47] : memref<9x128x256xbf16, #tpu.memory_space<vmem>>, vector<1x128x256xbf16>
    %47 = vector.shape_cast %46 : vector<1x128x256xbf16> to vector<128x256xbf16>
    %cst_48 = arith.constant dense<0.000000e+00> : vector<16x256xf32>
    %48 = tpu.matmul %45, %47, %cst_48 {dimension_numbers = #tpu.dot_dimension_numbers<[1], [0], [0], [1], [0, 0, 1, 1], [], []>} : vector<16x128xbf16>, vector<128x256xbf16>, vector<16x256xf32> -> vector<16x256xf32>
    %49 = arith.addf %42, %48 : vector<16x256xf32>
    %c0_49 = arith.constant 0 : index
    %c0_50 = arith.constant 0 : index
    %50 = vector.load %arg3[%c0_49, %c0_50] : memref<1x256xf32, #tpu.memory_space<vmem>>, vector<1x256xf32>
    %51 = vector.broadcast %50 : vector<1x256xf32> to vector<16x256xf32>
    %52 = arith.addf %49, %51 : vector<16x256xf32>
    %cst_51 = arith.constant 0.000000e+00 : f32
    %53 = vector.broadcast %cst_51 : f32 to vector<16x256xf32>
    %54 = arith.maximumf %52, %53 : vector<16x256xf32>
    %55 = arith.truncf %54 : vector<16x256xf32> to vector<16x256xbf16>
    %c0_52 = arith.constant 0 : index
    %c0_53 = arith.constant 0 : index
    %c0_54 = arith.constant 0 : index
    %56 = vector.load %arg4[%c0_52, %c0_53, %c0_54] : memref<1x16x256xbf16, #tpu.memory_space<vmem>>, vector<1x16x256xbf16>
    %57 = vector.shape_cast %56 : vector<1x16x256xbf16> to vector<16x256xbf16>
    %58 = vector.shape_cast %55 : vector<16x256xbf16> to vector<1x16x256xbf16>
    tpu.vector_store %arg4[%c0_52, %c0_53, %c0_54], %58 {strides = array<i32>} : memref<1x16x256xbf16, #tpu.memory_space<vmem>>, vector<1x16x256xbf16>,
    return
  }
  func.func @transform_0(%arg0: i32) -> (i32, i32, i32, i32) {
    %c0_i32 = arith.constant 0 : i32
    %c0_i32_0 = arith.constant 0 : i32
    %c0_i32_1 = arith.constant 0 : i32
    %c0_i32_2 = arith.constant 0 : i32
    return %arg0, %c0_i32, %c0_i32_0, %c0_i32_1 : i32, i32, i32, i32
  }
  func.func @transform_1(%arg0: i32) -> (i32, i32, i32) {
    %c0_i32 = arith.constant 0 : i32
    %c0_i32_0 = arith.constant 0 : i32
    %c0_i32_1 = arith.constant 0 : i32
    %c0_i32_2 = arith.constant 0 : i32
    return %c0_i32, %c0_i32_0, %c0_i32_1 : i32, i32, i32
  }
  func.func @transform_2(%arg0: i32) -> (i32, i32) {
    %c0_i32 = arith.constant 0 : i32
    %c0_i32_0 = arith.constant 0 : i32
    %c0_i32_1 = arith.constant 0 : i32
    return %c0_i32, %c0_i32_0 : i32, i32
  }
  func.func @transform_3(%arg0: i32) -> (i32, i32, i32) {
    %c0_i32 = arith.constant 0 : i32
    %c0_i32_0 = arith.constant 0 : i32
    %c0_i32_1 = arith.constant 0 : i32
    return %arg0, %c0_i32, %c0_i32_0 : i32, i32, i32
  }
}

module attributes {stable_mosaic.version = 11 : i64} {
  func.func @_fc_stack_kernel(%arg0: i32, %arg1: memref<8x1024xbf16, #tpu.memory_space<vmem>>, %arg2: memref<1024x512xbf16, #tpu.memory_space<vmem>>, %arg3: memref<1x512xf32, #tpu.memory_space<vmem>>, %arg4: memref<512x256xbf16, #tpu.memory_space<vmem>>, %arg5: memref<1x256xf32, #tpu.memory_space<vmem>>, %arg6: memref<256x128xbf16, #tpu.memory_space<vmem>>, %arg7: memref<1x128xf32, #tpu.memory_space<vmem>>, %arg8: memref<128x128xbf16, #tpu.memory_space<vmem>>, %arg9: memref<1x128xf32, #tpu.memory_space<vmem>>, %arg10: memref<8x128xf32, #tpu.memory_space<vmem>>, %arg11: memref<8x128xf32, #tpu.memory_space<vmem>>, %arg12: memref<8x512xf32, #tpu.memory_space<vmem>>) attributes {dimension_semantics = [#tpu.dimension_semantics<arbitrary>], iteration_bounds = array<i64: 1>, scalar_prefetch = 0 : i64, scratch_operands = 1 : i64, tpu.core_type = #tpu.core_type<tc>, window_params = [{transform_indices = @transform_0, window_bounds = array<i64: 8, 1024>}, {transform_indices = @transform_1, window_bounds = array<i64: 1024, 512>}, {pipeline_mode = #tpu.pipeline_mode<synchronous>, transform_indices = @transform_2, window_bounds = array<i64: 1, 512>}, {pipeline_mode = #tpu.pipeline_mode<synchronous>, transform_indices = @transform_3, window_bounds = array<i64: 512, 256>}, {pipeline_mode = #tpu.pipeline_mode<synchronous>, transform_indices = @transform_4, window_bounds = array<i64: 1, 256>}, {pipeline_mode = #tpu.pipeline_mode<synchronous>, transform_indices = @transform_5, window_bounds = array<i64: 256, 128>}, {pipeline_mode = #tpu.pipeline_mode<synchronous>, transform_indices = @transform_6, window_bounds = array<i64: 1, 128>}, {pipeline_mode = #tpu.pipeline_mode<synchronous>, transform_indices = @transform_7, window_bounds = array<i64: 128, 128>}, {pipeline_mode = #tpu.pipeline_mode<synchronous>, transform_indices = @transform_8, window_bounds = array<i64: 1, 128>}, {pipeline_mode = #tpu.pipeline_mode<synchronous>, transform_indices = @transform_9, window_bounds = array<i64: 8, 128>}, {pipeline_mode = #tpu.pipeline_mode<synchronous>, transform_indices = @transform_10, window_bounds = array<i64: 8, 128>}]} {
    %c0_i32 = arith.constant 0 : i32
    %0 = arith.cmpi eq, %arg0, %c0_i32 : i32
    %1 = arith.extui %0 : i1 to i32
    %c0_i32_0 = arith.constant 0 : i32
    %2 = arith.cmpi ne, %1, %c0_i32_0 : i32
    scf.if %2 {
      %cst_10 = arith.constant 0.000000e+00 : f32
      %12 = vector.broadcast %cst_10 : f32 to vector<8x512xf32>
      %c0_11 = arith.constant 0 : index
      %c0_12 = arith.constant 0 : index
      %13 = vector.load %arg12[%c0_11, %c0_12] : memref<8x512xf32, #tpu.memory_space<vmem>>, vector<8x512xf32>
      tpu.vector_store %arg12[%c0_11, %c0_12], %12 {strides = array<i32>} : memref<8x512xf32, #tpu.memory_space<vmem>>, vector<8x512xf32>,
    } else {
    }
    %c0 = arith.constant 0 : index
    %c0_1 = arith.constant 0 : index
    %3 = vector.load %arg12[%c0, %c0_1] : memref<8x512xf32, #tpu.memory_space<vmem>>, vector<8x512xf32>
    %c0_2 = arith.constant 0 : index
    %c0_3 = arith.constant 0 : index
    %4 = vector.load %arg1[%c0_2, %c0_3] : memref<8x1024xbf16, #tpu.memory_space<vmem>>, vector<8x1024xbf16>
    %c0_4 = arith.constant 0 : index
    %c0_5 = arith.constant 0 : index
    %5 = vector.load %arg2[%c0_4, %c0_5] : memref<1024x512xbf16, #tpu.memory_space<vmem>>, vector<1024x512xbf16>
    %cst = arith.constant dense<0.000000e+00> : vector<8x512xf32>
    %6 = tpu.matmul %4, %5, %cst {dimension_numbers = #tpu.dot_dimension_numbers<[1], [0], [0], [1], [0, 0, 1, 1], [], []>} : vector<8x1024xbf16>, vector<1024x512xbf16>, vector<8x512xf32> -> vector<8x512xf32>
    %7 = arith.addf %3, %6 : vector<8x512xf32>
    %c0_6 = arith.constant 0 : index
    %c0_7 = arith.constant 0 : index
    %8 = vector.load %arg12[%c0_6, %c0_7] : memref<8x512xf32, #tpu.memory_space<vmem>>, vector<8x512xf32>
    tpu.vector_store %arg12[%c0_6, %c0_7], %7 {strides = array<i32>} : memref<8x512xf32, #tpu.memory_space<vmem>>, vector<8x512xf32>,
    %c0_i32_8 = arith.constant 0 : i32
    %9 = arith.cmpi eq, %arg0, %c0_i32_8 : i32
    %10 = arith.extui %9 : i1 to i32
    %c0_i32_9 = arith.constant 0 : i32
    %11 = arith.cmpi ne, %10, %c0_i32_9 : i32
    scf.if %11 {
      %c0_10 = arith.constant 0 : index
      %c0_11 = arith.constant 0 : index
      %12 = vector.load %arg12[%c0_10, %c0_11] : memref<8x512xf32, #tpu.memory_space<vmem>>, vector<8x512xf32>
      %c0_12 = arith.constant 0 : index
      %c0_13 = arith.constant 0 : index
      %13 = vector.load %arg3[%c0_12, %c0_13] : memref<1x512xf32, #tpu.memory_space<vmem>>, vector<1x512xf32>
      %14 = vector.broadcast %13 : vector<1x512xf32> to vector<8x512xf32>
      %15 = arith.addf %12, %14 : vector<8x512xf32>
      %cst_14 = arith.constant 0.000000e+00 : f32
      %16 = vector.broadcast %cst_14 : f32 to vector<8x512xf32>
      %17 = arith.maximumf %15, %16 : vector<8x512xf32>
      %18 = arith.truncf %17 : vector<8x512xf32> to vector<8x512xbf16>
      %c0_15 = arith.constant 0 : index
      %c0_16 = arith.constant 0 : index
      %19 = vector.load %arg4[%c0_15, %c0_16] : memref<512x256xbf16, #tpu.memory_space<vmem>>, vector<512x256xbf16>
      %cst_17 = arith.constant dense<0.000000e+00> : vector<8x256xf32>
      %20 = tpu.matmul %18, %19, %cst_17 {dimension_numbers = #tpu.dot_dimension_numbers<[1], [0], [0], [1], [0, 0, 1, 1], [], []>} : vector<8x512xbf16>, vector<512x256xbf16>, vector<8x256xf32> -> vector<8x256xf32>
      %c0_18 = arith.constant 0 : index
      %c0_19 = arith.constant 0 : index
      %21 = vector.load %arg5[%c0_18, %c0_19] : memref<1x256xf32, #tpu.memory_space<vmem>>, vector<1x256xf32>
      %22 = vector.broadcast %21 : vector<1x256xf32> to vector<8x256xf32>
      %23 = arith.addf %20, %22 : vector<8x256xf32>
      %cst_20 = arith.constant 0.000000e+00 : f32
      %24 = vector.broadcast %cst_20 : f32 to vector<8x256xf32>
      %25 = arith.maximumf %23, %24 : vector<8x256xf32>
      %26 = arith.truncf %25 : vector<8x256xf32> to vector<8x256xbf16>
      %c0_21 = arith.constant 0 : index
      %c0_22 = arith.constant 0 : index
      %27 = vector.load %arg6[%c0_21, %c0_22] : memref<256x128xbf16, #tpu.memory_space<vmem>>, vector<256x128xbf16>
      %cst_23 = arith.constant dense<0.000000e+00> : vector<8x128xf32>
      %28 = tpu.matmul %26, %27, %cst_23 {dimension_numbers = #tpu.dot_dimension_numbers<[1], [0], [0], [1], [0, 0, 1, 1], [], []>} : vector<8x256xbf16>, vector<256x128xbf16>, vector<8x128xf32> -> vector<8x128xf32>
      %c0_24 = arith.constant 0 : index
      %c0_25 = arith.constant 0 : index
      %29 = vector.load %arg7[%c0_24, %c0_25] : memref<1x128xf32, #tpu.memory_space<vmem>>, vector<1x128xf32>
      %30 = vector.broadcast %29 : vector<1x128xf32> to vector<8x128xf32>
      %31 = arith.addf %28, %30 : vector<8x128xf32>
      %cst_26 = arith.constant 0.000000e+00 : f32
      %32 = vector.broadcast %cst_26 : f32 to vector<8x128xf32>
      %33 = arith.maximumf %31, %32 : vector<8x128xf32>
      %c0_27 = arith.constant 0 : index
      %c0_28 = arith.constant 0 : index
      %34 = vector.load %arg10[%c0_27, %c0_28] : memref<8x128xf32, #tpu.memory_space<vmem>>, vector<8x128xf32>
      tpu.vector_store %arg10[%c0_27, %c0_28], %33 {strides = array<i32>} : memref<8x128xf32, #tpu.memory_space<vmem>>, vector<8x128xf32>,
      %35 = arith.truncf %33 : vector<8x128xf32> to vector<8x128xbf16>
      %c0_29 = arith.constant 0 : index
      %c0_30 = arith.constant 0 : index
      %36 = vector.load %arg8[%c0_29, %c0_30] : memref<128x128xbf16, #tpu.memory_space<vmem>>, vector<128x128xbf16>
      %cst_31 = arith.constant dense<0.000000e+00> : vector<8x128xf32>
      %37 = tpu.matmul %35, %36, %cst_31 {dimension_numbers = #tpu.dot_dimension_numbers<[1], [0], [0], [1], [0, 0, 1, 1], [], []>} : vector<8x128xbf16>, vector<128x128xbf16>, vector<8x128xf32> -> vector<8x128xf32>
      %c0_32 = arith.constant 0 : index
      %c0_33 = arith.constant 0 : index
      %38 = vector.load %arg9[%c0_32, %c0_33] : memref<1x128xf32, #tpu.memory_space<vmem>>, vector<1x128xf32>
      %39 = vector.broadcast %38 : vector<1x128xf32> to vector<8x128xf32>
      %40 = arith.addf %37, %39 : vector<8x128xf32>
      %c0_34 = arith.constant 0 : index
      %c0_35 = arith.constant 0 : index
      %41 = vector.load %arg11[%c0_34, %c0_35] : memref<8x128xf32, #tpu.memory_space<vmem>>, vector<8x128xf32>
      tpu.vector_store %arg11[%c0_34, %c0_35], %40 {strides = array<i32>} : memref<8x128xf32, #tpu.memory_space<vmem>>, vector<8x128xf32>,
    } else {
    }
    return
  }
  func.func @transform_0(%arg0: i32) -> (i32, i32) {
    %c0_i32 = arith.constant 0 : i32
    %c0_i32_0 = arith.constant 0 : i32
    return %c0_i32, %arg0 : i32, i32
  }
  func.func @transform_1(%arg0: i32) -> (i32, i32) {
    %c0_i32 = arith.constant 0 : i32
    %c0_i32_0 = arith.constant 0 : i32
    return %arg0, %c0_i32 : i32, i32
  }
  func.func @transform_2(%arg0: i32) -> (i32, i32) {
    %c0_i32 = arith.constant 0 : i32
    %c0_i32_0 = arith.constant 0 : i32
    %c0_i32_1 = arith.constant 0 : i32
    return %c0_i32, %c0_i32_0 : i32, i32
  }
  func.func @transform_3(%arg0: i32) -> (i32, i32) {
    %c0_i32 = arith.constant 0 : i32
    %c0_i32_0 = arith.constant 0 : i32
    %c0_i32_1 = arith.constant 0 : i32
    return %c0_i32, %c0_i32_0 : i32, i32
  }
  func.func @transform_4(%arg0: i32) -> (i32, i32) {
    %c0_i32 = arith.constant 0 : i32
    %c0_i32_0 = arith.constant 0 : i32
    %c0_i32_1 = arith.constant 0 : i32
    return %c0_i32, %c0_i32_0 : i32, i32
  }
  func.func @transform_5(%arg0: i32) -> (i32, i32) {
    %c0_i32 = arith.constant 0 : i32
    %c0_i32_0 = arith.constant 0 : i32
    %c0_i32_1 = arith.constant 0 : i32
    return %c0_i32, %c0_i32_0 : i32, i32
  }
  func.func @transform_6(%arg0: i32) -> (i32, i32) {
    %c0_i32 = arith.constant 0 : i32
    %c0_i32_0 = arith.constant 0 : i32
    %c0_i32_1 = arith.constant 0 : i32
    return %c0_i32, %c0_i32_0 : i32, i32
  }
  func.func @transform_7(%arg0: i32) -> (i32, i32) {
    %c0_i32 = arith.constant 0 : i32
    %c0_i32_0 = arith.constant 0 : i32
    %c0_i32_1 = arith.constant 0 : i32
    return %c0_i32, %c0_i32_0 : i32, i32
  }
  func.func @transform_8(%arg0: i32) -> (i32, i32) {
    %c0_i32 = arith.constant 0 : i32
    %c0_i32_0 = arith.constant 0 : i32
    %c0_i32_1 = arith.constant 0 : i32
    return %c0_i32, %c0_i32_0 : i32, i32
  }
  func.func @transform_9(%arg0: i32) -> (i32, i32) {
    %c0_i32 = arith.constant 0 : i32
    %c0_i32_0 = arith.constant 0 : i32
    %c0_i32_1 = arith.constant 0 : i32
    return %c0_i32, %c0_i32_0 : i32, i32
  }
  func.func @transform_10(%arg0: i32) -> (i32, i32) {
    %c0_i32 = arith.constant 0 : i32
    %c0_i32_0 = arith.constant 0 : i32
    %c0_i32_1 = arith.constant 0 : i32
    return %c0_i32, %c0_i32_0 : i32, i32
  }
}

</mosaic_0001>

<bundles_post_ra>
// kernel: siamese_forward.4
= control target key start
LH: loop header
LB: loop body
LE: loop exit
PB: predicated region body
PF: predicated region fallthrough
CT: control target
= control target key end

     0   :  { %s989_s12 = smov 0   ;;  %s1156_s0 = inlined_call_operand.vmem [shape: bf16[2,16,16,32], index: 0, kind: input, shape index: {}]   ;;  %s1157_s1 = inlined_call_operand.vmem [shape: bf16[1,32,64], index: 1, kind: input, shape index: {}]   ;;  %s1158_s2 = inlined_call_operand.vmem [shape: f32[1,64], index: 2, kind: input, shape index: {}]   ;;  %s1159_s3 = inlined_call_operand.vmem [shape: bf16[2,256,64], index: 3, kind: output, shape index: {}]  }
   0x1 LB: > { %s765_s13 = sadd.s32 4294967295, %s967_s12   ;;  %p769_p0 = scmp.ge.s32.totalorder %s967_s12, 1  ;;  %s967_s12 = sphi %s989_s12, %s13_s12  }
   0x2   : > { %p137_p1 = scmp.lt.s32.totalorder %s967_s12, 3 }
   0x4   : > { %p138_p2 = pnand %p769_p0, %p137_p1 }
   0x5   : > { %p161_p3 = scmp.lt.s32.totalorder (!%p138_p2), %s765_s13, 1 }
   0x6   : > { %141 = sbr.rel (%p138_p2) target bundleno = 250 (0xfa), region = 32 }
   0xb   : > { %v943_v0 = vld [vmem:[%s1157_s1 + $0x8] sm:$0xff]   ;;  %v944_v1 = vld [vmem:[%s1157_s1] sm:$0xff]   ;;  %s1161_s13 = smov (!%p161_p3, %s765_s13), 1  ;;  %vm307_vm0 = vcmask 261120   ;;  %vm677_vm1 = vcmask 519168  }
   0xc   : > { %895 = vmatprep.subr.bf16.mxu0 %v943_v0  ;;  %931 = vmatprep.subr.bf16.mxu1 %v943_v0  ;;  %s843_s18 = sshll.u32 %s1161_s13, 7  ;;  %v1048_v18 = vld [vmem:[%s1158_s2] ss:$0 sm:$0xff] }
   0xd   : > { %896 = vmatpush3.bf16.msra.mxu0 %v943_v0  ;;  %933 = vmatpush3.bf16.msra.mxu1 %v943_v0  ;;  %s1011_s21 = scalar_lea.vmem %s1156_s0, %s843_s18  ;;  %s1058_s26 = scalar_lea.vmem %s1159_s3, %s843_s18 }
   0xe   : > { %897 = vmatprep.subr.bf16.mxu0 %v944_v1  ;;  %932 = vmatprep.subr.bf16.mxu1 %v944_v1  ;;  %v945_v2 = vld [vmem:[%s1011_s21] sm:$0xff]   ;;  %v947_v4 = vld [vmem:[%s1011_s21 + $0x8] sm:$0xff]   ;;  %v949_v6 = vld [vmem:[%s1011_s21 + $0x10] sm:$0xff]  }
   0xf   : > { %v946_v3 = vld [vmem:[%s1011_s21 + $0x40] sm:$0xff]   ;;  %899 = vmatprep.mubr.msk.bf16.mxu0 %vm307_vm0, %v945_v2  ;;  %v948_v5 = vld [vmem:[%s1011_s21 + $0x48] sm:$0xff]   ;;  %v950_v7 = vld [vmem:[%s1011_s21 + $0x50] sm:$0xff]  }
  0x10   : > { %915 = vmatprep.mubr.msk.bf16.mxu1 %vm307_vm0, %v946_v3  ;;  %v951_v8 = vld [vmem:[%s1011_s21 + $0x18] sm:$0xff]   ;;  %v953_v10 = vld [vmem:[%s1011_s21 + $0x20] sm:$0xff]   ;;  %v955_v12 = vld [vmem:[%s1011_s21 + $0x28] sm:$0xff]  }
  0x11   : > { %898 = vmatpush3.bf16.msra.mxu0 %v944_v1  ;;  %934 = vmatpush3.bf16.msra.mxu1 %v944_v1  ;;  %v952_v9 = vld [vmem:[%s1011_s21 + $0x58] sm:$0xff]   ;;  %v954_v11 = vld [vmem:[%s1011_s21 + $0x60] sm:$0xff]   ;;  %v956_v13 = vld [vmem:[%s1011_s21 + $0x68] sm:$0xff]  }
  0x12   : > { %v957_v14 = vld [vmem:[%s1011_s21 + $0x30] sm:$0xff]   ;;  %v959_v16 = vld [vmem:[%s1011_s21 + $0x38] sm:$0xff]  }
  0x13   : > { %v958_v15 = vld [vmem:[%s1011_s21 + $0x70] sm:$0xff]   ;;  %v960_v17 = vld [vmem:[%s1011_s21 + $0x78] sm:$0xff]  }
  0x14   : > { %900 = vmatmul.mubr.msk.bf16.vlgmr.msra.gmra.mxu0 %vm307_vm0, %v947_v4  ;;  %916 = vmatmul.mubr.msk.bf16.vlgmr.msra.gmra.mxu1 %vm307_vm0, %v948_v5 }
  0x15   : > { %903 = vmatprep.mubr.msk.bf16.mxu0 %vm307_vm0, %v949_v6  ;;  %919 = vmatprep.mubr.msk.bf16.mxu1 %vm307_vm0, %v950_v7 }
  0x1c   : > { %904 = vmatmul.mubr.msk.bf16.gmra.mxu0 %vm307_vm0, %v951_v8  ;;  %920 = vmatmul.mubr.msk.bf16.gmra.mxu1 %vm307_vm0, %v952_v9 }
  0x1d   : > { %907 = vmatprep.mubr.msk.bf16.mxu0 %vm307_vm0, %v953_v10  ;;  %923 = vmatprep.mubr.msk.bf16.mxu1 %vm307_vm0, %v954_v11 }
  0x24   : > { %908 = vmatmul.mubr.msk.bf16.gmra.mxu0 %vm307_vm0, %v955_v12  ;;  %924 = vmatmul.mubr.msk.bf16.gmra.mxu1 %vm307_vm0, %v956_v13 }
  0x25   : > { %911 = vmatprep.mubr.msk.bf16.mxu0 %vm307_vm0, %v957_v14  ;;  %927 = vmatprep.mubr.msk.bf16.mxu1 %vm307_vm0, %v958_v15 }
  0x2c   : > { %912 = vmatmul.mubr.msk.bf16.gmra.mxu0 %vm307_vm0, %v959_v16  ;;  %928 = vmatmul.mubr.msk.bf16.gmra.mxu1 %vm307_vm0, %v960_v17 }
  0xd4   : > { %v901_v19 = vpop.f32.mrf.mxu0  ;;  %v917_v21 = vpop.f32.mrf.mxu1 }
  0xd5   : > { %v399_v20 = vadd.f32 %v901_v19, %v1048_v18  ;;  %v463_v22 = vadd.f32 %v917_v21, %v1048_v18 }
  0xd6   : > { %v390_v23 = vpop.f32.mrf.mxu0  ;;  %v454_v26 = vpop.f32.mrf.mxu1 }
  0xd7   : > { %v519_v24 = vmax.f32 %v399_v20, 0.0  ;;  %v391_v25 = vadd.f32 %v1048_v18, %v390_v23  ;;  %v535_v27 = vmax.f32 %v463_v22, 0.0  ;;  %v455_v28 = vadd.f32 %v1048_v18, %v454_v26 }
  0xd8   : > { %v902_v29 = vpop.f32.mrf.mxu0  ;;  %v918_v33 = vpop.f32.mrf.mxu1 }
  0xd9   : > { %v847_v30 = vpack.c.bf16 %v519_v24, %v519_v24  ;;  %v517_v31 = vmax.f32 %v391_v25, 0.0  ;;  %v402_v32 = vadd.f32 %v902_v29, %v1048_v18  ;;  %v863_v34 = vpack.c.bf16 %v535_v27, %v535_v27 }
  0xda   : > { %v533_v35 = vmax.f32 %v455_v28, 0.0  ;;  %v466_v36 = vadd.f32 %v918_v33, %v1048_v18  ;;  %v393_v37 = vpop.f32.mrf.mxu0  ;;  %v457_v41 = vpop.f32.mrf.mxu1 }
  0xdb   : > { %680 = vst.msk [vmem:[%s1058_s26 + $0x8] sm:$0xf] %vm677_vm1, %v847_v30  ;;  %v845_v38 = vpack.c.bf16 %v517_v31, %v517_v31  ;;  %v520_v39 = vmax.f32 %v402_v32, 0.0  ;;  %v394_v40 = vadd.f32 %v1048_v18, %v393_v37  ;;  %696 = vst.msk [vmem:[%s1058_s26 + $0x48] sm:$0xf] %vm677_vm1, %v863_v34  ;;  %v458_v44 = vadd.f32 %v1048_v18, %v457_v41 }
  0xdc   : > { %v861_v42 = vpack.c.bf16 %v533_v35, %v533_v35  ;;  %v536_v43 = vmax.f32 %v466_v36, 0.0  ;;  %v905_v45 = vpop.f32.mrf.mxu0  ;;  %v921_v49 = vpop.f32.mrf.mxu1 }
  0xdd   : > { %678 = vst.msk [vmem:[%s1058_s26] sm:$0xf] %vm677_vm1, %v845_v38  ;;  %v848_v46 = vpack.c.bf16 %v520_v39, %v520_v39  ;;  %v518_v47 = vmax.f32 %v394_v40, 0.0  ;;  %v415_v48 = vadd.f32 %v905_v45, %v1048_v18  ;;  %v534_v51 = vmax.f32 %v458_v44, 0.0 }
  0xde   : > { %694 = vst.msk [vmem:[%s1058_s26 + $0x40] sm:$0xf] %vm677_vm1, %v861_v42  ;;  %v864_v50 = vpack.c.bf16 %v536_v43, %v536_v43  ;;  %v479_v52 = vadd.f32 %v921_v49, %v1048_v18  ;;  %v406_v53 = vpop.f32.mrf.mxu0  ;;  %v470_v57 = vpop.f32.mrf.mxu1 }
  0xdf   : > { %681 = vst.msk [vmem:[%s1058_s26 + $0xc] sm:$0xf] %vm677_vm1, %v848_v46  ;;  %v846_v54 = vpack.c.bf16 %v518_v47, %v518_v47  ;;  %v523_v55 = vmax.f32 %v415_v48, 0.0  ;;  %v407_v56 = vadd.f32 %v1048_v18, %v406_v53  ;;  %v862_v58 = vpack.c.bf16 %v534_v51, %v534_v51 }
  0xe0   : > { %697 = vst.msk [vmem:[%s1058_s26 + $0x4c] sm:$0xf] %vm677_vm1, %v864_v50  ;;  %v539_v59 = vmax.f32 %v479_v52, 0.0  ;;  %v471_v60 = vadd.f32 %v1048_v18, %v470_v57  ;;  %v906_v61 = vpop.f32.mrf.mxu0  ;;  %v922_v1 = vpop.f32.mrf.mxu1 }
  0xe1   : > { %679 = vst.msk [vmem:[%s1058_s26 + $0x4] sm:$0xf] %vm677_vm1, %v846_v54  ;;  %v851_v62 = vpack.c.bf16 %v523_v55, %v523_v55  ;;  %v521_v63 = vmax.f32 %v407_v56, 0.0  ;;  %v418_v0 = vadd.f32 %v906_v61, %v1048_v18  ;;  %695 = vst.msk [vmem:[%s1058_s26 + $0x44] sm:$0xf] %vm677_vm1, %v862_v58  ;;  %v482_v4 = vadd.f32 %v922_v1, %v1048_v18 }
  0xe2   : > { %v867_v2 = vpack.c.bf16 %v539_v59, %v539_v59  ;;  %v537_v3 = vmax.f32 %v471_v60, 0.0  ;;  %v409_v5 = vpop.f32.mrf.mxu0  ;;  %v473_v9 = vpop.f32.mrf.mxu1 }
  0xe3   : > { %684 = vst.msk [vmem:[%s1058_s26 + $0x18] sm:$0xf] %vm677_vm1, %v851_v62  ;;  %v849_v6 = vpack.c.bf16 %v521_v63, %v521_v63  ;;  %v524_v7 = vmax.f32 %v418_v0, 0.0  ;;  %v410_v8 = vadd.f32 %v1048_v18, %v409_v5  ;;  %v540_v11 = vmax.f32 %v482_v4, 0.0 }
  0xe4   : > { %700 = vst.msk [vmem:[%s1058_s26 + $0x58] sm:$0xf] %vm677_vm1, %v867_v2  ;;  %v865_v10 = vpack.c.bf16 %v537_v3, %v537_v3  ;;  %v474_v12 = vadd.f32 %v1048_v18, %v473_v9  ;;  %v909_v13 = vpop.f32.mrf.mxu0  ;;  %v925_v17 = vpop.f32.mrf.mxu1 }
  0xe5   : > { %682 = vst.msk [vmem:[%s1058_s26 + $0x10] sm:$0xf] %vm677_vm1, %v849_v6  ;;  %v852_v14 = vpack.c.bf16 %v524_v7, %v524_v7  ;;  %v522_v15 = vmax.f32 %v410_v8, 0.0  ;;  %v431_v16 = vadd.f32 %v909_v13, %v1048_v18  ;;  %v868_v19 = vpack.c.bf16 %v540_v11, %v540_v11 }
  0xe6   : > { %698 = vst.msk [vmem:[%s1058_s26 + $0x50] sm:$0xf] %vm677_vm1, %v865_v10  ;;  %v538_v20 = vmax.f32 %v474_v12, 0.0  ;;  %v495_v21 = vadd.f32 %v925_v17, %v1048_v18  ;;  %v422_v22 = vpop.f32.mrf.mxu0  ;;  %v486_v26 = vpop.f32.mrf.mxu1 }
  0xe7   : > { %685 = vst.msk [vmem:[%s1058_s26 + $0x1c] sm:$0xf] %vm677_vm1, %v852_v14  ;;  %v850_v23 = vpack.c.bf16 %v522_v15, %v522_v15  ;;  %v527_v24 = vmax.f32 %v431_v16, 0.0  ;;  %v423_v25 = vadd.f32 %v1048_v18, %v422_v22  ;;  %701 = vst.msk [vmem:[%s1058_s26 + $0x5c] sm:$0xf] %vm677_vm1, %v868_v19  ;;  %v487_v29 = vadd.f32 %v1048_v18, %v486_v26 }
  0xe8   : > { %v866_v27 = vpack.c.bf16 %v538_v20, %v538_v20  ;;  %v543_v28 = vmax.f32 %v495_v21, 0.0  ;;  %v910_v30 = vpop.f32.mrf.mxu0  ;;  %v926_v34 = vpop.f32.mrf.mxu1 }
  0xe9   : > { %683 = vst.msk [vmem:[%s1058_s26 + $0x14] sm:$0xf] %vm677_vm1, %v850_v23  ;;  %v855_v31 = vpack.c.bf16 %v527_v24, %v527_v24  ;;  %v525_v32 = vmax.f32 %v423_v25, 0.0  ;;  %v434_v33 = vadd.f32 %v910_v30, %v1048_v18  ;;  %v541_v36 = vmax.f32 %v487_v29, 0.0 }
  0xea   : > { %699 = vst.msk [vmem:[%s1058_s26 + $0x54] sm:$0xf] %vm677_vm1, %v866_v27  ;;  %v871_v35 = vpack.c.bf16 %v543_v28, %v543_v28  ;;  %v498_v37 = vadd.f32 %v926_v34, %v1048_v18  ;;  %v425_v38 = vpop.f32.mrf.mxu0  ;;  %v489_v42 = vpop.f32.mrf.mxu1 }
  0xeb   : > { %688 = vst.msk [vmem:[%s1058_s26 + $0x28] sm:$0xf] %vm677_vm1, %v855_v31  ;;  %v853_v39 = vpack.c.bf16 %v525_v32, %v525_v32  ;;  %v528_v40 = vmax.f32 %v434_v33, 0.0  ;;  %v426_v41 = vadd.f32 %v1048_v18, %v425_v38  ;;  %v869_v43 = vpack.c.bf16 %v541_v36, %v541_v36 }
  0xec   : > { %704 = vst.msk [vmem:[%s1058_s26 + $0x68] sm:$0xf] %vm677_vm1, %v871_v35  ;;  %v544_v44 = vmax.f32 %v498_v37, 0.0  ;;  %v490_v45 = vadd.f32 %v1048_v18, %v489_v42  ;;  %v913_v46 = vpop.f32.mrf.mxu0  ;;  %v929_v50 = vpop.f32.mrf.mxu1 }
  0xed   : > { %686 = vst.msk [vmem:[%s1058_s26 + $0x20] sm:$0xf] %vm677_vm1, %v853_v39  ;;  %v856_v47 = vpack.c.bf16 %v528_v40, %v528_v40  ;;  %v526_v48 = vmax.f32 %v426_v41, 0.0  ;;  %v447_v49 = vadd.f32 %v913_v46, %v1048_v18  ;;  %702 = vst.msk [vmem:[%s1058_s26 + $0x60] sm:$0xf] %vm677_vm1, %v869_v43  ;;  %v511_v53 = vadd.f32 %v929_v50, %v1048_v18 }
  0xee   : > { %v872_v51 = vpack.c.bf16 %v544_v44, %v544_v44  ;;  %v542_v52 = vmax.f32 %v490_v45, 0.0  ;;  %v438_v54 = vpop.f32.mrf.mxu0  ;;  %v502_v58 = vpop.f32.mrf.mxu1 }
  0xef   : > { %689 = vst.msk [vmem:[%s1058_s26 + $0x2c] sm:$0xf] %vm677_vm1, %v856_v47  ;;  %v854_v55 = vpack.c.bf16 %v526_v48, %v526_v48  ;;  %v531_v56 = vmax.f32 %v447_v49, 0.0  ;;  %v439_v57 = vadd.f32 %v1048_v18, %v438_v54  ;;  %v547_v60 = vmax.f32 %v511_v53, 0.0 }
  0xf0   : > { %705 = vst.msk [vmem:[%s1058_s26 + $0x6c] sm:$0xf] %vm677_vm1, %v872_v51  ;;  %v870_v59 = vpack.c.bf16 %v542_v52, %v542_v52  ;;  %v503_v61 = vadd.f32 %v1048_v18, %v502_v58  ;;  %v914_v62 = vpop.f32.mrf.mxu0  ;;  %v930_v2 = vpop.f32.mrf.mxu1 }
  0xf1   : > { %687 = vst.msk [vmem:[%s1058_s26 + $0x24] sm:$0xf] %vm677_vm1, %v854_v55  ;;  %v859_v63 = vpack.c.bf16 %v531_v56, %v531_v56  ;;  %v529_v0 = vmax.f32 %v439_v57, 0.0  ;;  %v450_v1 = vadd.f32 %v914_v62, %v1048_v18  ;;  %v875_v3 = vpack.c.bf16 %v547_v60, %v547_v60 }
  0xf2   : > { %703 = vst.msk [vmem:[%s1058_s26 + $0x64] sm:$0xf] %vm677_vm1, %v870_v59  ;;  %v545_v4 = vmax.f32 %v503_v61, 0.0  ;;  %v514_v5 = vadd.f32 %v930_v2, %v1048_v18  ;;  %v441_v6 = vpop.f32.mrf.mxu0  ;;  %v505_v10 = vpop.f32.mrf.mxu1 }
  0xf3   : > { %692 = vst.msk [vmem:[%s1058_s26 + $0x38] sm:$0xf] %vm677_vm1, %v859_v63  ;;  %v857_v7 = vpack.c.bf16 %v529_v0, %v529_v0  ;;  %v532_v8 = vmax.f32 %v450_v1, 0.0  ;;  %v442_v9 = vadd.f32 %v1048_v18, %v441_v6  ;;  %708 = vst.msk [vmem:[%s1058_s26 + $0x78] sm:$0xf] %vm677_vm1, %v875_v3  ;;  %v506_v13 = vadd.f32 %v1048_v18, %v505_v10 }
  0xf4   : > { %v873_v11 = vpack.c.bf16 %v545_v4, %v545_v4  ;;  %v548_v12 = vmax.f32 %v514_v5, 0.0 }
  0xf5   : > { %690 = vst.msk [vmem:[%s1058_s26 + $0x30] sm:$0xf] %vm677_vm1, %v857_v7  ;;  %v860_v14 = vpack.c.bf16 %v532_v8, %v532_v8  ;;  %v530_v15 = vmax.f32 %v442_v9, 0.0  ;;  %v546_v17 = vmax.f32 %v506_v13, 0.0 }
  0xf6   : > { %706 = vst.msk [vmem:[%s1058_s26 + $0x70] sm:$0xf] %vm677_vm1, %v873_v11  ;;  %v876_v16 = vpack.c.bf16 %v548_v12, %v548_v12 }
  0xf7   : > { %693 = vst.msk [vmem:[%s1058_s26 + $0x3c] sm:$0xf] %vm677_vm1, %v860_v14  ;;  %v858_v19 = vpack.c.bf16 %v530_v15, %v530_v15  ;;  %v874_v20 = vpack.c.bf16 %v546_v17, %v546_v17 }
  0xf8   : > { %709 = vst.msk [vmem:[%s1058_s26 + $0x7c] sm:$0xf] %vm677_vm1, %v876_v16 }
  0xf9   : > { %691 = vst.msk [vmem:[%s1058_s26 + $0x34] sm:$0xf] %vm677_vm1, %v858_v19  ;;  %707 = vst.msk [vmem:[%s1058_s26 + $0x74] sm:$0xf] %vm677_vm1, %v874_v20 }
  0xfa PF: > { %s13_s12 = sadd.s32 1, %s967_s12  }
  0xfb   : > { %p10_p4 = scmp.ge.s32.totalorder %s13_s12, 4  }
  0xfd   :  { %12 = sbr.rel (!%p10_p4) target bundleno = 1 (0x1), region = 62 }

// kernel: siamese_forward.6
= control target key start
LH: loop header
LB: loop body
LE: loop exit
PB: predicated region body
PF: predicated region fallthrough
CT: control target
= control target key end

     0   :  { %s2614_s12 = smov 0   ;;  %s3217_s0 = inlined_call_operand.vmem [shape: bf16[2,6,6,128], index: 0, kind: input, shape index: {}]   ;;  %s3218_s1 = inlined_call_operand.vmem [shape: bf16[9,128,256], index: 1, kind: input, shape index: {}]   ;;  %s3219_s2 = inlined_call_operand.vmem [shape: f32[1,256], index: 2, kind: input, shape index: {}]   ;;  %s3220_s3 = inlined_call_operand.vmem [shape: bf16[2,16,256], index: 3, kind: output, shape index: {}]  }
   0x1 LB: > { %s2014_s13 = sadd.s32 4294967295, %s2590_s12   ;;  %p2018_p0 = scmp.ge.s32.totalorder %s2590_s12, 1  ;;  %s2590_s12 = sphi %s2614_s12, %s13_s12  }
   0x2   : > { %p137_p1 = scmp.lt.s32.totalorder %s2590_s12, 3 }
   0x4   : > { %p138_p2 = pnand %p2018_p0, %p137_p1 }
   0x5   : > { %p161_p3 = scmp.lt.s32.totalorder (!%p138_p2), %s2014_s13, 1 }
   0x6   : > { %141 = sbr.rel (%p138_p2) target bundleno = 380 (0x17c), region = 32 }
   0xb   : > { %v2356_v0 = vld [vmem:[%s3218_s1 + $0x174] ss:$8 sps:$4 sm:$0xff]   ;;  %v2360_v2 = vld [vmem:[%s3218_s1 + $0x170] ss:$8 sps:$4 sm:$0xff]   ;;  %v2362_v4 = vld [vmem:[%s3218_s1 + $0x164] ss:$8 sps:$4 sm:$0xff]   ;;  %v288_v40 = vlaneseq }
   0xc   : > { %v2358_v1 = vld [vmem:[%s3218_s1 + $0x74] ss:$8 sps:$4 sm:$0xff]   ;;  %652 = vmatprep.subr.bf16.mxu0 %v2356_v0  ;;  %v2361_v3 = vld [vmem:[%s3218_s1 + $0x70] ss:$8 sps:$4 sm:$0xff]   ;;  %v2364_v5 = vld [vmem:[%s3218_s1 + $0x64] ss:$8 sps:$4 sm:$0xff]  }
   0xd   : > { %855 = vmatprep.subr.bf16.mxu1 %v2358_v1  ;;  %653 = vmatpush1.bf16.msra.mxu0 %v2360_v2  ;;  %v2366_v6 = vld [vmem:[%s3218_s1 + $0x160] ss:$8 sps:$4 sm:$0xff]   ;;  %v2368_v8 = vld [vmem:[%s3218_s1 + $0x154] ss:$8 sps:$4 sm:$0xff]   ;;  %v2372_v10 = vld [vmem:[%s3218_s1 + $0x150] ss:$8 sps:$4 sm:$0xff]  }
   0xe   : > { %856 = vmatpush1.bf16.msra.mxu1 %v2361_v3  ;;  %654 = vmatprep.subr.bf16.mxu0 %v2362_v4  ;;  %v2367_v7 = vld [vmem:[%s3218_s1 + $0x60] ss:$8 sps:$4 sm:$0xff]   ;;  %v2370_v9 = vld [vmem:[%s3218_s1 + $0x54] ss:$8 sps:$4 sm:$0xff]   ;;  %v2373_v11 = vld [vmem:[%s3218_s1 + $0x50] ss:$8 sps:$4 sm:$0xff]  }
   0xf   : > { %857 = vmatprep.subr.bf16.mxu1 %v2364_v5  ;;  %v2374_v12 = vld [vmem:[%s3218_s1 + $0x144] ss:$8 sps:$4 sm:$0xff]   ;;  %v2378_v14 = vld [vmem:[%s3218_s1 + $0x140] ss:$8 sps:$4 sm:$0xff]   ;;  %v2380_v16 = vld [vmem:[%s3218_s1 + $0x134] ss:$8 sps:$4 sm:$0xff]  }
  0x10   : > { %v2376_v13 = vld [vmem:[%s3218_s1 + $0x44] ss:$8 sps:$4 sm:$0xff]   ;;  %v2379_v15 = vld [vmem:[%s3218_s1 + $0x40] ss:$8 sps:$4 sm:$0xff]   ;;  %v2382_v17 = vld [vmem:[%s3218_s1 + $0x34] ss:$8 sps:$4 sm:$0xff]  }
  0x11   : > { %655 = vmatpush1.bf16.msra.mxu0 %v2366_v6  ;;  %v2384_v18 = vld [vmem:[%s3218_s1 + $0x130] ss:$8 sps:$4 sm:$0xff]   ;;  %v2386_v20 = vld [vmem:[%s3218_s1 + $0x124] ss:$8 sps:$4 sm:$0xff]   ;;  %v2390_v22 = vld [vmem:[%s3218_s1 + $0x120] ss:$8 sps:$4 sm:$0xff]  }
  0x12   : > { %858 = vmatpush1.bf16.msra.mxu1 %v2367_v7  ;;  %656 = vmatprep.subr.bf16.mxu0 %v2368_v8  ;;  %v2385_v19 = vld [vmem:[%s3218_s1 + $0x30] ss:$8 sps:$4 sm:$0xff]   ;;  %v2388_v21 = vld [vmem:[%s3218_s1 + $0x24] ss:$8 sps:$4 sm:$0xff]   ;;  %v2391_v23 = vld [vmem:[%s3218_s1 + $0x20] ss:$8 sps:$4 sm:$0xff]  }
  0x13   : > { %859 = vmatprep.subr.bf16.mxu1 %v2370_v9  ;;  %v2392_v24 = vld [vmem:[%s3218_s1 + $0x114] ss:$8 sps:$4 sm:$0xff]   ;;  %v2396_v26 = vld [vmem:[%s3218_s1 + $0x110] ss:$8 sps:$4 sm:$0xff]   ;;  %v2398_v28 = vld [vmem:[%s3218_s1 + $0x104] ss:$8 sps:$4 sm:$0xff]  }
  0x14   : > { %v2394_v25 = vld [vmem:[%s3218_s1 + $0x14] ss:$8 sps:$4 sm:$0xff]   ;;  %v2397_v27 = vld [vmem:[%s3218_s1 + $0x10] ss:$8 sps:$4 sm:$0xff]   ;;  %v2400_v29 = vld [vmem:[%s3218_s1 + $0x4] ss:$8 sps:$4 sm:$0xff]  }
  0x15   : > { %657 = vmatpush1.bf16.msra.mxu0 %v2372_v10  ;;  %v2402_v30 = vld [vmem:[%s3218_s1 + $0x100] ss:$8 sps:$4 sm:$0xff]   ;;  %v2404_v32 = vld [vmem:[%s3218_s1 + $0x1f4] ss:$8 sps:$4 sm:$0xff]   ;;  %v2408_v34 = vld [vmem:[%s3218_s1 + $0x1f0] ss:$8 sps:$4 sm:$0xff]  }
  0x16   : > { %860 = vmatpush1.bf16.msra.mxu1 %v2373_v11  ;;  %658 = vmatprep.subr.bf16.mxu0 %v2374_v12  ;;  %v2403_v31 = vld [vmem:[%s3218_s1] ss:$8 sps:$4 sm:$0xff]   ;;  %v2406_v33 = vld [vmem:[%s3218_s1 + $0xf4] ss:$8 sps:$4 sm:$0xff]   ;;  %v2409_v35 = vld [vmem:[%s3218_s1 + $0xf0] ss:$8 sps:$4 sm:$0xff]  }
  0x17   : > { %861 = vmatprep.subr.bf16.mxu1 %v2376_v13  ;;  %v2410_v36 = vld [vmem:[%s3218_s1 + $0x1e4] ss:$8 sps:$4 sm:$0xff]   ;;  %s3234_s13 = smov (!%p161_p3, %s2014_s13), 1  ;;  %v2592_v38 = vmov 1983009808   ;;  %v2755_v46 = vshrl.u32 %v288_v40, 7 }
  0x18   : > { %v2412_v37 = vld [vmem:[%s3218_s1 + $0xe4] ss:$8 sps:$4 sm:$0xff]   ;;  %v286_v39 = vunpack.c.l.s4 %v2592_v38  ;;  %v2414_v41 = vld [vmem:[%s3218_s1 + $0x1e0] ss:$8 sps:$4 sm:$0xff]   ;;  %v2416_v43 = vld [vmem:[%s3218_s1 + $0x1d4] ss:$8 sps:$4 sm:$0xff]  }
  0x19   : > { %659 = vmatpush1.bf16.msra.mxu0 %v2378_v14  ;;  %v2415_v42 = vld [vmem:[%s3218_s1 + $0xe0] ss:$8 sps:$4 sm:$0xff]   ;;  %v2418_v44 = vld [vmem:[%s3218_s1 + $0xd4] ss:$8 sps:$4 sm:$0xff]   ;;  %s2345_s23 = smul.u32 24, %s3234_s13  ;;  %vm391_vm2 = vcmask 1040384  }
  0x1a   : > { %862 = vmatpush1.bf16.msra.mxu1 %v2379_v15  ;;  %660 = vmatprep.subr.bf16.mxu0 %v2380_v16  ;;  %v287_v45 = vunpack.c.0.s8 %v286_v39  ;;  %vm216_vm0 = vsmask.f32 1280  ;;  %v2420_v47 = vld [vmem:[%s3218_s1 + $0x1d0] ss:$8 sps:$4 sm:$0xff]   ;;  %vm217_vm1 = vsmask.f32 3336 }
  0x1b   : > { %863 = vmatprep.subr.bf16.mxu1 %v2382_v17  ;;  %v2421_v48 = vld [vmem:[%s3218_s1 + $0xd0] ss:$8 sps:$4 sm:$0xff]   ;;  %vm392_vm3 = vcmask 1042434   ;;  %v2422_v49 = vld [vmem:[%s3218_s1 + $0x1c4] ss:$8 sps:$4 sm:$0xff]   ;;  %s2772_s7 = scalar_lea.vmem %s3217_s0, %s2345_s23  ;;  %vm394_vm6 = vcmask 1044484   ;;  %vm2801_vm8 = vmor %vm216_vm0, %vm217_vm1 }
  0x1c   : > { %vm219_vm4 = vsmask.f32 5392  ;;  %v2424_v50 = vld [vmem:[%s3218_s1 + $0xc4] ss:$8 sps:$4 sm:$0xff]   ;;  %vm221_vm5 = vsmask.f32 7448  ;;  %v2781_v53 = vsub.s32 %v287_v45, %v2755_v46  ;;  %vm2828_vm10 = vmor %vm391_vm2, %vm392_vm3 }
  0x1d   : > { %661 = vmatpush1.bf16.msra.mxu0 %v2384_v18  ;;  %v2426_v51 = vld [vmem:[%s3218_s1 + $0x1c0] ss:$8 sps:$4 sm:$0xff]   ;;  %v2428_v54 = vld [vmem:[%s3218_s1 + $0x1b4] ss:$8 sps:$4 sm:$0xff]   ;;  %vm396_vm7 = vcmask 1046534   ;;  %vm2816_vm9 = vmor %vm2801_vm8, %vm219_vm4  ;;  %s2342_s14 = sshll.u32 %s3234_s13, 4 }
  0x1e   : > { %864 = vmatpush1.bf16.msra.mxu1 %v2385_v19  ;;  %662 = vmatprep.subr.bf16.mxu0 %v2386_v20  ;;  %v2427_v52 = vld [vmem:[%s3218_s1 + $0xc0] ss:$8 sps:$4 sm:$0xff]   ;;  %v2430_v55 = vld [vmem:[%s3218_s1 + $0xb4] ss:$8 sps:$4 sm:$0xff]   ;;  %v2432_v59 = vld [vmem:[%s3218_s1 + $0x1b0] ss:$8 sps:$4 sm:$0xff]   ;;  %s170_s17 = scalar_lea.vmem %s3220_s3, %s2342_s14 }
  0x1f   : > { %865 = vmatprep.subr.bf16.mxu1 %v2388_v21  ;;  %v2578_v56 = vld.sshfl [vmem:[%s2772_s7 + $0x4] sm:$0xf pattern:$0x76325410]  ;;  %v2433_v60 = vld [vmem:[%s3218_s1 + $0xb0] ss:$8 sps:$4 sm:$0xff]   ;;  %vm2838_vm11 = vmor %vm2816_vm9, %vm221_vm5 }
  0x20   : > { %v2579_v57 = vld.sshfl [vmem:[%s2772_s7 + $0xc] sm:$0xf pattern:$0x76325410]  ;;  %v2438_v17 = vld [vmem:[%s3218_s1 + $0x1a0] ss:$8 sps:$4 sm:$0xff]   ;;  %vm2851_vm12 = vmor %vm2828_vm10, %vm394_vm6 }
  0x21   : > { %663 = vmatpush1.bf16.msra.mxu0 %v2390_v22  ;;  %v2022_v58 = vld.sshfl [vmem:[%s2772_s7] sm:$0x13 pattern:$0x76325410]  ;;  %v2434_v1 = vld [vmem:[%s3218_s1 + $0x1a4] ss:$8 sps:$4 sm:$0xff]   ;;  %v457_v7 = vcombine.low %v2578_v56, %v2579_v57  ;;  %vm2875_vm13 = vmor %vm2851_vm12, %vm396_vm7 }
  0x22   : > { %866 = vmatpush1.bf16.msra.mxu1 %v2391_v23  ;;  %664 = vmatprep.subr.bf16.mxu0 %v2392_v24  ;;  %v2023_v61 = vld.sshfl [vmem:[%s2772_s7 + $0x4] sm:$0x13 pattern:$0x76325410]  ;;  %v191_v62 = vcombine.high %v2022_v58, %v2022_v58  ;;  %v224_v0 = vshrl.u32 %v2022_v58, 16  ;;  %v227_v5 = vshll.u32 %v2022_v58, 16 }
  0x23   : > { %867 = vmatprep.subr.bf16.mxu1 %v2394_v25  ;;  %v2436_v2 = vld [vmem:[%s3218_s1 + $0xa4] ss:$8 sps:$4 sm:$0xff]   ;;  %v2024_v3 = vld.sshfl [vmem:[%s2772_s7 + $0x8] sm:$0x13 pattern:$0x76325410]  ;;  %v199_v4 = vcombine.high %v2023_v61, %v2023_v61  ;;  %684 = vmatprep.mubr.bf16.mxu0 %v457_v7 }
  0x24   : > { %v238_v6 = vshrl.u32 %v2023_v61, 16  ;;  %v2025_v8 = vld.sshfl [vmem:[%s2772_s7 + $0xc] sm:$0x13 pattern:$0x76325410]  ;;  %v207_v9 = vcombine.high %v2024_v3, %v2024_v3  ;;  %v226_v10 = vrot.slane %v224_v0, 6 }
  0x25   : > { %665 = vmatpush1.bf16.msra.mxu0 %v2396_v26  ;;  %v233_v11 = vshll.u32 %v191_v62, 16  ;;  %v215_v12 = vcombine.high %v2025_v8, %v2025_v8  ;;  %v229_v14 = vrot.slane %v227_v5, 7  ;;  %v241_v16 = vshll.u32 %v2023_v61, 16  ;;  %v2439_v18 = vld [vmem:[%s3218_s1 + $0xa0] ss:$8 sps:$4 sm:$0xff]  }
  0x26   : > { %868 = vmatpush1.bf16.msra.mxu1 %v2397_v27  ;;  %666 = vmatprep.subr.bf16.mxu0 %v2398_v28  ;;  %v240_v15 = vrot.slane %v238_v6, 6  ;;  %v247_v20 = vshll.u32 %v199_v4, 16  ;;  %v252_v21 = vshrl.u32 %v2024_v3, 16  ;;  %v255_v22 = vshll.u32 %v2024_v3, 16  ;;  %v2440_v24 = vld [vmem:[%s3218_s1 + $0x194] ss:$8 sps:$4 sm:$0xff]  }
  0x27   : > { %869 = vmatprep.subr.bf16.mxu1 %v2400_v29  ;;  %v235_v19 = vrot.slane %v233_v11, 7  ;;  %v230_v25 = vor.u32 %v229_v14, %v226_v10  ;;  %v243_v26 = vrot.slane %v241_v16, 7  ;;  %v261_v27 = vshll.u32 %v207_v9, 16  ;;  %v2451_v13 = vld [vmem:[%s3218_s1 + $0x80] ss:$8 sps:$4 sm:$0xff]  }
  0x28   : > { %v266_v28 = vshrl.u32 %v2025_v8, 16  ;;  %v275_v45 = vshll.u32 %v215_v12, 16  ;;  %v2029_v63 = vld.sshfl [vmem:[%s2772_s7 + $0xc] sm:$0x12 pattern:$0x76325410] }
  0x29   : > { %667 = vmatpush1.bf16.msra.mxu0 %v2402_v30  ;;  %v249_v30 = vrot.slane %v247_v20, 7  ;;  %v263_v38 = vrot.slane %v261_v27, 7  ;;  %v390_v6 = vcombine.high %v2029_v63, %v2029_v63  ;;  %v2581_v7 = vld.sshfl [vmem:[%s2772_s7 + $0x8] sm:$0xf pattern:$0x76325410] }
  0x2a   : > { %870 = vmatpush1.bf16.msra.mxu1 %v2403_v31  ;;  %668 = vmatprep.subr.bf16.mxu0 %v2404_v32  ;;  %v254_v31 = vrot.slane %v252_v21, 6  ;;  %v257_v32 = vrot.slane %v255_v22, 7  ;;  %v268_v39 = vrot.slane %v266_v28, 6  ;;  %v277_v58 = vrot.slane %v275_v45, 7  ;;  %v2461_v22 = vld [vmem:[%s3218_s1 + $0x374] ss:$8 sps:$4 sm:$0xff]  }
  0x2b   : > { %871 = vmatprep.subr.bf16.mxu1 %v2406_v33  ;;  %v269_v33 = vshll.u32 %v2025_v8, 16  ;;  %v2450_v8 = vld [vmem:[%s3218_s1 + $0x180] ss:$8 sps:$4 sm:$0xff]   ;;  %v2033_v16 = vrot.slane %v2029_v63, 9  ;;  %v2473_v40 = vld [vmem:[%s3218_s1 + $0x354] ss:$8 sps:$4 sm:$0xff]  }
  0x2c   : > { %v2476_v45 = vld [vmem:[%s3218_s1 + $0x244] ss:$8 sps:$4 sm:$0xff]   ;;  %v2492_v63 = vld [vmem:[%s3218_s1 + $0x210] ss:$8 sps:$4 sm:$0xff]  }
  0x2d   : > { %669 = vmatpush2.bf16.msra.mxu0 %v2408_v34  ;;  %v2843_v34 = vld.sshfl [vmem:[%s2772_s7] sm:$0xf pattern:$0x76325410] }
  0x2e   : > { %872 = vmatpush2.bf16.msra.mxu1 %v2409_v35  ;;  %670 = vmatprep.subr.bf16.mxu0 %v2410_v36  ;;  %v2442_v35 = vld [vmem:[%s3218_s1 + $0x94] ss:$8 sps:$4 sm:$0xff]   ;;  %v231_v36 = vrot.slane %v230_v25, 2 }
  0x2f   : > { %873 = vmatprep.subr.bf16.mxu1 %v2412_v37  ;;  %v244_v37 = vor.u32 %v243_v26, %v240_v15 }
  0x31   : > { %671 = vmatpush2.bf16.msra.mxu0 %v2414_v41  ;;  %v2444_v41 = vld [vmem:[%s3218_s1 + $0x190] ss:$8 sps:$4 sm:$0xff]  }
  0x32   : > { %874 = vmatpush2.bf16.msra.mxu1 %v2415_v42  ;;  %672 = vmatprep.subr.bf16.mxu0 %v2416_v43  ;;  %v2445_v42 = vld [vmem:[%s3218_s1 + $0x90] ss:$8 sps:$4 sm:$0xff]   ;;  %v258_v43 = vor.u32 %v257_v32, %v254_v31 }
  0x33   : > { %875 = vmatprep.subr.bf16.mxu1 %v2418_v44  ;;  %v271_v44 = vrot.slane %v269_v33, 7  ;;  %v2459_v33 = vld [vmem:[%s3218_s1 + $0x370] ss:$8 sps:$4 sm:$0xff]  }
  0x34   : > { %v259_v56 = vrot.slane %v258_v43, 2  ;;  %v2468_v43 = vld [vmem:[%s3218_s1 + $0x250] ss:$8 sps:$4 sm:$0xff]  }
  0x35   : > { %673 = vmatpush2.bf16.msra.mxu0 %v2420_v47  ;;  %v2026_v47 = vld.sshfl [vmem:[%s2772_s7] sm:$0x12 pattern:$0x76325410]  ;;  %v272_v57 = vor.u32 %v271_v44, %v268_v39  ;;  %v2479_v44 = vld [vmem:[%s3218_s1 + $0x344] ss:$8 sps:$4 sm:$0xff]  }
  0x36   : > { %876 = vmatpush2.bf16.msra.mxu1 %v2421_v48  ;;  %674 = vmatprep.subr.bf16.mxu0 %v2422_v49  ;;  %v2446_v48 = vld [vmem:[%s3218_s1 + $0x184] ss:$8 sps:$4 sm:$0xff]   ;;  %v2886_v3 = vsel %vm2838_vm11, %v259_v56, %v263_v38  ;;  %v2465_v38 = vld [vmem:[%s3218_s1 + $0x360] ss:$8 sps:$4 sm:$0xff]  }
  0x37   : > { %877 = vmatprep.subr.bf16.mxu1 %v2424_v50  ;;  %v2448_v49 = vld [vmem:[%s3218_s1 + $0x84] ss:$8 sps:$4 sm:$0xff]   ;;  %v236_v50 = vsel %vm2838_vm11, %v231_v36, %v235_v19  ;;  %v273_v4 = vrot.slane %v272_v57, 2  ;;  %v2462_v39 = vld [vmem:[%s3218_s1 + $0x260] ss:$8 sps:$4 sm:$0xff]  }
  0x38   : > { %v2467_v36 = vld [vmem:[%s3218_s1 + $0x364] ss:$8 sps:$4 sm:$0xff]   ;;  %v2489_v56 = vld [vmem:[%s3218_s1 + $0x320] ss:$8 sps:$4 sm:$0xff]  }
  0x39   : > { %675 = vmatpush2.bf16.msra.mxu0 %v2426_v51  ;;  %v245_v51 = vrot.slane %v244_v37, 2  ;;  %v2900_v14 = vsel %vm2838_vm11, %v273_v4, %v277_v58  ;;  %v2464_v37 = vld [vmem:[%s3218_s1 + $0x264] ss:$8 sps:$4 sm:$0xff]   ;;  %v2486_v57 = vld [vmem:[%s3218_s1 + $0x220] ss:$8 sps:$4 sm:$0xff]  }
  0x3a   : > { %878 = vmatpush2.bf16.msra.mxu1 %v2427_v52  ;;  %676 = vmatprep.subr.bf16.mxu0 %v2428_v54  ;;  %v2027_v52 = vld.sshfl [vmem:[%s2772_s7 + $0x4] sm:$0x12 pattern:$0x76325410]  ;;  %v366_v54 = vcombine.high %v2026_v47, %v2026_v47  ;;  %v302_v19 = vcombine.low %v2886_v3, %v2900_v14  ;;  %v2497_v58 = vld [vmem:[%s3218_s1 + $0x314] ss:$8 sps:$4 sm:$0xff]  }
  0x3b   : > { %879 = vmatprep.subr.bf16.mxu1 %v2430_v55  ;;  %v2030_v55 = vrot.slane %v2026_v47, 9  ;;  %v2881_v62 = vsel %vm2838_vm11, %v245_v51, %v249_v30  ;;  %v299_v30 = vcombine.low %v2843_v34, %v2581_v7  ;;  %v2477_v47 = vld [vmem:[%s3218_s1 + $0x340] ss:$8 sps:$4 sm:$0xff]   ;;  %v2483_v51 = vld [vmem:[%s3218_s1 + $0x330] ss:$8 sps:$4 sm:$0xff]  }
  0x3c   : > { %v301_v5 = vcombine.low %v236_v50, %v2881_v62  ;;  %v2925_v25 = vrot.slane %v302_v19, %v2781_v53  ;;  %v1050_v27 = vcombine.low %v2881_v62, %v2886_v3  ;;  %v2482_v50 = vld [vmem:[%s3218_s1 + $0x234] ss:$8 sps:$4 sm:$0xff]   ;;  %v2498_v4 = vld [vmem:[%s3218_s1 + $0x200] ss:$8 sps:$4 sm:$0xff]   ;;  %v2507_v7 = vld [vmem:[%s3218_s1 + $0x3f0] ss:$8 sps:$4 sm:$0xff]  }
  0x3d   : > { %677 = vmatpush2.bf16.msra.mxu0 %v2432_v59  ;;  %v2028_v59 = vld.sshfl [vmem:[%s2772_s7 + $0x8] sm:$0x12 pattern:$0x76325410]  ;;  %v2518_v19 = vld [vmem:[%s3218_s1 + $0x2d4] ss:$8 sps:$4 sm:$0xff]  }
  0x3e   : > { %880 = vmatpush2.bf16.msra.mxu1 %v2433_v60  ;;  %678 = vmatprep.subr.bf16.mxu0 %v2434_v1  ;;  %v374_v60 = vcombine.high %v2027_v52, %v2027_v52  ;;  %v382_v0 = vcombine.high %v2028_v59, %v2028_v59  ;;  %v400_v1 = vrot.slane %v366_v54, 7  ;;  %v2032_v11 = vrot.slane %v2028_v59, 9  ;;  %v2491_v54 = vld [vmem:[%s3218_s1 + $0x324] ss:$8 sps:$4 sm:$0xff]   ;;  %v2494_v59 = vld [vmem:[%s3218_s1 + $0x214] ss:$8 sps:$4 sm:$0xff]  }
  0x3f   : > { %881 = vmatprep.subr.bf16.mxu1 %v2436_v2  ;;  %v2031_v2 = vrot.slane %v2027_v52, 9  ;;  %v309_v15 = vrot.slane %v301_v5, %v2781_v53  ;;  %v2480_v52 = vld [vmem:[%s3218_s1 + $0x230] ss:$8 sps:$4 sm:$0xff]   ;;  %v2509_v5 = vld [vmem:[%s3218_s1 + $0x3f4] ss:$8 sps:$4 sm:$0xff]  }
  0x40   : > { %v401_v9 = vsel %vm2875_vm13, %v2030_v55, %v400_v1  ;;  %v404_v10 = vrot.slane %v374_v60, 7  ;;  %v408_v12 = vrot.slane %v382_v0, 7  ;;  %v2488_v55 = vld [vmem:[%s3218_s1 + $0x224] ss:$8 sps:$4 sm:$0xff]   ;;  %v2495_v60 = vld [vmem:[%s3218_s1 + $0x310] ss:$8 sps:$4 sm:$0xff]  }
  0x41   : > { %679 = vmatpush2.bf16.msra.mxu0 %v2438_v17  ;;  %v412_v17 = vrot.slane %v390_v6, 7  ;;  %v317_v31 = vcombine.low %v309_v15, %v2925_v25  ;;  %v2503_v0 = vld [vmem:[%s3218_s1 + $0x304] ss:$8 sps:$4 sm:$0xff]   ;;  %v2506_v6 = vld [vmem:[%s3218_s1 + $0x2f4] ss:$8 sps:$4 sm:$0xff]  }
  0x42   : > { %882 = vmatpush2.bf16.msra.mxu1 %v2439_v18  ;;  %680 = vmatprep.subr.bf16.mxu0 %v2440_v24  ;;  %v2458_v18 = vld [vmem:[%s3218_s1 + $0x274] ss:$8 sps:$4 sm:$0xff]   ;;  %v2910_v20 = vsel %vm2875_vm13, %v2031_v2, %v404_v10  ;;  %v2914_v21 = vsel %vm2875_vm13, %v2032_v11, %v408_v12  ;;  %v2500_v1 = vld [vmem:[%s3218_s1 + $0x204] ss:$8 sps:$4 sm:$0xff]   ;;  %v2501_v2 = vld [vmem:[%s3218_s1 + $0x300] ss:$8 sps:$4 sm:$0xff]  }
  0x43   : > { %883 = vmatprep.subr.bf16.mxu1 %v2442_v35  ;;  %v2921_v23 = vsel %vm2875_vm13, %v2033_v16, %v412_v17  ;;  %v419_v24 = vcombine.low %v401_v9, %v2910_v20  ;;  %v2456_v35 = vld [vmem:[%s3218_s1 + $0x270] ss:$8 sps:$4 sm:$0xff]   ;;  %887 = vmatprep.mubr.bf16.mxu1 %v317_v31  ;;  %v2515_v9 = vld [vmem:[%s3218_s1 + $0x3e4] ss:$8 sps:$4 sm:$0xff]   ;;  %v2513_v11 = vld [vmem:[%s3218_s1 + $0x3e0] ss:$8 sps:$4 sm:$0xff]   ;;  %v1068_v17 = vcombine.low %v2910_v20, %v2914_v21 }
  0x44   : > { %v420_v26 = vcombine.low %v2914_v21, %v2921_v23  ;;  %v2512_v10 = vld [vmem:[%s3218_s1 + $0x2e4] ss:$8 sps:$4 sm:$0xff]   ;;  %v2510_v12 = vld [vmem:[%s3218_s1 + $0x2e0] ss:$8 sps:$4 sm:$0xff]   ;;  %v2516_v31 = vld [vmem:[%s3218_s1 + $0x2d0] ss:$8 sps:$4 sm:$0xff]  }
  0x45   : > { %681 = vmatpush2.bf16.msra.mxu0 %v2444_v41  ;;  %v427_v28 = vrot.slane %v419_v24, %v2781_v53  ;;  %v2470_v41 = vld [vmem:[%s3218_s1 + $0x254] ss:$8 sps:$4 sm:$0xff]   ;;  %v2539_v62 = vld [vmem:[%s3218_s1 + $0x3a4] ss:$8 sps:$4 sm:$0xff]  }
  0x46   : > { %884 = vmatpush2.bf16.msra.mxu1 %v2445_v42  ;;  %682 = vmatprep.subr.bf16.mxu0 %v2446_v48  ;;  %v2935_v32 = vrot.slane %v420_v26, %v2781_v53  ;;  %v2471_v42 = vld [vmem:[%s3218_s1 + $0x350] ss:$8 sps:$4 sm:$0xff]   ;;  %v2474_v48 = vld [vmem:[%s3218_s1 + $0x240] ss:$8 sps:$4 sm:$0xff]  }
  0x47   : > { %885 = vmatprep.subr.bf16.mxu1 %v2448_v49  ;;  %v2485_v49 = vld [vmem:[%s3218_s1 + $0x334] ss:$8 sps:$4 sm:$0xff]  }
  0x48   : > { %v435_v34 = vcombine.low %v427_v28, %v2935_v32  ;;  %v2229_v21 = vld.sshfl [vmem:[%s2772_s7 + $0x14] sm:$0x13 pattern:$0x76325410] }
  0x49   : > { %683 = vmatpush2.bf16.msra.mxu0 %v2450_v8  ;;  %v2504_v8 = vld [vmem:[%s3218_s1 + $0x2f0] ss:$8 sps:$4 sm:$0xff]  }
  0x4a   : > { %886 = vmatpush2.bf16.msra.mxu1 %v2451_v13  ;;  %1279 = vmatprep.subr.bf16.mxu0 %v2458_v18  ;;  %v2149_v13 = vld.sshfl [vmem:[%s2772_s7 + $0x10] sm:$0x12 pattern:$0x76325410] }
  0x4b   : > { %1660 = vmatprep.subr.bf16.mxu1 %v2461_v22  ;;  %v1033_v15 = vcombine.high %v2149_v13, %v2149_v13  ;;  %v2153_v16 = vrot.slane %v2149_v13, 9  ;;  %v2141_v18 = vld.sshfl [vmem:[%s2772_s7 + $0x10] sm:$0x13 pattern:$0x76325410] }
  0x4c   : > { %685 = vmatmul.mubr.bf16.vlgmr.msra.gmra.mxu0 %v435_v34  ;;  %v2521_v22 = vld [vmem:[%s3218_s1 + $0x3d4] ss:$8 sps:$4 sm:$0xff]   ;;  %v937_v24 = vcombine.high %v2141_v18, %v2141_v18  ;;  %v981_v26 = vshrl.u32 %v2141_v18, 16  ;;  %v984_v28 = vshll.u32 %v2141_v18, 16  ;;  %v1370_v34 = vcombine.high %v2229_v21, %v2229_v21  ;;  %v2543_v18 = vld [vmem:[%s3218_s1 + $0x390] ss:$8 sps:$4 sm:$0xff]  }
  0x4d   : > { %888 = vmatmul.mubr.bf16.vlgmr.msra.gmra.mxu1 %v299_v30  ;;  %1280 = vmatpush1.bf16.msra.mxu0 %v2456_v35  ;;  %v2519_v30 = vld [vmem:[%s3218_s1 + $0x3d0] ss:$8 sps:$4 sm:$0xff]   ;;  %v1048_v20 = vrot.slane %v1033_v15, 7  ;;  %v2542_v13 = vld [vmem:[%s3218_s1 + $0x294] ss:$8 sps:$4 sm:$0xff]  }
  0x4e   : > { %1661 = vmatpush1.bf16.msra.mxu1 %v2459_v33  ;;  %1281 = vmatprep.subr.bf16.mxu0 %v2464_v37  ;;  %v983_v33 = vrot.slane %v981_v26, 6  ;;  %v986_v35 = vrot.slane %v984_v28, 7  ;;  %v2548_v26 = vld [vmem:[%s3218_s1 + $0x284] ss:$8 sps:$4 sm:$0xff]   ;;  %v2549_v28 = vld [vmem:[%s3218_s1 + $0x380] ss:$8 sps:$4 sm:$0xff]  }
  0x4f   : > { %1662 = vmatprep.subr.bf16.mxu1 %v2467_v36  ;;  %v990_v36 = vshll.u32 %v937_v24, 16  ;;  %v3071_v37 = vsel %vm2875_vm13, %v2153_v16, %v1048_v20  ;;  %v2582_v16 = vld.sshfl [vmem:[%s2772_s7 + $0x8] sm:$0xf pattern:$0x76325410] }
  0x51   : > { %1282 = vmatpush1.bf16.msra.mxu0 %v2462_v39  ;;  %v1414_v39 = vshrl.u32 %v2229_v21, 16 }
  0x52   : > { %1663 = vmatpush1.bf16.msra.mxu1 %v2465_v38  ;;  %1283 = vmatprep.subr.bf16.mxu0 %v2470_v41  ;;  %v1076_v38 = vrot.slane %v1068_v17, %v2781_v53  ;;  %v2527_v41 = vld [vmem:[%s3218_s1 + $0x3c4] ss:$8 sps:$4 sm:$0xff]   ;;  %v2583_v17 = vld.sshfl [vmem:[%s2772_s7 + $0x10] sm:$0xf pattern:$0x76325410] }
  0x53   : > { %1664 = vmatprep.subr.bf16.mxu1 %v2473_v40  ;;  %v1417_v40 = vshll.u32 %v2229_v21, 16  ;;  %v2554_v21 = vld [vmem:[%s3218_s1 + $0x474] ss:$8 sps:$4 sm:$0xff]  }
  0x55   : > { %1284 = vmatpush1.bf16.msra.mxu0 %v2468_v43  ;;  %v987_v43 = vor.u32 %v986_v35, %v983_v33  ;;  %v2559_v33 = vld [vmem:[%s3218_s1 + $0x464] ss:$8 sps:$4 sm:$0xff]   ;;  %v2593_v35 = vmov 0  }
  0x56   : > { %1665 = vmatpush1.bf16.msra.mxu1 %v2471_v42  ;;  %1285 = vmatprep.subr.bf16.mxu0 %v2476_v45  ;;  %v1069_v42 = vcombine.low %v2921_v23, %v3071_v37  ;;  %v1423_v45 = vshll.u32 %v1370_v34, 16  ;;  %v2560_v34 = vld [vmem:[%s3218_s1 + $0x450] ss:$8 sps:$4 sm:$0xff]  }
  0x57   : > { %1666 = vmatprep.subr.bf16.mxu1 %v2479_v44  ;;  %v992_v44 = vrot.slane %v990_v36, 7  ;;  %v2562_v36 = vld [vmem:[%s3218_s1 + $0x454] ss:$8 sps:$4 sm:$0xff]  }
  0x58   : > { %v1425_v23 = vrot.slane %v1423_v45, 7  ;;  %v2577_v45 = vld [vmem:[%s3218_s1 + $0x404] ss:$8 sps:$4 sm:$0xff]  }
  0x59   : > { %1286 = vmatpush1.bf16.msra.mxu0 %v2474_v48  ;;  %v1416_v48 = vrot.slane %v1414_v39, 6  ;;  %v2568_v39 = vld [vmem:[%s3218_s1 + $0x434] ss:$8 sps:$4 sm:$0xff]  }
  0x5a   : > { %1667 = vmatpush1.bf16.msra.mxu1 %v2477_v47  ;;  %1287 = vmatprep.subr.bf16.mxu0 %v2482_v50  ;;  %v2524_v47 = vld [vmem:[%s3218_s1 + $0x2c4] ss:$8 sps:$4 sm:$0xff]   ;;  %v1083_v50 = vrot.slane %v1069_v42, %v2781_v53  ;;  %v2569_v42 = vld [vmem:[%s3218_s1 + $0x420] ss:$8 sps:$4 sm:$0xff]  }
  0x5b   : > { %1668 = vmatprep.subr.bf16.mxu1 %v2485_v49  ;;  %v1419_v49 = vrot.slane %v1417_v40, 7  ;;  %v2566_v40 = vld [vmem:[%s3218_s1 + $0x430] ss:$8 sps:$4 sm:$0xff]  }
  0x5d   : > { %1288 = vmatpush1.bf16.msra.mxu0 %v2480_v52  ;;  %v2525_v52 = vld [vmem:[%s3218_s1 + $0x3c0] ss:$8 sps:$4 sm:$0xff]  }
  0x5e   : > { %1669 = vmatpush1.bf16.msra.mxu1 %v2483_v51  ;;  %1289 = vmatprep.subr.bf16.mxu0 %v2488_v55  ;;  %v988_v51 = vrot.slane %v987_v43, 2  ;;  %v2522_v55 = vld [vmem:[%s3218_s1 + $0x2c0] ss:$8 sps:$4 sm:$0xff]   ;;  %v2574_v43 = vld [vmem:[%s3218_s1 + $0x414] ss:$8 sps:$4 sm:$0xff]  }
  0x5f   : > { %1670 = vmatprep.subr.bf16.mxu1 %v2491_v54  ;;  %v1420_v54 = vor.u32 %v1419_v49, %v1416_v48 }
  0x61   : > { %1290 = vmatpush1.bf16.msra.mxu0 %v2486_v57  ;;  %v1084_v57 = vcombine.low %v1076_v38, %v1083_v50  ;;  %v2563_v38 = vld [vmem:[%s3218_s1 + $0x440] ss:$8 sps:$4 sm:$0xff]  }
  0x62   : > { %1671 = vmatpush1.bf16.msra.mxu1 %v2489_v56  ;;  %1291 = vmatprep.subr.bf16.mxu0 %v2494_v59  ;;  %v2533_v56 = vld [vmem:[%s3218_s1 + $0x3b4] ss:$8 sps:$4 sm:$0xff]  }
  0x63   : > { %1672 = vmatprep.subr.bf16.mxu1 %v2497_v58  ;;  %v993_v58 = vsel %vm2838_vm11, %v988_v51, %v992_v44  ;;  %v2530_v59 = vld [vmem:[%s3218_s1 + $0x2b4] ss:$8 sps:$4 sm:$0xff]   ;;  %1311 = vmatprep.mubr.bf16.mxu0 %v1084_v57  ;;  %v2572_v44 = vld [vmem:[%s3218_s1 + $0x410] ss:$8 sps:$4 sm:$0xff]  }
  0x65   : > { %1292 = vmatpush1.bf16.msra.mxu0 %v2492_v63  ;;  %v1058_v63 = vrot.slane %v1050_v27, %v2781_v53  ;;  %v2536_v27 = vld [vmem:[%s3218_s1 + $0x2a4] ss:$8 sps:$4 sm:$0xff]  }
  0x66   : > { %1673 = vmatpush1.bf16.msra.mxu1 %v2495_v60  ;;  %1293 = vmatprep.subr.bf16.mxu0 %v2500_v1  ;;  %v1051_v60 = vcombine.low %v2900_v14, %v993_v58  ;;  %v2531_v1 = vld [vmem:[%s3218_s1 + $0x3b0] ss:$8 sps:$4 sm:$0xff]  }
  0x67   : > { %1674 = vmatprep.subr.bf16.mxu1 %v2503_v0  ;;  %v1421_v0 = vrot.slane %v1420_v54, 2  ;;  %v2528_v14 = vld [vmem:[%s3218_s1 + $0x2b0] ss:$8 sps:$4 sm:$0xff]  }
  0x69   : > { %1294 = vmatpush1.bf16.msra.mxu0 %v2498_v4  ;;  %v1426_v4 = vsel %vm2838_vm11, %v1421_v0, %v1425_v23 }
  0x6a   : > { %1675 = vmatpush1.bf16.msra.mxu1 %v2501_v2  ;;  %1295 = vmatprep.subr.bf16.mxu0 %v2506_v6  ;;  %v1065_v2 = vrot.slane %v1051_v60, %v2781_v53  ;;  %v1450_v3 = vcombine.low %v993_v58, %v1426_v4  ;;  %v2301_v6 = vld.sshfl [vmem:[%s2772_s7 + $0x14] sm:$0x12 pattern:$0x76325410]  ;;  %v1925_v4 = vld [vmem:[%s3219_s2] sm:$0x3] }
  0x6b   : > { %1676 = vmatprep.subr.bf16.mxu1 %v2509_v5 }
  0x6c   : > { %v1066_v5 = vcombine.low %v1058_v63, %v1065_v2  ;;  %v1464_v29 = vrot.slane %v1450_v3, %v2781_v53  ;;  %v1929_v2 = vsub.s32 0, %v2755_v46  ;;  %v1933_v3 = vsub.s32 1, %v2755_v46 }
  0x6d   : > { %1296 = vmatpush2.bf16.msra.mxu0 %v2504_v8  ;;  %v1746_v8 = vcombine.high %v2301_v6, %v2301_v6 }
  0x6e   : > { %1677 = vmatpush2.bf16.msra.mxu1 %v2507_v7  ;;  %1297 = vmatprep.subr.bf16.mxu0 %v2512_v10  ;;  %v2537_v7 = vld [vmem:[%s3218_s1 + $0x3a0] ss:$8 sps:$4 sm:$0xff]  }
  0x6f   : > { %1678 = vmatprep.subr.bf16.mxu1 %v2515_v9  ;;  %v2305_v9 = vrot.slane %v2301_v6, 9  ;;  %v2534_v10 = vld [vmem:[%s3218_s1 + $0x2a0] ss:$8 sps:$4 sm:$0xff]   ;;  %v1761_v15 = vrot.slane %v1746_v8, 7  ;;  %v1930_v8 = vrot.slane %v1925_v4, %v1929_v2 }
  0x71   : > { %1298 = vmatpush2.bf16.msra.mxu0 %v2510_v12  ;;  %v1465_v12 = vcombine.low %v2925_v25, %v1464_v29  ;;  %v2540_v25 = vld [vmem:[%s3218_s1 + $0x290] ss:$8 sps:$4 sm:$0xff]  }
  0x72   : > { %1679 = vmatpush2.bf16.msra.mxu1 %v2513_v11  ;;  %1299 = vmatprep.subr.bf16.mxu0 %v2518_v19  ;;  %v2545_v11 = vld [vmem:[%s3218_s1 + $0x394] ss:$8 sps:$4 sm:$0xff]   ;;  %v1762_v19 = vsel %vm2875_vm13, %v2305_v9, %v1761_v15 }
  0x73   : > { %1680 = vmatprep.subr.bf16.mxu1 %v2521_v22  ;;  %1692 = vmatprep.mubr.bf16.mxu1 %v1465_v12  ;;  %v2551_v22 = vld [vmem:[%s3218_s1 + $0x384] ss:$8 sps:$4 sm:$0xff]   ;;  %v1781_v24 = vcombine.low %v3071_v37, %v1762_v19 }
  0x74   : > { %v2565_v37 = vld [vmem:[%s3218_s1 + $0x444] ss:$8 sps:$4 sm:$0xff]  }
  0x75   : > { %1300 = vmatpush2.bf16.msra.mxu0 %v2516_v31  ;;  %v1795_v61 = vrot.slane %v1781_v24, %v2781_v53  ;;  %v1447_v31 = vcombine.low %v2582_v16, %v2583_v17  ;;  %v2552_v53 = vld [vmem:[%s3218_s1 + $0x470] ss:$8 sps:$4 sm:$0xff]  }
  0x76   : > { %1681 = vmatpush2.bf16.msra.mxu1 %v2519_v30  ;;  %1301 = vmatprep.subr.bf16.mxu0 %v2524_v47  ;;  %v2546_v30 = vld [vmem:[%s3218_s1 + $0x280] ss:$8 sps:$4 sm:$0xff]  }
  0x77   : > { %1682 = vmatprep.subr.bf16.mxu1 %v2527_v41  ;;  %v1796_v20 = vcombine.low %v2935_v32, %v1795_v61  ;;  %v2557_v32 = vld [vmem:[%s3218_s1 + $0x460] ss:$8 sps:$4 sm:$0xff]   ;;  %v2571_v41 = vld [vmem:[%s3218_s1 + $0x424] ss:$8 sps:$4 sm:$0xff]  }
  0x78   : > { %v2575_v47 = vld [vmem:[%s3218_s1 + $0x400] ss:$8 sps:$4 sm:$0xff]  }
  0x79   : > { %1302 = vmatpush2.bf16.msra.mxu0 %v2522_v55 }
  0x7a   : > { %1683 = vmatpush2.bf16.msra.mxu1 %v2525_v52  ;;  %1303 = vmatprep.subr.bf16.mxu0 %v2530_v59 }
  0x7b   : > { %1684 = vmatprep.subr.bf16.mxu1 %v2533_v56 }
  0x7d   : > { %1304 = vmatpush2.bf16.msra.mxu0 %v2528_v14 }
  0x7e   : > { %1685 = vmatpush2.bf16.msra.mxu1 %v2531_v1  ;;  %1305 = vmatprep.subr.bf16.mxu0 %v2536_v27 }
  0x7f   : > { %1686 = vmatprep.subr.bf16.mxu1 %v2539_v62 }
  0x81   : > { %1306 = vmatpush2.bf16.msra.mxu0 %v2534_v10 }
  0x82   : > { %1687 = vmatpush2.bf16.msra.mxu1 %v2537_v7  ;;  %1307 = vmatprep.subr.bf16.mxu0 %v2542_v13  ;;  %v1934_v13 = vrot.slane %v1925_v4, %v1933_v3 }
  0x83   : > { %1688 = vmatprep.subr.bf16.mxu1 %v2545_v11 }
  0x85   : > { %1308 = vmatpush2.bf16.msra.mxu0 %v2540_v25 }
  0x86   : > { %1689 = vmatpush2.bf16.msra.mxu1 %v2543_v18  ;;  %1309 = vmatprep.subr.bf16.mxu0 %v2548_v26 }
  0x87   : > { %1690 = vmatprep.subr.bf16.mxu1 %v2551_v22 }
  0x89   : > { %1310 = vmatpush2.bf16.msra.mxu0 %v2546_v30 }
  0x8a   : > { %1691 = vmatpush2.bf16.msra.mxu1 %v2549_v28  ;;  %1878 = vmatprep.subr.bf16.mxu0 %v2554_v21 }
  0x8c   : > { %1312 = vmatmul.mubr.bf16.vlgmr.msra.gmra.mxu0 %v1066_v5 }
  0x8d   : > { %1693 = vmatmul.mubr.bf16.vlgmr.msra.gmra.mxu1 %v1447_v31  ;;  %1879 = vmatpush1.bf16.msra.mxu0 %v2552_v53 }
  0x8e   : > { %1910 = vmatprep.mubr.bf16.mxu0 %v2593_v35  ;;  %1880 = vmatprep.subr.bf16.mxu0 %v2559_v33 }
  0x91   : > { %1881 = vmatpush1.bf16.msra.mxu0 %v2557_v32 }
  0x92   : > { %1882 = vmatprep.subr.bf16.mxu0 %v2562_v36 }
  0x95   : > { %1883 = vmatpush1.bf16.msra.mxu0 %v2560_v34 }
  0x96   : > { %1884 = vmatprep.subr.bf16.mxu0 %v2565_v37 }
  0x99   : > { %1885 = vmatpush1.bf16.msra.mxu0 %v2563_v38 }
  0x9a   : > { %1886 = vmatprep.subr.bf16.mxu0 %v2568_v39 }
  0x9d   : > { %1887 = vmatpush1.bf16.msra.mxu0 %v2566_v40 }
  0x9e   : > { %1888 = vmatprep.subr.bf16.mxu0 %v2571_v41 }
  0xa1   : > { %1889 = vmatpush1.bf16.msra.mxu0 %v2569_v42 }
  0xa2   : > { %1890 = vmatprep.subr.bf16.mxu0 %v2574_v43 }
  0xa5   : > { %1891 = vmatpush1.bf16.msra.mxu0 %v2572_v44 }
  0xa6   : > { %1892 = vmatprep.subr.bf16.mxu0 %v2577_v45 }
  0xa9   : > { %1893 = vmatpush1.bf16.msra.mxu0 %v2575_v47 }
  0xac   : > { %1911 = vmatmul.mubr.bf16.vlgmr.msra.gmra.mxu0 %v1796_v20 }
 0x10c   : > { %v686_v48 = vpop.f32.mrf.mxu0 }
 0x10d   : > { %v889_v49 = vpop.f32.mrf.mxu1 }
 0x10e   : > { %v688_v50 = vpop.f32.mrf.mxu0  ;;  %v890_v59 = vadd.f32 %v889_v49, %v686_v48 }
 0x10f   : > { %v891_v51 = vpop.f32.mrf.mxu1 }
 0x110   : > { %v690_v52 = vpop.f32.mrf.mxu0  ;;  %v892_v0 = vadd.f32 %v891_v51, %v688_v50 }
 0x111   : > { %v893_v54 = vpop.f32.mrf.mxu1 }
 0x112   : > { %v692_v23 = vpop.f32.mrf.mxu0  ;;  %v894_v14 = vadd.f32 %v893_v54, %v690_v52 }
 0x113   : > { %v895_v56 = vpop.f32.mrf.mxu1 }
 0x114   : > { %v896_v29 = vadd.f32 %v895_v56, %v692_v23 }
 0x14c   : > { %v1313_v55 = vpop.f32.mrf.mxu0 }
 0x14d   : > { %v1694_v58 = vpop.f32.mrf.mxu1  ;;  %v1322_v1 = vadd.f32 %v1313_v55, %v890_v59 }
 0x14e   : > { %v1315_v57 = vpop.f32.mrf.mxu0 }
 0x14f   : > { %v1696_v63 = vpop.f32.mrf.mxu1  ;;  %v1323_v62 = vadd.f32 %v1315_v57, %v892_v0  ;;  %v1703_v6 = vadd.f32 %v1694_v58, %v1322_v1 }
 0x150   : > { %v1317_v60 = vpop.f32.mrf.mxu0 }
 0x151   : > { %v1698_v5 = vpop.f32.mrf.mxu1  ;;  %v1324_v7 = vadd.f32 %v1317_v60, %v894_v14  ;;  %v1704_v10 = vadd.f32 %v1696_v63, %v1323_v62 }
 0x152   : > { %v1319_v27 = vpop.f32.mrf.mxu0 }
 0x153   : > { %v1325_v11 = vadd.f32 %v1319_v27, %v896_v29  ;;  %v1700_v15 = vpop.f32.mrf.mxu1  ;;  %v1705_v17 = vadd.f32 %v1698_v5, %v1324_v7 }
 0x155   : > { %v1706_v22 = vadd.f32 %v1700_v15, %v1325_v11 }
 0x16c   : > { %v1912_v9 = vpop.f32.mrf.mxu0 }
 0x16d   : > { %v1921_v12 = vadd.f32 %v1912_v9, %v1703_v6 }
 0x16e   : > { %v1914_v16 = vpop.f32.mrf.mxu0 }
 0x16f   : > { %v1937_v18 = vadd.f32 %v1930_v8, %v1921_v12  ;;  %v1922_v19 = vadd.f32 %v1914_v16, %v1704_v10 }
 0x170   : > { %v1916_v25 = vpop.f32.mrf.mxu0 }
 0x171   : > { %v1938_v46 = vadd.f32 %v1934_v13, %v1922_v19  ;;  %v1923_v24 = vadd.f32 %v1916_v25, %v1705_v17  ;;  %v1941_v61 = vmax.f32 %v1937_v18, 0.0 }
 0x172   : > { %v1918_v26 = vpop.f32.mrf.mxu0 }
 0x173   : > { %v1942_v28 = vmax.f32 %v1938_v46, 0.0  ;;  %v1939_v30 = vadd.f32 %v1930_v8, %v1923_v24  ;;  %v1924_v20 = vadd.f32 %v1918_v26, %v1706_v22 }
 0x175   : > { %v2343_v21 = vpack.c.bf16 %v1942_v28, %v1941_v61  ;;  %v1940_v31 = vadd.f32 %v1934_v13, %v1924_v20  ;;  %v1943_v53 = vmax.f32 %v1939_v30, 0.0 }
 0x177   : > { %1957 = vst [vmem:[%s170_s17] sm:$0xff] %v2343_v21  ;;  %v1944_v33 = vmax.f32 %v1940_v31, 0.0 }
 0x179   : > { %v2344_v32 = vpack.c.bf16 %v1944_v33, %v1943_v53 }
 0x17b   : > { %1958 = vst [vmem:[%s170_s17 + $0x8] sm:$0xff] %v2344_v32 }
 0x17c PF: > { %s13_s12 = sadd.s32 1, %s2590_s12  }
 0x17d   : > { %p10_p4 = scmp.ge.s32.totalorder %s13_s12, 4  }
 0x17f   :  { %12 = sbr.rel (!%p10_p4) target bundleno = 1 (0x1), region = 68 }

// kernel: siamese_forward.5
= control target key start
LH: loop header
LB: loop body
LE: loop exit
PB: predicated region body
PF: predicated region fallthrough
CT: control target
= control target key end

     0   :  { %s7152_s12 = smov 0   ;;  %s8982_s0 = inlined_call_operand.vmem [shape: bf16[2,12,12,64], index: 0, kind: input, shape index: {}]   ;;  %s8983_s1 = inlined_call_operand.vmem [shape: bf16[25,64,128], index: 1, kind: input, shape index: {}]   ;;  %s8984_s2 = inlined_call_operand.vmem [shape: f32[1,128], index: 2, kind: input, shape index: {}]   ;;  %s8985_s3 = inlined_call_operand.vmem [shape: bf16[2,64,128], index: 3, kind: output, shape index: {}]  }
   0x1 LB: > { %s5572_s13 = sadd.s32 4294967295, %s7130_s12   ;;  %p5576_p0 = scmp.ge.s32.totalorder %s7130_s12, 1  ;;  %s7130_s12 = sphi %s7152_s12, %s13_s12  }
   0x2   : > { %p137_p1 = scmp.lt.s32.totalorder %s7130_s12, 3 }
   0x4   : > { %p138_p2 = pnand %p5576_p0, %p137_p1 }
   0x6   : > { %141 = sbr.rel (%p138_p2) target bundleno = 536 (0x218), region = 32 }
   0xb   : > { %v7004_v0 = vld [vmem:[%s8983_s1 + $0x38] sm:$0xff]   ;;  %p161_p3 = scmp.lt.s32.totalorder %s5572_s13, 1  ;;  %v7006_v2 = vld [vmem:[%s8983_s1 + $0x30] sm:$0xff]   ;;  %v7008_v4 = vld [vmem:[%s8983_s1 + $0x28] sm:$0xff]   ;;  %vm356_vm0 = vcmask 523264   ;;  %vm579_vm4 = vcmask 1042432  }
   0xc   : > { %v7005_v1 = vld [vmem:[%s8983_s1 + $0x18] sm:$0xff]   ;;  %6587 = vmatprep.subr.bf16.mxu0 %v7004_v0  ;;  %v7007_v3 = vld [vmem:[%s8983_s1 + $0x10] sm:$0xff]   ;;  %v7009_v5 = vld [vmem:[%s8983_s1 + $0x8] sm:$0xff]   ;;  %vm196_vm1 = vsmask.f32 3328  ;;  %vm580_vm5 = vcmask 1046532  }
   0xd   : > { %s9071_s13 = smov (!%p161_p3, %s5572_s13), 1  ;;  %6603 = vmatprep.subr.bf16.mxu1 %v7005_v1  ;;  %6588 = vmatpush3.bf16.msra.mxu0 %v7004_v0  ;;  %v7010_v6 = vld [vmem:[%s8983_s1 + $0x20] sm:$0xff]   ;;  %vm197_vm2 = vsmask.f32 7440  ;;  %v7204_v18 = vld [vmem:[%s8983_s1 + $0x58] sm:$0xff]   ;;  %v7017_v58 = vld [vmem:[%s8983_s1 + $0x70] sm:$0xff]  }
   0xe   : > { %6604 = vmatpush3.bf16.msra.mxu1 %v7005_v1  ;;  %6589 = vmatprep.subr.bf16.mxu0 %v7006_v2  ;;  %s6995_s24 = smul.u32 96, %s9071_s13  ;;  %v7011_v7 = vld [vmem:[%s8983_s1] sm:$0xff]   ;;  %vm7214_vm3 = vmor %vm196_vm1, %vm197_vm2  ;;  %v7015_v38 = vld [vmem:[%s8983_s1 + $0x78] sm:$0xff]   ;;  %vm752_vm6 = vsmask.f32 2304  ;;  %vm1053_vm10 = vcmask 1041408  }
   0xf   : > { %6605 = vmatprep.subr.bf16.mxu1 %v7007_v3  ;;  %vm753_vm7 = vsmask.f32 6416  ;;  %vm7318_vm8 = vmor %vm579_vm4, %vm580_vm5  ;;  %vm1054_vm11 = vcmask 1045508   ;;  %s6355_s26 = sshll.u32 %s9071_s13, 5 }
  0x10   : > { %s7187_s4 = scalar_lea.vmem %s8982_s0, %s6995_s24  ;;  %vm7337_vm9 = vmor %vm752_vm6, %vm753_vm7  ;;  %s170_s29 = scalar_lea.vmem %s8985_s3, %s6355_s26 }
  0x11   : > { %6590 = vmatpush3.bf16.msra.mxu0 %v7006_v2  ;;  %v172_v8 = vld [vmem:[%s7187_s4] sm:$0xf]  ;;  %v173_v9 = vld [vmem:[%s7187_s4 + $0x8] sm:$0xf]  ;;  %v7195_v10 = vld [vmem:[%s7187_s4 + $0x4] sm:$0x1] }
  0x12   : > { %6606 = vmatpush3.bf16.msra.mxu1 %v7007_v3  ;;  %6591 = vmatprep.subr.bf16.mxu0 %v7008_v4  ;;  %v200_v11 = vshrl.u32 %v172_v8, 16  ;;  %v203_v12 = vshll.u32 %v172_v8, 16  ;;  %v214_v13 = vshrl.u32 %v173_v9, 16  ;;  %v217_v14 = vshll.u32 %v173_v9, 16  ;;  %v7198_v15 = vld [vmem:[%s7187_s4 + $0xc] sm:$0x1]  ;;  %vm7452_vm12 = vmor %vm1053_vm10, %vm1054_vm11 }
  0x13   : > { %6607 = vmatprep.subr.bf16.mxu1 %v7009_v5  ;;  %v5600_v16 = vcombine.low %v172_v8, %v173_v9  ;;  %v209_v17 = vshll.u32 %v7195_v10, 16  ;;  %v174_v23 = vld [vmem:[%s7187_s4 + $0x10] sm:$0xf]  ;;  %v223_v25 = vshll.u32 %v7198_v15, 16  ;;  %v584_v26 = vrot.slane %v7195_v10, 5 }
  0x14   : > { %v202_v19 = vrot.slane %v200_v11, 4  ;;  %v205_v20 = vrot.slane %v203_v12, 5  ;;  %v216_v21 = vrot.slane %v214_v13, 4  ;;  %v219_v22 = vrot.slane %v217_v14, 5  ;;  %v175_v28 = vld [vmem:[%s7187_s4 + $0x18] sm:$0xf] }
  0x15   : > { %6592 = vmatpush3.bf16.msra.mxu0 %v7008_v4  ;;  %v211_v24 = vrot.slane %v209_v17, 5  ;;  %v588_v27 = vrot.slane %v7198_v15, 5  ;;  %6611 = vmatprep.mubr.msk.bf16.mxu1 %vm356_vm0, %v5600_v16  ;;  %v228_v31 = vshrl.u32 %v174_v23, 16  ;;  %v231_v32 = vshll.u32 %v174_v23, 16  ;;  %v7223_v45 = vld [vmem:[%s7187_s4 + $0x14] sm:$0x1] }
  0x16   : > { %6608 = vmatpush3.bf16.msra.mxu1 %v7009_v5  ;;  %6593 = vmatprep.subr.bf16.mxu0 %v7010_v6  ;;  %v206_v29 = vor.u32 %v205_v20, %v202_v19  ;;  %v220_v30 = vor.u32 %v219_v22, %v216_v21  ;;  %v225_v34 = vrot.slane %v223_v25, 5  ;;  %v242_v35 = vshrl.u32 %v175_v28, 16  ;;  %v7226_v46 = vld [vmem:[%s7187_s4 + $0x1c] sm:$0x1]  ;;  %v176_v59 = vld [vmem:[%s7187_s4 + $0x20] sm:$0xf] }
  0x17   : > { %6609 = vmatprep.subr.bf16.mxu1 %v7011_v7  ;;  %v245_v36 = vshll.u32 %v175_v28, 16  ;;  %v5601_v37 = vcombine.low %v174_v23, %v175_v28  ;;  %v230_v41 = vrot.slane %v228_v31, 4  ;;  %v233_v42 = vrot.slane %v231_v32, 5  ;;  %v177_v62 = vld [vmem:[%s7187_s4 + $0x28] sm:$0xf]  ;;  %v7016_v8 = vld [vmem:[%s8983_s1 + $0x50] sm:$0xff]  }
  0x18   : > { %v207_v39 = vrot.slane %v206_v29, 4  ;;  %v221_v40 = vrot.slane %v220_v30, 4  ;;  %v244_v43 = vrot.slane %v242_v35, 4  ;;  %v237_v50 = vshll.u32 %v7223_v45, 16  ;;  %v7246_v5 = vld [vmem:[%s7187_s4 + $0x24] sm:$0x1] }
  0x19   : > { %6594 = vmatpush3.bf16.msra.mxu0 %v7010_v6  ;;  %v247_v44 = vrot.slane %v245_v36, 5  ;;  %v234_v49 = vor.u32 %v233_v42, %v230_v41  ;;  %v251_v53 = vshll.u32 %v7226_v46, 16  ;;  %v592_v54 = vrot.slane %v7223_v45, 5  ;;  %v7249_v6 = vld [vmem:[%s7187_s4 + $0x2c] sm:$0x1]  ;;  %v7026_v45 = vld [vmem:[%s8983_s1 + $0x90] sm:$0xff]  }
  0x1a   : > { %6610 = vmatpush3.bf16.msra.mxu1 %v7011_v7  ;;  %6619 = vmatprep.subr.bf16.mxu0 %v7204_v18  ;;  %v212_v47 = vsel %vm7214_vm3, %v207_v39, %v211_v24  ;;  %v226_v48 = vsel %vm7214_vm3, %v221_v40, %v225_v34  ;;  %v239_v56 = vrot.slane %v237_v50, 5  ;;  %v596_v57 = vrot.slane %v7226_v46, 5  ;;  %v178_v13 = vld [vmem:[%s7187_s4 + $0x30] sm:$0xf]  ;;  %v179_v20 = vld [vmem:[%s7187_s4 + $0x38] sm:$0xf] }
  0x1b   : > { %6635 = vmatprep.subr.bf16.mxu1 %v7015_v38  ;;  %v5588_v51 = vcombine.low %v212_v47, %v226_v48  ;;  %v248_v52 = vor.u32 %v247_v44, %v244_v43  ;;  %v235_v55 = vrot.slane %v234_v49, 4  ;;  %v253_v61 = vrot.slane %v251_v53, 5  ;;  %v7021_v21 = vld [vmem:[%s8983_s1 + $0x68] sm:$0xff]   ;;  %v7276_v42 = vld [vmem:[%s7187_s4 + $0x34] sm:$0x1] }
  0x1c   : > { %v256_v63 = vshrl.u32 %v176_v59, 16  ;;  %v259_v0 = vshll.u32 %v176_v59, 16  ;;  %v270_v2 = vshrl.u32 %v177_v62, 16  ;;  %v273_v3 = vshll.u32 %v177_v62, 16  ;;  %v7020_v41 = vld [vmem:[%s8983_s1 + $0x48] sm:$0xff]  }
  0x1d   : > { %6612 = vmatmul.mubr.msk.bf16.vlgmr.msra.gmra.mxu1 %vm356_vm0, %v5601_v37  ;;  %6595 = vmatprep.mubr.msk.bf16.mxu0 %vm356_vm0, %v5588_v51  ;;  %v249_v60 = vrot.slane %v248_v52, 4  ;;  %v240_v1 = vsel %vm7214_vm3, %v235_v55, %v239_v56  ;;  %v5602_v4 = vcombine.low %v176_v59, %v177_v62  ;;  %v265_v12 = vshll.u32 %v7246_v5, 16  ;;  %v7023_v37 = vld [vmem:[%s8983_s1 + $0x60] sm:$0xff]   ;;  %v7279_v43 = vld [vmem:[%s7187_s4 + $0x3c] sm:$0x1] }
  0x1e   : > { %6636 = vmatpush3.bf16.msra.mxu1 %v7015_v38  ;;  %v258_v9 = vrot.slane %v256_v63, 4  ;;  %v261_v11 = vrot.slane %v259_v0, 5  ;;  %v272_v16 = vrot.slane %v270_v2, 4  ;;  %v275_v17 = vrot.slane %v273_v3, 5  ;;  %v7022_v51 = vld [vmem:[%s8983_s1 + $0x40] sm:$0xff]   ;;  %v7292_v56 = vld [vmem:[%s8983_s1 + $0xb8] sm:$0xff]  }
  0x1f   : > { %6637 = vmatprep.subr.bf16.mxu1 %v7017_v58  ;;  %v254_v7 = vsel %vm7214_vm3, %v249_v60, %v253_v61  ;;  %6615 = vmatprep.mubr.msk.bf16.mxu1 %vm356_vm0, %v5602_v4  ;;  %v279_v19 = vshll.u32 %v7249_v6, 16  ;;  %v267_v23 = vrot.slane %v265_v12, 5  ;;  %v284_v24 = vshrl.u32 %v178_v13, 16  ;;  %v555_v55 = vld [vmem:[%s7187_s4] sm:$0xe] }
  0x20   : > { %v5589_v14 = vcombine.low %v240_v1, %v254_v7  ;;  %v262_v22 = vor.u32 %v261_v11, %v258_v9  ;;  %v287_v25 = vshll.u32 %v178_v13, 16  ;;  %v276_v28 = vor.u32 %v275_v17, %v272_v16  ;;  %v556_v61 = vld [vmem:[%s7187_s4 + $0x8] sm:$0xe]  ;;  %v7297_v63 = vld [vmem:[%s7187_s4 + $0x4] sm:$0x3]  ;;  %v7311_v11 = vld [vmem:[%s8983_s1 + $0x98] sm:$0xff]  }
  0x21   : > { %v281_v29 = vrot.slane %v279_v19, 5  ;;  %v298_v30 = vshrl.u32 %v179_v20, 16  ;;  %v301_v31 = vshll.u32 %v179_v20, 16  ;;  %v286_v34 = vrot.slane %v284_v24, 4  ;;  %v7300_v0 = vld [vmem:[%s7187_s4 + $0xc] sm:$0x3] }
  0x22   : > { %6638 = vmatpush3.bf16.msra.mxu1 %v7017_v58  ;;  %6596 = vmatmul.mubr.msk.bf16.vlgmr.msra.gmra.mxu0 %vm356_vm0, %v5589_v14  ;;  %v263_v32 = vrot.slane %v262_v22, 4  ;;  %v289_v35 = vrot.slane %v287_v25, 5  ;;  %v5603_v36 = vcombine.low %v178_v13, %v179_v20  ;;  %v277_v38 = vrot.slane %v276_v28, 4  ;;  %v557_v19 = vld [vmem:[%s7187_s4 + $0x10] sm:$0xe] }
  0x23   : > { %6639 = vmatprep.subr.bf16.mxu1 %v7021_v21  ;;  %6620 = vmatpush3.bf16.msra.mxu0 %v7204_v18  ;;  %v300_v39 = vrot.slane %v298_v30, 4  ;;  %v303_v40 = vrot.slane %v301_v31, 5  ;;  %v293_v48 = vshll.u32 %v7276_v42, 16  ;;  %v307_v50 = vshll.u32 %v7279_v43, 16  ;;  %v7325_v24 = vld [vmem:[%s7187_s4 + $0x14] sm:$0x3] }
  0x24   : > { %6621 = vmatprep.subr.bf16.mxu0 %v7016_v8  ;;  %v268_v18 = vsel %vm7214_vm3, %v263_v32, %v267_v23  ;;  %v290_v44 = vor.u32 %v289_v35, %v286_v34  ;;  %v282_v47 = vsel %vm7214_vm3, %v277_v38, %v281_v29  ;;  %v756_v62 = vshrl.u32 %v555_v55, 16  ;;  %v558_v31 = vld [vmem:[%s7187_s4 + $0x18] sm:$0xe] }
  0x25   : > { %6616 = vmatmul.mubr.msk.bf16.gmra.mxu1 %vm356_vm0, %v5603_v36  ;;  %v304_v49 = vor.u32 %v303_v40, %v300_v39  ;;  %v5590_v52 = vcombine.low %v268_v18, %v282_v47  ;;  %v295_v58 = vrot.slane %v293_v48, 5  ;;  %v309_v60 = vrot.slane %v307_v50, 5 }
  0x26   : > { %6640 = vmatpush3.bf16.msra.mxu1 %v7021_v21  ;;  %v291_v53 = vrot.slane %v290_v44, 4  ;;  %v758_v3 = vrot.slane %v756_v62, 5  ;;  %v759_v7 = vshll.u32 %v555_v55, 16  ;;  %v768_v9 = vshll.u32 %v7297_v63, 16 }
  0x27   : > { %6622 = vmatpush3.bf16.msra.mxu0 %v7016_v8  ;;  %6641 = vmatprep.subr.bf16.mxu1 %v7023_v37  ;;  %v305_v59 = vrot.slane %v304_v49, 4  ;;  %v765_v8 = vshrl.u32 %v7297_v63, 16  ;;  %v774_v12 = vshrl.u32 %v556_v61, 16  ;;  %v777_v13 = vshll.u32 %v556_v61, 16 }
  0x28   : > { %6623 = vmatprep.subr.bf16.mxu0 %v7020_v41  ;;  %6599 = vmatprep.mubr.msk.bf16.mxu0 %vm356_vm0, %v5590_v52  ;;  %v296_v1 = vsel %vm7214_vm3, %v291_v53, %v295_v58  ;;  %v783_v14 = vshrl.u32 %v7300_v0, 16  ;;  %v786_v16 = vshll.u32 %v7300_v0, 16  ;;  %v761_v20 = vrot.slane %v759_v7, 6 }
  0x29   : > { %v310_v2 = vsel %vm7214_vm3, %v305_v59, %v309_v60  ;;  %v767_v21 = vrot.slane %v765_v8, 5  ;;  %v770_v22 = vrot.slane %v768_v9, 6  ;;  %v5612_v23 = vrot.slane %v555_v55, 9 }
  0x2a   : > { %6642 = vmatpush3.bf16.msra.mxu1 %v7023_v37  ;;  %v5591_v4 = vcombine.low %v296_v1, %v310_v2  ;;  %v776_v25 = vrot.slane %v774_v12, 5  ;;  %v779_v28 = vrot.slane %v777_v13, 6  ;;  %v785_v29 = vrot.slane %v783_v14, 5  ;;  %v7333_v37 = vld [vmem:[%s7187_s4 + $0x1c] sm:$0x3] }
  0x2b   : > { %6624 = vmatpush3.bf16.msra.mxu0 %v7020_v41  ;;  %6667 = vmatprep.subr.bf16.mxu1 %v7292_v56  ;;  %v788_v30 = vrot.slane %v786_v16, 6  ;;  %v762_v32 = vor.u32 %v761_v20, %v758_v3  ;;  %v771_v34 = vor.u32 %v770_v22, %v767_v21  ;;  %v585_v35 = vsel %vm7318_vm8, %v5612_v23, %v584_v26 }
  0x2c   : > { %6625 = vmatprep.subr.bf16.mxu0 %v7022_v51  ;;  %6600 = vmatmul.mubr.msk.bf16.gmra.mxu0 %vm356_vm0, %v5591_v4  ;;  %v5613_v36 = vrot.slane %v556_v61, 9  ;;  %v780_v39 = vor.u32 %v779_v28, %v776_v25  ;;  %v792_v41 = vshrl.u32 %v557_v19, 16  ;;  %v795_v18 = vshll.u32 %v557_v19, 16  ;;  %v7355_v61 = vld [vmem:[%s7187_s4 + $0x20] sm:$0xe] }
  0x2d   : > { %v789_v40 = vor.u32 %v788_v30, %v785_v29  ;;  %v763_v44 = vrot.slane %v762_v32, 4  ;;  %v801_v26 = vshrl.u32 %v7325_v24, 16  ;;  %v804_v47 = vshll.u32 %v7325_v24, 16  ;;  %v7359_v4 = vld [vmem:[%s7187_s4 + $0x24] sm:$0x3] }
  0x2e   : > { %v589_v10 = vsel %vm7318_vm8, %v5613_v36, %v588_v27  ;;  %v781_v48 = vrot.slane %v780_v39, 4  ;;  %v794_v50 = vrot.slane %v792_v41, 5  ;;  %v810_v58 = vshrl.u32 %v558_v31, 16  ;;  %v560_v25 = vld [vmem:[%s7187_s4 + $0x28] sm:$0xe] }
  0x2f   : > { %6626 = vmatpush3.bf16.msra.mxu0 %v7022_v51  ;;  %v5628_v49 = vcombine.low %v585_v35, %v589_v10  ;;  %v797_v51 = vrot.slane %v795_v18, 6  ;;  %v772_v52 = vsel %vm7337_vm9, %v763_v44, %v771_v34  ;;  %v803_v53 = vrot.slane %v801_v26, 5  ;;  %v7384_v39 = vld [vmem:[%s7187_s4 + $0x30] sm:$0xe] }
  0x30   : > { %6651 = vmatprep.subr.bf16.mxu0 %v7311_v11  ;;  %v806_v55 = vrot.slane %v804_v47, 6  ;;  %v790_v15 = vsel %vm7337_vm9, %v781_v48, %v789_v40  ;;  %v813_v59 = vshll.u32 %v558_v31, 16  ;;  %v819_v60 = vshrl.u32 %v7333_v37, 16  ;;  %v7393_v47 = vld [vmem:[%s7187_s4 + $0x34] sm:$0x3] }
  0x31   : > { %6627 = vmatprep.mubr.msk.bf16.mxu0 %vm356_vm0, %v5628_v49  ;;  %v798_v27 = vor.u32 %v797_v51, %v794_v50  ;;  %v5648_v62 = vcombine.low %v772_v52, %v790_v15  ;;  %v812_v2 = vrot.slane %v810_v58, 5  ;;  %v822_v3 = vshll.u32 %v7333_v37, 16  ;;  %v7027_v49 = vld [vmem:[%s8983_s1 + $0xb0] sm:$0xff]  }
  0x32   : > { %v807_v1 = vor.u32 %v806_v55, %v803_v53  ;;  %v815_v8 = vrot.slane %v813_v59, 6  ;;  %v821_v9 = vrot.slane %v819_v60, 5  ;;  %v5614_v12 = vrot.slane %v557_v19, 9  ;;  %v7372_v19 = vld [vmem:[%s7187_s4 + $0x2c] sm:$0x3] }
  0x33   : > { %v799_v7 = vrot.slane %v798_v27, 4  ;;  %6643 = vmatprep.mubr.msk.bf16.mxu1 %vm356_vm0, %v5648_v62  ;;  %v824_v13 = vrot.slane %v822_v3, 6  ;;  %v5615_v14 = vrot.slane %v558_v31, 9  ;;  %v828_v16 = vshrl.u32 %v7355_v61, 16  ;;  %v7400_v53 = vld [vmem:[%s7187_s4 + $0x38] sm:$0xe] }
  0x34   : > { %v831_v20 = vshll.u32 %v7355_v61, 16  ;;  %v816_v22 = vor.u32 %v815_v8, %v812_v2  ;;  %v593_v23 = vsel %vm7318_vm8, %v5614_v12, %v592_v54  ;;  %v837_v28 = vshrl.u32 %v7359_v4, 16  ;;  %v7404_v59 = vld [vmem:[%s7187_s4 + $0x3c] sm:$0x3] }
  0x35   : > { %v808_v21 = vsel %vm7337_vm9, %v799_v7, %v807_v1  ;;  %v825_v29 = vor.u32 %v824_v13, %v821_v9  ;;  %v597_v30 = vsel %vm7318_vm8, %v5615_v14, %v596_v57  ;;  %v830_v31 = vrot.slane %v828_v16, 5 }
  0x36   : > { %v833_v32 = vrot.slane %v831_v20, 6  ;;  %v817_v34 = vrot.slane %v816_v22, 4  ;;  %v5629_v35 = vcombine.low %v593_v23, %v597_v30  ;;  %v839_v54 = vrot.slane %v837_v28, 5  ;;  %v1029_v30 = vld [vmem:[%s7187_s4] sm:$0xc] }
  0x37   : > { %v840_v36 = vshll.u32 %v7359_v4, 16  ;;  %v846_v41 = vshrl.u32 %v560_v25, 16  ;;  %v849_v46 = vshll.u32 %v560_v25, 16  ;;  %v855_v57 = vshrl.u32 %v7372_v19, 16 }
  0x38   : > { %v834_v40 = vor.u32 %v833_v32, %v830_v31  ;;  %v826_v18 = vsel %vm7337_vm9, %v817_v34, %v825_v29  ;;  %6628 = vmatmul.mubr.msk.bf16.vlgmr.msra.gmra.mxu0 %vm356_vm0, %v5629_v35  ;;  %v858_v10 = vshll.u32 %v7372_v19, 16  ;;  %v5616_v26 = vrot.slane %v7355_v61, 9  ;;  %v7031_v29 = vld [vmem:[%s8983_s1 + $0xa0] sm:$0xff]  }
  0x39   : > { %v842_v44 = vrot.slane %v840_v36, 6  ;;  %v5649_v48 = vcombine.low %v808_v21, %v826_v18  ;;  %6652 = vmatpush3.bf16.msra.mxu0 %v7311_v11  ;;  %v848_v51 = vrot.slane %v846_v41, 5  ;;  %v851_v52 = vrot.slane %v849_v46, 6  ;;  %v7028_v11 = vld [vmem:[%s8983_s1 + $0x88] sm:$0xff]   ;;  %v7030_v21 = vld [vmem:[%s8983_s1 + $0x80] sm:$0xff]  }
  0x3a   : > { %v835_v50 = vrot.slane %v834_v40, 4  ;;  %6653 = vmatprep.subr.bf16.mxu0 %v7026_v45  ;;  %v857_v58 = vrot.slane %v855_v57, 5  ;;  %v860_v15 = vrot.slane %v858_v10, 6  ;;  %v600_v27 = vrot.slane %v7246_v5, 5  ;;  %v1030_v41 = vld [vmem:[%s7187_s4 + $0x8] sm:$0xc] }
  0x3b   : > { %v843_v55 = vor.u32 %v842_v44, %v839_v54  ;;  %6644 = vmatmul.mubr.msk.bf16.vlgmr.msra.gmra.mxu1 %vm356_vm0, %v5649_v48  ;;  %v852_v60 = vor.u32 %v851_v52, %v848_v51  ;;  %v5617_v61 = vrot.slane %v560_v25, 9  ;;  %v604_v62 = vrot.slane %v7249_v6, 5  ;;  %v7447_v10 = vld [vmem:[%s8983_s1 + $0xd8] sm:$0xff]  }
  0x3c   : > { %v864_v1 = vshrl.u32 %v7384_v39, 16  ;;  %6668 = vmatpush3.bf16.msra.mxu1 %v7292_v56  ;;  %v861_v5 = vor.u32 %v860_v15, %v857_v58  ;;  %v601_v3 = vsel %vm7318_vm8, %v5616_v26, %v600_v27  ;;  %v867_v7 = vshll.u32 %v7384_v39, 16  ;;  %v7029_v56 = vld [vmem:[%s8983_s1 + $0xa8] sm:$0xff]  }
  0x3d   : > { %v844_v2 = vsel %vm7337_vm9, %v835_v50, %v843_v55  ;;  %6669 = vmatprep.subr.bf16.mxu1 %v7027_v49  ;;  %6654 = vmatpush3.bf16.msra.mxu0 %v7026_v45  ;;  %v853_v8 = vrot.slane %v852_v60, 4  ;;  %v605_v6 = vsel %vm7318_vm8, %v5617_v61, %v604_v62  ;;  %v873_v12 = vshrl.u32 %v7393_v47, 16  ;;  %v7459_v50 = vld [vmem:[%s8983_s1 + $0xf8] sm:$0xff]   ;;  %v7032_v27 = vld [vmem:[%s7187_s4 + $0x8] ss:$8 sps:$4 sm:$0xff]  }
  0x3e   : > { %v866_v9 = vrot.slane %v864_v1, 5  ;;  %v5630_v13 = vcombine.low %v601_v3, %v605_v6  ;;  %v869_v14 = vrot.slane %v867_v7, 6  ;;  %v876_v16 = vshll.u32 %v7393_v47, 16  ;;  %6655 = vmatprep.subr.bf16.mxu0 %v7028_v11  ;;  %v1031_v60 = vld [vmem:[%s7187_s4 + $0x10] sm:$0xc] }
  0x3f   : > { %v882_v20 = vshrl.u32 %v7400_v53, 16  ;;  %v862_v22 = vsel %vm7337_vm9, %v853_v8, %v861_v5  ;;  %v875_v23 = vrot.slane %v873_v12, 5  ;;  %v885_v25 = vshll.u32 %v7400_v53, 16  ;;  %v1032_v61 = vld [vmem:[%s7187_s4 + $0x18] sm:$0xc] }
  0x40   : > { %v891_v28 = vshrl.u32 %v7404_v59, 16  ;;  %6670 = vmatpush3.bf16.msra.mxu1 %v7027_v49  ;;  %v5650_v31 = vcombine.low %v844_v2, %v862_v22  ;;  %6631 = vmatprep.mubr.msk.bf16.mxu0 %vm356_vm0, %v5630_v13  ;;  %v870_v32 = vor.u32 %v869_v14, %v866_v9  ;;  %v878_v34 = vrot.slane %v876_v16, 6  ;;  %v1033_v12 = vld [vmem:[%s7187_s4 + $0x20] sm:$0xc] }
  0x41   : > { %v884_v35 = vrot.slane %v882_v20, 5  ;;  %v887_v45 = vrot.slane %v885_v25, 6  ;;  %v894_v36 = vshll.u32 %v7404_v59, 16  ;;  %6671 = vmatprep.subr.bf16.mxu1 %v7029_v56  ;;  %v5618_v40 = vrot.slane %v7384_v39, 9  ;;  %6656 = vmatpush3.bf16.msra.mxu0 %v7028_v11  ;;  %v7033_v20 = vld [vmem:[%s7187_s4 + $0x18] ss:$8 sps:$4 sm:$0xff]  }
  0x42   : > { %v893_v54 = vrot.slane %v891_v28, 5  ;;  %6647 = vmatprep.mubr.msk.bf16.mxu1 %vm356_vm0, %v5650_v31  ;;  %v871_v46 = vrot.slane %v870_v32, 4  ;;  %v879_v57 = vor.u32 %v878_v34, %v875_v23  ;;  %v608_v18 = vrot.slane %v7276_v42, 5  ;;  %6657 = vmatprep.subr.bf16.mxu0 %v7030_v21  ;;  %v7036_v23 = vld [vmem:[%s8983_s1 + $0xd0] sm:$0xff]  }
  0x43   : > { %v5619_v44 = vrot.slane %v7400_v53, 9  ;;  %v888_v26 = vor.u32 %v887_v45, %v884_v35  ;;  %v896_v48 = vrot.slane %v894_v36, 6  ;;  %v612_v39 = vrot.slane %v7279_v43, 5  ;;  %v7038_v25 = vld [vmem:[%s7187_s4 + $0x28] ss:$8 sps:$4 sm:$0xff]  }
  0x44   : > { %v5660_v42 = vrot.slane %v1029_v30, 10  ;;  %v880_v51 = vsel %vm7337_vm9, %v871_v46, %v879_v57  ;;  %v609_v43 = vsel %vm7318_vm8, %v5618_v40, %v608_v18  ;;  %6672 = vmatpush3.bf16.msra.mxu1 %v7029_v56  ;;  %v1058_v52 = vrot.slane %v7297_v63, 6  ;;  %v1034_v56 = vld [vmem:[%s7187_s4 + $0x28] sm:$0xc]  ;;  %v7037_v34 = vld [vmem:[%s8983_s1 + $0xf0] sm:$0xff]  }
  0x45   : > { %v5661_v53 = vrot.slane %v1030_v41, 10  ;;  %v889_v55 = vrot.slane %v888_v26, 4  ;;  %v897_v58 = vor.u32 %v896_v48, %v893_v54  ;;  %v613_v15 = vsel %vm7318_vm8, %v5619_v44, %v612_v39  ;;  %6673 = vmatprep.subr.bf16.mxu1 %v7031_v29  ;;  %6658 = vmatpush3.bf16.msra.mxu0 %v7030_v21  ;;  %v5717_v45 = vld [vmem:[%s7187_s4 + $0xc] sm:$0x1]  ;;  %v5719_v40 = vld [vmem:[%s7187_s4 + $0x14] sm:$0x1] }
  0x46   : > { %v1062_v11 = vrot.slane %v7300_v0, 6  ;;  %v5631_v62 = vcombine.low %v609_v43, %v613_v15  ;;  %v1059_v1 = vsel %vm7452_vm12, %v5660_v42, %v1058_v52  ;;  %6683 = vmatprep.subr.bf16.mxu0 %v7447_v10  ;;  %v5662_v63 = vrot.slane %v1031_v60, 10  ;;  %v7040_v41 = vld [vmem:[%s8983_s1 + $0xc8] sm:$0xff]   ;;  %v5718_v48 = vld [vmem:[%s7187_s4 + $0x10] sm:$0xf] }
  0x47   : > { %v1066_v2 = vrot.slane %v7325_v24, 6  ;;  %v898_v5 = vsel %vm7337_vm9, %v889_v55, %v897_v58  ;;  %v5663_v0 = vrot.slane %v1032_v61, 10  ;;  %v1070_v7 = vrot.slane %v7333_v37, 6  ;;  %v5716_v44 = vld [vmem:[%s7187_s4 + $0x8] sm:$0xf] }
  0x48   : > { %v1063_v3 = vsel %vm7452_vm12, %v5661_v53, %v1062_v11  ;;  %v5651_v8 = vcombine.low %v880_v51, %v898_v5  ;;  %6632 = vmatmul.mubr.msk.bf16.gmra.mxu0 %vm356_vm0, %v5631_v62  ;;  %6674 = vmatpush3.bf16.msra.mxu1 %v7031_v29  ;;  %v1074_v37 = vrot.slane %v7359_v4, 6  ;;  %v1078_v13 = vrot.slane %v7372_v19, 6  ;;  %v1035_v19 = vld [vmem:[%s7187_s4 + $0x30] sm:$0xc]  ;;  %v1036_v29 = vld [vmem:[%s7187_s4 + $0x38] sm:$0xc] }
  0x49   : > { %v5676_v6 = vcombine.low %v1059_v1, %v1063_v3  ;;  %6699 = vmatprep.subr.bf16.mxu1 %v7459_v50  ;;  %v1067_v24 = vsel %vm7452_vm12, %v5662_v63, %v1066_v2  ;;  %v1071_v9 = vsel %vm7452_vm12, %v5663_v0, %v1070_v7  ;;  %v5664_v14 = vrot.slane %v1033_v12, 10  ;;  %v7041_v51 = vld [vmem:[%s8983_s1 + $0xe8] sm:$0xff]   ;;  %v5721_v58 = vld [vmem:[%s7187_s4 + $0x1c] sm:$0x1]  ;;  %v7039_v15 = vld [vmem:[%s7187_s4 + $0x38] ss:$8 sps:$4 sm:$0xff]  }
  0x4a   : > { %6648 = vmatmul.mubr.msk.bf16.gmra.mxu1 %vm356_vm0, %v5651_v8  ;;  %v5665_v16 = vrot.slane %v1034_v56, 10  ;;  %v5677_v21 = vcombine.low %v1067_v24, %v1071_v9  ;;  %v5666_v30 = vrot.slane %v1035_v19, 10  ;;  %v1082_v31 = vrot.slane %v7393_v47, 6  ;;  %v7518_v47 = vld [vmem:[%s7187_s4 + $0x8] sm:$0xe]  ;;  %v7043_v0 = vld [vmem:[%s8983_s1 + $0xe0] sm:$0xff]  }
  0x4b   : > { %6659 = vmatprep.mubr.msk.bf16.mxu0 %vm356_vm0, %v5676_v6  ;;  %6675 = vmatprep.mubr.msk.bf16.mxu1 %vm356_vm0, %v7032_v27  ;;  %v1075_v22 = vsel %vm7452_vm12, %v5664_v14, %v1074_v37  ;;  %v1086_v32 = vrot.slane %v7404_v59, 6  ;;  %v5667_v35 = vrot.slane %v1036_v29, 10  ;;  %v7521_v59 = vld [vmem:[%s7187_s4 + $0x10] sm:$0xe]  ;;  %v5760_v46 = vrot.slane %v7518_v47, 9  ;;  %v7042_v27 = vld [vmem:[%s8983_s1 + $0xc0] sm:$0xff]  }
  0x4c   : > { %v1079_v4 = vsel %vm7452_vm12, %v5665_v16, %v1078_v13  ;;  %v1083_v54 = vsel %vm7452_vm12, %v5666_v30, %v1082_v31  ;;  %v1649_v57 = vrot.slane %v5717_v45, 5  ;;  %v5761_v18 = vrot.slane %v7521_v59, 9  ;;  %v5723_v62 = vld [vmem:[%s7187_s4 + $0x24] sm:$0x1]  ;;  %v7549_v3 = vld [vmem:[%s7187_s4 + $0x18] sm:$0xe] }
  0x4d   : > { %v5678_v28 = vcombine.low %v1075_v22, %v1079_v4  ;;  %v1087_v36 = vsel %vm7452_vm12, %v5667_v35, %v1086_v32  ;;  %v1653_v26 = vrot.slane %v5719_v40, 5  ;;  %v1385_v39 = vshll.u32 %v5716_v44, 16  ;;  %v7555_v8 = vld [vmem:[%s7187_s4 + $0x20] sm:$0xe]  ;;  %v7563_v16 = vld [vmem:[%s8983_s1 + $0x118] sm:$0xff]  }
  0x4e   : > { %v1391_v42 = vshll.u32 %v5717_v45, 16  ;;  %v5679_v43 = vcombine.low %v1083_v54, %v1087_v36  ;;  %v1396_v52 = vshrl.u32 %v5718_v48, 16  ;;  %v1399_v53 = vshll.u32 %v5718_v48, 16  ;;  %v5720_v4 = vld [vmem:[%s7187_s4 + $0x18] sm:$0xf] }
  0x4f   : > { %v1405_v55 = vshll.u32 %v5719_v40, 16  ;;  %v1654_v11 = vsel %vm7318_vm8, %v5761_v18, %v1653_v26  ;;  %v1387_v61 = vrot.slane %v1385_v39, 5  ;;  %v5762_v6 = vrot.slane %v7549_v3, 9  ;;  %v5722_v19 = vld [vmem:[%s7187_s4 + $0x20] sm:$0xf]  ;;  %v7045_v32 = vld [vmem:[%s8983_s1 + $0x138] sm:$0xff]  }
  0x50   : > { %6660 = vmatmul.mubr.msk.bf16.vlgmr.msra.gmra.mxu0 %vm356_vm0, %v5677_v21  ;;  %v1393_v1 = vrot.slane %v1391_v42, 5  ;;  %v1398_v63 = vrot.slane %v1396_v52, 4  ;;  %v1401_v2 = vrot.slane %v1399_v53, 5  ;;  %v1657_v24 = vrot.slane %v5721_v58, 5  ;;  %v7585_v26 = vld [vmem:[%s7187_s4 + $0x28] sm:$0xe] }
  0x51   : > { %6684 = vmatpush3.bf16.msra.mxu0 %v7447_v10  ;;  %6663 = vmatprep.mubr.msk.bf16.mxu0 %vm356_vm0, %v5678_v28  ;;  %v1382_v10 = vshrl.u32 %v5716_v44, 16  ;;  %v1407_v5 = vrot.slane %v1405_v55, 5  ;;  %v1661_v9 = vrot.slane %v5723_v62, 5  ;;  %v5763_v37 = vrot.slane %v7555_v8, 9  ;;  %v5727_v44 = vld [vmem:[%s7187_s4 + $0x34] sm:$0x1] }
  0x52   : > { %6676 = vmatmul.mubr.msk.bf16.vlgmr.msra.gmra.mxu1 %vm356_vm0, %v7033_v20  ;;  %6685 = vmatprep.subr.bf16.mxu0 %v7036_v23  ;;  %v1402_v56 = vor.u32 %v1401_v2, %v1398_v63  ;;  %v1419_v13 = vshll.u32 %v5721_v58, 16  ;;  %v1433_v20 = vshll.u32 %v5723_v62, 16  ;;  %v1658_v22 = vsel %vm7318_vm8, %v5762_v6, %v1657_v24  ;;  %v5724_v53 = vld [vmem:[%s7187_s4 + $0x28] sm:$0xf]  ;;  %v5726_v55 = vld [vmem:[%s7187_s4 + $0x30] sm:$0xf] }
  0x53   : > { %6700 = vmatpush3.bf16.msra.mxu1 %v7459_v50  ;;  %6679 = vmatprep.mubr.msk.bf16.mxu1 %vm356_vm0, %v7038_v25  ;;  %v1650_v50 = vsel %vm7318_vm8, %v5760_v46, %v1649_v57  ;;  %v1384_v60 = vrot.slane %v1382_v10, 4  ;;  %v1662_v28 = vsel %vm7318_vm8, %v5763_v37, %v1661_v9  ;;  %v1410_v29 = vshrl.u32 %v5720_v4, 16  ;;  %v7590_v10 = vld [vmem:[%s7187_s4 + $0x30] sm:$0xe] }
  0x54   : > { %6701 = vmatprep.subr.bf16.mxu1 %v7037_v34  ;;  %v5776_v12 = vcombine.low %v1650_v50, %v1654_v11  ;;  %v1403_v21 = vrot.slane %v1402_v56, 4  ;;  %v1413_v30 = vshll.u32 %v5720_v4, 16  ;;  %v1427_v35 = vshll.u32 %v5722_v19, 16  ;;  %v7620_v56 = vld [vmem:[%s7187_s4 + $0x40] sm:$0xe] }
  0x55   : > { %6686 = vmatpush3.bf16.msra.mxu0 %v7036_v23  ;;  %v1388_v7 = vor.u32 %v1387_v61, %v1384_v60  ;;  %v7569_v23 = vrot.slane %v1419_v13, 5  ;;  %v1435_v45 = vrot.slane %v1433_v20, 5  ;;  %v1412_v36 = vrot.slane %v1410_v29, 4  ;;  %v5729_v61 = vld [vmem:[%s7187_s4 + $0x3c] sm:$0x1] }
  0x56   : > { %6687 = vmatprep.subr.bf16.mxu0 %v7040_v41  ;;  %v1408_v31 = vsel %vm7214_vm3, %v1403_v21, %v1407_v5  ;;  %v1415_v40 = vrot.slane %v1413_v30, 5  ;;  %v5777_v46 = vcombine.low %v1658_v22, %v1662_v28  ;;  %v1429_v18 = vrot.slane %v1427_v35, 5  ;;  %v7607_v5 = vld [vmem:[%s7187_s4 + $0x44] sm:$0x1]  ;;  %v7049_v21 = vld [vmem:[%s8983_s1 + $0x128] sm:$0xff]  }
  0x57   : > { %6702 = vmatpush3.bf16.msra.mxu1 %v7037_v34  ;;  %v1389_v14 = vrot.slane %v1388_v7, 4  ;;  %v1424_v34 = vshrl.u32 %v5722_v19, 16  ;;  %v5764_v39 = vrot.slane %v7585_v26, 9  ;;  %v5765_v52 = vrot.slane %v7590_v10, 9  ;;  %v7046_v7 = vld [vmem:[%s8983_s1 + $0x110] sm:$0xff]  }
  0x58   : > { %6703 = vmatprep.subr.bf16.mxu1 %v7041_v51  ;;  %6664 = vmatmul.mubr.msk.bf16.gmra.mxu0 %vm356_vm0, %v5679_v43  ;;  %v1416_v48 = vor.u32 %v1415_v40, %v1412_v36  ;;  %v1438_v11 = vshrl.u32 %v5724_v53, 16  ;;  %v1441_v60 = vshll.u32 %v5724_v53, 16  ;;  %v1452_v2 = vshrl.u32 %v5726_v55, 16  ;;  %v5728_v35 = vld [vmem:[%s7187_s4 + $0x38] sm:$0xf] }
  0x59   : > { %6688 = vmatpush3.bf16.msra.mxu0 %v7040_v41  ;;  %v1394_v25 = vsel %vm7214_vm3, %v1389_v14, %v1393_v1  ;;  %v5725_v41 = vld [vmem:[%s7187_s4 + $0x2c] sm:$0x1]  ;;  %v1426_v57 = vrot.slane %v1424_v34, 4  ;;  %v1455_v14 = vshll.u32 %v5726_v55, 16  ;;  %v1461_v20 = vshll.u32 %v5727_v44, 16  ;;  %v7050_v55 = vld [vmem:[%s8983_s1 + $0x100] sm:$0xff]  }
  0x5a   : > { %6680 = vmatmul.mubr.msk.bf16.gmra.mxu1 %vm356_vm0, %v7039_v15  ;;  %6689 = vmatprep.subr.bf16.mxu0 %v7042_v27  ;;  %v5740_v54 = vcombine.low %v1394_v25, %v1408_v31  ;;  %v1665_v42 = vrot.slane %v5725_v41, 5  ;;  %v1447_v58 = vshll.u32 %v5725_v41, 16  ;;  %v1417_v15 = vrot.slane %v1416_v48, 4  ;;  %v7048_v34 = vld [vmem:[%s8983_s1 + $0x108] sm:$0xff]  }
  0x5b   : > { %6704 = vmatpush3.bf16.msra.mxu1 %v7041_v51  ;;  %6707 = vmatprep.mubr.msk.bf16.mxu1 %vm356_vm0, %v5776_v12  ;;  %v1669_v51 = vrot.slane %v5727_v44, 5  ;;  %v1430_v43 = vor.u32 %v1429_v18, %v1426_v57  ;;  %v1440_v24 = vrot.slane %v1438_v11, 4  ;;  %v1443_v9 = vrot.slane %v1441_v60, 5  ;;  %v7617_v12 = vld [vmem:[%s7187_s4 + $0x38] sm:$0xe] }
  0x5c   : > { %6705 = vmatprep.subr.bf16.mxu1 %v7043_v0  ;;  %6691 = vmatprep.mubr.msk.bf16.mxu0 %vm356_vm0, %v5740_v54  ;;  %v1666_v50 = vsel %vm7318_vm8, %v5764_v39, %v1665_v42  ;;  %v7604_v63 = vrot.slane %v1447_v58, 5  ;;  %v1454_v13 = vrot.slane %v1452_v2, 4  ;;  %v5766_v19 = vrot.slane %v7617_v12, 9  ;;  %v5816_v58 = vld [vmem:[%s7187_s4 + $0x8] sm:$0xc] }
  0x5d   : > { %6690 = vmatpush3.bf16.msra.mxu0 %v7042_v27  ;;  %v7047_v27 = vld [vmem:[%s8983_s1 + $0x130] sm:$0xff]   ;;  %v1431_v62 = vrot.slane %v1430_v43, 4  ;;  %v1670_v1 = vsel %vm7318_vm8, %v5765_v52, %v1669_v51  ;;  %v1444_v4 = vor.u32 %v1443_v9, %v1440_v24  ;;  %v1457_v25 = vrot.slane %v1455_v14, 5  ;;  %v5788_v11 = vld [vmem:[%s7187_s4 + $0xc] sm:$0x3] }
  0x5e   : > { %6715 = vmatprep.subr.bf16.mxu0 %v7563_v16  ;;  %v5778_v6 = vcombine.low %v1666_v50, %v1670_v1  ;;  %v1463_v28 = vrot.slane %v1461_v20, 5  ;;  %v5767_v29 = vrot.slane %v7620_v56, 9  ;;  %v1677_v30 = vrot.slane %v7607_v5, 5  ;;  %v5817_v60 = vld [vmem:[%s7187_s4 + $0x10] sm:$0xc] }
  0x5f   : > { %6706 = vmatpush3.bf16.msra.mxu1 %v7043_v0  ;;  %v1422_v0 = vsel %vm7214_vm3, %v1417_v15, %v7569_v23  ;;  %v1436_v37 = vsel %vm7214_vm3, %v1431_v62, %v1435_v45  ;;  %v1673_v23 = vrot.slane %v5729_v61, 5  ;;  %v1445_v31 = vrot.slane %v1444_v4, 4  ;;  %v5730_v45 = vld [vmem:[%s7187_s4 + $0x40] sm:$0xf] }
  0x60   : > { %6731 = vmatprep.subr.bf16.mxu1 %v7045_v32  ;;  %v5741_v22 = vcombine.low %v1422_v0, %v1436_v37  ;;  %v1475_v54 = vshll.u32 %v5729_v61, 16  ;;  %v1458_v36 = vor.u32 %v1457_v25, %v1454_v13  ;;  %v1678_v40 = vsel %vm7318_vm8, %v5767_v29, %v1677_v30  ;;  %v7662_v0 = vld [vmem:[%s8983_s1 + $0x178] sm:$0xff]   ;;  %v5819_v25 = vld [vmem:[%s7187_s4 + $0x20] sm:$0xc] }
  0x61   : > { %v1466_v41 = vshrl.u32 %v5728_v35, 16  ;;  %v1450_v57 = vsel %vm7214_vm3, %v1445_v31, %v7604_v63  ;;  %v1480_v44 = vshrl.u32 %v5730_v45, 16  ;;  %v1483_v51 = vshll.u32 %v5730_v45, 16  ;;  %v5789_v63 = vld [vmem:[%s7187_s4 + $0x14] sm:$0x3]  ;;  %v7678_v31 = vld [vmem:[%s8983_s1 + $0x158] sm:$0xff]  }
  0x62   : > { %6708 = vmatmul.mubr.msk.bf16.vlgmr.msra.gmra.mxu1 %vm356_vm0, %v5777_v46  ;;  %6692 = vmatmul.mubr.msk.bf16.vlgmr.msra.gmra.mxu0 %vm356_vm0, %v5741_v22  ;;  %v1469_v46 = vshll.u32 %v5728_v35, 16  ;;  %v1459_v48 = vrot.slane %v1458_v36, 4  ;;  %v1477_v43 = vrot.slane %v1475_v54, 5  ;;  %v1489_v53 = vshll.u32 %v7607_v5, 16  ;;  %v5790_v54 = vld [vmem:[%s7187_s4 + $0x1c] sm:$0x3] }
  0x63   : > { %6732 = vmatpush3.bf16.msra.mxu1 %v7045_v32  ;;  %6711 = vmatprep.mubr.msk.bf16.mxu1 %vm356_vm0, %v5778_v6  ;;  %v1674_v32 = vsel %vm7318_vm8, %v5766_v19, %v1673_v23  ;;  %v1468_v39 = vrot.slane %v1466_v41, 4  ;;  %v1482_v52 = vrot.slane %v1480_v44, 4  ;;  %v1485_v50 = vrot.slane %v1483_v51, 5 }
  0x64   : > { %6733 = vmatprep.subr.bf16.mxu1 %v7047_v27  ;;  %6716 = vmatpush3.bf16.msra.mxu0 %v7563_v16  ;;  %v5779_v18 = vcombine.low %v1674_v32, %v1678_v40  ;;  %v7051_v16 = vld [vmem:[%s8983_s1 + $0x120] sm:$0xff]   ;;  %v1471_v42 = vrot.slane %v1469_v46, 5  ;;  %v1464_v15 = vsel %vm7214_vm3, %v1459_v48, %v1463_v28  ;;  %v5824_v61 = vrot.slane %v5816_v58, 10 }
  0x65   : > { %6717 = vmatprep.subr.bf16.mxu0 %v7046_v7  ;;  %v5742_v62 = vcombine.low %v1450_v57, %v1464_v15  ;;  %v1491_v1 = vrot.slane %v1489_v53, 5  ;;  %v2117_v2 = vrot.slane %v5788_v11, 6  ;;  %v5825_v5 = vrot.slane %v5817_v60, 10  ;;  %v5791_v57 = vld [vmem:[%s7187_s4 + $0x24] sm:$0x3] }
  0x66   : > { %v1486_v6 = vor.u32 %v1485_v50, %v1482_v52  ;;  %v2121_v24 = vrot.slane %v5789_v63, 6  ;;  %v1818_v9 = vshrl.u32 %v7518_v47, 16  ;;  %v1821_v13 = vshll.u32 %v7518_v47, 16 }
  0x67   : > { %6734 = vmatpush3.bf16.msra.mxu1 %v7047_v27  ;;  %v1472_v27 = vor.u32 %v1471_v42, %v1468_v39  ;;  %6695 = vmatprep.mubr.msk.bf16.mxu0 %vm356_vm0, %v5742_v62  ;;  %v2118_v37 = vsel %vm7452_vm12, %v5824_v61, %v2117_v2  ;;  %v1827_v14 = vshrl.u32 %v5788_v11, 16  ;;  %v1830_v20 = vshll.u32 %v5788_v11, 16 }
  0x68   : > { %6735 = vmatprep.subr.bf16.mxu1 %v7049_v21  ;;  %6718 = vmatpush3.bf16.msra.mxu0 %v7046_v7  ;;  %v1487_v4 = vrot.slane %v1486_v6, 4  ;;  %v2122_v19 = vsel %vm7452_vm12, %v5825_v5, %v2121_v24  ;;  %v1820_v23 = vrot.slane %v1818_v9, 5  ;;  %v1823_v29 = vrot.slane %v1821_v13, 6  ;;  %v7055_v5 = vld [vmem:[%s8983_s1 + $0x170] sm:$0xff]   ;;  %v5792_v13 = vld [vmem:[%s7187_s4 + $0x2c] sm:$0x3] }
  0x69   : > { %6719 = vmatprep.subr.bf16.mxu0 %v7048_v34  ;;  %v1473_v7 = vrot.slane %v1472_v27, 4  ;;  %v5840_v28 = vcombine.low %v2118_v37, %v2122_v19  ;;  %v1829_v47 = vrot.slane %v1827_v14, 5  ;;  %v1832_v30 = vrot.slane %v1830_v20, 6  ;;  %v5821_v14 = vld [vmem:[%s7187_s4 + $0x30] sm:$0xc] }
  0x6a   : > { %6712 = vmatmul.mubr.msk.bf16.gmra.mxu1 %vm356_vm0, %v5779_v18  ;;  %v1492_v32 = vsel %vm7214_vm3, %v1487_v4, %v1491_v1  ;;  %v1839_v35 = vshll.u32 %v7521_v59, 16  ;;  %v1845_v45 = vshrl.u32 %v5789_v63, 16  ;;  %v1824_v40 = vor.u32 %v1823_v29, %v1820_v23  ;;  %v5793_v19 = vld [vmem:[%s7187_s4 + $0x34] sm:$0x3] }
  0x6b   : > { %6736 = vmatpush3.bf16.msra.mxu1 %v7049_v21  ;;  %v5818_v21 = vld [vmem:[%s7187_s4 + $0x18] sm:$0xc]  ;;  %v1478_v22 = vsel %vm7214_vm3, %v1473_v7, %v1477_v43  ;;  %6739 = vmatprep.mubr.msk.bf16.mxu1 %vm356_vm0, %v5840_v28  ;;  %v1833_v41 = vor.u32 %v1832_v30, %v1829_v47  ;;  %v1848_v46 = vshll.u32 %v5789_v63, 16  ;;  %v2125_v51 = vrot.slane %v5790_v54, 6  ;;  %v5820_v7 = vld [vmem:[%s7187_s4 + $0x28] sm:$0xc] }
  0x6c   : > { %6737 = vmatprep.subr.bf16.mxu1 %v7051_v16  ;;  %6720 = vmatpush3.bf16.msra.mxu0 %v7048_v34  ;;  %v1836_v34 = vshrl.u32 %v7521_v59, 16  ;;  %v5743_v36 = vcombine.low %v1478_v22, %v1492_v32  ;;  %v1841_v44 = vrot.slane %v1839_v35, 6  ;;  %v5826_v48 = vrot.slane %v5818_v21, 10 }
  0x6d   : > { %6721 = vmatprep.subr.bf16.mxu0 %v7050_v55  ;;  %v1825_v39 = vrot.slane %v1824_v40, 4  ;;  %v1850_v42 = vrot.slane %v1848_v46, 6  ;;  %v5827_v59 = vrot.slane %v5819_v25, 10  ;;  %v2129_v52 = vrot.slane %v5791_v57, 6 }
  0x6e   : > { %v1838_v18 = vrot.slane %v1836_v34, 5  ;;  %6696 = vmatmul.mubr.msk.bf16.gmra.mxu0 %vm356_vm0, %v5743_v36  ;;  %v1854_v53 = vshrl.u32 %v7549_v3, 16  ;;  %v1857_v58 = vshll.u32 %v7549_v3, 16  ;;  %v2126_v27 = vsel %vm7452_vm12, %v5826_v48, %v2125_v51  ;;  %v7057_v34 = vld [vmem:[%s8983_s1 + $0x168] sm:$0xff]  }
  0x6f   : > { %6738 = vmatpush3.bf16.msra.mxu1 %v7051_v16  ;;  %v1847_v16 = vrot.slane %v1845_v45, 5  ;;  %v1863_v50 = vshrl.u32 %v5790_v54, 16  ;;  %v2130_v60 = vsel %vm7452_vm12, %v5827_v59, %v2129_v52  ;;  %v1866_v3 = vshll.u32 %v5790_v54, 16  ;;  %v7059_v59 = vld [vmem:[%s8983_s1 + $0x160] sm:$0xff]  }
  0x70   : > { %6763 = vmatprep.subr.bf16.mxu1 %v7662_v0  ;;  %6722 = vmatpush3.bf16.msra.mxu0 %v7050_v55  ;;  %v1842_v43 = vor.u32 %v1841_v44, %v1838_v18  ;;  %v1834_v55 = vsel %vm7337_vm9, %v1825_v39, %v1833_v41  ;;  %v1856_v61 = vrot.slane %v1854_v53, 5  ;;  %v1859_v62 = vrot.slane %v1857_v58, 6 }
  0x71   : > { %6747 = vmatprep.subr.bf16.mxu0 %v7678_v31  ;;  %v1851_v15 = vor.u32 %v1850_v42, %v1847_v16  ;;  %v5841_v1 = vcombine.low %v2126_v27, %v2130_v60  ;;  %v1865_v63 = vrot.slane %v1863_v50, 5  ;;  %v1872_v2 = vshrl.u32 %v7555_v8, 16  ;;  %v7054_v27 = vld [vmem:[%s8983_s1 + $0x150] sm:$0xff]  }
  0x72   : > { %v1843_v11 = vrot.slane %v1842_v43, 4  ;;  %v1860_v24 = vor.u32 %v1859_v62, %v1856_v61  ;;  %v1875_v9 = vshll.u32 %v7555_v8, 16  ;;  %v1881_v37 = vshrl.u32 %v5791_v57, 16 }
  0x73   : > { %6740 = vmatmul.mubr.msk.bf16.vlgmr.msra.gmra.mxu1 %vm356_vm0, %v5841_v1  ;;  %v1868_v21 = vrot.slane %v1866_v3, 6  ;;  %v1874_v22 = vrot.slane %v1872_v2, 5  ;;  %v1884_v4 = vshll.u32 %v5791_v57, 16  ;;  %v5828_v29 = vrot.slane %v5820_v7, 10  ;;  %v5822_v57 = vld [vmem:[%s7187_s4 + $0x38] sm:$0xc] }
  0x74   : > { %v1852_v6 = vsel %vm7337_vm9, %v1843_v11, %v1851_v15  ;;  %v1861_v23 = vrot.slane %v1860_v24, 4  ;;  %v1877_v25 = vrot.slane %v1875_v9, 6  ;;  %v1883_v28 = vrot.slane %v1881_v37, 5  ;;  %6764 = vmatpush3.bf16.msra.mxu1 %v7662_v0  ;;  %v7742_v24 = vld [vmem:[%s8983_s1 + $0x1b8] sm:$0xff]  }
  0x75   : > { %v5804_v20 = vcombine.low %v1834_v55, %v1852_v6  ;;  %v1869_v8 = vor.u32 %v1868_v21, %v1865_v63  ;;  %v1886_v47 = vrot.slane %v1884_v4, 6  ;;  %6765 = vmatprep.subr.bf16.mxu1 %v7055_v5  ;;  %v2133_v30 = vrot.slane %v5792_v13, 6  ;;  %v5823_v55 = vld [vmem:[%s7187_s4 + $0x40] sm:$0xc]  ;;  %v5794_v63 = vld [vmem:[%s7187_s4 + $0x3c] sm:$0x3] }
  0x76   : > { %v5829_v32 = vrot.slane %v5821_v14, 10  ;;  %v1878_v35 = vor.u32 %v1877_v25, %v1874_v22  ;;  %v2137_v45 = vrot.slane %v5793_v19, 6  ;;  %v1890_v54 = vshrl.u32 %v7585_v26, 16  ;;  %v7056_v4 = vld [vmem:[%s8983_s1 + $0x148] sm:$0xff]  }
  0x77   : > { %6723 = vmatprep.mubr.msk.bf16.mxu0 %vm356_vm0, %v5804_v20  ;;  %v1893_v36 = vshll.u32 %v7585_v26, 16  ;;  %v1870_v0 = vsel %vm7337_vm9, %v1861_v23, %v1869_v8  ;;  %v1887_v40 = vor.u32 %v1886_v47, %v1883_v28  ;;  %v2134_v41 = vsel %vm7452_vm12, %v5828_v29, %v2133_v30  ;;  %v5880_v30 = vld [vmem:[%s7187_s4 + $0x10] sm:$0xf] }
  0x78   : > { %v1899_v46 = vshrl.u32 %v5792_v13, 16  ;;  %v1879_v18 = vrot.slane %v1878_v35, 4  ;;  %6766 = vmatpush3.bf16.msra.mxu1 %v7055_v5  ;;  %v2138_v44 = vsel %vm7452_vm12, %v5829_v32, %v2137_v45  ;;  %v1892_v16 = vrot.slane %v1890_v54, 5  ;;  %v5795_v5 = vld [vmem:[%s7187_s4 + $0x44] sm:$0x3] }
  0x79   : > { %v1895_v48 = vrot.slane %v1893_v36, 6  ;;  %v5842_v39 = vcombine.low %v2134_v41, %v2138_v44  ;;  %v1902_v26 = vshll.u32 %v5792_v13, 16  ;;  %v1908_v51 = vshrl.u32 %v7590_v10, 16  ;;  %6767 = vmatprep.subr.bf16.mxu1 %v7057_v34  ;;  %v7763_v54 = vld [vmem:[%s7187_s4 + $0x14] sm:$0x1] }
  0x7a   : > { %v1901_v42 = vrot.slane %v1899_v46, 5  ;;  %v1888_v43 = vsel %vm7337_vm9, %v1879_v18, %v1887_v40  ;;  %v1911_v53 = vshll.u32 %v7590_v10, 16  ;;  %v1917_v58 = vshrl.u32 %v5793_v19, 16  ;;  %v5882_v36 = vld [vmem:[%s7187_s4 + $0x18] sm:$0xf] }
  0x7b   : > { %v1896_v52 = vor.u32 %v1895_v48, %v1892_v16  ;;  %v5805_v15 = vcombine.low %v1870_v0, %v1888_v43  ;;  %6743 = vmatprep.mubr.msk.bf16.mxu1 %vm356_vm0, %v5842_v39  ;;  %v1904_v50 = vrot.slane %v1902_v26, 6  ;;  %v1910_v11 = vrot.slane %v1908_v51, 5  ;;  %v7771_v18 = vld [vmem:[%s7187_s4 + $0x1c] sm:$0x1]  ;;  %v5884_v39 = vld [vmem:[%s7187_s4 + $0x20] sm:$0xf] }
  0x7c   : > { %v1920_v60 = vshll.u32 %v5793_v19, 16  ;;  %v1913_v62 = vrot.slane %v1911_v53, 6  ;;  %v1919_v1 = vrot.slane %v1917_v58, 5  ;;  %v5830_v3 = vrot.slane %v5822_v57, 10  ;;  %6768 = vmatpush3.bf16.msra.mxu1 %v7057_v34  ;;  %v7058_v57 = vld [vmem:[%s8983_s1 + $0x140] sm:$0xff]  }
  0x7d   : > { %v1897_v61 = vrot.slane %v1896_v52, 4  ;;  %6724 = vmatmul.mubr.msk.bf16.vlgmr.msra.gmra.mxu0 %vm356_vm0, %v5805_v15  ;;  %v1905_v10 = vor.u32 %v1904_v50, %v1901_v42  ;;  %v2141_v7 = vrot.slane %v5794_v63, 6  ;;  %v5831_v6 = vrot.slane %v5823_v55, 10  ;;  %6769 = vmatprep.subr.bf16.mxu1 %v7059_v59  ;;  %v7775_v42 = vld [vmem:[%s7187_s4 + $0x24] sm:$0x1] }
  0x7e   : > { %v1922_v2 = vrot.slane %v1920_v60, 6  ;;  %6748 = vmatpush3.bf16.msra.mxu0 %v7678_v31  ;;  %v1914_v9 = vor.u32 %v1913_v62, %v1910_v11  ;;  %v2145_v37 = vrot.slane %v5795_v5, 6  ;;  %v1926_v13 = vshrl.u32 %v7617_v12, 16  ;;  %v5886_v52 = vld [vmem:[%s7187_s4 + $0x28] sm:$0xf] }
  0x7f   : > { %v1929_v14 = vshll.u32 %v7617_v12, 16  ;;  %6749 = vmatprep.subr.bf16.mxu0 %v7054_v27  ;;  %v1906_v20 = vsel %vm7337_vm9, %v1897_v61, %v1905_v10  ;;  %v2142_v22 = vsel %vm7452_vm12, %v5830_v3, %v2141_v7  ;;  %v1935_v31 = vshrl.u32 %v5794_v63, 16  ;;  %v7060_v10 = vld [vmem:[%s7187_s4 + $0x10] ss:$8 sps:$4 sm:$0xff]  }
  0x80   : > { %v1923_v21 = vor.u32 %v1922_v2, %v1919_v1  ;;  %v1915_v19 = vrot.slane %v1914_v9, 4  ;;  %v2146_v23 = vsel %vm7452_vm12, %v5831_v6, %v2145_v37  ;;  %v1928_v12 = vrot.slane %v1926_v13, 5  ;;  %6770 = vmatpush3.bf16.msra.mxu1 %v7059_v59  ;;  %v7790_v2 = vld [vmem:[%s7187_s4 + $0x2c] sm:$0x1] }
  0x81   : > { %v1931_v25 = vrot.slane %v1929_v14, 6  ;;  %v5843_v28 = vcombine.low %v2142_v22, %v2146_v23  ;;  %v1937_v29 = vrot.slane %v1935_v31, 5  ;;  %v1938_v8 = vshll.u32 %v5794_v63, 16  ;;  %6795 = vmatprep.subr.bf16.mxu1 %v7742_v24 }
  0x82   : > { %v1944_v47 = vshrl.u32 %v7620_v56, 16  ;;  %6750 = vmatpush3.bf16.msra.mxu0 %v7054_v27  ;;  %v1924_v32 = vsel %vm7337_vm9, %v1915_v19, %v1923_v21  ;;  %v1947_v35 = vshll.u32 %v7620_v56, 16  ;;  %v1953_v45 = vshrl.u32 %v5795_v5, 16  ;;  %v7783_v27 = vld [vmem:[%s8983_s1 + $0x198] sm:$0xff]  }
  0x83   : > { %v1932_v34 = vor.u32 %v1931_v25, %v1928_v12  ;;  %v5806_v0 = vcombine.low %v1906_v20, %v1924_v32  ;;  %6744 = vmatmul.mubr.msk.bf16.gmra.mxu1 %vm356_vm0, %v5843_v28  ;;  %6751 = vmatprep.subr.bf16.mxu0 %v7056_v4  ;;  %v1940_v40 = vrot.slane %v1938_v8, 6  ;;  %v1956_v46 = vshll.u32 %v5795_v5, 16  ;;  %v5888_v28 = vld [vmem:[%s7187_s4 + $0x30] sm:$0xf]  ;;  %v5890_v32 = vld [vmem:[%s7187_s4 + $0x38] sm:$0xf] }
  0x84   : > { %v1946_v41 = vrot.slane %v1944_v47, 5  ;;  %v1949_v44 = vrot.slane %v1947_v35, 6  ;;  %v1955_v16 = vrot.slane %v1953_v45, 5  ;;  %v2441_v48 = vshrl.u32 %v5880_v30, 16 }
  0x85   : > { %v1933_v56 = vrot.slane %v1932_v34, 4  ;;  %6727 = vmatprep.mubr.msk.bf16.mxu0 %vm356_vm0, %v5806_v0  ;;  %v1941_v26 = vor.u32 %v1940_v40, %v1937_v29  ;;  %v1958_v51 = vrot.slane %v1956_v46, 6  ;;  %v2444_v59 = vshll.u32 %v5880_v30, 16  ;;  %v7802_v30 = vld [vmem:[%s7187_s4 + $0x34] sm:$0x1] }
  0x86   : > { %v2450_v43 = vshll.u32 %v7763_v54, 16  ;;  %v1950_v53 = vor.u32 %v1949_v44, %v1946_v41  ;;  %6752 = vmatpush3.bf16.msra.mxu0 %v7056_v4  ;;  %v2443_v58 = vrot.slane %v2441_v48, 4  ;;  %v2455_v55 = vshrl.u32 %v5882_v36, 16 }
  0x87   : > { %v2458_v15 = vshll.u32 %v5882_v36, 16  ;;  %v1942_v50 = vsel %vm7337_vm9, %v1933_v56, %v1941_v26  ;;  %v1959_v11 = vor.u32 %v1958_v51, %v1955_v16  ;;  %6753 = vmatprep.subr.bf16.mxu0 %v7058_v57  ;;  %v2446_v60 = vrot.slane %v2444_v59, 5  ;;  %v7809_v36 = vld [vmem:[%s7187_s4 + $0x3c] sm:$0x1]  ;;  %v7063_v56 = vld [vmem:[%s7187_s4 + $0x20] ss:$8 sps:$4 sm:$0xff]  }
  0x88   : > { %v2452_v61 = vrot.slane %v2450_v43, 5  ;;  %v1951_v62 = vrot.slane %v1950_v53, 4  ;;  %v2457_v1 = vrot.slane %v2455_v55, 4  ;;  %v2464_v3 = vshll.u32 %v7771_v18, 16  ;;  %v7064_v51 = vld [vmem:[%s8983_s1 + $0x190] sm:$0xff]  }
  0x89   : > { %v2460_v63 = vrot.slane %v2458_v15, 5  ;;  %v2447_v5 = vor.u32 %v2446_v60, %v2443_v58  ;;  %v2469_v7 = vshrl.u32 %v5884_v39, 16  ;;  %v2472_v6 = vshll.u32 %v5884_v39, 16  ;;  %v5892_v53 = vld [vmem:[%s7187_s4 + $0x40] sm:$0xf] }
  0x8a   : > { %v2478_v9 = vshll.u32 %v7775_v42, 16  ;;  %v1960_v37 = vsel %vm7337_vm9, %v1951_v62, %v1959_v11  ;;  %6754 = vmatpush3.bf16.msra.mxu0 %v7058_v57  ;;  %v2466_v14 = vrot.slane %v2464_v3, 5  ;;  %v2483_v20 = vshrl.u32 %v5886_v52, 16  ;;  %v7823_v11 = vld [vmem:[%s7187_s4 + $0x44] sm:$0x1] }
  0x8b   : > { %v2461_v13 = vor.u32 %v2460_v63, %v2457_v1  ;;  %v5807_v21 = vcombine.low %v1942_v50, %v1960_v37  ;;  %v2448_v22 = vrot.slane %v2447_v5, 4  ;;  %v2471_v4 = vrot.slane %v2469_v7, 4  ;;  %6779 = vmatprep.subr.bf16.mxu0 %v7783_v27  ;;  %v5894_v60 = vld [vmem:[%s7187_s4 + $0x48] sm:$0xf]  ;;  %v7827_v1 = vld [vmem:[%s7187_s4 + $0x4c] sm:$0x1] }
  0x8c   : > { %v2474_v31 = vrot.slane %v2472_v6, 5  ;;  %v2480_v23 = vrot.slane %v2478_v9, 5  ;;  %v2485_v12 = vrot.slane %v2483_v20, 4  ;;  %v2486_v25 = vshll.u32 %v5886_v52, 16  ;;  %v7066_v52 = vld [vmem:[%s7187_s4 + $0x30] ss:$8 sps:$4 sm:$0xff]  }
  0x8d   : > { %v2462_v19 = vrot.slane %v2461_v13, 4  ;;  %6728 = vmatmul.mubr.msk.bf16.gmra.mxu0 %vm356_vm0, %v5807_v21  ;;  %v2453_v29 = vsel %vm7214_vm3, %v2448_v22, %v2452_v61  ;;  %v2492_v47 = vshll.u32 %v7790_v2, 16  ;;  %v2497_v34 = vshrl.u32 %v5888_v28, 16  ;;  %v7065_v5 = vld [vmem:[%s8983_s1 + $0x1b0] sm:$0xff]  }
  0x8e   : > { %v2475_v8 = vor.u32 %v2474_v31, %v2471_v4  ;;  %6755 = vmatprep.mubr.msk.bf16.mxu0 %vm356_vm0, %v7060_v10  ;;  %v2488_v45 = vrot.slane %v2486_v25, 5  ;;  %v2500_v0 = vshll.u32 %v5888_v28, 16  ;;  %v2506_v40 = vshll.u32 %v7802_v30, 16  ;;  %v7067_v31 = vld [vmem:[%s8983_s1 + $0x188] sm:$0xff]  }
  0x8f   : > { %v2467_v35 = vsel %vm7214_vm3, %v2462_v19, %v2466_v14  ;;  %v2494_v57 = vrot.slane %v2492_v47, 5  ;;  %v2499_v44 = vrot.slane %v2497_v34, 4  ;;  %v2511_v26 = vshrl.u32 %v5890_v32, 16  ;;  %v7068_v25 = vld [vmem:[%s8983_s1 + $0x1a8] sm:$0xff]  }
  0x90   : > { %v5904_v41 = vcombine.low %v2453_v29, %v2467_v35  ;;  %v2476_v46 = vrot.slane %v2475_v8, 4  ;;  %v2489_v16 = vor.u32 %v2488_v45, %v2485_v12  ;;  %v2502_v48 = vrot.slane %v2500_v0, 5  ;;  %v7069_v29 = vld [vmem:[%s7187_s4 + $0x40] ss:$8 sps:$4 sm:$0xff]  }
  0x91   : > { %v2508_v39 = vrot.slane %v2506_v40, 5  ;;  %v2514_v59 = vshll.u32 %v5890_v32, 16  ;;  %v2520_v43 = vshll.u32 %v7809_v36, 16  ;;  %v2513_v50 = vrot.slane %v2511_v26, 4  ;;  %v7070_v35 = vld [vmem:[%s8983_s1 + $0x180] sm:$0xff]  }
  0x92   : > { %6771 = vmatprep.mubr.msk.bf16.mxu1 %vm356_vm0, %v5904_v41  ;;  %v2481_v58 = vsel %vm7214_vm3, %v2476_v46, %v2480_v23  ;;  %v2490_v55 = vrot.slane %v2489_v16, 4  ;;  %v2503_v15 = vor.u32 %v2502_v48, %v2499_v44  ;;  %v2525_v63 = vshrl.u32 %v5892_v53, 16  ;;  %v5917_v40 = vld [vmem:[%s7187_s4 + $0x18] sm:$0xe]  ;;  %v7864_v46 = vld [vmem:[%s7187_s4 + $0x1c] sm:$0x3] }
  0x93   : > { %v2516_v61 = vrot.slane %v2514_v59, 5  ;;  %v2522_v62 = vrot.slane %v2520_v43, 5  ;;  %v2528_v3 = vshll.u32 %v5892_v53, 16  ;;  %v2534_v6 = vshll.u32 %v7823_v11, 16  ;;  %v7071_v26 = vld [vmem:[%s8983_s1 + $0x1a0] sm:$0xff]  }
  0x94   : > { %v2495_v10 = vsel %vm7214_vm3, %v2490_v55, %v2494_v57  ;;  %v2504_v7 = vrot.slane %v2503_v15, 4  ;;  %v2539_v9 = vshrl.u32 %v5894_v60, 16  ;;  %v2527_v14 = vrot.slane %v2525_v63, 4 }
  0x95   : > { %v5905_v37 = vcombine.low %v2481_v58, %v2495_v10  ;;  %6756 = vmatmul.mubr.msk.bf16.vlgmr.msra.gmra.mxu0 %vm356_vm0, %v7063_v56  ;;  %v2517_v13 = vor.u32 %v2516_v61, %v2513_v50  ;;  %v2530_v20 = vrot.slane %v2528_v3, 5  ;;  %v2536_v21 = vrot.slane %v2534_v6, 5  ;;  %v7877_v50 = vld [vmem:[%s7187_s4 + $0x20] sm:$0xe]  ;;  %v7885_v10 = vld [vmem:[%s7187_s4 + $0x24] sm:$0x3] }
  0x96   : > { %6780 = vmatpush3.bf16.msra.mxu0 %v7783_v27  ;;  %6759 = vmatprep.mubr.msk.bf16.mxu0 %vm356_vm0, %v7066_v52  ;;  %v2541_v22 = vrot.slane %v2539_v9, 4  ;;  %v2542_v4 = vshll.u32 %v5894_v60, 16  ;;  %v2509_v19 = vsel %vm7214_vm3, %v2504_v7, %v2508_v39  ;;  %v2548_v27 = vshll.u32 %v7827_v1, 16  ;;  %v7882_v60 = vld [vmem:[%s8983_s1 + $0x1d8] sm:$0xff]  }
  0x97   : > { %6772 = vmatmul.mubr.msk.bf16.vlgmr.msra.gmra.mxu1 %vm356_vm0, %v5905_v37  ;;  %6781 = vmatprep.subr.bf16.mxu0 %v7064_v51  ;;  %v2518_v23 = vrot.slane %v2517_v13, 4  ;;  %v2531_v12 = vor.u32 %v2530_v20, %v2527_v14  ;;  %v2708_v8 = vrot.slane %v7763_v54, 5  ;;  %v7861_v54 = vld [vmem:[%s7187_s4 + $0x14] sm:$0x3]  ;;  %v2895_v39 = vshrl.u32 %v5917_v40, 16 }
  0x98   : > { %6796 = vmatpush3.bf16.msra.mxu1 %v7742_v24  ;;  %v2544_v28 = vrot.slane %v2542_v4, 5  ;;  %v2550_v34 = vrot.slane %v2548_v27, 5  ;;  %v5916_v24 = vld [vmem:[%s7187_s4 + $0x10] sm:$0xe]  ;;  %v2886_v16 = vshrl.u32 %v7861_v54, 16  ;;  %v2889_v48 = vshll.u32 %v7861_v54, 16 }
  0x99   : > { %6797 = vmatprep.subr.bf16.mxu1 %v7065_v5  ;;  %v2523_v47 = vsel %vm7214_vm3, %v2518_v23, %v2522_v62  ;;  %v2532_v32 = vrot.slane %v2531_v12, 4  ;;  %v2877_v57 = vshrl.u32 %v5916_v24, 16  ;;  %v2880_v56 = vshll.u32 %v5916_v24, 16  ;;  %v5919_v37 = vld [vmem:[%s7187_s4 + $0x28] sm:$0xe]  ;;  %v7898_v4 = vld [vmem:[%s8983_s1 + $0x1f8] sm:$0xff]  }
  0x9a   : > { %6782 = vmatpush3.bf16.msra.mxu0 %v7064_v51  ;;  %v5906_v45 = vcombine.low %v2509_v19, %v2523_v47  ;;  %v2545_v0 = vor.u32 %v2544_v28, %v2541_v22  ;;  %v2898_v43 = vshll.u32 %v5917_v40, 16  ;;  %v2904_v52 = vshrl.u32 %v7864_v46, 16  ;;  %v7890_v13 = vld [vmem:[%s7187_s4 + $0x2c] sm:$0x3] }
  0x9b   : > { %v2537_v41 = vsel %vm7214_vm3, %v2532_v32, %v2536_v21  ;;  %6783 = vmatprep.subr.bf16.mxu0 %v7067_v31  ;;  %v2879_v51 = vrot.slane %v2877_v57, 5  ;;  %v2882_v59 = vrot.slane %v2880_v56, 6  ;;  %v2888_v58 = vrot.slane %v2886_v16, 5 }
  0x9c   : > { %6798 = vmatpush3.bf16.msra.mxu1 %v7065_v5  ;;  %6775 = vmatprep.mubr.msk.bf16.mxu1 %vm356_vm0, %v5906_v45  ;;  %v2546_v44 = vrot.slane %v2545_v0, 4  ;;  %v2891_v55 = vrot.slane %v2889_v48, 6  ;;  %v2897_v15 = vrot.slane %v2895_v39, 5  ;;  %v2900_v63 = vrot.slane %v2898_v43, 6  ;;  %v5920_v39 = vld [vmem:[%s7187_s4 + $0x30] sm:$0xe] }
  0x9d   : > { %6799 = vmatprep.subr.bf16.mxu1 %v7068_v25  ;;  %6760 = vmatmul.mubr.msk.bf16.gmra.mxu0 %vm356_vm0, %v7069_v29  ;;  %v2883_v62 = vor.u32 %v2882_v59, %v2879_v51  ;;  %v2906_v3 = vrot.slane %v2904_v52, 5  ;;  %v2907_v7 = vshll.u32 %v7864_v46, 16  ;;  %v5924_v6 = vrot.slane %v5916_v24, 9  ;;  %v7920_v52 = vld [vmem:[%s7187_s4 + $0x34] sm:$0x3] }
  0x9e   : > { %v2551_v53 = vsel %vm7214_vm3, %v2546_v44, %v2550_v34  ;;  %6784 = vmatpush3.bf16.msra.mxu0 %v7067_v31  ;;  %v2892_v5 = vor.u32 %v2891_v55, %v2888_v58  ;;  %v5925_v9 = vrot.slane %v5917_v40, 9  ;;  %v2901_v20 = vor.u32 %v2900_v63, %v2897_v15  ;;  %v7928_v63 = vld [vmem:[%s7187_s4 + $0x3c] sm:$0x3] }
  0x9f   : > { %v5907_v61 = vcombine.low %v2537_v41, %v2551_v53  ;;  %6785 = vmatprep.subr.bf16.mxu0 %v7070_v35  ;;  %v2884_v14 = vrot.slane %v2883_v62, 4  ;;  %v2712_v21 = vrot.slane %v7771_v18, 5  ;;  %v2913_v22 = vshrl.u32 %v7877_v50, 16 }
  0xa0   : > { %6800 = vmatpush3.bf16.msra.mxu1 %v7068_v25  ;;  %v2909_v31 = vrot.slane %v2907_v7, 6  ;;  %v2709_v19 = vsel %vm7318_vm8, %v5924_v6, %v2708_v8  ;;  %v2916_v23 = vshll.u32 %v7877_v50, 16  ;;  %v2922_v12 = vshrl.u32 %v7885_v10, 16 }
  0xa1   : > { %6776 = vmatmul.mubr.msk.bf16.gmra.mxu1 %vm356_vm0, %v5907_v61  ;;  %6801 = vmatprep.subr.bf16.mxu1 %v7071_v26  ;;  %v2893_v27 = vsel %vm7337_vm9, %v2884_v14, %v2892_v5  ;;  %v2902_v18 = vrot.slane %v2901_v20, 4  ;;  %v2713_v25 = vsel %vm7318_vm8, %v5925_v9, %v2712_v21  ;;  %v2915_v28 = vrot.slane %v2913_v22, 5 }
  0xa2   : > { %6786 = vmatpush3.bf16.msra.mxu0 %v7070_v35  ;;  %v2910_v29 = vor.u32 %v2909_v31, %v2906_v3  ;;  %v5940_v47 = vcombine.low %v2709_v19, %v2713_v25  ;;  %v2918_v32 = vrot.slane %v2916_v23, 6  ;;  %v2924_v8 = vrot.slane %v2922_v12, 5  ;;  %v7075_v31 = vld [vmem:[%s8983_s1 + $0x1f0] sm:$0xff]  }
  0xa3   : > { %6811 = vmatprep.subr.bf16.mxu0 %v7882_v60  ;;  %v2925_v34 = vshll.u32 %v7885_v10, 16  ;;  %v2931_v35 = vshrl.u32 %v5919_v37, 16  ;;  %v2934_v45 = vshll.u32 %v5919_v37, 16  ;;  %v2940_v0 = vshrl.u32 %v7890_v13, 16 }
  0xa4   : > { %6802 = vmatpush3.bf16.msra.mxu1 %v7071_v26  ;;  %v2911_v24 = vsel %vm7337_vm9, %v2902_v18, %v2910_v29  ;;  %6787 = vmatprep.mubr.msk.bf16.mxu0 %vm356_vm0, %v5940_v47  ;;  %v2919_v40 = vor.u32 %v2918_v32, %v2915_v28  ;;  %v2943_v41 = vshll.u32 %v7890_v13, 16  ;;  %v5926_v57 = vrot.slane %v7877_v50, 9  ;;  %v5921_v50 = vld [vmem:[%s7187_s4 + $0x38] sm:$0xe]  ;;  %v7950_v47 = vld [vmem:[%s7187_s4 + $0x44] sm:$0x3] }
  0xa5   : > { %6827 = vmatprep.subr.bf16.mxu1 %v7898_v4  ;;  %v5968_v56 = vcombine.low %v2893_v27, %v2911_v24  ;;  %v2927_v44 = vrot.slane %v2925_v34, 6  ;;  %v2933_v16 = vrot.slane %v2931_v35, 5  ;;  %v2936_v48 = vrot.slane %v2934_v45, 6  ;;  %v7945_v27 = vld [vmem:[%s7187_s4 + $0x40] sm:$0xe] }
  0xa6   : > { %v2920_v26 = vrot.slane %v2919_v40, 4  ;;  %v2942_v51 = vrot.slane %v2940_v0, 5  ;;  %v2945_v59 = vrot.slane %v2943_v41, 6  ;;  %v2716_v43 = vrot.slane %v7775_v42, 5  ;;  %v7076_v41 = vld [vmem:[%s8983_s1 + $0x1c8] sm:$0xff]  }
  0xa7   : > { %6803 = vmatprep.mubr.msk.bf16.mxu1 %vm356_vm0, %v5968_v56  ;;  %v2928_v53 = vor.u32 %v2927_v44, %v2924_v8  ;;  %v2937_v58 = vor.u32 %v2936_v48, %v2933_v16  ;;  %v5927_v55 = vrot.slane %v5919_v37, 9  ;;  %v2720_v15 = vrot.slane %v7790_v2, 5  ;;  %v7074_v37 = vld [vmem:[%s8983_s1 + $0x1d0] sm:$0xff]  }
  0xa8   : > { %v2946_v61 = vor.u32 %v2945_v59, %v2942_v51  ;;  %v2717_v62 = vsel %vm7318_vm8, %v5926_v57, %v2716_v43  ;;  %v2949_v3 = vshrl.u32 %v5920_v39, 16  ;;  %v2952_v5 = vshll.u32 %v5920_v39, 16  ;;  %v7974_v43 = vld [vmem:[%s7187_s4 + $0x4c] sm:$0x3] }
  0xa9   : > { %v2929_v42 = vsel %vm7337_vm9, %v2920_v26, %v2928_v53  ;;  %v2938_v7 = vrot.slane %v2937_v58, 4  ;;  %v2721_v6 = vsel %vm7318_vm8, %v5927_v55, %v2720_v15  ;;  %v2958_v9 = vshrl.u32 %v7920_v52, 16 }
  0xaa   : > { %v5941_v2 = vcombine.low %v2717_v62, %v2721_v6  ;;  %v2951_v14 = vrot.slane %v2949_v3, 5  ;;  %v2954_v20 = vrot.slane %v2952_v5, 6  ;;  %v2961_v21 = vshll.u32 %v7920_v52, 16  ;;  %v5980_v6 = vld [vmem:[%s7187_s4 + $0x10] sm:$0xc] }
  0xab   : > { %v2947_v22 = vsel %vm7337_vm9, %v2938_v7, %v2946_v61  ;;  %v2960_v19 = vrot.slane %v2958_v9, 5  ;;  %v2967_v23 = vshrl.u32 %v5921_v50, 16  ;;  %v2970_v12 = vshll.u32 %v5921_v50, 16  ;;  %v7078_v61 = vld [vmem:[%s8983_s1 + $0x1c0] sm:$0xff]  }
  0xac   : > { %v5969_v18 = vcombine.low %v2929_v42, %v2947_v22  ;;  %6788 = vmatmul.mubr.msk.bf16.vlgmr.msra.gmra.mxu0 %vm356_vm0, %v5941_v2  ;;  %v2955_v25 = vor.u32 %v2954_v20, %v2951_v14  ;;  %v2963_v28 = vrot.slane %v2961_v21, 6  ;;  %v2976_v29 = vshrl.u32 %v7928_v63, 16  ;;  %v7079_v7 = vld [vmem:[%s8983_s1 + $0x1e0] sm:$0xff]   ;;  %v5981_v20 = vld [vmem:[%s7187_s4 + $0x18] sm:$0xc] }
  0xad   : > { %6812 = vmatpush3.bf16.msra.mxu0 %v7882_v60  ;;  %v2969_v32 = vrot.slane %v2967_v23, 5  ;;  %v2972_v8 = vrot.slane %v2970_v12, 6  ;;  %v2979_v34 = vshll.u32 %v7928_v63, 16  ;;  %v5928_v35 = vrot.slane %v5920_v39, 9 }
  0xae   : > { %6804 = vmatmul.mubr.msk.bf16.vlgmr.msra.gmra.mxu1 %vm356_vm0, %v5969_v18  ;;  %6813 = vmatprep.subr.bf16.mxu0 %v7074_v37  ;;  %v2956_v45 = vrot.slane %v2955_v25, 4  ;;  %v2964_v0 = vor.u32 %v2963_v28, %v2960_v19  ;;  %v2978_v24 = vrot.slane %v2976_v29, 5  ;;  %v2724_v40 = vrot.slane %v7802_v30, 5  ;;  %v5923_v30 = vld [vmem:[%s7187_s4 + $0x48] sm:$0xe]  ;;  %v7997_v28 = vld [vmem:[%s8983_s1 + $0x218] sm:$0xff]  }
  0xaf   : > { %6828 = vmatpush3.bf16.msra.mxu1 %v7898_v4  ;;  %v2973_v60 = vor.u32 %v2972_v8, %v2969_v32  ;;  %v2981_v57 = vrot.slane %v2979_v34, 6  ;;  %v5929_v56 = vrot.slane %v5921_v50, 9  ;;  %v2728_v44 = vrot.slane %v7809_v36, 5  ;;  %v7077_v4 = vld [vmem:[%s8983_s1 + $0x1e8] sm:$0xff]   ;;  %v8003_v34 = vld [vmem:[%s8983_s1 + $0x238] sm:$0xff]  }
  0xb0   : > { %6829 = vmatprep.subr.bf16.mxu1 %v7075_v31  ;;  %v2965_v16 = vsel %vm7337_vm9, %v2956_v45, %v2964_v0  ;;  %v2725_v48 = vsel %vm7318_vm8, %v5928_v35, %v2724_v40  ;;  %v2985_v39 = vshrl.u32 %v7945_v27, 16  ;;  %v2988_v26 = vshll.u32 %v7945_v27, 16  ;;  %v5982_v35 = vld [vmem:[%s7187_s4 + $0x20] sm:$0xc]  ;;  %v5983_v40 = vld [vmem:[%s7187_s4 + $0x28] sm:$0xc] }
  0xb1   : > { %6814 = vmatpush3.bf16.msra.mxu0 %v7074_v37  ;;  %v2974_v51 = vrot.slane %v2973_v60, 4  ;;  %v2982_v59 = vor.u32 %v2981_v57, %v2978_v24  ;;  %v2729_v36 = vsel %vm7318_vm8, %v5929_v56, %v2728_v44  ;;  %v2994_v53 = vshrl.u32 %v7950_v47, 16  ;;  %v7080_v57 = vld [vmem:[%s7187_s4 + $0x18] ss:$8 sps:$4 sm:$0xff]  }
  0xb2   : > { %v5942_v58 = vcombine.low %v2725_v48, %v2729_v36  ;;  %v2987_v55 = vrot.slane %v2985_v39, 5  ;;  %v2990_v15 = vrot.slane %v2988_v26, 6  ;;  %v2997_v50 = vshll.u32 %v7950_v47, 16  ;;  %6815 = vmatprep.subr.bf16.mxu0 %v7076_v41  ;;  %v5985_v36 = vld [vmem:[%s7187_s4 + $0x38] sm:$0xc] }
  0xb3   : > { %6830 = vmatpush3.bf16.msra.mxu1 %v7075_v31  ;;  %v2983_v62 = vsel %vm7337_vm9, %v2974_v51, %v2982_v59  ;;  %v2996_v3 = vrot.slane %v2994_v53, 5  ;;  %v3003_v5 = vshrl.u32 %v5923_v30, 16  ;;  %v3006_v42 = vshll.u32 %v5923_v30, 16 }
  0xb4   : > { %v5970_v9 = vcombine.low %v2965_v16, %v2983_v62  ;;  %6791 = vmatprep.mubr.msk.bf16.mxu0 %vm356_vm0, %v5942_v58  ;;  %v2991_v2 = vor.u32 %v2990_v15, %v2987_v55  ;;  %v2999_v37 = vrot.slane %v2997_v50, 6  ;;  %v3012_v14 = vshrl.u32 %v7974_v43, 16  ;;  %6831 = vmatprep.subr.bf16.mxu1 %v7077_v4 }
  0xb5   : > { %v3005_v21 = vrot.slane %v3003_v5, 5  ;;  %v3008_v22 = vrot.slane %v3006_v42, 6  ;;  %v3015_v31 = vshll.u32 %v7974_v43, 16  ;;  %v5930_v19 = vrot.slane %v7945_v27, 9  ;;  %6816 = vmatpush3.bf16.msra.mxu0 %v7076_v41  ;;  %v5986_v42 = vld [vmem:[%s7187_s4 + $0x40] sm:$0xc] }
  0xb6   : > { %6807 = vmatprep.mubr.msk.bf16.mxu1 %vm356_vm0, %v5970_v9  ;;  %v2992_v23 = vrot.slane %v2991_v2, 4  ;;  %v3000_v12 = vor.u32 %v2999_v37, %v2996_v3  ;;  %v3014_v18 = vrot.slane %v3012_v14, 5  ;;  %v2732_v25 = vrot.slane %v7823_v11, 5  ;;  %6817 = vmatprep.subr.bf16.mxu0 %v7078_v61  ;;  %v7085_v14 = vld [vmem:[%s8983_s1 + $0x230] sm:$0xff]  }
  0xb7   : > { %v3009_v29 = vor.u32 %v3008_v22, %v3005_v21  ;;  %v3017_v32 = vrot.slane %v3015_v31, 6  ;;  %v5931_v8 = vrot.slane %v5923_v30, 9  ;;  %v2736_v27 = vrot.slane %v7827_v1, 5  ;;  %6832 = vmatpush3.bf16.msra.mxu1 %v7077_v4  ;;  %v6045_v21 = vld [vmem:[%s7187_s4 + $0x1c] sm:$0x1]  ;;  %v7088_v31 = vld [vmem:[%s8983_s1 + $0x208] sm:$0xff]  }
  0xb8   : > { %v3001_v11 = vsel %vm7337_vm9, %v2992_v23, %v3000_v12  ;;  %v2733_v45 = vsel %vm7318_vm8, %v5930_v19, %v2732_v25  ;;  %6833 = vmatprep.subr.bf16.mxu1 %v7079_v7  ;;  %v5988_v0 = vrot.slane %v5980_v6, 10  ;;  %v3176_v24 = vrot.slane %v7861_v54, 6  ;;  %v6047_v22 = vld [vmem:[%s7187_s4 + $0x24] sm:$0x1]  ;;  %v8065_v23 = vld [vmem:[%s7187_s4 + $0x18] sm:$0xe] }
  0xb9   : > { %v3010_v41 = vrot.slane %v3009_v29, 4  ;;  %v3018_v1 = vor.u32 %v3017_v32, %v3014_v18  ;;  %v2737_v60 = vsel %vm7318_vm8, %v5931_v8, %v2736_v27  ;;  %6818 = vmatpush3.bf16.msra.mxu0 %v7078_v61  ;;  %v5989_v56 = vrot.slane %v5981_v20, 10  ;;  %v7081_v61 = vld [vmem:[%s7187_s4 + $0x28] ss:$8 sps:$4 sm:$0xff]   ;;  %v8068_v12 = vld [vmem:[%s7187_s4 + $0x20] sm:$0xe] }
  0xba   : > { %v5943_v44 = vcombine.low %v2733_v45, %v2737_v60  ;;  %v3177_v16 = vsel %vm7452_vm12, %v5988_v0, %v3176_v24  ;;  %v3180_v48 = vrot.slane %v7864_v46, 6  ;;  %6843 = vmatprep.subr.bf16.mxu0 %v7997_v28  ;;  %v5990_v54 = vrot.slane %v5982_v35, 10  ;;  %v5984_v46 = vld [vmem:[%s7187_s4 + $0x30] sm:$0xc]  ;;  %v6044_v32 = vld [vmem:[%s7187_s4 + $0x18] sm:$0xf] }
  0xbb   : > { %v3019_v30 = vsel %vm7337_vm9, %v3010_v41, %v3018_v1  ;;  %6834 = vmatpush3.bf16.msra.mxu1 %v7079_v7  ;;  %v3184_v39 = vrot.slane %v7885_v10, 6  ;;  %v5991_v26 = vrot.slane %v5983_v40, 10  ;;  %v3188_v4 = vrot.slane %v7890_v13, 6  ;;  %v7086_v7 = vld [vmem:[%s7187_s4 + $0x38] ss:$8 sps:$4 sm:$0xff]   ;;  %v7089_v27 = vld [vmem:[%s8983_s1 + $0x228] sm:$0xff]  }
  0xbc   : > { %v5971_v51 = vcombine.low %v3001_v11, %v3019_v30  ;;  %6792 = vmatmul.mubr.msk.bf16.gmra.mxu0 %vm356_vm0, %v5943_v44  ;;  %v3181_v59 = vsel %vm7452_vm12, %v5989_v56, %v3180_v48  ;;  %6859 = vmatprep.subr.bf16.mxu1 %v8003_v34  ;;  %v5992_v58 = vrot.slane %v5984_v46, 10  ;;  %v3192_v55 = vrot.slane %v7920_v52, 6  ;;  %v5987_v52 = vld [vmem:[%s7187_s4 + $0x48] sm:$0xc]  ;;  %v6046_v8 = vld [vmem:[%s7187_s4 + $0x20] sm:$0xf] }
  0xbd   : > { %v6004_v53 = vcombine.low %v3177_v16, %v3181_v59  ;;  %v3185_v10 = vsel %vm7452_vm12, %v5990_v54, %v3184_v39  ;;  %v3189_v13 = vsel %vm7452_vm12, %v5991_v26, %v3188_v4  ;;  %v5993_v15 = vrot.slane %v5985_v36, 10  ;;  %v6049_v0 = vld [vmem:[%s7187_s4 + $0x2c] sm:$0x1]  ;;  %v6051_v60 = vld [vmem:[%s7187_s4 + $0x34] sm:$0x1]  ;;  %v7090_v44 = vld [vmem:[%s8983_s1 + $0x200] sm:$0xff]  }
  0xbe   : > { %6808 = vmatmul.mubr.msk.bf16.gmra.mxu1 %vm356_vm0, %v5971_v51  ;;  %v3196_v50 = vrot.slane %v7928_v63, 6  ;;  %v6005_v62 = vcombine.low %v3185_v10, %v3189_v13  ;;  %v3193_v3 = vsel %vm7452_vm12, %v5992_v58, %v3192_v55  ;;  %v7084_v63 = vld [vmem:[%s8983_s1 + $0x210] sm:$0xff]   ;;  %v5994_v9 = vrot.slane %v5986_v42, 10  ;;  %v7091_v59 = vld [vmem:[%s8983_s1 + $0x220] sm:$0xff]   ;;  %v6048_v55 = vld [vmem:[%s7187_s4 + $0x28] sm:$0xf] }
  0xbf   : > { %6835 = vmatprep.mubr.msk.bf16.mxu1 %vm356_vm0, %v7080_v57  ;;  %6819 = vmatprep.mubr.msk.bf16.mxu0 %vm356_vm0, %v6004_v53  ;;  %v3200_v2 = vrot.slane %v7950_v47, 6  ;;  %v5995_v37 = vrot.slane %v5987_v52, 10  ;;  %v3204_v20 = vrot.slane %v7974_v43, 6  ;;  %v3767_v43 = vrot.slane %v6045_v21, 5  ;;  %v8087_v57 = vld [vmem:[%s7187_s4 + $0x28] sm:$0xe] }
  0xc0   : > { %v3197_v5 = vsel %vm7452_vm12, %v5993_v15, %v3196_v50  ;;  %v3771_v18 = vrot.slane %v6047_v22, 5  ;;  %v6088_v25 = vrot.slane %v8065_v23, 9  ;;  %v6089_v29 = vrot.slane %v8068_v12, 9  ;;  %v7087_v56 = vld [vmem:[%s7187_s4 + $0x48] ss:$8 sps:$4 sm:$0xff]  }
  0xc1   : > { %v6006_v6 = vcombine.low %v3193_v3, %v3197_v5  ;;  %v3201_v47 = vsel %vm7452_vm12, %v5994_v9, %v3200_v2  ;;  %v3205_v19 = vsel %vm7452_vm12, %v5995_v37, %v3204_v20  ;;  %v3500_v35 = vshrl.u32 %v6044_v32, 16  ;;  %v8096_v30 = vld [vmem:[%s7187_s4 + $0x30] sm:$0xe] }
  0xc2   : > { %v3509_v11 = vshll.u32 %v6045_v21, 16  ;;  %v3514_v45 = vshrl.u32 %v6046_v8, 16  ;;  %v6007_v24 = vcombine.low %v3201_v47, %v3205_v19  ;;  %v3768_v40 = vsel %vm7318_vm8, %v6088_v25, %v3767_v43  ;;  %v6053_v43 = vld [vmem:[%s7187_s4 + $0x3c] sm:$0x1] }
  0xc3   : > { %v3517_v41 = vshll.u32 %v6046_v8, 16  ;;  %v3523_v1 = vshll.u32 %v6047_v22, 16  ;;  %v3502_v16 = vrot.slane %v3500_v35, 4  ;;  %v6090_v51 = vrot.slane %v8087_v57, 9  ;;  %v8130_v8 = vld [vmem:[%s7187_s4 + $0x38] sm:$0xe] }
  0xc4   : > { %6820 = vmatmul.mubr.msk.bf16.vlgmr.msra.gmra.mxu0 %vm356_vm0, %v6005_v62  ;;  %v3511_v54 = vrot.slane %v3509_v11, 5  ;;  %v3516_v39 = vrot.slane %v3514_v45, 4  ;;  %v3775_v36 = vrot.slane %v6049_v0, 5  ;;  %v6091_v53 = vrot.slane %v8096_v30, 9  ;;  %v7095_v11 = vld [vmem:[%s8983_s1 + $0x270] sm:$0xff]  }
  0xc5   : > { %6844 = vmatpush3.bf16.msra.mxu0 %v7997_v28  ;;  %6823 = vmatprep.mubr.msk.bf16.mxu0 %vm356_vm0, %v6006_v6  ;;  %v3503_v28 = vshll.u32 %v6044_v32, 16  ;;  %v3519_v26 = vrot.slane %v3517_v41, 5  ;;  %v3525_v4 = vrot.slane %v3523_v1, 5  ;;  %v3779_v10 = vrot.slane %v6051_v60, 5 }
  0xc6   : > { %6836 = vmatmul.mubr.msk.bf16.vlgmr.msra.gmra.mxu1 %vm356_vm0, %v7081_v61  ;;  %6845 = vmatprep.subr.bf16.mxu0 %v7084_v63  ;;  %v8107_v50 = vsel %vm7318_vm8, %v6090_v51, %v3775_v36  ;;  %v6050_v61 = vld [vmem:[%s7187_s4 + $0x30] sm:$0xf]  ;;  %v3528_v62 = vshrl.u32 %v6048_v55, 16  ;;  %v3531_v42 = vshll.u32 %v6048_v55, 16  ;;  %v3537_v52 = vshll.u32 %v6049_v0, 16 }
  0xc7   : > { %6860 = vmatpush3.bf16.msra.mxu1 %v8003_v34  ;;  %6839 = vmatprep.mubr.msk.bf16.mxu1 %vm356_vm0, %v7086_v7  ;;  %v3772_v34 = vsel %vm7318_vm8, %v6089_v29, %v3771_v18  ;;  %v3505_v48 = vrot.slane %v3503_v28, 5  ;;  %v3520_v58 = vor.u32 %v3519_v26, %v3516_v39  ;;  %v3780_v5 = vsel %vm7318_vm8, %v6091_v53, %v3779_v10  ;;  %v8118_v7 = vld [vmem:[%s8983_s1 + $0x258] sm:$0xff]   ;;  %v6055_v18 = vld [vmem:[%s7187_s4 + $0x44] sm:$0x1]  ;;  %v6057_v26 = vld [vmem:[%s7187_s4 + $0x4c] sm:$0x1] }
  0xc8   : > { %6861 = vmatprep.subr.bf16.mxu1 %v7085_v14  ;;  %v6104_v13 = vcombine.low %v3768_v40, %v3772_v34  ;;  %v3530_v6 = vrot.slane %v3528_v62, 4  ;;  %v3542_v9 = vshrl.u32 %v6050_v61, 16  ;;  %v3545_v2 = vshll.u32 %v6050_v61, 16  ;;  %v6052_v40 = vld [vmem:[%s7187_s4 + $0x38] sm:$0xf]  ;;  %v7097_v62 = vld [vmem:[%s8983_s1 + $0x268] sm:$0xff]  }
  0xc9   : > { %6846 = vmatpush3.bf16.msra.mxu0 %v7084_v63  ;;  %v3506_v46 = vor.u32 %v3505_v48, %v3502_v16  ;;  %v3521_v3 = vrot.slane %v3520_v58, 4  ;;  %v3533_v20 = vrot.slane %v3531_v42, 5  ;;  %v3539_v21 = vrot.slane %v3537_v52, 5  ;;  %v8158_v10 = vld [vmem:[%s7187_s4 + $0x48] sm:$0xe] }
  0xca   : > { %6847 = vmatprep.subr.bf16.mxu0 %v7088_v31  ;;  %v3551_v22 = vshll.u32 %v6051_v60, 16  ;;  %v3544_v47 = vrot.slane %v3542_v9, 4  ;;  %v3547_v19 = vrot.slane %v3545_v2, 5  ;;  %v6105_v25 = vcombine.low %v8107_v50, %v3780_v5  ;;  %v6054_v60 = vld [vmem:[%s7187_s4 + $0x40] sm:$0xf] }
  0xcb   : > { %6862 = vmatpush3.bf16.msra.mxu1 %v7085_v14  ;;  %v3507_v15 = vrot.slane %v3506_v46, 4  ;;  %v3526_v37 = vsel %vm7214_vm3, %v3521_v3, %v3525_v4  ;;  %v7093_v14 = vld [vmem:[%s8983_s1 + $0x278] sm:$0xff]   ;;  %v3534_v29 = vor.u32 %v3533_v20, %v3530_v6  ;;  %v3783_v35 = vrot.slane %v6053_v43, 5  ;;  %v8150_v4 = vld [vmem:[%s7187_s4 + $0x54] sm:$0x1] }
  0xcc   : > { %6863 = vmatprep.subr.bf16.mxu1 %v7089_v27  ;;  %6824 = vmatmul.mubr.msk.bf16.gmra.mxu0 %vm356_vm0, %v6007_v24  ;;  %v3553_v32 = vrot.slane %v3551_v22, 5  ;;  %v3548_v28 = vor.u32 %v3547_v19, %v3544_v47  ;;  %v6092_v45 = vrot.slane %v8130_v8, 9  ;;  %v3787_v24 = vrot.slane %v6055_v18, 5  ;;  %v6058_v47 = vld [vmem:[%s7187_s4 + $0x50] sm:$0xf] }
  0xcd   : > { %6848 = vmatpush3.bf16.msra.mxu0 %v7088_v31  ;;  %v3512_v63 = vsel %vm7214_vm3, %v3507_v15, %v3511_v54  ;;  %v3535_v1 = vrot.slane %v3534_v29, 4  ;;  %v3565_v34 = vshll.u32 %v6053_v43, 16  ;;  %v3570_v39 = vshrl.u32 %v6054_v60, 16 }
  0xce   : > { %6840 = vmatmul.mubr.msk.bf16.gmra.mxu1 %vm356_vm0, %v7087_v56  ;;  %6849 = vmatprep.subr.bf16.mxu0 %v7090_v44  ;;  %v6068_v31 = vcombine.low %v3512_v63, %v3526_v37  ;;  %v3556_v56 = vshrl.u32 %v6052_v40, 16  ;;  %v3549_v16 = vrot.slane %v3548_v28, 4  ;;  %v3784_v48 = vsel %vm7318_vm8, %v6092_v45, %v3783_v35  ;;  %v7099_v28 = vld [vmem:[%s8983_s1 + $0x260] sm:$0xff]  }
  0xcf   : > { %6864 = vmatpush3.bf16.msra.mxu1 %v7089_v27  ;;  %6867 = vmatprep.mubr.msk.bf16.mxu1 %vm356_vm0, %v6104_v13  ;;  %v8133_v27 = vld [vmem:[%s7187_s4 + $0x40] sm:$0xe]  ;;  %v3540_v51 = vsel %vm7214_vm3, %v3535_v1, %v3539_v21  ;;  %v8161_v13 = vld [vmem:[%s7187_s4 + $0x50] sm:$0xe]  ;;  %v3567_v15 = vrot.slane %v3565_v34, 5  ;;  %v3572_v50 = vrot.slane %v3570_v39, 4 }
  0xd0   : > { %6865 = vmatprep.subr.bf16.mxu1 %v7091_v59  ;;  %6851 = vmatprep.mubr.msk.bf16.mxu0 %vm356_vm0, %v6068_v31  ;;  %v6093_v0 = vrot.slane %v8133_v27, 9  ;;  %v3558_v36 = vrot.slane %v3556_v56, 4  ;;  %v3554_v55 = vsel %vm7214_vm3, %v3549_v16, %v3553_v32  ;;  %v3573_v61 = vshll.u32 %v6054_v60, 16  ;;  %v6056_v31 = vld [vmem:[%s7187_s4 + $0x48] sm:$0xf] }
  0xd1   : > { %6850 = vmatpush3.bf16.msra.mxu0 %v7090_v44  ;;  %v3559_v44 = vshll.u32 %v6052_v40, 16  ;;  %v6069_v5 = vcombine.low %v3540_v51, %v3554_v55  ;;  %v3579_v52 = vshll.u32 %v6055_v18, 16  ;;  %v6094_v63 = vrot.slane %v8158_v10, 9 }
  0xd2   : > { %6875 = vmatprep.subr.bf16.mxu0 %v8118_v7  ;;  %v3788_v54 = vsel %vm7318_vm8, %v6093_v0, %v3787_v24  ;;  %v3575_v9 = vrot.slane %v3573_v61, 5  ;;  %v3791_v2 = vrot.slane %v6057_v26, 5  ;;  %v6095_v37 = vrot.slane %v8161_v13, 9 }
  0xd3   : > { %6866 = vmatpush3.bf16.msra.mxu1 %v7091_v59  ;;  %v7094_v59 = vld [vmem:[%s8983_s1 + $0x250] sm:$0xff]   ;;  %v6106_v46 = vcombine.low %v3784_v48, %v3788_v54  ;;  %v3561_v53 = vrot.slane %v3559_v44, 5  ;;  %v3795_v20 = vrot.slane %v8150_v4, 5  ;;  %v3581_v22 = vrot.slane %v3579_v52, 5  ;;  %v6116_v44 = vld [vmem:[%s7187_s4 + $0x1c] sm:$0x3] }
  0xd4   : > { %6891 = vmatprep.subr.bf16.mxu1 %v7093_v14  ;;  %6852 = vmatmul.mubr.msk.bf16.vlgmr.msra.gmra.mxu0 %vm356_vm0, %v6069_v5  ;;  %v3792_v29 = vsel %vm7318_vm8, %v6094_v63, %v3791_v2  ;;  %v3584_v35 = vshrl.u32 %v6056_v31, 16  ;;  %v3587_v24 = vshll.u32 %v6056_v31, 16  ;;  %v3593_v40 = vshll.u32 %v6057_v26, 16  ;;  %v8214_v63 = vld [vmem:[%s8983_s1 + $0x2b8] sm:$0xff]  }
  0xd5   : > { %v3562_v42 = vor.u32 %v3561_v53, %v3558_v36  ;;  %6876 = vmatpush3.bf16.msra.mxu0 %v8118_v7  ;;  %v3796_v32 = vsel %vm7318_vm8, %v6095_v37, %v3795_v20  ;;  %v3598_v60 = vshrl.u32 %v6058_v47, 16  ;;  %v3601_v56 = vshll.u32 %v6058_v47, 16  ;;  %v6145_v36 = vld [vmem:[%s7187_s4 + $0x20] sm:$0xc]  ;;  %v6146_v20 = vld [vmem:[%s7187_s4 + $0x28] sm:$0xc] }
  0xd6   : > { %6868 = vmatmul.mubr.msk.bf16.vlgmr.msra.gmra.mxu1 %vm356_vm0, %v6105_v25  ;;  %v3576_v25 = vor.u32 %v3575_v9, %v3572_v50  ;;  %6877 = vmatprep.subr.bf16.mxu0 %v7094_v59  ;;  %v6107_v7 = vcombine.low %v3792_v29, %v3796_v32  ;;  %v3586_v1 = vrot.slane %v3584_v35, 4  ;;  %v3589_v16 = vrot.slane %v3587_v24, 5  ;;  %v6117_v50 = vld [vmem:[%s7187_s4 + $0x24] sm:$0x3]  ;;  %v6147_v35 = vld [vmem:[%s7187_s4 + $0x30] sm:$0xc] }
  0xd7   : > { %6892 = vmatpush3.bf16.msra.mxu1 %v7093_v14  ;;  %6871 = vmatprep.mubr.msk.bf16.mxu1 %vm356_vm0, %v6106_v46  ;;  %v3563_v21 = vrot.slane %v3562_v42, 4  ;;  %v7096_v14 = vld [vmem:[%s8983_s1 + $0x248] sm:$0xff]   ;;  %v3595_v48 = vrot.slane %v3593_v40, 5  ;;  %v4235_v54 = vrot.slane %v6116_v44, 6  ;;  %v3600_v26 = vrot.slane %v3598_v60, 4 }
  0xd8   : > { %6893 = vmatprep.subr.bf16.mxu1 %v7095_v11  ;;  %v3603_v51 = vrot.slane %v3601_v56, 5  ;;  %v6144_v46 = vld [vmem:[%s7187_s4 + $0x18] sm:$0xc]  ;;  %v6153_v5 = vrot.slane %v6145_v36, 10  ;;  %v4239_v42 = vrot.slane %v6117_v50, 6  ;;  %v3936_v52 = vshrl.u32 %v8065_v23, 16 }
  0xd9   : > { %v3568_v0 = vsel %vm7214_vm3, %v3563_v21, %v3567_v15  ;;  %6878 = vmatpush3.bf16.msra.mxu0 %v7094_v59  ;;  %v3590_v15 = vor.u32 %v3589_v16, %v3586_v1  ;;  %v7098_v59 = vld [vmem:[%s8983_s1 + $0x240] sm:$0xff]   ;;  %v6152_v61 = vrot.slane %v6144_v46, 10  ;;  %v3939_v2 = vshll.u32 %v8065_v23, 16 }
  0xda   : > { %6879 = vmatprep.subr.bf16.mxu0 %v7096_v14  ;;  %v3945_v37 = vshrl.u32 %v6116_v44, 16  ;;  %v3938_v31 = vrot.slane %v3936_v52, 5  ;;  %v3948_v47 = vshll.u32 %v6116_v44, 16  ;;  %v3954_v24 = vshrl.u32 %v8068_v12, 16  ;;  %v6119_v44 = vld [vmem:[%s7187_s4 + $0x34] sm:$0x3] }
  0xdb   : > { %6894 = vmatpush3.bf16.msra.mxu1 %v7095_v11  ;;  %v3607_v11 = vshll.u32 %v8150_v4, 16  ;;  %v4236_v9 = vsel %vm7452_vm12, %v6152_v61, %v4235_v54  ;;  %v3957_v40 = vshll.u32 %v8068_v12, 16  ;;  %v3963_v60 = vshrl.u32 %v6117_v50, 16 }
  0xdc   : > { %6895 = vmatprep.subr.bf16.mxu1 %v7097_v62  ;;  %v3947_v32 = vrot.slane %v3945_v37, 5  ;;  %v3966_v56 = vshll.u32 %v6117_v50, 16  ;;  %v6154_v54 = vrot.slane %v6146_v20, 10 }
  0xdd   : > { %v6613_v41 = vpop.f32.mrf.mxu1  ;;  %v3609_v4 = vrot.slane %v3607_v11, 5  ;;  %6880 = vmatpush3.bf16.msra.mxu0 %v7096_v14  ;;  %v3941_v14 = vrot.slane %v3939_v2, 6  ;;  %v3959_v11 = vrot.slane %v3957_v40, 6 }
  0xde   : > { %6872 = vmatmul.mubr.msk.bf16.gmra.mxu1 %vm356_vm0, %v6107_v7  ;;  %6881 = vmatprep.subr.bf16.mxu0 %v7098_v59  ;;  %v3950_v7 = vrot.slane %v3948_v47, 6 }
  0xdf   : > { %v524_v3 = vpop.f32.mrf.mxu1  ;;  %6896 = vmatpush3.bf16.msra.mxu1 %v7097_v62  ;;  %v3591_v62 = vrot.slane %v3590_v15, 4  ;;  %v6155_v15 = vrot.slane %v6147_v35, 10  ;;  %v6149_v35 = vld [vmem:[%s7187_s4 + $0x40] sm:$0xc] }
  0xe0   : > { %6897 = vmatprep.subr.bf16.mxu1 %v7099_v28  ;;  %v3951_v16 = vor.u32 %v3950_v7, %v3947_v32  ;;  %v3999_v32 = vshrl.u32 %v6119_v44, 16 }
  0xe1   : > { %v6614_v45 = vpop.f32.mrf.mxu1  ;;  %v3596_v23 = vsel %vm7214_vm3, %v3591_v62, %v3595_v48  ;;  %6882 = vmatpush3.bf16.msra.mxu0 %v7098_v59  ;;  %v3956_v48 = vrot.slane %v3954_v24, 5  ;;  %v3972_v59 = vshrl.u32 %v8087_v57, 16 }
  0xe2   : > { %v6597_v58 = vpop.f32.mrf.mxu0 }
  0xe3   : > { %v8179_v19 = vadd.f32 %v6613_v41, %v6597_v58  ;;  %v3577_v41 = vrot.slane %v3576_v25, 4  ;;  %v8204_v58 = vpop.f32.mrf.mxu1  ;;  %6898 = vmatpush3.bf16.msra.mxu1 %v7099_v28  ;;  %v3942_v28 = vor.u32 %v3941_v14, %v3938_v31  ;;  %v3974_v62 = vrot.slane %v3972_v59, 5  ;;  %v6148_v31 = vld [vmem:[%s7187_s4 + $0x38] sm:$0xc] }
  0xe4   : > { %v403_v6 = vpop.f32.mrf.mxu0  ;;  %6923 = vmatprep.subr.bf16.mxu1 %v8214_v63  ;;  %v3993_v14 = vshll.u32 %v8096_v30, 16  ;;  %v4011_v59 = vshll.u32 %v8130_v8, 16 }
  0xe5   : > { %v8181_v43 = vadd.f32 %v524_v3, %v403_v6  ;;  %v3582_v39 = vsel %vm7214_vm3, %v3577_v41, %v3581_v22  ;;  %v3604_v3 = vor.u32 %v3603_v51, %v3600_v26  ;;  %v4240_v22 = vsel %vm7452_vm12, %v6153_v5, %v4239_v42  ;;  %v8230_v25 = vpop.f32.mrf.mxu1  ;;  %v6118_v41 = vld [vmem:[%s7187_s4 + $0x2c] sm:$0x3] }
  0xe6   : > { %v6598_v18 = vpop.f32.mrf.mxu0  ;;  %v6070_v55 = vcombine.low %v3568_v0, %v3582_v39  ;;  %v6168_v29 = vcombine.low %v4236_v9, %v4240_v22  ;;  %v3943_v12 = vrot.slane %v3942_v28, 4  ;;  %v3965_v26 = vrot.slane %v3963_v60, 5 }
  0xe7   : > { %v8202_v53 = vadd.f32 %v6614_v45, %v6598_v18  ;;  %v3605_v21 = vrot.slane %v3604_v3, 4  ;;  %v8228_v18 = vld [vmem:[%s8983_s1 + $0x298] sm:$0xff]   ;;  %v8245_v39 = vpop.f32.mrf.mxu1  ;;  %v3968_v51 = vrot.slane %v3966_v56, 6  ;;  %v4243_v46 = vrot.slane %v6118_v41, 6 }
  0xe8   : > { %v8194_v34 = vpop.f32.mrf.mxu0  ;;  %6855 = vmatprep.mubr.msk.bf16.mxu0 %vm356_vm0, %v6070_v55  ;;  %6899 = vmatprep.mubr.msk.bf16.mxu1 %vm356_vm0, %v6168_v29  ;;  %v3960_v55 = vor.u32 %v3959_v11, %v3956_v48  ;;  %v3952_v50 = vsel %vm7337_vm9, %v3943_v12, %v3951_v16  ;;  %v3975_v5 = vshll.u32 %v8087_v57, 16  ;;  %v3981_v9 = vshrl.u32 %v6118_v41, 16  ;;  %v7103_v57 = vld [vmem:[%s8983_s1 + $0x2b0] sm:$0xff]  }
  0xe9   : > { %v3610_v0 = vsel %vm7214_vm3, %v3605_v21, %v3609_v4  ;;  %6907 = vmatprep.subr.bf16.mxu0 %v8228_v18  ;;  %v4247_v4 = vrot.slane %v6119_v44, 6  ;;  %v3969_v61 = vor.u32 %v3968_v51, %v3965_v26  ;;  %v4244_v3 = vsel %vm7452_vm12, %v6154_v54, %v4243_v46  ;;  %v8259_v2 = vpop.f32.mrf.mxu1  ;;  %v7105_v26 = vld [vmem:[%s8983_s1 + $0x2a8] sm:$0xff]  }
  0xea   : > { %v6071_v1 = vcombine.low %v3596_v23, %v3610_v0  ;;  %v3961_v42 = vrot.slane %v3960_v55, 4  ;;  %v3977_v20 = vrot.slane %v3975_v5, 6  ;;  %v3984_v21 = vshll.u32 %v6118_v41, 16  ;;  %v6120_v41 = vld [vmem:[%s7187_s4 + $0x3c] sm:$0x3] }
  0xeb   : > { %v4248_v52 = vsel %vm7452_vm12, %v6155_v15, %v4247_v4  ;;  %v3990_v22 = vshrl.u32 %v8096_v30, 16  ;;  %v3983_v29 = vrot.slane %v3981_v9, 5  ;;  %v3995_v28 = vrot.slane %v3993_v14, 6  ;;  %v8276_v48 = vpop.f32.mrf.mxu1 }
  0xec   : > { %v8216_v6 = vpop.f32.mrf.mxu0  ;;  %6856 = vmatmul.mubr.msk.bf16.gmra.mxu0 %vm356_vm0, %v6071_v1  ;;  %v6169_v37 = vcombine.low %v4244_v3, %v4248_v52  ;;  %v3970_v23 = vsel %vm7337_vm9, %v3961_v42, %v3969_v61  ;;  %v3978_v7 = vor.u32 %v3977_v20, %v3974_v62  ;;  %v3986_v24 = vrot.slane %v3984_v21, 6  ;;  %v6121_v1 = vld [vmem:[%s7187_s4 + $0x44] sm:$0x3]  ;;  %v6150_v61 = vld [vmem:[%s7187_s4 + $0x48] sm:$0xc] }
  0xed   : > { %v6132_v0 = vcombine.low %v3952_v50, %v3970_v23  ;;  %v3992_v40 = vrot.slane %v3990_v22, 5  ;;  %v4001_v60 = vrot.slane %v3999_v32, 5  ;;  %v4002_v56 = vshll.u32 %v6119_v44, 16 }
  0xee   : > { %v8235_v45 = vpop.f32.mrf.mxu0  ;;  %6900 = vmatmul.mubr.msk.bf16.vlgmr.msra.gmra.mxu1 %vm356_vm0, %v6169_v37  ;;  %v6156_v16 = vrot.slane %v6148_v31, 10  ;;  %v3979_v30 = vrot.slane %v3978_v7, 4  ;;  %v3987_v11 = vor.u32 %v3986_v24, %v3983_v29  ;;  %v4251_v54 = vrot.slane %v6120_v41, 6  ;;  %v7102_v31 = vld [vmem:[%s8983_s1 + $0x290] sm:$0xff]   ;;  %v6122_v24 = vld [vmem:[%s7187_s4 + $0x4c] sm:$0x3] }
  0xef   : > { %6924 = vmatpush3.bf16.msra.mxu1 %v8214_v63  ;;  %6883 = vmatprep.mubr.msk.bf16.mxu0 %vm356_vm0, %v6132_v0  ;;  %v6157_v12 = vrot.slane %v6149_v35, 10  ;;  %v3996_v44 = vor.u32 %v3995_v28, %v3992_v40  ;;  %v4004_v46 = vrot.slane %v4002_v56, 6  ;;  %v4255_v63 = vrot.slane %v6121_v1, 6  ;;  %v6151_v40 = vld [vmem:[%s7187_s4 + $0x50] sm:$0xc] }
  0xf0   : > { %v8249_v36 = vpop.f32.mrf.mxu0  ;;  %6925 = vmatprep.subr.bf16.mxu1 %v7103_v57  ;;  %v4008_v55 = vshrl.u32 %v8130_v8, 16  ;;  %v3988_v15 = vsel %vm7337_vm9, %v3979_v30, %v3987_v11  ;;  %v4252_v4 = vsel %vm7452_vm12, %v6156_v16, %v4251_v54  ;;  %v4017_v50 = vshrl.u32 %v6120_v41, 16  ;;  %v7107_v8 = vld [vmem:[%s8983_s1 + $0x2a0] sm:$0xff]   ;;  %v8313_v16 = vld [vmem:[%s7187_s4 + $0x54] sm:$0x3] }
  0xf1   : > { %v3997_v3 = vrot.slane %v3996_v44, 4  ;;  %v4005_v5 = vor.u32 %v4004_v46, %v4001_v60  ;;  %v4256_v42 = vsel %vm7452_vm12, %v6157_v12, %v4255_v63  ;;  %v4013_v37 = vrot.slane %v4011_v59, 6 }
  0xf2   : > { %v8266_v47 = vpop.f32.mrf.mxu0  ;;  %v4010_v52 = vrot.slane %v4008_v55, 5  ;;  %v6170_v9 = vcombine.low %v4252_v4, %v4256_v42  ;;  %v4019_v20 = vrot.slane %v4017_v50, 5  ;;  %v4020_v21 = vshll.u32 %v6120_v41, 16 }
  0xf3   : > { %6926 = vmatpush3.bf16.msra.mxu1 %v7103_v57  ;;  %v4006_v57 = vsel %vm7337_vm9, %v3997_v3, %v4005_v5  ;;  %v4026_v23 = vshrl.u32 %v8133_v27, 16  ;;  %v4029_v29 = vshll.u32 %v8133_v27, 16  ;;  %v4035_v14 = vshrl.u32 %v6121_v1, 16 }
  0xf4   : > { %6927 = vmatprep.subr.bf16.mxu1 %v7105_v26  ;;  %v6133_v32 = vcombine.low %v3988_v15, %v4006_v57  ;;  %6903 = vmatprep.mubr.msk.bf16.mxu1 %vm356_vm0, %v6170_v9  ;;  %v4014_v35 = vor.u32 %v4013_v37, %v4010_v52  ;;  %v4022_v0 = vrot.slane %v4020_v21, 6  ;;  %v4038_v7 = vshll.u32 %v6121_v1, 16  ;;  %v8319_v1 = vld [vmem:[%s8983_s1 + $0x2f8] sm:$0xff]   ;;  %v6208_v9 = vld [vmem:[%s7187_s4 + $0x20] sm:$0xf] }
  0xf5   : > { %v4028_v28 = vrot.slane %v4026_v23, 5  ;;  %v4031_v60 = vrot.slane %v4029_v29, 6  ;;  %v4037_v56 = vrot.slane %v4035_v14, 5  ;;  %v6158_v30 = vrot.slane %v6150_v61, 10  ;;  %v8341_v23 = vld [vmem:[%s7187_s4 + $0x24] sm:$0x1] }
  0xf6   : > { %6884 = vmatmul.mubr.msk.bf16.vlgmr.msra.gmra.mxu0 %vm356_vm0, %v6133_v32  ;;  %v4015_v27 = vrot.slane %v4014_v35, 4  ;;  %v4023_v11 = vor.u32 %v4022_v0, %v4019_v20  ;;  %v4040_v54 = vrot.slane %v4038_v7, 6  ;;  %v4259_v12 = vrot.slane %v6122_v24, 6  ;;  %v7106_v35 = vld [vmem:[%s8983_s1 + $0x280] sm:$0xff]   ;;  %v6210_v0 = vld [vmem:[%s7187_s4 + $0x28] sm:$0xf] }
  0xf7   : > { %6928 = vmatpush3.bf16.msra.mxu1 %v7105_v26  ;;  %6908 = vmatpush3.bf16.msra.mxu0 %v8228_v18  ;;  %v4032_v46 = vor.u32 %v4031_v60, %v4028_v28  ;;  %v6159_v63 = vrot.slane %v6151_v40, 10  ;;  %v4263_v26 = vrot.slane %v8313_v16, 6  ;;  %v4044_v55 = vshrl.u32 %v8158_v10, 16  ;;  %v7104_v18 = vld [vmem:[%s8983_s1 + $0x288] sm:$0xff]  }
  0xf8   : > { %v8282_v51 = vpop.f32.mrf.mxu0  ;;  %6929 = vmatprep.subr.bf16.mxu1 %v7107_v8  ;;  %6909 = vmatprep.subr.bf16.mxu0 %v7102_v31  ;;  %v4024_v15 = vsel %vm7337_vm9, %v4015_v27, %v4023_v11  ;;  %v4041_v4 = vor.u32 %v4040_v54, %v4037_v56  ;;  %v4260_v59 = vsel %vm7452_vm12, %v6158_v30, %v4259_v12  ;;  %v4047_v50 = vshll.u32 %v8158_v10, 16  ;;  %v8356_v28 = vld [vmem:[%s7187_s4 + $0x2c] sm:$0x1]  ;;  %v6212_v11 = vld [vmem:[%s7187_s4 + $0x30] sm:$0xf] }
  0xf9   : > { %v4033_v3 = vrot.slane %v4032_v46, 4  ;;  %v4264_v5 = vsel %vm7452_vm12, %v6159_v63, %v4263_v26  ;;  %v4046_v42 = vrot.slane %v4044_v55, 5  ;;  %v4053_v52 = vshrl.u32 %v6122_v24, 16  ;;  %v8365_v26 = vld [vmem:[%s7187_s4 + $0x34] sm:$0x1] }
  0xfa   : > { %v8298_v22 = vpop.f32.mrf.mxu0  ;;  %v6171_v37 = vcombine.low %v4260_v59, %v4264_v5  ;;  %v4049_v20 = vrot.slane %v4047_v50, 6  ;;  %v4056_v21 = vshll.u32 %v6122_v24, 16  ;;  %v4062_v57 = vshrl.u32 %v8161_v13, 16  ;;  %v6214_v55 = vld [vmem:[%s7187_s4 + $0x38] sm:$0xf] }
  0xfb   : > { %v8293_v62 = vpop.f32.mrf.mxu1  ;;  %6930 = vmatpush3.bf16.msra.mxu1 %v7107_v8  ;;  %6910 = vmatpush3.bf16.msra.mxu0 %v7102_v31  ;;  %v4042_v29 = vsel %vm7337_vm9, %v4033_v3, %v4041_v4  ;;  %v4055_v14 = vrot.slane %v4053_v52, 5  ;;  %v4065_v8 = vshll.u32 %v8161_v13, 16  ;;  %v4071_v32 = vshrl.u32 %v8313_v16, 16 }
  0xfc   : > { %v8321_v44 = vpop.f32.mrf.mxu0  ;;  %6955 = vmatprep.subr.bf16.mxu1 %v8319_v1  ;;  %v6134_v7 = vcombine.low %v4024_v15, %v4042_v29  ;;  %6904 = vmatmul.mubr.msk.bf16.gmra.mxu1 %vm356_vm0, %v6171_v37  ;;  %v4050_v31 = vor.u32 %v4049_v20, %v4046_v42  ;;  %v4058_v24 = vrot.slane %v4056_v21, 6  ;;  %v4064_v40 = vrot.slane %v4062_v57, 5 }
  0xfd   : > { %v8310_v41 = vpop.f32.mrf.mxu1  ;;  %6911 = vmatprep.subr.bf16.mxu0 %v7104_v18  ;;  %v4067_v60 = vrot.slane %v4065_v8, 6  ;;  %v4073_v56 = vrot.slane %v4071_v32, 5  ;;  %v4074_v30 = vshll.u32 %v8313_v16, 16  ;;  %v4559_v27 = vshrl.u32 %v6208_v9, 16  ;;  %v8384_v8 = vld [vmem:[%s7187_s4 + $0x3c] sm:$0x1] }
  0xfe   : > { %v8344_v10 = vpop.f32.mrf.mxu0  ;;  %6887 = vmatprep.mubr.msk.bf16.mxu0 %vm356_vm0, %v6134_v7  ;;  %v4051_v54 = vrot.slane %v4050_v31, 4  ;;  %v4059_v12 = vor.u32 %v4058_v24, %v4055_v14  ;;  %v4562_v46 = vshll.u32 %v6208_v9, 16  ;;  %v4568_v63 = vshll.u32 %v8341_v23, 16  ;;  %v8375_v9 = vld [vmem:[%s8983_s1 + $0x2d8] sm:$0xff]   ;;  %v7108_v14 = vld [vmem:[%s7187_s4 + $0x20] ss:$8 sps:$4 sm:$0xff]  }
  0xff   : > { %v8334_v61 = vpop.f32.mrf.mxu1  ;;  %v4068_v4 = vor.u32 %v4067_v60, %v4064_v40  ;;  %v4076_v59 = vrot.slane %v4074_v30, 6  ;;  %6912 = vmatpush3.bf16.msra.mxu0 %v7104_v18  ;;  %v4561_v16 = vrot.slane %v4559_v27, 4  ;;  %v4573_v50 = vshrl.u32 %v6210_v0, 16 }
 0x100   : > { %v4060_v3 = vsel %vm7337_vm9, %v4051_v54, %v4059_v12  ;;  %6913 = vmatprep.subr.bf16.mxu0 %v7106_v35  ;;  %v4564_v5 = vrot.slane %v4562_v46, 5  ;;  %v4570_v42 = vrot.slane %v4568_v63, 5  ;;  %v4576_v52 = vshll.u32 %v6210_v0, 16 }
 0x101   : > { %v8358_v13 = vpop.f32.mrf.mxu1  ;;  %v4069_v18 = vrot.slane %v4068_v4, 4  ;;  %v4077_v21 = vor.u32 %v4076_v59, %v4073_v56  ;;  %v4575_v57 = vrot.slane %v4573_v50, 4  ;;  %v4582_v29 = vshll.u32 %v8356_v28, 16 }
 0x102   : > { %v4565_v32 = vor.u32 %v4564_v5, %v4561_v16  ;;  %v4578_v7 = vrot.slane %v4576_v52, 5  ;;  %v4587_v0 = vshrl.u32 %v6212_v11, 16  ;;  %v4590_v31 = vshll.u32 %v6212_v11, 16  ;;  %v6216_v5 = vld [vmem:[%s7187_s4 + $0x40] sm:$0xf] }
 0x103   : > { %v4078_v60 = vsel %vm7337_vm9, %v4069_v18, %v4077_v21  ;;  %6914 = vmatpush3.bf16.msra.mxu0 %v7106_v35  ;;  %v4584_v56 = vrot.slane %v4582_v29, 5  ;;  %v4596_v30 = vshll.u32 %v8365_v26, 16  ;;  %v4601_v27 = vshrl.u32 %v6214_v55, 16  ;;  %v8404_v21 = vld [vmem:[%s7187_s4 + $0x44] sm:$0x1] }
 0x104   : > { %v6135_v54 = vcombine.low %v4060_v3, %v4078_v60  ;;  %v4566_v12 = vrot.slane %v4565_v32, 4  ;;  %v4579_v46 = vor.u32 %v4578_v7, %v4575_v57  ;;  %v4589_v63 = vrot.slane %v4587_v0, 4  ;;  %6939 = vmatprep.subr.bf16.mxu0 %v8375_v9  ;;  %v6218_v57 = vld [vmem:[%s7187_s4 + $0x48] sm:$0xf]  ;;  %v8417_v0 = vld [vmem:[%s7187_s4 + $0x4c] sm:$0x1] }
 0x105   : > { %v4592_v59 = vrot.slane %v4590_v31, 5  ;;  %v4598_v16 = vrot.slane %v4596_v30, 5  ;;  %v4603_v35 = vrot.slane %v4601_v27, 4  ;;  %v4604_v50 = vshll.u32 %v6214_v55, 16 }
 0x106   : > { %6888 = vmatmul.mubr.msk.bf16.gmra.mxu0 %vm356_vm0, %v6135_v54  ;;  %v4571_v3 = vsel %vm7214_vm3, %v4566_v12, %v4570_v42  ;;  %v4580_v52 = vrot.slane %v4579_v46, 4  ;;  %v4610_v18 = vshll.u32 %v8384_v8, 16  ;;  %v8409_v29 = vadd.f32 %v8204_v58, %v8194_v34  ;;  %v7111_v34 = vld [vmem:[%s7187_s4 + $0x30] ss:$8 sps:$4 sm:$0xff]  }
 0x107   : > { %6915 = vmatprep.mubr.msk.bf16.mxu0 %vm356_vm0, %v7108_v14  ;;  %v4593_v7 = vor.u32 %v4592_v59, %v4589_v63  ;;  %v4606_v42 = vrot.slane %v4604_v50, 5  ;;  %v4615_v31 = vshrl.u32 %v6216_v5, 16  ;;  %v4618_v60 = vshll.u32 %v6216_v5, 16  ;;  %v7114_v5 = vld [vmem:[%s7187_s4 + $0x40] ss:$8 sps:$4 sm:$0xff]  }
 0x108   : > { %v8368_v15 = vpop.f32.mrf.mxu0  ;;  %v4585_v30 = vsel %vm7214_vm3, %v4580_v52, %v4584_v56  ;;  %v4612_v27 = vrot.slane %v4610_v18, 5  ;;  %v4624_v58 = vshll.u32 %v8404_v21, 16  ;;  %v4629_v54 = vshrl.u32 %v6218_v57, 16  ;;  %v6220_v18 = vld [vmem:[%s7187_s4 + $0x50] sm:$0xf] }
 0x109   : > { %v6232_v14 = vcombine.low %v4571_v3, %v4585_v30  ;;  %v4594_v63 = vrot.slane %v4593_v7, 4  ;;  %v4607_v59 = vor.u32 %v4606_v42, %v4603_v35  ;;  %v4617_v50 = vrot.slane %v4615_v31, 4  ;;  %v8440_v42 = vld [vmem:[%s7187_s4 + $0x54] sm:$0x1]  ;;  %v6222_v31 = vld [vmem:[%s7187_s4 + $0x58] sm:$0xf] }
 0x10a   : > { %v8377_v37 = vpop.f32.mrf.mxu1  ;;  %v8379_v20 = vpop.f32.mrf.mxu0  ;;  %v4631_v56 = vrot.slane %v4629_v54, 4  ;;  %v4632_v52 = vshll.u32 %v6218_v57, 16  ;;  %v4638_v35 = vshll.u32 %v8417_v0, 16  ;;  %v7112_v57 = vld [vmem:[%s8983_s1 + $0x2d0] sm:$0xff]   ;;  %v8451_v54 = vld [vmem:[%s7187_s4 + $0x5c] sm:$0x1] }
 0x10b   : > { %6931 = vmatprep.mubr.msk.bf16.mxu1 %vm356_vm0, %v6232_v14  ;;  %v4599_v3 = vsel %vm7214_vm3, %v4594_v63, %v4598_v16  ;;  %v4608_v7 = vrot.slane %v4607_v59, 4  ;;  %v4643_v14 = vshrl.u32 %v6220_v18, 16  ;;  %v4646_v16 = vshll.u32 %v6220_v18, 16 }
 0x10c   : > { %v8386_v24 = vpop.f32.mrf.mxu1  ;;  %v8388_v40 = vpop.f32.mrf.mxu0 }
 0x10d   : > { %8994 = vst [vmem:[#allocation2_spill] sm:$0xff] %v8386_v24 }
 0x10e   : > { %v8394_v11 = vpop.f32.mrf.mxu1  ;;  %v8396_v4 = vpop.f32.mrf.mxu0  ;;  %6916 = vmatmul.mubr.msk.bf16.vlgmr.msra.gmra.mxu0 %vm356_vm0, %v7111_v34 }
 0x10f   : > { %8995 = vst [vmem:[#allocation3_spill] sm:$0xff] %v8394_v11  ;;  %6940 = vmatpush3.bf16.msra.mxu0 %v8375_v9  ;;  %6919 = vmatprep.mubr.msk.bf16.mxu0 %vm356_vm0, %v7114_v5  ;;  %v7116_v9 = vld [vmem:[%s8983_s1 + $0x2e8] sm:$0xff]   ;;  %v8485_v5 = vadd.f32 %v8245_v39, %v8235_v45 }
 0x110   : > { %v8411_v32 = vpop.f32.mrf.mxu1  ;;  %v8413_v55 = vpop.f32.mrf.mxu0  ;;  %6941 = vmatprep.subr.bf16.mxu0 %v7112_v57 }
 0x111   : > { %8996 = vst [vmem:[#allocation4_spill] sm:$0xff] %v8411_v32  ;;  %8997 = vst [vmem:[#allocation5_spill] sm:$0xff] %v8413_v55  ;;  %v4620_v32 = vrot.slane %v4618_v60, 5  ;;  %v8428_v55 = vrot.slane %v4624_v58, 5  ;;  %v8445_v60 = vadd.f32 %v8230_v25, %v8216_v6  ;;  %v4634_v58 = vrot.slane %v4632_v52, 5  ;;  %v7113_v6 = vld [vmem:[%s8983_s1 + $0x2f0] sm:$0xff]  }
 0x112   : > { %v8423_v12 = vpop.f32.mrf.mxu1  ;;  %v8425_v46 = vpop.f32.mrf.mxu0  ;;  %v4640_v25 = vrot.slane %v4638_v35, 5  ;;  %v4648_v35 = vrot.slane %v4646_v16, 5  ;;  %v7117_v16 = vld [vmem:[%s7187_s4 + $0x50] ss:$8 sps:$4 sm:$0xff]  }
 0x113   : > { %8998 = vst [vmem:[#allocation6_spill] sm:$0xff] %v8423_v12  ;;  %v4621_v30 = vor.u32 %v4620_v32, %v4617_v50  ;;  %v4652_v12 = vshll.u32 %v8440_v42, 16  ;;  %v4657_v32 = vshrl.u32 %v6222_v31, 16  ;;  %v4635_v18 = vor.u32 %v4634_v58, %v4631_v56  ;;  %6942 = vmatpush3.bf16.msra.mxu0 %v7112_v57 }
 0x114   : > { %v8431_v11 = vpop.f32.mrf.mxu1  ;;  %v8433_v24 = vpop.f32.mrf.mxu0  ;;  %v4666_v58 = vshll.u32 %v8451_v54, 16  ;;  %v8530_v57 = vadd.f32 %v8321_v44, %v8202_v53  ;;  %v7119_v53 = vld [vmem:[%s8983_s1 + $0x2e0] sm:$0xff]  }
 0x115   : > { %8999 = vst [vmem:[#allocation7_spill] sm:$0xff] %v8431_v11  ;;  %9000 = vst [vmem:[#allocation8_spill] sm:$0xff] %v8433_v24  ;;  %v4613_v11 = vsel %vm7214_vm3, %v4608_v7, %v4612_v27  ;;  %v4622_v52 = vrot.slane %v4621_v30, 4  ;;  %v4645_v24 = vrot.slane %v4643_v14, 4  ;;  %v4659_v34 = vrot.slane %v4657_v32, 4 }
 0x116   : > { %v8453_v63 = vpop.f32.mrf.mxu1  ;;  %v8455_v59 = vpop.f32.mrf.mxu0  ;;  %v6233_v50 = vcombine.low %v4599_v3, %v4613_v11  ;;  %v4654_v11 = vrot.slane %v4652_v12, 5  ;;  %v4660_v3 = vshll.u32 %v6222_v31, 16  ;;  %v4636_v30 = vrot.slane %v4635_v18, 4  ;;  %v8518_v32 = vld [vmem:[%s7187_s4 + $0x2c] sm:$0x3]  ;;  %6920 = vmatmul.mubr.msk.bf16.gmra.mxu0 %vm356_vm0, %v7117_v16 }
 0x117   : > { %9001 = vst [vmem:[#allocation9_spill] sm:$0xff] %v8453_v63  ;;  %v8467_v63 = vld [vmem:[%s8983_s1 + $0x2c8] sm:$0xff]   ;;  %v4627_v56 = vsel %vm7214_vm3, %v4622_v52, %v8428_v55  ;;  %v4649_v14 = vor.u32 %v4648_v35, %v4645_v24  ;;  %v4668_v39 = vrot.slane %v4666_v58, 5  ;;  %v8506_v52 = vadd.f32 %v8276_v48, %v8266_v47  ;;  %v8515_v58 = vld [vmem:[%s7187_s4 + $0x24] sm:$0x3] }
 0x118   : > { %v8469_v27 = vpop.f32.mrf.mxu1  ;;  %v8471_v7 = vpop.f32.mrf.mxu0  ;;  %6932 = vmatmul.mubr.msk.bf16.vlgmr.msra.gmra.mxu1 %vm356_vm0, %v6233_v50  ;;  %v4662_v55 = vrot.slane %v4660_v3, 5  ;;  %v8496_v50 = vadd.f32 %v8259_v2, %v8249_v36  ;;  %v4641_v45 = vsel %vm7214_vm3, %v4636_v30, %v4640_v25  ;;  %v6244_v3 = vld [vmem:[%s7187_s4 + $0x20] sm:$0xe]  ;;  %6943 = vmatprep.subr.bf16.mxu0 %v8467_v63  ;;  %v6245_v30 = vld [vmem:[%s7187_s4 + $0x28] sm:$0xe]  ;;  %v8522_v47 = vadd.f32 %v8282_v51, %v8179_v19 }
 0x119   : > { %6956 = vmatpush3.bf16.msra.mxu1 %v8319_v1  ;;  %v7118_v1 = vld [vmem:[%s8983_s1 + $0x2c0] sm:$0xff]   ;;  %v6234_v36 = vcombine.low %v4627_v56, %v4641_v45  ;;  %v4650_v2 = vrot.slane %v4649_v14, 4  ;;  %v8526_v48 = vadd.f32 %v8298_v22, %v8181_v43  ;;  %v4995_v51 = vshrl.u32 %v6244_v3, 16  ;;  %6944 = vmatpush3.bf16.msra.mxu0 %v8467_v63 }
 0x11a   : > { %v8487_v12 = vpop.f32.mrf.mxu1  ;;  %v8489_v31 = vpop.f32.mrf.mxu0  ;;  %6957 = vmatprep.subr.bf16.mxu1 %v7113_v6  ;;  %v4663_v35 = vor.u32 %v4662_v55, %v4659_v34  ;;  %v8534_v34 = vadd.f32 %v8344_v10, %v8409_v29  ;;  %v4998_v22 = vshll.u32 %v6244_v3, 16  ;;  %v5004_v44 = vshrl.u32 %v8515_v58, 16  ;;  %6945 = vmatprep.subr.bf16.mxu0 %v7118_v1 }
 0x11b   : > { %6935 = vmatprep.mubr.msk.bf16.mxu1 %vm356_vm0, %v6234_v36  ;;  %v4655_v19 = vsel %vm7214_vm3, %v4650_v2, %v4654_v11  ;;  %v5007_v10 = vshll.u32 %v8515_v58, 16  ;;  %v5013_v29 = vshrl.u32 %v6245_v30, 16  ;;  %v4997_v45 = vrot.slane %v4995_v51, 5  ;;  %v8556_v2 = vld [vmem:[%s7187_s4 + $0x30] sm:$0xe] }
 0x11c   : > { %v8508_v18 = vpop.f32.mrf.mxu1  ;;  %v8538_v14 = vpop.f32.mrf.mxu0  ;;  %v4664_v43 = vrot.slane %v4663_v35, 4  ;;  %v5000_v16 = vrot.slane %v4998_v22, 6  ;;  %v5022_v36 = vshrl.u32 %v8518_v32, 16  ;;  %v5006_v25 = vrot.slane %v5004_v44, 5  ;;  %v8567_v22 = vld [vmem:[%s7187_s4 + $0x38] sm:$0xe] }
 0x11d   : > { %9002 = vst [vmem:[#allocation10_spill] sm:$0xff] %v8508_v18  ;;  %6958 = vmatpush3.bf16.msra.mxu1 %v7113_v6  ;;  %v5016_v6 = vshll.u32 %v6245_v30, 16  ;;  %v5009_v24 = vrot.slane %v5007_v10, 6  ;;  %v8559_v18 = vld [vmem:[%s7187_s4 + $0x34] sm:$0x3]  ;;  %v5025_v51 = vshll.u32 %v8518_v32, 16  ;;  %6946 = vmatpush3.bf16.msra.mxu0 %v7118_v1  ;;  %v1022_v49 = vadd.f32 %v8358_v13, %v8534_v34 }
 0x11e   : > { %v8536_v56 = vpop.f32.mrf.mxu1  ;;  %6959 = vmatprep.subr.bf16.mxu1 %v7116_v9  ;;  %v4669_v11 = vsel %vm7214_vm3, %v4664_v43, %v4668_v39  ;;  %v5001_v63 = vor.u32 %v5000_v16, %v4997_v45  ;;  %v5024_v43 = vrot.slane %v5022_v36, 5  ;;  %v6252_v44 = vrot.slane %v6244_v3, 9 }
 0x11f   : > { %9003 = vst [vmem:[#allocation11_spill] sm:$0xff] %v8536_v56  ;;  %v6235_v35 = vcombine.low %v4655_v19, %v4669_v11  ;;  %v5015_v56 = vrot.slane %v5013_v29, 5  ;;  %v5018_v39 = vrot.slane %v5016_v6, 6  ;;  %v5010_v19 = vor.u32 %v5009_v24, %v5006_v25 }
 0x120   : > { %v8549_v55 = vpop.f32.mrf.mxu1  ;;  %v6253_v10 = vrot.slane %v6245_v30, 9  ;;  %v5031_v29 = vshrl.u32 %v8556_v2, 16  ;;  %v5002_v11 = vrot.slane %v5001_v63, 4  ;;  %v5027_v16 = vrot.slane %v5025_v51, 6  ;;  %v8588_v30 = vld [vmem:[%s7187_s4 + $0x3c] sm:$0x3] }
 0x121   : > { %9004 = vst [vmem:[#allocation12_spill] sm:$0xff] %v8549_v55  ;;  %v8561_v55 = vpop.f32.mrf.mxu0  ;;  %6960 = vmatpush3.bf16.msra.mxu1 %v7116_v9  ;;  %v8574_v9 = vld [vmem:[%s8983_s1 + $0x318] sm:$0xff]   ;;  %v5019_v45 = vor.u32 %v5018_v39, %v5015_v56  ;;  %v5034_v36 = vshll.u32 %v8556_v2, 16  ;;  %v9008_v3 = vrot.slane %v8356_v28, 5  ;;  %v5040_v1 = vshrl.u32 %v8559_v18, 16 }
 0x122   : > { %v8563_v33 = vpop.f32.mrf.mxu1  ;;  %6936 = vmatmul.mubr.msk.bf16.gmra.mxu1 %vm356_vm0, %v6235_v35  ;;  %6961 = vmatprep.subr.bf16.mxu1 %v7119_v53  ;;  %v9007_v35 = vrot.slane %v8341_v23, 5  ;;  %v5011_v23 = vsel %vm7337_vm9, %v5002_v11, %v5010_v19  ;;  %v5028_v28 = vor.u32 %v5027_v16, %v5024_v43  ;;  %v5052_v43 = vshll.u32 %v8567_v22, 16 }
 0x123   : > { %9005 = vst [vmem:[#allocation13_spill] sm:$0xff] %v8563_v33  ;;  %v4831_v25 = vsel %vm7318_vm8, %v6253_v10, %v9008_v3  ;;  %v5033_v33 = vrot.slane %v5031_v29, 5  ;;  %6971 = vmatprep.subr.bf16.mxu0 %v8574_v9  ;;  %v8592_v56 = vpop.f32.mrf.mxu0  ;;  %v5020_v39 = vrot.slane %v5019_v45, 4  ;;  %v5042_v10 = vrot.slane %v5040_v1, 5 }
 0x124   : > { %v8576_v6 = vpop.f32.mrf.mxu1  ;;  %v4827_v24 = vsel %vm7318_vm8, %v6252_v44, %v9007_v35  ;;  %v5036_v44 = vrot.slane %v5034_v36, 6  ;;  %v5043_v29 = vshll.u32 %v8559_v18, 16  ;;  %v5049_v35 = vshrl.u32 %v8567_v22, 16 }
 0x125   : > { %9006 = vst [vmem:[#allocation14_spill] sm:$0xff] %v8576_v6  ;;  %6962 = vmatpush3.bf16.msra.mxu1 %v7119_v53  ;;  %v6268_v51 = vcombine.low %v4827_v24, %v4831_v25  ;;  %v8601_v3 = vpop.f32.mrf.mxu0  ;;  %v5029_v53 = vsel %vm7337_vm9, %v5020_v39, %v5028_v28  ;;  %v5058_v19 = vshrl.u32 %v8588_v30, 16  ;;  %v5061_v11 = vshll.u32 %v8588_v30, 16  ;;  %v8610_v25 = vld [vmem:[%s7187_s4 + $0x40] sm:$0xe] }
 0x126   : > { %v8594_v63 = vpop.f32.mrf.mxu1  ;;  %6987 = vmatprep.subr.bf16.mxu1 %v8574_v9  ;;  %9010 = vst [vmem:[#allocation16_spill] sm:$0xff] %v8601_v3  ;;  %v6296_v45 = vcombine.low %v5011_v23, %v5029_v53  ;;  %v5037_v16 = vor.u32 %v5036_v44, %v5033_v33  ;;  %v5045_v36 = vrot.slane %v5043_v29, 6  ;;  %v5051_v24 = vrot.slane %v5049_v35, 5  ;;  %v8619_v3 = vld [vmem:[%s7187_s4 + $0x44] sm:$0x3] }
 0x127   : > { %9009 = vst [vmem:[#allocation15_spill] sm:$0xff] %v8594_v63  ;;  %6947 = vmatprep.mubr.msk.bf16.mxu0 %vm356_vm0, %v6268_v51  ;;  %v5054_v63 = vrot.slane %v5052_v43, 6  ;;  %v5060_v6 = vrot.slane %v5058_v19, 5  ;;  %v5063_v39 = vrot.slane %v5061_v11, 6  ;;  %v6254_v28 = vrot.slane %v8556_v2, 9  ;;  %v8624_v35 = vpop.f32.mrf.mxu0 }
 0x128   : > { %v8612_v1 = vpop.f32.mrf.mxu1  ;;  %v8616_v51 = vld [vmem:[%s7187_s4 + $0x48] sm:$0xe]  ;;  %6963 = vmatprep.mubr.msk.bf16.mxu1 %vm356_vm0, %v6296_v45  ;;  %v5038_v23 = vrot.slane %v5037_v16, 4  ;;  %v5046_v33 = vor.u32 %v5045_v36, %v5042_v10  ;;  %v6255_v44 = vrot.slane %v8567_v22, 9  ;;  %v4838_v29 = vrot.slane %v8384_v8, 5  ;;  %9012 = vst [vmem:[#allocation18_spill] sm:$0xff] %v8624_v35 }
 0x129   : > { %9011 = vst [vmem:[#allocation17_spill] sm:$0xff] %v8612_v1  ;;  %v5055_v53 = vor.u32 %v5054_v63, %v5051_v24  ;;  %v5064_v43 = vor.u32 %v5063_v39, %v5060_v6  ;;  %v9013_v19 = vrot.slane %v8365_v26, 5  ;;  %v5067_v11 = vshrl.u32 %v8610_v25, 16  ;;  %v8636_v22 = vld [vmem:[%s7187_s4 + $0x4c] sm:$0x3] }
 0x12a   : > { %v5047_v45 = vsel %vm7337_vm9, %v5038_v23, %v5046_v33  ;;  %v4839_v10 = vsel %vm7318_vm8, %v6255_v44, %v4838_v29  ;;  %v5070_v8 = vshll.u32 %v8610_v25, 16  ;;  %v5076_v63 = vshrl.u32 %v8619_v3, 16  ;;  %v8640_v6 = vpop.f32.mrf.mxu1  ;;  %v8645_v44 = vpop.f32.mrf.mxu0  ;;  %v8657_v1 = vld [vmem:[%s7187_s4 + $0x50] sm:$0xe]  ;;  %v8663_v35 = vld [vmem:[%s7187_s4 + $0x54] sm:$0x3] }
 0x12b   : > { %v4835_v2 = vsel %vm7318_vm8, %v6254_v28, %v9013_v19  ;;  %9014 = vst [vmem:[#allocation19_spill] sm:$0xff] %v8640_v6  ;;  %v5056_v26 = vrot.slane %v5055_v53, 4  ;;  %v5069_v36 = vrot.slane %v5067_v11, 5  ;;  %v5079_v24 = vshll.u32 %v8619_v3, 16  ;;  %9015 = vst [vmem:[#allocation20_spill] sm:$0xff] %v8645_v44  ;;  %v7121_v53 = vld [vmem:[%s8983_s1 + $0x310] sm:$0xff]  }
 0x12c   : > { %v6269_v16 = vcombine.low %v4835_v2, %v4839_v10  ;;  %v5072_v39 = vrot.slane %v5070_v8, 6  ;;  %v5078_v28 = vrot.slane %v5076_v63, 5  ;;  %v5085_v23 = vshrl.u32 %v8616_v51, 16 }
 0x12d   : > { %v5088_v33 = vshll.u32 %v8616_v51, 16  ;;  %v5065_v29 = vsel %vm7337_vm9, %v5056_v26, %v5064_v43  ;;  %v5081_v19 = vrot.slane %v5079_v24, 6  ;;  %v5094_v2 = vshrl.u32 %v8636_v22, 16  ;;  %v8659_v43 = vpop.f32.mrf.mxu1 }
 0x12e   : > { %6948 = vmatmul.mubr.msk.bf16.vlgmr.msra.gmra.mxu0 %vm356_vm0, %v6269_v16  ;;  %v5097_v11 = vshll.u32 %v8636_v22, 16  ;;  %v6297_v10 = vcombine.low %v5047_v45, %v5065_v29  ;;  %v5073_v8 = vor.u32 %v5072_v39, %v5069_v36  ;;  %v5087_v63 = vrot.slane %v5085_v23, 5  ;;  %9016 = vst [vmem:[#allocation21_spill] sm:$0xff] %v8659_v43  ;;  %v8668_v23 = vpop.f32.mrf.mxu0 }
 0x12f   : > { %6972 = vmatpush3.bf16.msra.mxu0 %v8574_v9  ;;  %v5090_v6 = vrot.slane %v5088_v33, 6  ;;  %v5082_v26 = vor.u32 %v5081_v19, %v5078_v28  ;;  %v5096_v16 = vrot.slane %v5094_v2, 5  ;;  %v6256_v24 = vrot.slane %v8610_v25, 9  ;;  %v8673_v19 = vld [vmem:[%s7187_s4 + $0x58] sm:$0xe] }
 0x130   : > { %6973 = vmatprep.subr.bf16.mxu0 %v7121_v53  ;;  %v5099_v44 = vrot.slane %v5097_v11, 6  ;;  %6964 = vmatmul.mubr.msk.bf16.vlgmr.msra.gmra.mxu1 %vm356_vm0, %v6297_v10  ;;  %v5074_v45 = vrot.slane %v5073_v8, 4  ;;  %v4842_v36 = vrot.slane %v8404_v21, 5  ;;  %v6257_v39 = vrot.slane %v8616_v51, 9  ;;  %v7122_v21 = vld [vmem:[%s8983_s1 + $0x308] sm:$0xff]  }
 0x131   : > { %v5091_v29 = vor.u32 %v5090_v6, %v5087_v63  ;;  %6991 = vmatpush3.bf16.msra.mxu1 %v8574_v9  ;;  %v4846_v33 = vrot.slane %v8417_v0, 5  ;;  %v5103_v25 = vshrl.u32 %v8657_v1, 16  ;;  %v5106_v2 = vshll.u32 %v8657_v1, 16  ;;  %v8690_v10 = vld [vmem:[%s7187_s4 + $0x5c] sm:$0x3] }
 0x132   : > { %v5100_v28 = vor.u32 %v5099_v44, %v5096_v16  ;;  %6988 = vmatprep.subr.bf16.mxu1 %v7121_v53  ;;  %v5083_v51 = vsel %vm7337_vm9, %v5074_v45, %v5082_v26  ;;  %v4843_v9 = vsel %vm7318_vm8, %v6256_v24, %v4842_v36  ;;  %v5112_v0 = vshrl.u32 %v8663_v35, 16  ;;  %v8685_v44 = vpop.f32.mrf.mxu1  ;;  %v8696_v36 = vpop.f32.mrf.mxu0 }
 0x133   : > { %6974 = vmatpush3.bf16.msra.mxu0 %v7121_v53  ;;  %v5092_v6 = vrot.slane %v5091_v29, 4  ;;  %9017 = vst [vmem:[#allocation22_spill] sm:$0xff] %v8685_v44  ;;  %v4847_v11 = vsel %vm7318_vm8, %v6257_v39, %v4846_v33  ;;  %v5105_v8 = vrot.slane %v5103_v25, 5  ;;  %v5108_v63 = vrot.slane %v5106_v2, 6 }
 0x134   : > { %v5115_v16 = vshll.u32 %v8663_v35, 16  ;;  %6975 = vmatprep.subr.bf16.mxu0 %v7122_v21  ;;  %v6270_v45 = vcombine.low %v4843_v9, %v4847_v11  ;;  %v5114_v29 = vrot.slane %v5112_v0, 5  ;;  %v5121_v24 = vshrl.u32 %v8673_v19, 16 }
 0x135   : > { %v5101_v26 = vsel %vm7337_vm9, %v5092_v6, %v5100_v28  ;;  %6992 = vmatpush3.bf16.msra.mxu1 %v7121_v53  ;;  %v5109_v43 = vor.u32 %v5108_v63, %v5105_v8  ;;  %v5124_v33 = vshll.u32 %v8673_v19, 16  ;;  %v5130_v2 = vshrl.u32 %v8690_v10, 16  ;;  %v7123_v53 = vld [vmem:[%s8983_s1 + $0x300] sm:$0xff]   ;;  %v6313_v6 = vld [vmem:[%s7187_s4 + $0x48] sm:$0xc] }
 0x136   : > { %v6298_v44 = vcombine.low %v5083_v51, %v5101_v26  ;;  %v5117_v39 = vrot.slane %v5115_v16, 6  ;;  %6951 = vmatprep.mubr.msk.bf16.mxu0 %vm356_vm0, %v6270_v45  ;;  %v5123_v25 = vrot.slane %v5121_v24, 5  ;;  %v5133_v28 = vshll.u32 %v8690_v10, 16  ;;  %6989 = vmatprep.subr.bf16.mxu1 %v7122_v21  ;;  %v8706_v51 = vpop.f32.mrf.mxu1  ;;  %v6312_v63 = vld [vmem:[%s7187_s4 + $0x40] sm:$0xc] }
 0x137   : > { %9018 = vst [vmem:[#allocation23_spill] sm:$0xff] %v8706_v51  ;;  %v5110_v9 = vrot.slane %v5109_v43, 4  ;;  %v5126_v11 = vrot.slane %v5124_v33, 6  ;;  %v5322_v8 = vrot.slane %v8690_v10, 6  ;;  %6976 = vmatpush3.bf16.msra.mxu0 %v7122_v21  ;;  %v5132_v16 = vrot.slane %v5130_v2, 5  ;;  %v8714_v51 = vpop.f32.mrf.mxu0 }
 0x138   : > { %6967 = vmatprep.mubr.msk.bf16.mxu1 %vm356_vm0, %v6298_v44  ;;  %v5118_v0 = vor.u32 %v5117_v39, %v5114_v29  ;;  %v5135_v26 = vrot.slane %v5133_v28, 6  ;;  %v6258_v45 = vrot.slane %v8657_v1, 9  ;;  %v4850_v24 = vrot.slane %v8440_v42, 5  ;;  %6977 = vmatprep.subr.bf16.mxu0 %v7123_v53  ;;  %v6308_v39 = vld [vmem:[%s7187_s4 + $0x20] sm:$0xc] }
 0x139   : > { %v5127_v44 = vor.u32 %v5126_v11, %v5123_v25  ;;  %v6259_v29 = vrot.slane %v8673_v19, 9  ;;  %v4854_v10 = vrot.slane %v8451_v54, 5  ;;  %6993 = vmatpush3.bf16.msra.mxu1 %v7122_v21  ;;  %v6320_v42 = vrot.slane %v6312_v63, 10  ;;  %v6309_v28 = vld [vmem:[%s7187_s4 + $0x28] sm:$0xc] }
 0x13a   : > { %v5119_v43 = vsel %vm7337_vm9, %v5110_v9, %v5118_v0  ;;  %v5136_v33 = vor.u32 %v5135_v26, %v5132_v16  ;;  %v4851_v1 = vsel %vm7318_vm8, %v6258_v45, %v4850_v24  ;;  %6990 = vmatprep.subr.bf16.mxu1 %v7123_v53  ;;  %v5310_v2 = vrot.slane %v8619_v3, 6  ;;  %v8725_v9 = vpop.f32.mrf.mxu1  ;;  %v6314_v0 = vld [vmem:[%s7187_s4 + $0x50] sm:$0xc]  ;;  %v6315_v26 = vld [vmem:[%s7187_s4 + $0x58] sm:$0xc]  ;;  %v8736_v24 = vpop.f32.mrf.mxu0 }
 0x13b   : > { %v5128_v25 = vrot.slane %v5127_v44, 4  ;;  %v4855_v19 = vsel %vm7318_vm8, %v6259_v29, %v4854_v10  ;;  %6978 = vmatpush3.bf16.msra.mxu0 %v7123_v53  ;;  %v6321_v54 = vrot.slane %v6313_v6, 10  ;;  %v5314_v21 = vrot.slane %v8636_v22, 6  ;;  %v6310_v45 = vld [vmem:[%s7187_s4 + $0x30] sm:$0xc] }
 0x13c   : > { %v6271_v11 = vcombine.low %v4851_v1, %v4855_v19  ;;  %v5311_v16 = vsel %vm7452_vm12, %v6320_v42, %v5310_v2  ;;  %v6316_v63 = vrot.slane %v6308_v39, 10  ;;  %v5294_v3 = vrot.slane %v8515_v58, 6  ;;  %v6311_v29 = vld [vmem:[%s7187_s4 + $0x38] sm:$0xc]  ;;  %v8747_v42 = vpop.f32.mrf.mxu1 }
 0x13d   : > { %v5137_v17 = vsel %vm7337_vm9, %v5128_v25, %v5136_v33  ;;  %6994 = vmatpush3.bf16.msra.mxu1 %v7123_v53  ;;  %v5315_v6 = vsel %vm7452_vm12, %v6321_v54, %v5314_v21  ;;  %v6317_v22 = vrot.slane %v6309_v28, 10  ;;  %v5298_v44 = vrot.slane %v8518_v32, 6  ;;  %v6725_v54 = vpop.f32.mrf.mxu0 }
 0x13e   : > { %v6299_v10 = vcombine.low %v5119_v43, %v5137_v17  ;;  %6952 = vmatmul.mubr.msk.bf16.gmra.mxu0 %vm356_vm0, %v6271_v11  ;;  %v6334_v39 = vcombine.low %v5311_v16, %v5315_v6  ;;  %v5295_v58 = vsel %vm7452_vm12, %v6316_v63, %v5294_v3  ;;  %v6322_v1 = vrot.slane %v6314_v0, 10  ;;  %v6742_v63 = vpop.f32.mrf.mxu1 }
 0x13f   : > { %v5299_v38 = vsel %vm7452_vm12, %v6317_v22, %v5298_v44  ;;  %v6323_v53 = vrot.slane %v6315_v26, 10  ;;  %v6318_v33 = vrot.slane %v6310_v45, 10  ;;  %v5302_v2 = vrot.slane %v8559_v18, 6  ;;  %v9022_v45 = vld [vmem:[#allocation5_spill] sm:$0xff]  ;;  %v9025_v44 = vld [vmem:[#allocation6_spill] sm:$0xff] }
 0x140   : > { %6968 = vmatmul.mubr.msk.bf16.gmra.mxu1 %vm356_vm0, %v6299_v10  ;;  %v6332_v32 = vcombine.low %v5295_v58, %v5299_v38  ;;  %v9019_v43 = vrot.slane %v8663_v35, 6  ;;  %v6319_v25 = vrot.slane %v6311_v29, 10  ;;  %v5306_v19 = vrot.slane %v8588_v30, 6  ;;  %v2241_v34 = vpop.f32.mrf.mxu1  ;;  %v9028_v38 = vld [vmem:[#allocation10_spill] sm:$0xff] }
 0x141   : > { %6983 = vmatprep.mubr.msk.bf16.mxu1 %vm356_vm0, %v6334_v39  ;;  %v5323_v21 = vsel %vm7452_vm12, %v6323_v53, %v5322_v8  ;;  %v5303_v18 = vsel %vm7452_vm12, %v6318_v33, %v5302_v2  ;;  %v742_v0 = vadd.f32 %v8368_v15, %v8445_v60  ;;  %v740_v35 = vadd.f32 %v8379_v20, %v8485_v5  ;;  %v2052_v5 = vpop.f32.mrf.mxu0  ;;  %v9027_v39 = vld [vmem:[#allocation9_spill] sm:$0xff]  ;;  %v9029_v53 = vld [vmem:[#allocation11_spill] sm:$0xff] }
 0x142   : > { %v5319_v28 = vsel %vm7452_vm12, %v6322_v1, %v9019_v43  ;;  %6979 = vmatprep.mubr.msk.bf16.mxu0 %vm356_vm0, %v6332_v32  ;;  %v5307_v30 = vsel %vm7452_vm12, %v6319_v25, %v5306_v19  ;;  %v743_v16 = vadd.f32 %v8388_v40, %v8496_v50  ;;  %v741_v8 = vadd.f32 %v8396_v4, %v8506_v52  ;;  %v9020_v50 = vld [vmem:[#allocation2_spill] sm:$0xff]  ;;  %v9021_v4 = vld [vmem:[#allocation3_spill] sm:$0xff]  ;;  %v9033_v19 = vld [vmem:[#allocation20_spill] sm:$0xff] }
 0x143   : > { %v6335_v11 = vcombine.low %v5319_v28, %v5323_v21  ;;  %v6333_v3 = vcombine.low %v5303_v18, %v5307_v30  ;;  %v1023_v15 = vadd.f32 %v8293_v62, %v8522_v47  ;;  %v1021_v20 = vadd.f32 %v8310_v41, %v8526_v48  ;;  %v9023_v47 = vld [vmem:[#allocation8_spill] sm:$0xff]  ;;  %v6726_v1 = vpop.f32.mrf.mxu0  ;;  %v9031_v32 = vld [vmem:[#allocation18_spill] sm:$0xff] }
 0x144   : > { %v1024_v60 = vadd.f32 %v8334_v61, %v8530_v57  ;;  %v1027_v40 = vadd.f32 %v8377_v37, %v742_v0  ;;  %v1025_v26 = vadd.f32 %v9020_v50, %v740_v35  ;;  %v1028_v52 = vadd.f32 %v9021_v4, %v743_v16  ;;  %v9024_v41 = vld [vmem:[#allocation4_spill] sm:$0xff]  ;;  %v6745_v0 = vpop.f32.mrf.mxu1  ;;  %v9039_v50 = vld [vmem:[#allocation21_spill] sm:$0xff] }
 0x145   : > { %v1212_v17 = vadd.f32 %v9022_v45, %v1023_v15  ;;  %v1210_v62 = vadd.f32 %v8425_v46, %v1021_v20  ;;  %v1026_v48 = vadd.f32 %v9024_v41, %v741_v8  ;;  %v1211_v61 = vadd.f32 %v8455_v59, %v1022_v49  ;;  %v9026_v46 = vld [vmem:[#allocation7_spill] sm:$0xff]  ;;  %v9032_v28 = vld [vmem:[#allocation12_spill] sm:$0xff]  ;;  %v2055_v15 = vpop.f32.mrf.mxu0  ;;  %v9037_v20 = vld [vmem:[#allocation17_spill] sm:$0xff] }
 0x146   : > { %v1213_v6 = vadd.f32 %v9023_v47, %v1024_v60  ;;  %6980 = vmatmul.mubr.msk.bf16.vlgmr.msra.gmra.mxu0 %vm356_vm0, %v6333_v3  ;;  %v1216_v13 = vadd.f32 %v8471_v7, %v1027_v40  ;;  %v1214_v37 = vadd.f32 %v8489_v31, %v1025_v26  ;;  %v1217_v57 = vadd.f32 %v8538_v14, %v1028_v52  ;;  %v9036_v8 = vld [vmem:[#allocation15_spill] sm:$0xff]  ;;  %v9040_v26 = vld [vmem:[#allocation22_spill] sm:$0xff] }
 0x147   : > { %v1215_v22 = vadd.f32 %v8561_v55, %v1026_v48  ;;  %v1359_v29 = vadd.f32 %v9025_v44, %v1212_v17  ;;  %v1357_v10 = vadd.f32 %v9026_v46, %v1210_v62  ;;  %v1358_v59 = vadd.f32 %v8469_v27, %v1211_v61  ;;  %v9030_v55 = vld [vmem:[#allocation16_spill] sm:$0xff]  ;;  %v9038_v49 = vld [vmem:[#allocation19_spill] sm:$0xff]  ;;  %v2254_v62 = vpop.f32.mrf.mxu1 }
 0x148   : > { %v1360_v58 = vadd.f32 %v9027_v39, %v1213_v6  ;;  %6984 = vmatmul.mubr.msk.bf16.vlgmr.msra.gmra.mxu1 %vm356_vm0, %v6335_v11  ;;  %v1363_v7 = vadd.f32 %v8487_v12, %v1216_v13  ;;  %v1361_v31 = vadd.f32 %v9028_v38, %v1214_v37  ;;  %v1364_v14 = vadd.f32 %v9029_v53, %v1217_v57  ;;  %v9034_v11 = vld [vmem:[#allocation13_spill] sm:$0xff]  ;;  %v9041_v45 = vld [vmem:[#allocation23_spill] sm:$0xff] }
 0x149   : > { %v1617_v33 = vadd.f32 %v8592_v56, %v1359_v29  ;;  %v1615_v2 = vadd.f32 %v9030_v55, %v1357_v10  ;;  %v1362_v25 = vadd.f32 %v9032_v28, %v1215_v22  ;;  %v1616_v21 = vadd.f32 %v9033_v19, %v1358_v59  ;;  %v9035_v56 = vld [vmem:[#allocation14_spill] sm:$0xff]  ;;  %v6746_v57 = vpop.f32.mrf.mxu1 }
 0x14a   : > { %v1618_v43 = vadd.f32 %v9031_v32, %v1360_v58  ;;  %v1621_v18 = vadd.f32 %v8668_v23, %v1363_v7  ;;  %v1619_v27 = vadd.f32 %v8696_v36, %v1361_v31  ;;  %v1622_v12 = vadd.f32 %v8714_v51, %v1364_v14 }
 0x14b   : > { %v1620_v35 = vadd.f32 %v8736_v24, %v1362_v25  ;;  %v1803_v30 = vadd.f32 %v9034_v11, %v1617_v33  ;;  %v1801_v16 = vadd.f32 %v9035_v56, %v1615_v2  ;;  %v1802_v60 = vadd.f32 %v9037_v20, %v1616_v21  ;;  %v2257_v46 = vpop.f32.mrf.mxu1 }
 0x14c   : > { %v1804_v3 = vadd.f32 %v9036_v8, %v1618_v43  ;;  %v1807_v40 = vadd.f32 %v9038_v49, %v1621_v18  ;;  %v1805_v23 = vadd.f32 %v9039_v50, %v1619_v27  ;;  %v1808_v36 = vadd.f32 %v9040_v26, %v1622_v12 }
 0x14d   : > { %v2085_v4 = vadd.f32 %v6725_v54, %v1803_v30  ;;  %v2083_v51 = vadd.f32 %v2052_v5, %v1801_v16  ;;  %v1806_v24 = vadd.f32 %v9041_v45, %v1620_v35  ;;  %v2084_v17 = vadd.f32 %v2055_v15, %v1802_v60  ;;  %v6729_v48 = vpop.f32.mrf.mxu0 }
 0x14e   : > { %v2086_v52 = vadd.f32 %v6726_v1, %v1804_v3  ;;  %v2089_v13 = vadd.f32 %v6729_v48, %v1807_v40 }
 0x14f   : > { %v2271_v47 = vadd.f32 %v8725_v9, %v2085_v4  ;;  %v2269_v6 = vadd.f32 %v8747_v42, %v2083_v51  ;;  %v2270_v61 = vadd.f32 %v2241_v34, %v2084_v17  ;;  %v2068_v37 = vpop.f32.mrf.mxu0 }
 0x150   : > { %v2272_v41 = vadd.f32 %v6742_v63, %v2086_v52  ;;  %v2087_v22 = vadd.f32 %v2068_v37, %v1805_v23  ;;  %v2275_v44 = vadd.f32 %v6745_v0, %v2089_v13 }
 0x151   : > { %v6730_v29 = vpop.f32.mrf.mxu0 }
 0x152   : > { %v2090_v54 = vadd.f32 %v6730_v29, %v1808_v36  ;;  %v2273_v5 = vadd.f32 %v2254_v62, %v2087_v22 }
 0x153   : > { %v2071_v10 = vpop.f32.mrf.mxu0 }
 0x154   : > { %v2088_v39 = vadd.f32 %v2071_v10, %v1806_v24  ;;  %v2276_v58 = vadd.f32 %v6746_v57, %v2090_v54 }
 0x155   : > { %v6757_v1 = vpop.f32.mrf.mxu0 }
 0x156   : > { %v2418_v59 = vadd.f32 %v6757_v1, %v2271_v47  ;;  %v2274_v9 = vadd.f32 %v2257_v46, %v2088_v39 }
 0x157   : > { %v6773_v7 = vpop.f32.mrf.mxu1  ;;  %v2385_v42 = vpop.f32.mrf.mxu0 }
 0x158   : > { %v2416_v63 = vadd.f32 %v2385_v42, %v2269_v6  ;;  %v2676_v38 = vadd.f32 %v6773_v7, %v2418_v59 }
 0x159   : > { %v2643_v34 = vpop.f32.mrf.mxu1  ;;  %v6758_v31 = vpop.f32.mrf.mxu0 }
 0x15a   : > { %v2419_v53 = vadd.f32 %v6758_v31, %v2272_v41  ;;  %v2674_v14 = vadd.f32 %v2643_v34, %v2416_v63 }
 0x15b   : > { %v6774_v33 = vpop.f32.mrf.mxu1  ;;  %v2388_v55 = vpop.f32.mrf.mxu0 }
 0x15c   : > { %v2417_v2 = vadd.f32 %v2388_v55, %v2270_v61  ;;  %v2677_v32 = vadd.f32 %v6774_v33, %v2419_v53 }
 0x15d   : > { %v2646_v43 = vpop.f32.mrf.mxu1  ;;  %v6761_v28 = vpop.f32.mrf.mxu0 }
 0x15e   : > { %v2422_v25 = vadd.f32 %v6761_v28, %v2275_v44  ;;  %v2675_v19 = vadd.f32 %v2646_v43, %v2417_v2 }
 0x15f   : > { %v2401_v21 = vpop.f32.mrf.mxu0 }
 0x160   : > { %v2420_v18 = vadd.f32 %v2401_v21, %v2273_v5 }
 0x161   : > { %v6777_v27 = vpop.f32.mrf.mxu1  ;;  %v6762_v12 = vpop.f32.mrf.mxu0 }
 0x162   : > { %v2423_v0 = vadd.f32 %v6762_v12, %v2276_v58  ;;  %v2680_v35 = vadd.f32 %v6777_v27, %v2422_v25 }
 0x163   : > { %v2659_v11 = vpop.f32.mrf.mxu1  ;;  %v2404_v30 = vpop.f32.mrf.mxu0 }
 0x164   : > { %v2421_v56 = vadd.f32 %v2404_v30, %v2274_v9  ;;  %v2678_v16 = vadd.f32 %v2659_v11, %v2420_v18 }
 0x165   : > { %v6778_v8 = vpop.f32.mrf.mxu1 }
 0x166   : > { %v2681_v3 = vadd.f32 %v6778_v8, %v2423_v0 }
 0x167   : > { %v2662_v15 = vpop.f32.mrf.mxu1 }
 0x168   : > { %v2679_v20 = vadd.f32 %v2662_v15, %v2421_v56 }
 0x16c   : > { %v6789_v60 = vpop.f32.mrf.mxu0 }
 0x16d   : > { %v2862_v49 = vadd.f32 %v6789_v60, %v2676_v38 }
 0x16e   : > { %v6805_v40 = vpop.f32.mrf.mxu1  ;;  %v2829_v50 = vpop.f32.mrf.mxu0 }
 0x16f   : > { %v2860_v23 = vadd.f32 %v2829_v50, %v2674_v14  ;;  %v3144_v26 = vadd.f32 %v6805_v40, %v2862_v49 }
 0x170   : > { %v3111_v36 = vpop.f32.mrf.mxu1  ;;  %v6790_v4 = vpop.f32.mrf.mxu0 }
 0x171   : > { %v2863_v51 = vadd.f32 %v6790_v4, %v2677_v32  ;;  %v3142_v52 = vadd.f32 %v3111_v36, %v2860_v23 }
 0x172   : > { %v6806_v45 = vpop.f32.mrf.mxu1  ;;  %v2832_v24 = vpop.f32.mrf.mxu0 }
 0x173   : > { %v2861_v17 = vadd.f32 %v2832_v24, %v2675_v19  ;;  %v8822_v62 = vadd.f32 %v6806_v45, %v2863_v51 }
 0x174   : > { %v3114_v47 = vpop.f32.mrf.mxu1 }
 0x175   : > { %v8824_v6 = vadd.f32 %v3114_v47, %v2861_v17 }
 0x17c   : > { %v6793_v41 = vpop.f32.mrf.mxu0 }
 0x17d   : > { %v2866_v48 = vadd.f32 %v6793_v41, %v2680_v35 }
 0x17e   : > { %v6809_v61 = vpop.f32.mrf.mxu1  ;;  %v2845_v13 = vpop.f32.mrf.mxu0 }
 0x17f   : > { %v2864_v37 = vadd.f32 %v2845_v13, %v2678_v16  ;;  %v8826_v57 = vadd.f32 %v6809_v61, %v2866_v48 }
 0x180   : > { %v3127_v22 = vpop.f32.mrf.mxu1  ;;  %v6794_v44 = vpop.f32.mrf.mxu0 }
 0x181   : > { %v2867_v29 = vadd.f32 %v6794_v44, %v2681_v3  ;;  %v8828_v54 = vadd.f32 %v3127_v22, %v2864_v37 }
 0x182   : > { %v6810_v5 = vpop.f32.mrf.mxu1  ;;  %v2848_v46 = vpop.f32.mrf.mxu0 }
 0x183   : > { %v2865_v10 = vadd.f32 %v2848_v46, %v2679_v20  ;;  %v8830_v39 = vadd.f32 %v6810_v5, %v2867_v29 }
 0x184   : > { %v3130_v58 = vpop.f32.mrf.mxu1  ;;  %v6821_v1 = vpop.f32.mrf.mxu0 }
 0x185   : > { %v3330_v59 = vadd.f32 %v6821_v1, %v3144_v26  ;;  %v8832_v9 = vadd.f32 %v3130_v58, %v2865_v10 }
 0x186   : > { %v6837_v7 = vpop.f32.mrf.mxu1  ;;  %v3297_v42 = vpop.f32.mrf.mxu0 }
 0x187   : > { %v3328_v63 = vadd.f32 %v3297_v42, %v3142_v52  ;;  %v8834_v38 = vadd.f32 %v6837_v7, %v3330_v59 }
 0x188   : > { %v3444_v34 = vpop.f32.mrf.mxu1  ;;  %v8836_v31 = vpop.f32.mrf.mxu0 }
 0x189   : > { %v8838_v53 = vadd.f32 %v3444_v34, %v3328_v63 }
 0x18a   : > { %v8840_v14 = vpop.f32.mrf.mxu1  ;;  %v8842_v33 = vpop.f32.mrf.mxu0 }
 0x18c   : > { %v8844_v55 = vpop.f32.mrf.mxu1  ;;  %v6825_v2 = vpop.f32.mrf.mxu0 }
 0x18e   : > { %v6841_v32 = vpop.f32.mrf.mxu1  ;;  %v3313_v43 = vpop.f32.mrf.mxu0 }
 0x190   : > { %v8846_v28 = vpop.f32.mrf.mxu1  ;;  %v6826_v25 = vpop.f32.mrf.mxu0 }
 0x192   : > { %v8848_v19 = vpop.f32.mrf.mxu1  ;;  %v3316_v18 = vpop.f32.mrf.mxu0 }
 0x194   : > { %v8850_v21 = vpop.f32.mrf.mxu1  ;;  %v6853_v0 = vpop.f32.mrf.mxu0 }
 0x196   : > { %v8852_v27 = vpop.f32.mrf.mxu1  ;;  %v3702_v11 = vpop.f32.mrf.mxu0 }
 0x198   : > { %v8854_v12 = vpop.f32.mrf.mxu1  ;;  %v6854_v56 = vpop.f32.mrf.mxu0 }
 0x19a   : > { %v8856_v35 = vpop.f32.mrf.mxu1  ;;  %v8862_v8 = vpop.f32.mrf.mxu0 }
 0x19c   : > { %v8858_v30 = vpop.f32.mrf.mxu1 }
 0x19e   : > { %v8860_v16 = vpop.f32.mrf.mxu1 }
 0x1a0   : > { %v8864_v3 = vpop.f32.mrf.mxu1 }
 0x1a2   : > { %v8866_v20 = vpop.f32.mrf.mxu1 }
 0x1a4   : > { %v8868_v49 = vpop.f32.mrf.mxu1 }
 0x1ac   : > { %v6857_v15 = vpop.f32.mrf.mxu0 }
 0x1ae   : > { %v3718_v60 = vpop.f32.mrf.mxu0  ;;  %v8870_v50 = vpop.f32.mrf.mxu1 }
 0x1b0   : > { %v6858_v40 = vpop.f32.mrf.mxu0  ;;  %v8872_v26 = vpop.f32.mrf.mxu1 }
 0x1b2   : > { %v3721_v23 = vpop.f32.mrf.mxu0  ;;  %v8874_v4 = vpop.f32.mrf.mxu1 }
 0x1b4   : > { %v8876_v52 = vpop.f32.mrf.mxu1 }
 0x1b5   : > { %9042 = vst [vmem:[#allocation2_spill] sm:$0xff] %v8876_v52 }
 0x1b6   : > { %v6885_v36 = vpop.f32.mrf.mxu0 }
 0x1b8   : > { %v4170_v51 = vpop.f32.mrf.mxu0 }
 0x1ba   : > { %v6886_v45 = vpop.f32.mrf.mxu0 }
 0x1bc   : > { %v8878_v24 = vpop.f32.mrf.mxu1  ;;  %v8880_v17 = vpop.f32.mrf.mxu0 }
 0x1be   : > { %v8882_v47 = vpop.f32.mrf.mxu1 }
 0x1c0   : > { %v8884_v61 = vpop.f32.mrf.mxu1 }
 0x1c1   : > { %9043 = vst [vmem:[#allocation3_spill] sm:$0xff] %v8884_v61 }
 0x1c2   : > { %v8886_v37 = vpop.f32.mrf.mxu1 }
 0x1c3   : > { %9044 = vst [vmem:[#allocation5_spill] sm:$0xff] %v8886_v37 }
 0x1c6   : > { %v6889_v41 = vpop.f32.mrf.mxu0 }
 0x1c8   : > { %v4186_v48 = vpop.f32.mrf.mxu0 }
 0x1ca   : > { %v6890_v13 = vpop.f32.mrf.mxu0 }
 0x1cc   : > { %v8888_v22 = vpop.f32.mrf.mxu0 }
 0x1ce   : > { %v6917_v44 = vpop.f32.mrf.mxu0 }
 0x1d0   : > { %v8892_v5 = vpop.f32.mrf.mxu0 }
 0x1d2   : > { %v8896_v10 = vpop.f32.mrf.mxu0 }
 0x1d3   : > { %9047 = vst [vmem:[#allocation6_spill] sm:$0xff] %v8896_v10 }
 0x1d4   : > { %v8900_v1 = vpop.f32.mrf.mxu0 }
 0x1d5   : > { %9049 = vst [vmem:[#allocation9_spill] sm:$0xff] %v8900_v1 }
 0x1d6   : > { %v6921_v7 = vpop.f32.mrf.mxu0 }
 0x1d8   : > { %v8890_v29 = vpop.f32.mrf.mxu1  ;;  %v4519_v63 = vpop.f32.mrf.mxu0 }
 0x1d9   : > { %9045 = vst [vmem:[#allocation8_spill] sm:$0xff] %v8890_v29 }
 0x1da   : > { %v8894_v46 = vpop.f32.mrf.mxu1  ;;  %v8908_v37 = vpop.f32.mrf.mxu0 }
 0x1db   : > { %9046 = vst [vmem:[#allocation4_spill] sm:$0xff] %v8894_v46  ;;  %9053 = vst [vmem:[#allocation18_spill] sm:$0xff] %v8908_v37  ;;  %v3334_v46 = vadd.f32 %v6825_v2, %v8826_v57  ;;  %v3333_v57 = vadd.f32 %v3316_v18, %v8832_v9 }
 0x1dc   : > { %v8898_v58 = vpop.f32.mrf.mxu1  ;;  %v8912_v52 = vpop.f32.mrf.mxu0 }
 0x1dd   : > { %9048 = vst [vmem:[#allocation7_spill] sm:$0xff] %v8898_v58  ;;  %v3332_v58 = vadd.f32 %v3313_v43, %v8828_v54  ;;  %v3481_v61 = vadd.f32 %v6841_v32, %v3334_v46  ;;  %v3733_v54 = vadd.f32 %v3702_v11, %v8838_v53  ;;  %v3480_v9 = vadd.f32 %v8850_v21, %v3333_v57 }
 0x1de   : > { %v8902_v59 = vpop.f32.mrf.mxu1 }
 0x1df   : > { %9050 = vst [vmem:[#allocation10_spill] sm:$0xff] %v8902_v59  ;;  %v3331_v59 = vadd.f32 %v8836_v31, %v8822_v62  ;;  %v3739_v2 = vadd.f32 %v6857_v15, %v3481_v61  ;;  %v3738_v11 = vadd.f32 %v3721_v23, %v3480_v9 }
 0x1e1   : > { %v3478_v62 = vadd.f32 %v8840_v14, %v3331_v59  ;;  %v3919_v14 = vadd.f32 %v8854_v12, %v3733_v54  ;;  %v3924_v23 = vadd.f32 %v8868_v49, %v3738_v11  ;;  %v9056_v49 = vld [vmem:[#allocation3_spill] sm:$0xff] }
 0x1e2   : > { %v8904_v42 = vpop.f32.mrf.mxu1 }
 0x1e3   : > { %9051 = vst [vmem:[#allocation11_spill] sm:$0xff] %v8904_v42  ;;  %v3335_v42 = vadd.f32 %v6826_v25, %v8830_v39  ;;  %v3736_v32 = vadd.f32 %v6854_v56, %v3478_v62 }
 0x1e4   : > { %v8906_v34 = vpop.f32.mrf.mxu1 }
 0x1e5   : > { %9052 = vst [vmem:[#allocation16_spill] sm:$0xff] %v8906_v34  ;;  %v3329_v34 = vadd.f32 %v8842_v33, %v8824_v6  ;;  %v3482_v39 = vadd.f32 %v8848_v19, %v3335_v42 }
 0x1e6   : > { %v8910_v29 = vpop.f32.mrf.mxu1 }
 0x1e7   : > { %9054 = vst [vmem:[#allocation12_spill] sm:$0xff] %v8910_v29  ;;  %v3735_v29 = vadd.f32 %v6853_v0, %v8834_v38  ;;  %v3476_v6 = vadd.f32 %v8844_v55, %v3329_v34  ;;  %v3740_v25 = vadd.f32 %v6858_v40, %v3482_v39  ;;  %v4201_v55 = vadd.f32 %v4170_v51, %v3919_v14  ;;  %v9061_v34 = vld [vmem:[#allocation5_spill] sm:$0xff] }
 0x1e8   : > { %v8915_v10 = vpop.f32.mrf.mxu1 }
 0x1e9   : > { %9055 = vst [vmem:[#allocation20_spill] sm:$0xff] %v8915_v10  ;;  %v3479_v10 = vadd.f32 %v8846_v28, %v3332_v58  ;;  %v3921_v38 = vadd.f32 %v8852_v27, %v3735_v29  ;;  %v3925_v28 = vadd.f32 %v8860_v16, %v3739_v2  ;;  %v3734_v53 = vadd.f32 %v8862_v8, %v3476_v6  ;;  %v9059_v58 = vld [vmem:[#allocation8_spill] sm:$0xff]  ;;  %v9063_v2 = vld [vmem:[#allocation9_spill] sm:$0xff] }
 0x1ea   : > { %v3922_v27 = vadd.f32 %v8856_v35, %v3736_v32  ;;  %v3926_v21 = vadd.f32 %v8866_v20, %v3740_v25  ;;  %v4387_v35 = vadd.f32 %v8872_v26, %v4201_v55  ;;  %v9062_v57 = vld [vmem:[#allocation11_spill] sm:$0xff] }
 0x1eb   : > { %v3737_v43 = vadd.f32 %v3718_v60, %v3479_v10  ;;  %v4203_v18 = vadd.f32 %v6885_v36, %v3921_v38  ;;  %v4207_v19 = vadd.f32 %v6889_v41, %v3925_v28  ;;  %v3920_v16 = vadd.f32 %v8858_v30, %v3734_v53  ;;  %v9066_v28 = vld [vmem:[#allocation7_spill] sm:$0xff] }
 0x1ec   : > { %v4204_v40 = vadd.f32 %v6886_v45, %v3922_v27  ;;  %v4208_v12 = vadd.f32 %v6890_v13, %v3926_v21  ;;  %v4534_v30 = vadd.f32 %v8892_v5, %v4387_v35  ;;  %v9065_v38 = vld [vmem:[#allocation16_spill] sm:$0xff]  ;;  %v9068_v27 = vld [vmem:[#allocation10_spill] sm:$0xff] }
 0x1ed   : > { %v3923_v56 = vadd.f32 %v8864_v3, %v3737_v43  ;;  %v4389_v8 = vadd.f32 %v8870_v50, %v4203_v18  ;;  %v4393_v41 = vadd.f32 %v8878_v24, %v4207_v19  ;;  %v4202_v3 = vadd.f32 %v8880_v17, %v3920_v16  ;;  %v9057_v24 = vld [vmem:[#allocation6_spill] sm:$0xff] }
 0x1ee   : > { %v6949_v1 = vpop.f32.mrf.mxu0  ;;  %v4390_v50 = vadd.f32 %v8874_v4, %v4204_v40  ;;  %v4394_v46 = vadd.f32 %v9056_v49, %v4208_v12  ;;  %v9058_v17 = vld [vmem:[#allocation2_spill] sm:$0xff]  ;;  %v9067_v19 = vld [vmem:[#allocation12_spill] sm:$0xff] }
 0x1ef   : > { %v4205_v60 = vadd.f32 %v4186_v48, %v3923_v56  ;;  %v4536_v51 = vadd.f32 %v6917_v44, %v4389_v8  ;;  %v4206_v48 = vadd.f32 %v8888_v22, %v3924_v23  ;;  %v4540_v20 = vadd.f32 %v6921_v7, %v4393_v41  ;;  %v9060_v22 = vld [vmem:[#allocation18_spill] sm:$0xff] }
 0x1f0   : > { %v8924_v37 = vpop.f32.mrf.mxu1  ;;  %v4947_v31 = vpop.f32.mrf.mxu0  ;;  %v4537_v10 = vadd.f32 %v9057_v24, %v4390_v50  ;;  %v4388_v44 = vadd.f32 %v9058_v17, %v4202_v3  ;;  %v4541_v7 = vadd.f32 %v9060_v22, %v4394_v46 }
 0x1f1   : > { %v4391_v45 = vadd.f32 %v8882_v47, %v4205_v60  ;;  %v4794_v26 = vadd.f32 %v9059_v58, %v4536_v51  ;;  %v4392_v47 = vadd.f32 %v9061_v34, %v4206_v48  ;;  %v4798_v5 = vadd.f32 %v9062_v57, %v4540_v20 }
 0x1f2   : > { %v8933_v33 = vpop.f32.mrf.mxu1  ;;  %v6950_v0 = vpop.f32.mrf.mxu0  ;;  %v4535_v4 = vadd.f32 %v9063_v2, %v4388_v44  ;;  %v4795_v53 = vadd.f32 %v9066_v28, %v4537_v10  ;;  %v4799_v56 = vadd.f32 %v9067_v19, %v4541_v7 }
 0x1f3   : > { %v4538_v29 = vadd.f32 %v4519_v63, %v4391_v45  ;;  %v4980_v54 = vadd.f32 %v6949_v1, %v4794_v26  ;;  %v9064_v63 = vld [vmem:[#allocation4_spill] sm:$0xff]  ;;  %v4539_v32 = vadd.f32 %v8912_v52, %v4392_v47 }
 0x1f4   : > { %v8941_v15 = vpop.f32.mrf.mxu1  ;;  %v4950_v36 = vpop.f32.mrf.mxu0  ;;  %v4792_v62 = vadd.f32 %v9064_v63, %v4534_v30  ;;  %v4981_v55 = vadd.f32 %v6950_v0, %v4795_v53  ;;  %v4793_v1 = vadd.f32 %v9068_v27, %v4535_v4  ;;  %v9069_v52 = vld [vmem:[#allocation20_spill] sm:$0xff]  ;;  %v6344_v0 = vld [vmem:[%s8984_s2] ss:$0 sm:$0xff] }
 0x1f5   : > { %v4796_v25 = vadd.f32 %v9065_v38, %v4538_v29  ;;  %v5262_v21 = vadd.f32 %v8924_v37, %v4980_v54  ;;  %v4797_v8 = vadd.f32 %v9069_v52, %v4539_v32 }
 0x1f6   : > { %v5232_v61 = vpop.f32.mrf.mxu1  ;;  %v4978_v9 = vadd.f32 %v4947_v31, %v4792_v62  ;;  %v4979_v23 = vadd.f32 %v4950_v36, %v4793_v1  ;;  %v5263_v30 = vadd.f32 %v8941_v15, %v4981_v55 }
 0x1f8   : > { %v5260_v3 = vadd.f32 %v8933_v33, %v4978_v9  ;;  %v5261_v33 = vadd.f32 %v5232_v61, %v4979_v23 }
 0x1fe   : > { %v6953_v13 = vpop.f32.mrf.mxu0 }
 0x1ff   : > { %v4984_v6 = vadd.f32 %v6953_v13, %v4798_v5 }
 0x200   : > { %v6969_v59 = vpop.f32.mrf.mxu1  ;;  %v4963_v42 = vpop.f32.mrf.mxu0 }
 0x201   : > { %v4982_v11 = vadd.f32 %v4963_v42, %v4796_v25  ;;  %v5266_v12 = vadd.f32 %v6969_v59, %v4984_v6 }
 0x202   : > { %v5245_v43 = vpop.f32.mrf.mxu1  ;;  %v6954_v39 = vpop.f32.mrf.mxu0 }
 0x203   : > { %v4985_v16 = vadd.f32 %v6954_v39, %v4799_v56  ;;  %v5264_v20 = vadd.f32 %v5245_v43, %v4982_v11 }
 0x204   : > { %v6970_v18 = vpop.f32.mrf.mxu1  ;;  %v4966_v14 = vpop.f32.mrf.mxu0 }
 0x205   : > { %v4983_v35 = vadd.f32 %v4966_v14, %v4797_v8  ;;  %v5267_v36 = vadd.f32 %v6970_v18, %v4985_v16 }
 0x206   : > { %v5248_v60 = vpop.f32.mrf.mxu1  ;;  %v6981_v40 = vpop.f32.mrf.mxu0 }
 0x207   : > { %v5448_v41 = vadd.f32 %v6981_v40, %v5262_v21  ;;  %v5265_v44 = vadd.f32 %v5248_v60, %v4983_v35 }
 0x208   : > { %v6985_v31 = vpop.f32.mrf.mxu1  ;;  %v5415_v51 = vpop.f32.mrf.mxu0 }
 0x209   : > { %v5452_v48 = vadd.f32 %v6985_v31, %v5266_v12  ;;  %v5446_v37 = vadd.f32 %v5415_v51, %v5260_v3  ;;  %v5463_v29 = vadd.f32 %v6344_v0, %v5448_v41 }
 0x20a   : > { %v5431_v45 = vpop.f32.mrf.mxu1  ;;  %v6982_v50 = vpop.f32.mrf.mxu0 }
 0x20b   : > { %v5450_v13 = vadd.f32 %v5431_v45, %v5264_v20  ;;  %v5449_v46 = vadd.f32 %v6982_v50, %v5263_v30  ;;  %v5467_v10 = vadd.f32 %v6344_v0, %v5452_v48  ;;  %v5461_v58 = vadd.f32 %v6344_v0, %v5446_v37 }
 0x20c   : > { %v6986_v49 = vpop.f32.mrf.mxu1  ;;  %v5418_v24 = vpop.f32.mrf.mxu0  ;;  %v5471_v34 = vmax.f32 %v5463_v29, 0.0 }
 0x20d   : > { %v5453_v17 = vadd.f32 %v6986_v49, %v5267_v36  ;;  %v5464_v26 = vadd.f32 %v6344_v0, %v5449_v46  ;;  %v5447_v42 = vadd.f32 %v5418_v24, %v5261_v33  ;;  %v5465_v22 = vadd.f32 %v6344_v0, %v5450_v13 }
 0x20e   : > { %v5434_v59 = vpop.f32.mrf.mxu1  ;;  %v5475_v5 = vmax.f32 %v5467_v10, 0.0  ;;  %v5469_v54 = vmax.f32 %v5461_v58, 0.0 }
 0x20f   : > { %v5468_v7 = vadd.f32 %v6344_v0, %v5453_v17  ;;  %v5451_v15 = vadd.f32 %v5434_v59, %v5265_v44  ;;  %v5472_v47 = vmax.f32 %v5464_v26, 0.0  ;;  %v5462_v57 = vadd.f32 %v6344_v0, %v5447_v42 }
 0x210   : > { %v5473_v62 = vmax.f32 %v5465_v22, 0.0 }
 0x211   : > { %v5476_v2 = vmax.f32 %v5468_v7, 0.0  ;;  %v5466_v4 = vadd.f32 %v6344_v0, %v5451_v15  ;;  %v6372_v61 = vpack.c.bf16 %v5472_v47, %v5471_v34  ;;  %v5470_v63 = vmax.f32 %v5462_v57, 0.0 }
 0x213   : > { %v6382_v43 = vpack.c.bf16 %v5476_v2, %v5475_v5  ;;  %v5474_v39 = vmax.f32 %v5466_v4, 0.0  ;;  %6384 = vst [vmem:[%s170_s29 + $0x8] sm:$0xff] %v6372_v61   ;;  %v6367_v32 = vpack.c.bf16 %v5470_v63, %v5469_v54 }
 0x215   : > { %6386 = vst [vmem:[%s170_s29 + $0x18] sm:$0xff] %v6382_v43   ;;  %v6377_v6 = vpack.c.bf16 %v5474_v39, %v5473_v62  ;;  %6368 = vst [vmem:[%s170_s29] sm:$0xff] %v6367_v32  }
 0x217   : > { %6385 = vst [vmem:[%s170_s29 + $0x10] sm:$0xff] %v6377_v6  }
 0x218 PF: > { %s13_s12 = sadd.s32 1, %s7130_s12  }
 0x219   : > { %p10_p4 = scmp.ge.s32.totalorder %s13_s12, 4  }
 0x21b   :  { %12 = sbr.rel (!%p10_p4) target bundleno = 1 (0x1), region = 90 }

// kernel: siamese_forward.7
= control target key start
LH: loop header
LB: loop body
LE: loop exit
PB: predicated region body
PF: predicated region fallthrough
CT: control target
= control target key end

     0   :  { %vm3692_vm0 = vmmov 0   ;;  %s4883_s1 = inlined_call_operand.vmem [shape: bf16[1024,512], index: 1, kind: input, shape index: {}]   ;;  %s4884_s0 = inlined_call_operand.vmem [shape: bf16[8,1024], index: 0, kind: input, shape index: {}]   ;;  %s4885_s3 = inlined_call_operand.vmem [shape: bf16[512,256], index: 3, kind: input, shape index: {}]   ;;  %s4886_s2 = inlined_call_operand.vmem [shape: f32[1,512], index: 2, kind: input, shape index: {}]   ;;  %s4887_s5 = inlined_call_operand.vmem [shape: bf16[256,128], index: 5, kind: input, shape index: {}]   ;;  %s4888_s7 = inlined_call_operand.vmem [shape: bf16[128,128], index: 7, kind: input, shape index: {}]   ;;  %s4889_s4 = inlined_call_operand.vmem [shape: f32[1,256], index: 4, kind: input, shape index: {}]   ;;  %s4890_s6 = inlined_call_operand.vmem [shape: f32[1,128], index: 6, kind: input, shape index: {}]   ;;  %s4891_s9 = inlined_call_operand.vmem [shape: f32[8,128], index: 9, kind: output, shape index: {0}]   ;;  %s4892_s8 = inlined_call_operand.vmem [shape: f32[1,128], index: 8, kind: input, shape index: {}]   ;;  %s4893_s10 = inlined_call_operand.vmem [shape: f32[8,128], index: 10, kind: output, shape index: {1}]  }
   0x1   :  { %v3179_v0 = vld [vmem:[%s4883_s1 + $0xe4] ss:$16 sps:$4 sm:$0xff]   ;;  %v3183_v2 = vld [vmem:[%s4883_s1 + $0xe0] ss:$16 sps:$4 sm:$0xff]   ;;  %v48_v48 = vld [vmem:[%s4884_s0 + $0x8] sm:$0xff] }
   0x2   :  { %v3181_v1 = vld [vmem:[%s4883_s1 + $0x2e4] ss:$16 sps:$4 sm:$0xff]   ;;  %1615 = vmatprep.subr.bf16.mxu0 %v3179_v0  ;;  %v3184_v3 = vld [vmem:[%s4883_s1 + $0x2e0] ss:$16 sps:$4 sm:$0xff]   ;;  %v3900_v51 = vcombine.high %v48_v48, %v48_v48 }
   0x3   :  { %1656 = vmatprep.subr.bf16.mxu1 %v3181_v1  ;;  %v3185_v4 = vld [vmem:[%s4883_s1 + $0xc4] ss:$16 sps:$4 sm:$0xff]   ;;  %1616 = vmatpush1.bf16.msra.mxu0 %v3183_v2  ;;  %v3189_v6 = vld [vmem:[%s4883_s1 + $0xc0] ss:$16 sps:$4 sm:$0xff]  }
   0x4   :  { %1657 = vmatpush1.bf16.msra.mxu1 %v3184_v3  ;;  %v3187_v5 = vld [vmem:[%s4883_s1 + $0x2c4] ss:$16 sps:$4 sm:$0xff]   ;;  %1617 = vmatprep.subr.bf16.mxu0 %v3185_v4  ;;  %v3190_v7 = vld [vmem:[%s4883_s1 + $0x2c0] ss:$16 sps:$4 sm:$0xff]  }
   0x5   :  { %1658 = vmatprep.subr.bf16.mxu1 %v3187_v5  ;;  %v3191_v8 = vld [vmem:[%s4883_s1 + $0xa4] ss:$16 sps:$4 sm:$0xff]   ;;  %v3195_v10 = vld [vmem:[%s4883_s1 + $0xa0] ss:$16 sps:$4 sm:$0xff]   ;;  %1688 = vmatprep.mubr.bf16.mxu1 %v3900_v51 }
   0x6   :  { %v3193_v9 = vld [vmem:[%s4883_s1 + $0x2a4] ss:$16 sps:$4 sm:$0xff]   ;;  %v3196_v11 = vld [vmem:[%s4883_s1 + $0x2a0] ss:$16 sps:$4 sm:$0xff]  }
   0x7   :  { %1618 = vmatpush1.bf16.msra.mxu0 %v3189_v6  ;;  %v3197_v12 = vld [vmem:[%s4883_s1 + $0x84] ss:$16 sps:$4 sm:$0xff]   ;;  %v3201_v14 = vld [vmem:[%s4883_s1 + $0x80] ss:$16 sps:$4 sm:$0xff]  }
   0x8   :  { %1659 = vmatpush1.bf16.msra.mxu1 %v3190_v7  ;;  %1619 = vmatprep.subr.bf16.mxu0 %v3191_v8  ;;  %v3199_v13 = vld [vmem:[%s4883_s1 + $0x284] ss:$16 sps:$4 sm:$0xff]   ;;  %v3202_v15 = vld [vmem:[%s4883_s1 + $0x280] ss:$16 sps:$4 sm:$0xff]   ;;  %v3960_v7 = vcombine.low %v48_v48, %v48_v48 }
   0x9   :  { %1660 = vmatprep.subr.bf16.mxu1 %v3193_v9  ;;  %v3203_v16 = vld [vmem:[%s4883_s1 + $0x64] ss:$16 sps:$4 sm:$0xff]   ;;  %v3207_v18 = vld [vmem:[%s4883_s1 + $0x60] ss:$16 sps:$4 sm:$0xff]  }
   0xa   :  { %v3205_v17 = vld [vmem:[%s4883_s1 + $0x264] ss:$16 sps:$4 sm:$0xff]   ;;  %v3208_v19 = vld [vmem:[%s4883_s1 + $0x260] ss:$16 sps:$4 sm:$0xff]  }
   0xb   :  { %1620 = vmatpush1.bf16.msra.mxu0 %v3195_v10  ;;  %v3209_v20 = vld [vmem:[%s4883_s1 + $0x44] ss:$16 sps:$4 sm:$0xff]   ;;  %v3213_v22 = vld [vmem:[%s4883_s1 + $0x40] ss:$16 sps:$4 sm:$0xff]  }
   0xc   :  { %1661 = vmatpush1.bf16.msra.mxu1 %v3196_v11  ;;  %1621 = vmatprep.subr.bf16.mxu0 %v3197_v12  ;;  %v3211_v21 = vld [vmem:[%s4883_s1 + $0x244] ss:$16 sps:$4 sm:$0xff]   ;;  %v3214_v23 = vld [vmem:[%s4883_s1 + $0x240] ss:$16 sps:$4 sm:$0xff]  }
   0xd   :  { %1662 = vmatprep.subr.bf16.mxu1 %v3199_v13  ;;  %v3215_v24 = vld [vmem:[%s4883_s1 + $0x24] ss:$16 sps:$4 sm:$0xff]   ;;  %v3219_v26 = vld [vmem:[%s4883_s1 + $0x20] ss:$16 sps:$4 sm:$0xff]  }
   0xe   :  { %v3217_v25 = vld [vmem:[%s4883_s1 + $0x224] ss:$16 sps:$4 sm:$0xff]   ;;  %v3220_v27 = vld [vmem:[%s4883_s1 + $0x220] ss:$16 sps:$4 sm:$0xff]  }
   0xf   :  { %1622 = vmatpush1.bf16.msra.mxu0 %v3201_v14  ;;  %v3221_v28 = vld [vmem:[%s4883_s1 + $0x4] ss:$16 sps:$4 sm:$0xff]   ;;  %v3225_v30 = vld [vmem:[%s4883_s1] ss:$16 sps:$4 sm:$0xff]  }
  0x10   :  { %1663 = vmatpush1.bf16.msra.mxu1 %v3202_v15  ;;  %1623 = vmatprep.subr.bf16.mxu0 %v3203_v16  ;;  %v3223_v29 = vld [vmem:[%s4883_s1 + $0x204] ss:$16 sps:$4 sm:$0xff]   ;;  %v3226_v31 = vld [vmem:[%s4883_s1 + $0x200] ss:$16 sps:$4 sm:$0xff]  }
  0x11   :  { %1664 = vmatprep.subr.bf16.mxu1 %v3205_v17  ;;  %v3227_v32 = vld [vmem:[%s4883_s1 + $0x1e4] ss:$16 sps:$4 sm:$0xff]   ;;  %v3231_v34 = vld [vmem:[%s4883_s1 + $0x1e0] ss:$16 sps:$4 sm:$0xff]  }
  0x12   :  { %v3229_v33 = vld [vmem:[%s4883_s1 + $0x3e4] ss:$16 sps:$4 sm:$0xff]   ;;  %v3232_v35 = vld [vmem:[%s4883_s1 + $0x3e0] ss:$16 sps:$4 sm:$0xff]  }
  0x13   :  { %1624 = vmatpush1.bf16.msra.mxu0 %v3207_v18  ;;  %v3233_v36 = vld [vmem:[%s4883_s1 + $0x1c4] ss:$16 sps:$4 sm:$0xff]   ;;  %v3237_v38 = vld [vmem:[%s4883_s1 + $0x1c0] ss:$16 sps:$4 sm:$0xff]  }
  0x14   :  { %1665 = vmatpush1.bf16.msra.mxu1 %v3208_v19  ;;  %1625 = vmatprep.subr.bf16.mxu0 %v3209_v20  ;;  %v3235_v37 = vld [vmem:[%s4883_s1 + $0x3c4] ss:$16 sps:$4 sm:$0xff]   ;;  %v3238_v39 = vld [vmem:[%s4883_s1 + $0x3c0] ss:$16 sps:$4 sm:$0xff]  }
  0x15   :  { %1666 = vmatprep.subr.bf16.mxu1 %v3211_v21  ;;  %v3239_v40 = vld [vmem:[%s4883_s1 + $0x1a4] ss:$16 sps:$4 sm:$0xff]   ;;  %v3243_v42 = vld [vmem:[%s4883_s1 + $0x1a0] ss:$16 sps:$4 sm:$0xff]  }
  0x16   :  { %v3241_v41 = vld [vmem:[%s4883_s1 + $0x3a4] ss:$16 sps:$4 sm:$0xff]   ;;  %v3244_v43 = vld [vmem:[%s4883_s1 + $0x3a0] ss:$16 sps:$4 sm:$0xff]  }
  0x17   :  { %1626 = vmatpush1.bf16.msra.mxu0 %v3213_v22  ;;  %v3245_v44 = vld [vmem:[%s4883_s1 + $0x184] ss:$16 sps:$4 sm:$0xff]   ;;  %v3249_v49 = vld [vmem:[%s4883_s1 + $0x180] ss:$16 sps:$4 sm:$0xff]  }
  0x18   :  { %1667 = vmatpush1.bf16.msra.mxu1 %v3214_v23  ;;  %1627 = vmatprep.subr.bf16.mxu0 %v3215_v24  ;;  %v3247_v45 = vld [vmem:[%s4883_s1 + $0x384] ss:$16 sps:$4 sm:$0xff]   ;;  %v3250_v50 = vld [vmem:[%s4883_s1 + $0x380] ss:$16 sps:$4 sm:$0xff]  }
  0x19   :  { %1668 = vmatprep.subr.bf16.mxu1 %v3217_v25  ;;  %v47_v46 = vld [vmem:[%s4884_s0] sm:$0xff] }
  0x1a   :  { %v3889_v47 = vcombine.high %v47_v46, %v47_v46  ;;  %v3251_v52 = vld [vmem:[%s4883_s1 + $0x164] ss:$16 sps:$4 sm:$0xff]   ;;  %v3255_v54 = vld [vmem:[%s4883_s1 + $0x160] ss:$16 sps:$4 sm:$0xff]   ;;  %v3958_v6 = vcombine.low %v47_v46, %v47_v46 }
  0x1b   :  { %1628 = vmatpush1.bf16.msra.mxu0 %v3219_v26  ;;  %v3253_v53 = vld [vmem:[%s4883_s1 + $0x364] ss:$16 sps:$4 sm:$0xff]   ;;  %v3256_v55 = vld [vmem:[%s4883_s1 + $0x360] ss:$16 sps:$4 sm:$0xff]  }
  0x1c   :  { %1669 = vmatpush1.bf16.msra.mxu1 %v3220_v27  ;;  %1629 = vmatprep.subr.bf16.mxu0 %v3221_v28  ;;  %v3257_v56 = vld [vmem:[%s4883_s1 + $0x144] ss:$16 sps:$4 sm:$0xff]   ;;  %v3261_v58 = vld [vmem:[%s4883_s1 + $0x140] ss:$16 sps:$4 sm:$0xff]  }
  0x1d   :  { %1670 = vmatprep.subr.bf16.mxu1 %v3223_v29  ;;  %1647 = vmatprep.mubr.bf16.mxu0 %v3889_v47  ;;  %v3259_v57 = vld [vmem:[%s4883_s1 + $0x344] ss:$16 sps:$4 sm:$0xff]   ;;  %v3262_v59 = vld [vmem:[%s4883_s1 + $0x340] ss:$16 sps:$4 sm:$0xff]  }
  0x1e   :  { %v3263_v60 = vld [vmem:[%s4883_s1 + $0x124] ss:$16 sps:$4 sm:$0xff]   ;;  %v3267_v62 = vld [vmem:[%s4883_s1 + $0x120] ss:$16 sps:$4 sm:$0xff]  }
  0x1f   :  { %1630 = vmatpush1.bf16.msra.mxu0 %v3225_v30  ;;  %v3265_v61 = vld [vmem:[%s4883_s1 + $0x324] ss:$16 sps:$4 sm:$0xff]   ;;  %v3268_v63 = vld [vmem:[%s4883_s1 + $0x320] ss:$16 sps:$4 sm:$0xff]  }
  0x20   :  { %1671 = vmatpush1.bf16.msra.mxu1 %v3226_v31  ;;  %1631 = vmatprep.subr.bf16.mxu0 %v3227_v32  ;;  %v3269_v0 = vld [vmem:[%s4883_s1 + $0x104] ss:$16 sps:$4 sm:$0xff]   ;;  %v3273_v2 = vld [vmem:[%s4883_s1 + $0x100] ss:$16 sps:$4 sm:$0xff]  }
  0x21   :  { %1672 = vmatprep.subr.bf16.mxu1 %v3229_v33  ;;  %v3271_v1 = vld [vmem:[%s4883_s1 + $0x304] ss:$16 sps:$4 sm:$0xff]   ;;  %v3274_v3 = vld [vmem:[%s4883_s1 + $0x300] ss:$16 sps:$4 sm:$0xff]   ;;  %v4044_v33 = vld [vmem:[%s4884_s0 + $0x18] sm:$0xff] }
  0x22   :  { %v3281_v4 = vld [vmem:[%s4883_s1 + $0x4e4] ss:$16 sps:$4 sm:$0xff]   ;;  %v3279_v8 = vld [vmem:[%s4883_s1 + $0x4e0] ss:$16 sps:$4 sm:$0xff]  }
  0x23   :  { %1632 = vmatpush2.bf16.msra.mxu0 %v3231_v34  ;;  %v3284_v5 = vld [vmem:[%s4883_s1 + $0x6e4] ss:$16 sps:$4 sm:$0xff]   ;;  %v3282_v9 = vld [vmem:[%s4883_s1 + $0x6e0] ss:$16 sps:$4 sm:$0xff]  }
  0x24   :  { %1673 = vmatpush2.bf16.msra.mxu1 %v3232_v35  ;;  %1633 = vmatprep.subr.bf16.mxu0 %v3233_v36  ;;  %v3287_v10 = vld [vmem:[%s4883_s1 + $0x4c4] ss:$16 sps:$4 sm:$0xff]   ;;  %v3285_v12 = vld [vmem:[%s4883_s1 + $0x4c0] ss:$16 sps:$4 sm:$0xff]  }
  0x25   :  { %1674 = vmatprep.subr.bf16.mxu1 %v3235_v37  ;;  %v3290_v11 = vld [vmem:[%s4883_s1 + $0x6c4] ss:$16 sps:$4 sm:$0xff]   ;;  %v3288_v13 = vld [vmem:[%s4883_s1 + $0x6c0] ss:$16 sps:$4 sm:$0xff]   ;;  %v4058_v37 = vcombine.high %v4044_v33, %v4044_v33 }
  0x26   :  { %v3293_v14 = vld [vmem:[%s4883_s1 + $0x4a4] ss:$16 sps:$4 sm:$0xff]   ;;  %v3291_v16 = vld [vmem:[%s4883_s1 + $0x4a0] ss:$16 sps:$4 sm:$0xff]  }
  0x27   :  { %1634 = vmatpush2.bf16.msra.mxu0 %v3237_v38  ;;  %v3296_v15 = vld [vmem:[%s4883_s1 + $0x6a4] ss:$16 sps:$4 sm:$0xff]   ;;  %v3294_v17 = vld [vmem:[%s4883_s1 + $0x6a0] ss:$16 sps:$4 sm:$0xff]  }
  0x28   :  { %1675 = vmatpush2.bf16.msra.mxu1 %v3238_v39  ;;  %1635 = vmatprep.subr.bf16.mxu0 %v3239_v40  ;;  %v3299_v18 = vld [vmem:[%s4883_s1 + $0x484] ss:$16 sps:$4 sm:$0xff]   ;;  %v3297_v20 = vld [vmem:[%s4883_s1 + $0x480] ss:$16 sps:$4 sm:$0xff]  }
  0x29   :  { %1676 = vmatprep.subr.bf16.mxu1 %v3241_v41  ;;  %v3302_v19 = vld [vmem:[%s4883_s1 + $0x684] ss:$16 sps:$4 sm:$0xff]   ;;  %v3300_v21 = vld [vmem:[%s4883_s1 + $0x680] ss:$16 sps:$4 sm:$0xff]  }
  0x2a   :  { %v3305_v22 = vld [vmem:[%s4883_s1 + $0x464] ss:$16 sps:$4 sm:$0xff]   ;;  %v3303_v24 = vld [vmem:[%s4883_s1 + $0x460] ss:$16 sps:$4 sm:$0xff]  }
  0x2b   :  { %1636 = vmatpush2.bf16.msra.mxu0 %v3243_v42  ;;  %v3308_v23 = vld [vmem:[%s4883_s1 + $0x664] ss:$16 sps:$4 sm:$0xff]   ;;  %v3306_v25 = vld [vmem:[%s4883_s1 + $0x660] ss:$16 sps:$4 sm:$0xff]  }
  0x2c   :  { %1677 = vmatpush2.bf16.msra.mxu1 %v3244_v43  ;;  %1637 = vmatprep.subr.bf16.mxu0 %v3245_v44  ;;  %v3311_v26 = vld [vmem:[%s4883_s1 + $0x444] ss:$16 sps:$4 sm:$0xff]   ;;  %v3309_v28 = vld [vmem:[%s4883_s1 + $0x440] ss:$16 sps:$4 sm:$0xff]  }
  0x2d   :  { %1678 = vmatprep.subr.bf16.mxu1 %v3247_v45  ;;  %v3314_v27 = vld [vmem:[%s4883_s1 + $0x644] ss:$16 sps:$4 sm:$0xff]   ;;  %v3312_v29 = vld [vmem:[%s4883_s1 + $0x640] ss:$16 sps:$4 sm:$0xff]  }
  0x2e   :  { %v3317_v30 = vld [vmem:[%s4883_s1 + $0x424] ss:$16 sps:$4 sm:$0xff]   ;;  %v3315_v34 = vld [vmem:[%s4883_s1 + $0x420] ss:$16 sps:$4 sm:$0xff]  }
  0x2f   :  { %1638 = vmatpush2.bf16.msra.mxu0 %v3249_v49  ;;  %v3320_v31 = vld [vmem:[%s4883_s1 + $0x624] ss:$16 sps:$4 sm:$0xff]   ;;  %v3318_v35 = vld [vmem:[%s4883_s1 + $0x620] ss:$16 sps:$4 sm:$0xff]  }
  0x30   :  { %1679 = vmatpush2.bf16.msra.mxu1 %v3250_v50  ;;  %1639 = vmatprep.subr.bf16.mxu0 %v3251_v52  ;;  %v4039_v32 = vld [vmem:[%s4884_s0 + $0x10] sm:$0xff] }
  0x31   :  { %1680 = vmatprep.subr.bf16.mxu1 %v3253_v53  ;;  %v4054_v36 = vcombine.high %v4039_v32, %v4039_v32  ;;  %v3323_v38 = vld [vmem:[%s4883_s1 + $0x404] ss:$16 sps:$4 sm:$0xff]   ;;  %v3321_v40 = vld [vmem:[%s4883_s1 + $0x400] ss:$16 sps:$4 sm:$0xff]  }
  0x32   :  { %v3326_v39 = vld [vmem:[%s4883_s1 + $0x604] ss:$16 sps:$4 sm:$0xff]   ;;  %v3324_v41 = vld [vmem:[%s4883_s1 + $0x600] ss:$16 sps:$4 sm:$0xff]  }
  0x33   :  { %1640 = vmatpush2.bf16.msra.mxu0 %v3255_v54  ;;  %v3329_v42 = vld [vmem:[%s4883_s1 + $0x5e4] ss:$16 sps:$4 sm:$0xff]   ;;  %v3327_v44 = vld [vmem:[%s4883_s1 + $0x5e0] ss:$16 sps:$4 sm:$0xff]  }
  0x34   :  { %1681 = vmatpush2.bf16.msra.mxu1 %v3256_v55  ;;  %1641 = vmatprep.subr.bf16.mxu0 %v3257_v56  ;;  %v3332_v43 = vld [vmem:[%s4883_s1 + $0x7e4] ss:$16 sps:$4 sm:$0xff]   ;;  %v3330_v45 = vld [vmem:[%s4883_s1 + $0x7e0] ss:$16 sps:$4 sm:$0xff]  }
  0x35   :  { %1682 = vmatprep.subr.bf16.mxu1 %v3259_v57  ;;  %v3335_v46 = vld [vmem:[%s4883_s1 + $0x5c4] ss:$16 sps:$4 sm:$0xff]   ;;  %v3333_v49 = vld [vmem:[%s4883_s1 + $0x5c0] ss:$16 sps:$4 sm:$0xff]  }
  0x36   :  { %v3338_v48 = vld [vmem:[%s4883_s1 + $0x7c4] ss:$16 sps:$4 sm:$0xff]   ;;  %v3336_v50 = vld [vmem:[%s4883_s1 + $0x7c0] ss:$16 sps:$4 sm:$0xff]  }
  0x37   :  { %1642 = vmatpush2.bf16.msra.mxu0 %v3261_v58  ;;  %v3341_v52 = vld [vmem:[%s4883_s1 + $0x5a4] ss:$16 sps:$4 sm:$0xff]   ;;  %v3339_v54 = vld [vmem:[%s4883_s1 + $0x5a0] ss:$16 sps:$4 sm:$0xff]  }
  0x38   :  { %1683 = vmatpush2.bf16.msra.mxu1 %v3262_v59  ;;  %1643 = vmatprep.subr.bf16.mxu0 %v3263_v60  ;;  %v3344_v53 = vld [vmem:[%s4883_s1 + $0x7a4] ss:$16 sps:$4 sm:$0xff]   ;;  %v3342_v55 = vld [vmem:[%s4883_s1 + $0x7a0] ss:$16 sps:$4 sm:$0xff]  }
  0x39   :  { %1684 = vmatprep.subr.bf16.mxu1 %v3265_v61  ;;  %v3347_v56 = vld [vmem:[%s4883_s1 + $0x584] ss:$16 sps:$4 sm:$0xff]   ;;  %v3345_v58 = vld [vmem:[%s4883_s1 + $0x580] ss:$16 sps:$4 sm:$0xff]  }
  0x3a   :  { %v3350_v57 = vld [vmem:[%s4883_s1 + $0x784] ss:$16 sps:$4 sm:$0xff]   ;;  %v3348_v59 = vld [vmem:[%s4883_s1 + $0x780] ss:$16 sps:$4 sm:$0xff]  }
  0x3b   :  { %1644 = vmatpush2.bf16.msra.mxu0 %v3267_v62  ;;  %v3353_v60 = vld [vmem:[%s4883_s1 + $0x564] ss:$16 sps:$4 sm:$0xff]   ;;  %v3351_v62 = vld [vmem:[%s4883_s1 + $0x560] ss:$16 sps:$4 sm:$0xff]  }
  0x3c   :  { %1685 = vmatpush2.bf16.msra.mxu1 %v3268_v63  ;;  %1645 = vmatprep.subr.bf16.mxu0 %v3269_v0  ;;  %v3356_v61 = vld [vmem:[%s4883_s1 + $0x764] ss:$16 sps:$4 sm:$0xff]   ;;  %v3354_v63 = vld [vmem:[%s4883_s1 + $0x760] ss:$16 sps:$4 sm:$0xff]  }
  0x3d   :  { %1686 = vmatprep.subr.bf16.mxu1 %v3271_v1  ;;  %v3359_v0 = vld [vmem:[%s4883_s1 + $0x544] ss:$16 sps:$4 sm:$0xff]  }
  0x3e   :  { %v3362_v1 = vld [vmem:[%s4883_s1 + $0x744] ss:$16 sps:$4 sm:$0xff]  }
  0x3f   :  { %1646 = vmatpush2.bf16.msra.mxu0 %v3273_v2  ;;  %v3357_v2 = vld [vmem:[%s4883_s1 + $0x540] ss:$16 sps:$4 sm:$0xff]  }
  0x40   :  { %1687 = vmatpush2.bf16.msra.mxu1 %v3274_v3  ;;  %1697 = vmatprep.subr.bf16.mxu0 %v3281_v4  ;;  %v3360_v3 = vld [vmem:[%s4883_s1 + $0x740] ss:$16 sps:$4 sm:$0xff]   ;;  %v3365_v4 = vld [vmem:[%s4883_s1 + $0x524] ss:$16 sps:$4 sm:$0xff]  }
  0x41   :  { %1738 = vmatprep.subr.bf16.mxu1 %v3284_v5  ;;  %v3368_v5 = vld [vmem:[%s4883_s1 + $0x724] ss:$16 sps:$4 sm:$0xff]  }
  0x42   :  { %1648 = vmatmul.mubr.bf16.vlgmr.msra.gmra.mxu0 %v3958_v6 }
  0x43   :  { %1689 = vmatmul.mubr.bf16.vlgmr.msra.gmra.mxu1 %v3960_v7  ;;  %1698 = vmatpush1.bf16.msra.mxu0 %v3279_v8  ;;  %v3363_v8 = vld [vmem:[%s4883_s1 + $0x520] ss:$16 sps:$4 sm:$0xff]  }
  0x44   :  { %1739 = vmatpush1.bf16.msra.mxu1 %v3282_v9  ;;  %1699 = vmatprep.subr.bf16.mxu0 %v3287_v10  ;;  %v3366_v9 = vld [vmem:[%s4883_s1 + $0x720] ss:$16 sps:$4 sm:$0xff]   ;;  %v3371_v10 = vld [vmem:[%s4883_s1 + $0x504] ss:$16 sps:$4 sm:$0xff]  }
  0x45   :  { %1740 = vmatprep.subr.bf16.mxu1 %v3290_v11  ;;  %1729 = vmatprep.mubr.bf16.mxu0 %v4054_v36  ;;  %v3374_v11 = vld [vmem:[%s4883_s1 + $0x704] ss:$16 sps:$4 sm:$0xff]  }
  0x46   :  { %1770 = vmatprep.mubr.bf16.mxu1 %v4058_v37 }
  0x47   :  { %1700 = vmatpush1.bf16.msra.mxu0 %v3285_v12  ;;  %v3369_v12 = vld [vmem:[%s4883_s1 + $0x500] ss:$16 sps:$4 sm:$0xff]  }
  0x48   :  { %1741 = vmatpush1.bf16.msra.mxu1 %v3288_v13  ;;  %1701 = vmatprep.subr.bf16.mxu0 %v3293_v14  ;;  %v3372_v13 = vld [vmem:[%s4883_s1 + $0x700] ss:$16 sps:$4 sm:$0xff]   ;;  %v3381_v14 = vld [vmem:[%s4883_s1 + $0xec] ss:$16 sps:$4 sm:$0xff]  }
  0x49   :  { %1742 = vmatprep.subr.bf16.mxu1 %v3296_v15  ;;  %v3384_v15 = vld [vmem:[%s4883_s1 + $0x2ec] ss:$16 sps:$4 sm:$0xff]  }
  0x4b   :  { %1702 = vmatpush1.bf16.msra.mxu0 %v3291_v16  ;;  %v4178_v16 = vcombine.low %v4039_v32, %v4039_v32  ;;  %v3403_v32 = vld [vmem:[%s4883_s1 + $0x68] ss:$16 sps:$4 sm:$0xff]  }
  0x4c   :  { %1743 = vmatpush1.bf16.msra.mxu1 %v3294_v17  ;;  %1703 = vmatprep.subr.bf16.mxu0 %v3299_v18  ;;  %v4182_v17 = vcombine.low %v4044_v33, %v4044_v33  ;;  %v3379_v18 = vld [vmem:[%s4883_s1 + $0xe8] ss:$16 sps:$4 sm:$0xff]  }
  0x4d   :  { %1744 = vmatprep.subr.bf16.mxu1 %v3302_v19  ;;  %v3382_v19 = vld [vmem:[%s4883_s1 + $0x2e8] ss:$16 sps:$4 sm:$0xff]  }
  0x4e   :  { %v3406_v33 = vld [vmem:[%s4883_s1 + $0x268] ss:$16 sps:$4 sm:$0xff]  }
  0x4f   :  { %1704 = vmatpush1.bf16.msra.mxu0 %v3297_v20  ;;  %v3387_v20 = vld [vmem:[%s4883_s1 + $0xcc] ss:$16 sps:$4 sm:$0xff]  }
  0x50   :  { %1745 = vmatpush1.bf16.msra.mxu1 %v3300_v21  ;;  %1705 = vmatprep.subr.bf16.mxu0 %v3305_v22  ;;  %v3390_v21 = vld [vmem:[%s4883_s1 + $0x2cc] ss:$16 sps:$4 sm:$0xff]   ;;  %v3385_v22 = vld [vmem:[%s4883_s1 + $0xc8] ss:$16 sps:$4 sm:$0xff]  }
  0x51   :  { %1746 = vmatprep.subr.bf16.mxu1 %v3308_v23  ;;  %v3388_v23 = vld [vmem:[%s4883_s1 + $0x2c8] ss:$16 sps:$4 sm:$0xff]  }
  0x53   :  { %1706 = vmatpush1.bf16.msra.mxu0 %v3303_v24  ;;  %v3393_v24 = vld [vmem:[%s4883_s1 + $0xac] ss:$16 sps:$4 sm:$0xff]  }
  0x54   :  { %1747 = vmatpush1.bf16.msra.mxu1 %v3306_v25  ;;  %1707 = vmatprep.subr.bf16.mxu0 %v3311_v26  ;;  %v3396_v25 = vld [vmem:[%s4883_s1 + $0x2ac] ss:$16 sps:$4 sm:$0xff]   ;;  %v3391_v26 = vld [vmem:[%s4883_s1 + $0xa8] ss:$16 sps:$4 sm:$0xff]  }
  0x55   :  { %1748 = vmatprep.subr.bf16.mxu1 %v3314_v27  ;;  %v3394_v27 = vld [vmem:[%s4883_s1 + $0x2a8] ss:$16 sps:$4 sm:$0xff]  }
  0x57   :  { %1708 = vmatpush1.bf16.msra.mxu0 %v3309_v28  ;;  %v3399_v28 = vld [vmem:[%s4883_s1 + $0x8c] ss:$16 sps:$4 sm:$0xff]  }
  0x58   :  { %1749 = vmatpush1.bf16.msra.mxu1 %v3312_v29  ;;  %1709 = vmatprep.subr.bf16.mxu0 %v3317_v30  ;;  %v3400_v29 = vld [vmem:[%s4883_s1 + $0x288] ss:$16 sps:$4 sm:$0xff]   ;;  %v3405_v30 = vld [vmem:[%s4883_s1 + $0x6c] ss:$16 sps:$4 sm:$0xff]  }
  0x59   :  { %1750 = vmatprep.subr.bf16.mxu1 %v3320_v31  ;;  %v3408_v31 = vld [vmem:[%s4883_s1 + $0x26c] ss:$16 sps:$4 sm:$0xff]  }
  0x5b   :  { %1710 = vmatpush1.bf16.msra.mxu0 %v3315_v34  ;;  %v3411_v34 = vld [vmem:[%s4883_s1 + $0x4c] ss:$16 sps:$4 sm:$0xff]  }
  0x5c   :  { %1751 = vmatpush1.bf16.msra.mxu1 %v3318_v35  ;;  %1711 = vmatprep.subr.bf16.mxu0 %v3323_v38  ;;  %v3414_v35 = vld [vmem:[%s4883_s1 + $0x24c] ss:$16 sps:$4 sm:$0xff]   ;;  %v3409_v38 = vld [vmem:[%s4883_s1 + $0x48] ss:$16 sps:$4 sm:$0xff]  }
  0x5d   :  { %1752 = vmatprep.subr.bf16.mxu1 %v3326_v39  ;;  %v3412_v39 = vld [vmem:[%s4883_s1 + $0x248] ss:$16 sps:$4 sm:$0xff]  }
  0x5f   :  { %1712 = vmatpush1.bf16.msra.mxu0 %v3321_v40  ;;  %v3417_v40 = vld [vmem:[%s4883_s1 + $0x2c] ss:$16 sps:$4 sm:$0xff]  }
  0x60   :  { %1753 = vmatpush1.bf16.msra.mxu1 %v3324_v41  ;;  %1713 = vmatprep.subr.bf16.mxu0 %v3329_v42  ;;  %v3420_v41 = vld [vmem:[%s4883_s1 + $0x22c] ss:$16 sps:$4 sm:$0xff]   ;;  %v3415_v42 = vld [vmem:[%s4883_s1 + $0x28] ss:$16 sps:$4 sm:$0xff]  }
  0x61   :  { %1754 = vmatprep.subr.bf16.mxu1 %v3332_v43  ;;  %v3418_v43 = vld [vmem:[%s4883_s1 + $0x228] ss:$16 sps:$4 sm:$0xff]  }
  0x63   :  { %1714 = vmatpush2.bf16.msra.mxu0 %v3327_v44  ;;  %v3423_v44 = vld [vmem:[%s4883_s1 + $0xc] ss:$16 sps:$4 sm:$0xff]  }
  0x64   :  { %1755 = vmatpush2.bf16.msra.mxu1 %v3330_v45  ;;  %1715 = vmatprep.subr.bf16.mxu0 %v3335_v46  ;;  %v3426_v45 = vld [vmem:[%s4883_s1 + $0x20c] ss:$16 sps:$4 sm:$0xff]   ;;  %v3421_v46 = vld [vmem:[%s4883_s1 + $0x8] ss:$16 sps:$4 sm:$0xff]  }
  0x65   :  { %1756 = vmatprep.subr.bf16.mxu1 %v3338_v48  ;;  %v3424_v48 = vld [vmem:[%s4883_s1 + $0x208] ss:$16 sps:$4 sm:$0xff]  }
  0x67   :  { %1716 = vmatpush2.bf16.msra.mxu0 %v3333_v49  ;;  %v3429_v49 = vld [vmem:[%s4883_s1 + $0x1ec] ss:$16 sps:$4 sm:$0xff]  }
  0x68   :  { %1757 = vmatpush2.bf16.msra.mxu1 %v3336_v50  ;;  %1717 = vmatprep.subr.bf16.mxu0 %v3341_v52  ;;  %v3432_v50 = vld [vmem:[%s4883_s1 + $0x3ec] ss:$16 sps:$4 sm:$0xff]   ;;  %v3427_v52 = vld [vmem:[%s4883_s1 + $0x1e8] ss:$16 sps:$4 sm:$0xff]  }
  0x69   :  { %1758 = vmatprep.subr.bf16.mxu1 %v3344_v53  ;;  %v3430_v53 = vld [vmem:[%s4883_s1 + $0x3e8] ss:$16 sps:$4 sm:$0xff]  }
  0x6b   :  { %1718 = vmatpush2.bf16.msra.mxu0 %v3339_v54  ;;  %v3435_v54 = vld [vmem:[%s4883_s1 + $0x1cc] ss:$16 sps:$4 sm:$0xff]  }
  0x6c   :  { %1759 = vmatpush2.bf16.msra.mxu1 %v3342_v55  ;;  %1719 = vmatprep.subr.bf16.mxu0 %v3347_v56  ;;  %v3438_v55 = vld [vmem:[%s4883_s1 + $0x3cc] ss:$16 sps:$4 sm:$0xff]   ;;  %v3433_v56 = vld [vmem:[%s4883_s1 + $0x1c8] ss:$16 sps:$4 sm:$0xff]  }
  0x6d   :  { %1760 = vmatprep.subr.bf16.mxu1 %v3350_v57  ;;  %v3436_v57 = vld [vmem:[%s4883_s1 + $0x3c8] ss:$16 sps:$4 sm:$0xff]  }
  0x6f   :  { %1720 = vmatpush2.bf16.msra.mxu0 %v3345_v58  ;;  %v3441_v58 = vld [vmem:[%s4883_s1 + $0x1ac] ss:$16 sps:$4 sm:$0xff]  }
  0x70   :  { %1761 = vmatpush2.bf16.msra.mxu1 %v3348_v59  ;;  %1721 = vmatprep.subr.bf16.mxu0 %v3353_v60  ;;  %v3444_v59 = vld [vmem:[%s4883_s1 + $0x3ac] ss:$16 sps:$4 sm:$0xff]   ;;  %v3439_v60 = vld [vmem:[%s4883_s1 + $0x1a8] ss:$16 sps:$4 sm:$0xff]  }
  0x71   :  { %1762 = vmatprep.subr.bf16.mxu1 %v3356_v61  ;;  %v3442_v61 = vld [vmem:[%s4883_s1 + $0x3a8] ss:$16 sps:$4 sm:$0xff]  }
  0x73   :  { %1722 = vmatpush2.bf16.msra.mxu0 %v3351_v62  ;;  %v3447_v62 = vld [vmem:[%s4883_s1 + $0x18c] ss:$16 sps:$4 sm:$0xff]  }
  0x74   :  { %1763 = vmatpush2.bf16.msra.mxu1 %v3354_v63  ;;  %1723 = vmatprep.subr.bf16.mxu0 %v3359_v0  ;;  %v3450_v63 = vld [vmem:[%s4883_s1 + $0x38c] ss:$16 sps:$4 sm:$0xff]   ;;  %v3445_v0 = vld [vmem:[%s4883_s1 + $0x188] ss:$16 sps:$4 sm:$0xff]  }
  0x75   :  { %1764 = vmatprep.subr.bf16.mxu1 %v3362_v1  ;;  %v3448_v1 = vld [vmem:[%s4883_s1 + $0x388] ss:$16 sps:$4 sm:$0xff]  }
  0x77   :  { %1724 = vmatpush2.bf16.msra.mxu0 %v3357_v2  ;;  %v3453_v2 = vld [vmem:[%s4883_s1 + $0x16c] ss:$16 sps:$4 sm:$0xff]  }
  0x78   :  { %1765 = vmatpush2.bf16.msra.mxu1 %v3360_v3  ;;  %1725 = vmatprep.subr.bf16.mxu0 %v3365_v4  ;;  %v3456_v3 = vld [vmem:[%s4883_s1 + $0x36c] ss:$16 sps:$4 sm:$0xff]   ;;  %v3451_v4 = vld [vmem:[%s4883_s1 + $0x168] ss:$16 sps:$4 sm:$0xff]  }
  0x79   :  { %1766 = vmatprep.subr.bf16.mxu1 %v3368_v5  ;;  %v3454_v5 = vld [vmem:[%s4883_s1 + $0x368] ss:$16 sps:$4 sm:$0xff]  }
  0x7b   :  { %1726 = vmatpush2.bf16.msra.mxu0 %v3363_v8  ;;  %v3459_v8 = vld [vmem:[%s4883_s1 + $0x14c] ss:$16 sps:$4 sm:$0xff]  }
  0x7c   :  { %1767 = vmatpush2.bf16.msra.mxu1 %v3366_v9  ;;  %1727 = vmatprep.subr.bf16.mxu0 %v3371_v10  ;;  %v3462_v9 = vld [vmem:[%s4883_s1 + $0x34c] ss:$16 sps:$4 sm:$0xff]   ;;  %v3457_v10 = vld [vmem:[%s4883_s1 + $0x148] ss:$16 sps:$4 sm:$0xff]  }
  0x7d   :  { %1768 = vmatprep.subr.bf16.mxu1 %v3374_v11  ;;  %v3460_v11 = vld [vmem:[%s4883_s1 + $0x348] ss:$16 sps:$4 sm:$0xff]  }
  0x7f   :  { %1728 = vmatpush2.bf16.msra.mxu0 %v3369_v12  ;;  %v3465_v12 = vld [vmem:[%s4883_s1 + $0x12c] ss:$16 sps:$4 sm:$0xff]  }
  0x80   :  { %1769 = vmatpush2.bf16.msra.mxu1 %v3372_v13  ;;  %1779 = vmatprep.subr.bf16.mxu0 %v3381_v14  ;;  %v3468_v13 = vld [vmem:[%s4883_s1 + $0x32c] ss:$16 sps:$4 sm:$0xff]   ;;  %v3463_v14 = vld [vmem:[%s4883_s1 + $0x128] ss:$16 sps:$4 sm:$0xff]  }
  0x81   :  { %1820 = vmatprep.subr.bf16.mxu1 %v3384_v15  ;;  %v3466_v15 = vld [vmem:[%s4883_s1 + $0x328] ss:$16 sps:$4 sm:$0xff]  }
  0x82   :  { %1730 = vmatmul.mubr.bf16.vlgmr.msra.gmra.mxu0 %v4178_v16 }
  0x83   :  { %1771 = vmatmul.mubr.bf16.vlgmr.msra.gmra.mxu1 %v4182_v17  ;;  %1780 = vmatpush1.bf16.msra.mxu0 %v3379_v18  ;;  %v3471_v18 = vld [vmem:[%s4883_s1 + $0x10c] ss:$16 sps:$4 sm:$0xff]  }
  0x84   :  { %1821 = vmatpush1.bf16.msra.mxu1 %v3382_v19  ;;  %1781 = vmatprep.subr.bf16.mxu0 %v3387_v20  ;;  %v3474_v19 = vld [vmem:[%s4883_s1 + $0x30c] ss:$16 sps:$4 sm:$0xff]   ;;  %v3469_v20 = vld [vmem:[%s4883_s1 + $0x108] ss:$16 sps:$4 sm:$0xff]  }
  0x85   :  { %1822 = vmatprep.subr.bf16.mxu1 %v3390_v21  ;;  %1811 = vmatprep.mubr.bf16.mxu0 %v3889_v47  ;;  %v3402_v47 = vld [vmem:[%s4883_s1 + $0x28c] ss:$16 sps:$4 sm:$0xff]   ;;  %v3472_v21 = vld [vmem:[%s4883_s1 + $0x308] ss:$16 sps:$4 sm:$0xff]  }
  0x86   :  { %1852 = vmatprep.mubr.bf16.mxu1 %v3900_v51  ;;  %v3397_v51 = vld [vmem:[%s4883_s1 + $0x88] ss:$16 sps:$4 sm:$0xff]  }
  0x87   :  { %1782 = vmatpush1.bf16.msra.mxu0 %v3385_v22  ;;  %v3477_v22 = vld [vmem:[%s4883_s1 + $0x4ec] ss:$16 sps:$4 sm:$0xff]  }
  0x88   :  { %1823 = vmatpush1.bf16.msra.mxu1 %v3388_v23  ;;  %1783 = vmatprep.subr.bf16.mxu0 %v3393_v24  ;;  %v3480_v23 = vld [vmem:[%s4883_s1 + $0x6ec] ss:$16 sps:$4 sm:$0xff]   ;;  %v3475_v24 = vld [vmem:[%s4883_s1 + $0x4e8] ss:$16 sps:$4 sm:$0xff]  }
  0x89   :  { %1824 = vmatprep.subr.bf16.mxu1 %v3396_v25  ;;  %v3478_v25 = vld [vmem:[%s4883_s1 + $0x6e8] ss:$16 sps:$4 sm:$0xff]  }
  0x8b   :  { %1784 = vmatpush1.bf16.msra.mxu0 %v3391_v26  ;;  %v3483_v26 = vld [vmem:[%s4883_s1 + $0x4cc] ss:$16 sps:$4 sm:$0xff]  }
  0x8c   :  { %1825 = vmatpush1.bf16.msra.mxu1 %v3394_v27  ;;  %1785 = vmatprep.subr.bf16.mxu0 %v3399_v28  ;;  %v3486_v27 = vld [vmem:[%s4883_s1 + $0x6cc] ss:$16 sps:$4 sm:$0xff]   ;;  %v3481_v28 = vld [vmem:[%s4883_s1 + $0x4c8] ss:$16 sps:$4 sm:$0xff]  }
  0x8d   :  { %1826 = vmatprep.subr.bf16.mxu1 %v3402_v47  ;;  %v3484_v47 = vld [vmem:[%s4883_s1 + $0x6c8] ss:$16 sps:$4 sm:$0xff]  }
  0x8f   :  { %1786 = vmatpush1.bf16.msra.mxu0 %v3397_v51  ;;  %v3489_v51 = vld [vmem:[%s4883_s1 + $0x4ac] ss:$16 sps:$4 sm:$0xff]  }
  0x90   :  { %1827 = vmatpush1.bf16.msra.mxu1 %v3400_v29  ;;  %1787 = vmatprep.subr.bf16.mxu0 %v3405_v30  ;;  %v3492_v29 = vld [vmem:[%s4883_s1 + $0x6ac] ss:$16 sps:$4 sm:$0xff]  }
  0x91   :  { %1828 = vmatprep.subr.bf16.mxu1 %v3408_v31  ;;  %v3495_v30 = vld [vmem:[%s4883_s1 + $0x48c] ss:$16 sps:$4 sm:$0xff]  }
  0x92   :  { %v3498_v31 = vld [vmem:[%s4883_s1 + $0x68c] ss:$16 sps:$4 sm:$0xff]  }
  0x93   :  { %1788 = vmatpush1.bf16.msra.mxu0 %v3403_v32  ;;  %v3501_v32 = vld [vmem:[%s4883_s1 + $0x46c] ss:$16 sps:$4 sm:$0xff]  }
  0x94   :  { %1829 = vmatpush1.bf16.msra.mxu1 %v3406_v33  ;;  %1789 = vmatprep.subr.bf16.mxu0 %v3411_v34  ;;  %v3504_v33 = vld [vmem:[%s4883_s1 + $0x66c] ss:$16 sps:$4 sm:$0xff]   ;;  %v3499_v34 = vld [vmem:[%s4883_s1 + $0x468] ss:$16 sps:$4 sm:$0xff]  }
  0x95   :  { %1830 = vmatprep.subr.bf16.mxu1 %v3414_v35  ;;  %v3502_v35 = vld [vmem:[%s4883_s1 + $0x668] ss:$16 sps:$4 sm:$0xff]  }
  0x97   :  { %1790 = vmatpush1.bf16.msra.mxu0 %v3409_v38  ;;  %v3507_v38 = vld [vmem:[%s4883_s1 + $0x44c] ss:$16 sps:$4 sm:$0xff]  }
  0x98   :  { %1831 = vmatpush1.bf16.msra.mxu1 %v3412_v39  ;;  %1791 = vmatprep.subr.bf16.mxu0 %v3417_v40  ;;  %v3510_v39 = vld [vmem:[%s4883_s1 + $0x64c] ss:$16 sps:$4 sm:$0xff]   ;;  %v3505_v40 = vld [vmem:[%s4883_s1 + $0x448] ss:$16 sps:$4 sm:$0xff]  }
  0x99   :  { %1832 = vmatprep.subr.bf16.mxu1 %v3420_v41  ;;  %v3508_v41 = vld [vmem:[%s4883_s1 + $0x648] ss:$16 sps:$4 sm:$0xff]  }
  0x9b   :  { %1792 = vmatpush1.bf16.msra.mxu0 %v3415_v42  ;;  %v3513_v42 = vld [vmem:[%s4883_s1 + $0x42c] ss:$16 sps:$4 sm:$0xff]  }
  0x9c   :  { %1833 = vmatpush1.bf16.msra.mxu1 %v3418_v43  ;;  %1793 = vmatprep.subr.bf16.mxu0 %v3423_v44  ;;  %v3516_v43 = vld [vmem:[%s4883_s1 + $0x62c] ss:$16 sps:$4 sm:$0xff]   ;;  %v3511_v44 = vld [vmem:[%s4883_s1 + $0x428] ss:$16 sps:$4 sm:$0xff]  }
  0x9d   :  { %1834 = vmatprep.subr.bf16.mxu1 %v3426_v45  ;;  %v3514_v45 = vld [vmem:[%s4883_s1 + $0x628] ss:$16 sps:$4 sm:$0xff]  }
  0x9f   :  { %1794 = vmatpush1.bf16.msra.mxu0 %v3421_v46  ;;  %v3519_v46 = vld [vmem:[%s4883_s1 + $0x40c] ss:$16 sps:$4 sm:$0xff]  }
  0xa0   :  { %1835 = vmatpush1.bf16.msra.mxu1 %v3424_v48  ;;  %1795 = vmatprep.subr.bf16.mxu0 %v3429_v49  ;;  %v3522_v48 = vld [vmem:[%s4883_s1 + $0x60c] ss:$16 sps:$4 sm:$0xff]   ;;  %v3517_v49 = vld [vmem:[%s4883_s1 + $0x408] ss:$16 sps:$4 sm:$0xff]  }
  0xa1   :  { %1836 = vmatprep.subr.bf16.mxu1 %v3432_v50  ;;  %v3520_v50 = vld [vmem:[%s4883_s1 + $0x608] ss:$16 sps:$4 sm:$0xff]  }
  0xa3   :  { %1796 = vmatpush2.bf16.msra.mxu0 %v3427_v52  ;;  %v3525_v52 = vld [vmem:[%s4883_s1 + $0x5ec] ss:$16 sps:$4 sm:$0xff]  }
  0xa4   :  { %1837 = vmatpush2.bf16.msra.mxu1 %v3430_v53  ;;  %1797 = vmatprep.subr.bf16.mxu0 %v3435_v54  ;;  %v3528_v53 = vld [vmem:[%s4883_s1 + $0x7ec] ss:$16 sps:$4 sm:$0xff]   ;;  %v3523_v54 = vld [vmem:[%s4883_s1 + $0x5e8] ss:$16 sps:$4 sm:$0xff]  }
  0xa5   :  { %1838 = vmatprep.subr.bf16.mxu1 %v3438_v55  ;;  %v3526_v55 = vld [vmem:[%s4883_s1 + $0x7e8] ss:$16 sps:$4 sm:$0xff]  }
  0xa7   :  { %1798 = vmatpush2.bf16.msra.mxu0 %v3433_v56  ;;  %v3531_v56 = vld [vmem:[%s4883_s1 + $0x5cc] ss:$16 sps:$4 sm:$0xff]  }
  0xa8   :  { %1839 = vmatpush2.bf16.msra.mxu1 %v3436_v57  ;;  %1799 = vmatprep.subr.bf16.mxu0 %v3441_v58  ;;  %v3534_v57 = vld [vmem:[%s4883_s1 + $0x7cc] ss:$16 sps:$4 sm:$0xff]   ;;  %v3529_v58 = vld [vmem:[%s4883_s1 + $0x5c8] ss:$16 sps:$4 sm:$0xff]  }
  0xa9   :  { %1840 = vmatprep.subr.bf16.mxu1 %v3444_v59  ;;  %v3532_v59 = vld [vmem:[%s4883_s1 + $0x7c8] ss:$16 sps:$4 sm:$0xff]  }
  0xab   :  { %1800 = vmatpush2.bf16.msra.mxu0 %v3439_v60  ;;  %v3537_v60 = vld [vmem:[%s4883_s1 + $0x5ac] ss:$16 sps:$4 sm:$0xff]  }
  0xac   :  { %1841 = vmatpush2.bf16.msra.mxu1 %v3442_v61  ;;  %1801 = vmatprep.subr.bf16.mxu0 %v3447_v62  ;;  %v3540_v61 = vld [vmem:[%s4883_s1 + $0x7ac] ss:$16 sps:$4 sm:$0xff]   ;;  %v3535_v62 = vld [vmem:[%s4883_s1 + $0x5a8] ss:$16 sps:$4 sm:$0xff]  }
  0xad   :  { %1842 = vmatprep.subr.bf16.mxu1 %v3450_v63  ;;  %v3538_v63 = vld [vmem:[%s4883_s1 + $0x7a8] ss:$16 sps:$4 sm:$0xff]  }
  0xaf   :  { %1802 = vmatpush2.bf16.msra.mxu0 %v3445_v0  ;;  %v3543_v0 = vld [vmem:[%s4883_s1 + $0x58c] ss:$16 sps:$4 sm:$0xff]  }
  0xb0   :  { %1843 = vmatpush2.bf16.msra.mxu1 %v3448_v1  ;;  %1803 = vmatprep.subr.bf16.mxu0 %v3453_v2  ;;  %v3546_v1 = vld [vmem:[%s4883_s1 + $0x78c] ss:$16 sps:$4 sm:$0xff]   ;;  %v3541_v2 = vld [vmem:[%s4883_s1 + $0x588] ss:$16 sps:$4 sm:$0xff]  }
  0xb1   :  { %1844 = vmatprep.subr.bf16.mxu1 %v3456_v3  ;;  %v3544_v3 = vld [vmem:[%s4883_s1 + $0x788] ss:$16 sps:$4 sm:$0xff]  }
  0xb3   :  { %1804 = vmatpush2.bf16.msra.mxu0 %v3451_v4  ;;  %v3549_v4 = vld [vmem:[%s4883_s1 + $0x56c] ss:$16 sps:$4 sm:$0xff]  }
  0xb4   :  { %1845 = vmatpush2.bf16.msra.mxu1 %v3454_v5  ;;  %1805 = vmatprep.subr.bf16.mxu0 %v3459_v8  ;;  %v3552_v5 = vld [vmem:[%s4883_s1 + $0x76c] ss:$16 sps:$4 sm:$0xff]   ;;  %v3547_v8 = vld [vmem:[%s4883_s1 + $0x568] ss:$16 sps:$4 sm:$0xff]  }
  0xb5   :  { %1846 = vmatprep.subr.bf16.mxu1 %v3462_v9  ;;  %v3550_v9 = vld [vmem:[%s4883_s1 + $0x768] ss:$16 sps:$4 sm:$0xff]  }
  0xb7   :  { %1806 = vmatpush2.bf16.msra.mxu0 %v3457_v10  ;;  %v3555_v10 = vld [vmem:[%s4883_s1 + $0x54c] ss:$16 sps:$4 sm:$0xff]  }
  0xb8   :  { %1847 = vmatpush2.bf16.msra.mxu1 %v3460_v11  ;;  %1807 = vmatprep.subr.bf16.mxu0 %v3465_v12  ;;  %v3558_v11 = vld [vmem:[%s4883_s1 + $0x74c] ss:$16 sps:$4 sm:$0xff]   ;;  %v3553_v12 = vld [vmem:[%s4883_s1 + $0x548] ss:$16 sps:$4 sm:$0xff]  }
  0xb9   :  { %1848 = vmatprep.subr.bf16.mxu1 %v3468_v13  ;;  %v3556_v13 = vld [vmem:[%s4883_s1 + $0x748] ss:$16 sps:$4 sm:$0xff]  }
  0xbb   :  { %1808 = vmatpush2.bf16.msra.mxu0 %v3463_v14  ;;  %v3561_v14 = vld [vmem:[%s4883_s1 + $0x52c] ss:$16 sps:$4 sm:$0xff]  }
  0xbc   :  { %1849 = vmatpush2.bf16.msra.mxu1 %v3466_v15  ;;  %1809 = vmatprep.subr.bf16.mxu0 %v3471_v18  ;;  %v3564_v15 = vld [vmem:[%s4883_s1 + $0x72c] ss:$16 sps:$4 sm:$0xff]   ;;  %v3559_v18 = vld [vmem:[%s4883_s1 + $0x528] ss:$16 sps:$4 sm:$0xff]  }
  0xbd   :  { %1850 = vmatprep.subr.bf16.mxu1 %v3474_v19  ;;  %v3562_v19 = vld [vmem:[%s4883_s1 + $0x728] ss:$16 sps:$4 sm:$0xff]  }
  0xbf   :  { %1810 = vmatpush2.bf16.msra.mxu0 %v3469_v20  ;;  %v3567_v20 = vld [vmem:[%s4883_s1 + $0x50c] ss:$16 sps:$4 sm:$0xff]  }
  0xc0   :  { %1851 = vmatpush2.bf16.msra.mxu1 %v3472_v21  ;;  %1861 = vmatprep.subr.bf16.mxu0 %v3477_v22  ;;  %v3570_v21 = vld [vmem:[%s4883_s1 + $0x70c] ss:$16 sps:$4 sm:$0xff]   ;;  %v3565_v22 = vld [vmem:[%s4883_s1 + $0x508] ss:$16 sps:$4 sm:$0xff]  }
  0xc1   :  { %1902 = vmatprep.subr.bf16.mxu1 %v3480_v23  ;;  %v3568_v23 = vld [vmem:[%s4883_s1 + $0x708] ss:$16 sps:$4 sm:$0xff]  }
  0xc2   :  { %1812 = vmatmul.mubr.bf16.vlgmr.msra.gmra.mxu0 %v3958_v6  ;;  %v3487_v6 = vld [vmem:[%s4883_s1 + $0x4a8] ss:$16 sps:$4 sm:$0xff]  }
  0xc3   :  { %1853 = vmatmul.mubr.bf16.vlgmr.msra.gmra.mxu1 %v3960_v7  ;;  %1862 = vmatpush1.bf16.msra.mxu0 %v3475_v24  ;;  %v3490_v7 = vld [vmem:[%s4883_s1 + $0x6a8] ss:$16 sps:$4 sm:$0xff]   ;;  %v3573_v24 = vld [vmem:[%s4885_s3 + $0x74] ss:$8 sps:$4 sm:$0xff]  }
  0xc4   :  { %1903 = vmatpush1.bf16.msra.mxu1 %v3478_v25  ;;  %1863 = vmatprep.subr.bf16.mxu0 %v3483_v26  ;;  %v3571_v25 = vld [vmem:[%s4885_s3 + $0x70] ss:$8 sps:$4 sm:$0xff]   ;;  %v3576_v26 = vld [vmem:[%s4885_s3 + $0x64] ss:$8 sps:$4 sm:$0xff]  }
  0xc5   :  { %1904 = vmatprep.subr.bf16.mxu1 %v3486_v27  ;;  %1893 = vmatprep.mubr.bf16.mxu0 %v4054_v36  ;;  %v3493_v36 = vld [vmem:[%s4883_s1 + $0x488] ss:$16 sps:$4 sm:$0xff]  }
  0xc6   :  { %1934 = vmatprep.mubr.bf16.mxu1 %v4058_v37  ;;  %v3496_v37 = vld [vmem:[%s4883_s1 + $0x688] ss:$16 sps:$4 sm:$0xff]  }
  0xc7   :  { %1864 = vmatpush1.bf16.msra.mxu0 %v3481_v28 }
  0xc8   :  { %1905 = vmatpush1.bf16.msra.mxu1 %v3484_v47  ;;  %1865 = vmatprep.subr.bf16.mxu0 %v3489_v51  ;;  %v3574_v51 = vld [vmem:[%s4885_s3 + $0x60] ss:$8 sps:$4 sm:$0xff]  }
  0xc9   :  { %1906 = vmatprep.subr.bf16.mxu1 %v3492_v29 }
  0xcb   :  { %1866 = vmatpush1.bf16.msra.mxu0 %v3487_v6 }
  0xcc   :  { %1907 = vmatpush1.bf16.msra.mxu1 %v3490_v7  ;;  %1867 = vmatprep.subr.bf16.mxu0 %v3495_v30  ;;  %v3579_v7 = vld [vmem:[%s4885_s3 + $0x54] ss:$8 sps:$4 sm:$0xff]  }
  0xcd   :  { %1908 = vmatprep.subr.bf16.mxu1 %v3498_v31 }
  0xcf   :  { %1868 = vmatpush1.bf16.msra.mxu0 %v3493_v36 }
  0xd0   :  { %1909 = vmatpush1.bf16.msra.mxu1 %v3496_v37  ;;  %1869 = vmatprep.subr.bf16.mxu0 %v3501_v32  ;;  %v3582_v37 = vld [vmem:[%s4885_s3 + $0x44] ss:$8 sps:$4 sm:$0xff]   ;;  %v3619_v32 = vld [vmem:[%s4885_s3 + $0x170] ss:$8 sps:$4 sm:$0xff]  }
  0xd1   :  { %1910 = vmatprep.subr.bf16.mxu1 %v3504_v33  ;;  %v3621_v33 = vld [vmem:[%s4885_s3 + $0x174] ss:$8 sps:$4 sm:$0xff]  }
  0xd3   :  { %1870 = vmatpush1.bf16.msra.mxu0 %v3499_v34  ;;  %v3624_v34 = vld [vmem:[%s4885_s3 + $0x164] ss:$8 sps:$4 sm:$0xff]  }
  0xd4   :  { %1911 = vmatpush1.bf16.msra.mxu1 %v3502_v35  ;;  %1871 = vmatprep.subr.bf16.mxu0 %v3507_v38  ;;  %v3580_v35 = vld [vmem:[%s4885_s3 + $0x40] ss:$8 sps:$4 sm:$0xff]  }
  0xd5   :  { %1912 = vmatprep.subr.bf16.mxu1 %v3510_v39  ;;  %v3622_v38 = vld [vmem:[%s4885_s3 + $0x160] ss:$8 sps:$4 sm:$0xff]   ;;  %v3585_v39 = vld [vmem:[%s4885_s3 + $0x34] ss:$8 sps:$4 sm:$0xff]  }
  0xd7   :  { %1872 = vmatpush1.bf16.msra.mxu0 %v3505_v40  ;;  %v3627_v40 = vld [vmem:[%s4885_s3 + $0x154] ss:$8 sps:$4 sm:$0xff]  }
  0xd8   :  { %1913 = vmatpush1.bf16.msra.mxu1 %v3508_v41  ;;  %1873 = vmatprep.subr.bf16.mxu0 %v3513_v42  ;;  %v3583_v41 = vld [vmem:[%s4885_s3 + $0x30] ss:$8 sps:$4 sm:$0xff]  }
  0xd9   :  { %1914 = vmatprep.subr.bf16.mxu1 %v3516_v43  ;;  %v3625_v42 = vld [vmem:[%s4885_s3 + $0x150] ss:$8 sps:$4 sm:$0xff]   ;;  %v3588_v43 = vld [vmem:[%s4885_s3 + $0x24] ss:$8 sps:$4 sm:$0xff]  }
  0xdb   :  { %1874 = vmatpush1.bf16.msra.mxu0 %v3511_v44  ;;  %v3630_v44 = vld [vmem:[%s4885_s3 + $0x144] ss:$8 sps:$4 sm:$0xff]  }
  0xdc   :  { %1915 = vmatpush1.bf16.msra.mxu1 %v3514_v45  ;;  %1875 = vmatprep.subr.bf16.mxu0 %v3519_v46  ;;  %v3586_v45 = vld [vmem:[%s4885_s3 + $0x20] ss:$8 sps:$4 sm:$0xff]  }
  0xdd   :  { %1916 = vmatprep.subr.bf16.mxu1 %v3522_v48  ;;  %v3628_v46 = vld [vmem:[%s4885_s3 + $0x140] ss:$8 sps:$4 sm:$0xff]   ;;  %v3591_v48 = vld [vmem:[%s4885_s3 + $0x14] ss:$8 sps:$4 sm:$0xff]  }
  0xdf   :  { %1876 = vmatpush1.bf16.msra.mxu0 %v3517_v49  ;;  %v3633_v49 = vld [vmem:[%s4885_s3 + $0x134] ss:$8 sps:$4 sm:$0xff]  }
  0xe0   :  { %1917 = vmatpush1.bf16.msra.mxu1 %v3520_v50  ;;  %1877 = vmatprep.subr.bf16.mxu0 %v3525_v52  ;;  %v3589_v50 = vld [vmem:[%s4885_s3 + $0x10] ss:$8 sps:$4 sm:$0xff]  }
  0xe1   :  { %1918 = vmatprep.subr.bf16.mxu1 %v3528_v53  ;;  %v3631_v52 = vld [vmem:[%s4885_s3 + $0x130] ss:$8 sps:$4 sm:$0xff]   ;;  %v3594_v53 = vld [vmem:[%s4885_s3 + $0x4] ss:$8 sps:$4 sm:$0xff]  }
  0xe3   :  { %1878 = vmatpush2.bf16.msra.mxu0 %v3523_v54  ;;  %v3636_v54 = vld [vmem:[%s4885_s3 + $0x124] ss:$8 sps:$4 sm:$0xff]  }
  0xe4   :  { %1919 = vmatpush2.bf16.msra.mxu1 %v3526_v55  ;;  %1879 = vmatprep.subr.bf16.mxu0 %v3531_v56  ;;  %v3592_v55 = vld [vmem:[%s4885_s3] ss:$8 sps:$4 sm:$0xff]  }
  0xe5   :  { %1920 = vmatprep.subr.bf16.mxu1 %v3534_v57  ;;  %v3634_v56 = vld [vmem:[%s4885_s3 + $0x120] ss:$8 sps:$4 sm:$0xff]   ;;  %v3597_v57 = vld [vmem:[%s4885_s3 + $0xf4] ss:$8 sps:$4 sm:$0xff]  }
  0xe7   :  { %1880 = vmatpush2.bf16.msra.mxu0 %v3529_v58  ;;  %v3639_v58 = vld [vmem:[%s4885_s3 + $0x114] ss:$8 sps:$4 sm:$0xff]  }
  0xe8   :  { %1921 = vmatpush2.bf16.msra.mxu1 %v3532_v59  ;;  %1881 = vmatprep.subr.bf16.mxu0 %v3537_v60  ;;  %v3595_v59 = vld [vmem:[%s4885_s3 + $0xf0] ss:$8 sps:$4 sm:$0xff]  }
  0xe9   :  { %1922 = vmatprep.subr.bf16.mxu1 %v3540_v61  ;;  %v3637_v60 = vld [vmem:[%s4885_s3 + $0x110] ss:$8 sps:$4 sm:$0xff]   ;;  %v3600_v61 = vld [vmem:[%s4885_s3 + $0xe4] ss:$8 sps:$4 sm:$0xff]  }
  0xeb   :  { %1882 = vmatpush2.bf16.msra.mxu0 %v3535_v62  ;;  %v3642_v62 = vld [vmem:[%s4885_s3 + $0x104] ss:$8 sps:$4 sm:$0xff]  }
  0xec   :  { %1923 = vmatpush2.bf16.msra.mxu1 %v3538_v63  ;;  %1883 = vmatprep.subr.bf16.mxu0 %v3543_v0  ;;  %v3598_v63 = vld [vmem:[%s4885_s3 + $0xe0] ss:$8 sps:$4 sm:$0xff]  }
  0xed   :  { %1924 = vmatprep.subr.bf16.mxu1 %v3546_v1  ;;  %v3640_v0 = vld [vmem:[%s4885_s3 + $0x100] ss:$8 sps:$4 sm:$0xff]   ;;  %v3603_v1 = vld [vmem:[%s4885_s3 + $0xd4] ss:$8 sps:$4 sm:$0xff]  }
  0xef   :  { %1884 = vmatpush2.bf16.msra.mxu0 %v3541_v2  ;;  %v3645_v2 = vld [vmem:[%s4885_s3 + $0x1f4] ss:$8 sps:$4 sm:$0xff]  }
  0xf0   :  { %1925 = vmatpush2.bf16.msra.mxu1 %v3544_v3  ;;  %1885 = vmatprep.subr.bf16.mxu0 %v3549_v4  ;;  %v3601_v3 = vld [vmem:[%s4885_s3 + $0xd0] ss:$8 sps:$4 sm:$0xff]  }
  0xf1   :  { %1926 = vmatprep.subr.bf16.mxu1 %v3552_v5  ;;  %v3643_v4 = vld [vmem:[%s4885_s3 + $0x1f0] ss:$8 sps:$4 sm:$0xff]   ;;  %v3606_v5 = vld [vmem:[%s4885_s3 + $0xc4] ss:$8 sps:$4 sm:$0xff]  }
  0xf3   :  { %1886 = vmatpush2.bf16.msra.mxu0 %v3547_v8  ;;  %v3648_v8 = vld [vmem:[%s4885_s3 + $0x1e4] ss:$8 sps:$4 sm:$0xff]  }
  0xf4   :  { %1927 = vmatpush2.bf16.msra.mxu1 %v3550_v9  ;;  %1887 = vmatprep.subr.bf16.mxu0 %v3555_v10  ;;  %v3604_v9 = vld [vmem:[%s4885_s3 + $0xc0] ss:$8 sps:$4 sm:$0xff]  }
  0xf5   :  { %1928 = vmatprep.subr.bf16.mxu1 %v3558_v11  ;;  %v3646_v10 = vld [vmem:[%s4885_s3 + $0x1e0] ss:$8 sps:$4 sm:$0xff]   ;;  %v3609_v11 = vld [vmem:[%s4885_s3 + $0xb4] ss:$8 sps:$4 sm:$0xff]  }
  0xf7   :  { %1888 = vmatpush2.bf16.msra.mxu0 %v3553_v12  ;;  %v3651_v12 = vld [vmem:[%s4885_s3 + $0x1d4] ss:$8 sps:$4 sm:$0xff]  }
  0xf8   :  { %1929 = vmatpush2.bf16.msra.mxu1 %v3556_v13  ;;  %1889 = vmatprep.subr.bf16.mxu0 %v3561_v14  ;;  %v3607_v13 = vld [vmem:[%s4885_s3 + $0xb0] ss:$8 sps:$4 sm:$0xff]  }
  0xf9   :  { %1930 = vmatprep.subr.bf16.mxu1 %v3564_v15  ;;  %v3649_v14 = vld [vmem:[%s4885_s3 + $0x1d0] ss:$8 sps:$4 sm:$0xff]   ;;  %v3612_v15 = vld [vmem:[%s4885_s3 + $0xa4] ss:$8 sps:$4 sm:$0xff]  }
  0xfb   :  { %1890 = vmatpush2.bf16.msra.mxu0 %v3559_v18  ;;  %v3654_v18 = vld [vmem:[%s4885_s3 + $0x1c4] ss:$8 sps:$4 sm:$0xff]  }
  0xfc   :  { %1931 = vmatpush2.bf16.msra.mxu1 %v3562_v19  ;;  %1891 = vmatprep.subr.bf16.mxu0 %v3567_v20  ;;  %v3610_v19 = vld [vmem:[%s4885_s3 + $0xa0] ss:$8 sps:$4 sm:$0xff]  }
  0xfd   :  { %1932 = vmatprep.subr.bf16.mxu1 %v3570_v21  ;;  %v3652_v20 = vld [vmem:[%s4885_s3 + $0x1c0] ss:$8 sps:$4 sm:$0xff]   ;;  %v3615_v21 = vld [vmem:[%s4885_s3 + $0x94] ss:$8 sps:$4 sm:$0xff]  }
  0xff   :  { %1892 = vmatpush2.bf16.msra.mxu0 %v3565_v22  ;;  %v3657_v22 = vld [vmem:[%s4885_s3 + $0x1b4] ss:$8 sps:$4 sm:$0xff]  }
 0x100   :  { %1933 = vmatpush2.bf16.msra.mxu1 %v3568_v23  ;;  %2388 = vmatprep.subr.bf16.mxu0 %v3573_v24  ;;  %v1960_v23 = vlaneseq  ;;  %v3613_v24 = vld [vmem:[%s4885_s3 + $0x90] ss:$8 sps:$4 sm:$0xff]  }
 0x101   :  { %2429 = vmatprep.subr.bf16.mxu1 %v3621_v33  ;;  %v3658_v33 = vld [vmem:[%s4885_s3 + $0x1a0] ss:$8 sps:$4 sm:$0xff]  }
 0x102   :  { %v1649_v27 = vpop.f32.mrf.mxu0  ;;  %1894 = vmatmul.mubr.bf16.vlgmr.msra.gmra.mxu0 %v4178_v16 }
 0x103   :  { %v1690_v28 = vpop.f32.mrf.mxu1  ;;  %1935 = vmatmul.mubr.bf16.vlgmr.msra.gmra.mxu1 %v4182_v17  ;;  %2389 = vmatpush1.bf16.msra.mxu0 %v3571_v25  ;;  %v3577_v17 = vld [vmem:[%s4885_s3 + $0x50] ss:$8 sps:$4 sm:$0xff]  }
 0x104   :  { %v4581_v47 = vadd.f32 %v1690_v28, %v1649_v27  ;;  %v4586_v29 = vpop.f32.mrf.mxu0  ;;  %2390 = vmatprep.subr.bf16.mxu0 %v3576_v26  ;;  %2430 = vmatpush1.bf16.msra.mxu1 %v3619_v32  ;;  %v3655_v25 = vld [vmem:[%s4885_s3 + $0x1b0] ss:$8 sps:$4 sm:$0xff]   ;;  %v3618_v26 = vld [vmem:[%s4885_s3 + $0x84] ss:$8 sps:$4 sm:$0xff]   ;;  %v4749_v27 = vshrl.u32 %v1960_v23, 7 }
 0x105   :  { %v4588_v6 = vpop.f32.mrf.mxu1  ;;  %2431 = vmatprep.subr.bf16.mxu1 %v3624_v34  ;;  %v3616_v28 = vld [vmem:[%s4885_s3 + $0x80] ss:$8 sps:$4 sm:$0xff]  }
 0x106   :  { %v1653_v30 = vpop.f32.mrf.mxu0 }
 0x107   :  { %v1694_v16 = vpop.f32.mrf.mxu1  ;;  %2391 = vmatpush1.bf16.msra.mxu0 %v3574_v51  ;;  %v1962_v51 = vsub.s32 0, %v4749_v27  ;;  %v1966_v30 = vsub.s32 1, %v4749_v27 }
 0x108   :  { %v1654_v31 = vpop.f32.mrf.mxu0  ;;  %2392 = vmatprep.subr.bf16.mxu0 %v3579_v7  ;;  %2432 = vmatpush1.bf16.msra.mxu1 %v3622_v38  ;;  %v4758_v7 = vld [vmem:[%s4886_s2] sm:$0xf] }
 0x109   :  { %v1695_v36 = vpop.f32.mrf.mxu1  ;;  %2433 = vmatprep.subr.bf16.mxu1 %v3627_v40  ;;  %v3660_v31 = vld [vmem:[%s4885_s3 + $0x1a4] ss:$8 sps:$4 sm:$0xff]   ;;  %v1963_v32 = vrot.slane %v4758_v7, %v1962_v51  ;;  %v1967_v40 = vrot.slane %v4758_v7, %v1966_v30 }
 0x10a   :  { %v1693_v36 = vadd.f32 %v4588_v6, %v4586_v29  ;;  %v3663_v6 = vld [vmem:[%s4885_s3 + $0x194] ss:$8 sps:$4 sm:$0xff]  }
 0x10b   :  { %2393 = vmatpush1.bf16.msra.mxu0 %v3577_v17 }
 0x10c   :  { %2394 = vmatprep.subr.bf16.mxu0 %v3582_v37  ;;  %2434 = vmatpush1.bf16.msra.mxu1 %v3625_v42 }
 0x10d   :  { %2435 = vmatprep.subr.bf16.mxu1 %v3630_v44 }
 0x10f   :  { %2395 = vmatpush1.bf16.msra.mxu0 %v3580_v35 }
 0x110   :  { %2396 = vmatprep.subr.bf16.mxu0 %v3585_v39  ;;  %2436 = vmatpush1.bf16.msra.mxu1 %v3628_v46 }
 0x111   :  { %2437 = vmatprep.subr.bf16.mxu1 %v3633_v49  ;;  %v3666_v49 = vld [vmem:[%s4885_s3 + $0x184] ss:$8 sps:$4 sm:$0xff]  }
 0x113   :  { %2397 = vmatpush1.bf16.msra.mxu0 %v3583_v41 }
 0x114   :  { %2398 = vmatprep.subr.bf16.mxu0 %v3588_v43  ;;  %2438 = vmatpush1.bf16.msra.mxu1 %v3631_v52  ;;  %v3661_v43 = vld [vmem:[%s4885_s3 + $0x190] ss:$8 sps:$4 sm:$0xff]   ;;  %v3664_v52 = vld [vmem:[%s4885_s3 + $0x180] ss:$8 sps:$4 sm:$0xff]  }
 0x115   :  { %2439 = vmatprep.subr.bf16.mxu1 %v3636_v54 }
 0x117   :  { %2399 = vmatpush1.bf16.msra.mxu0 %v3586_v45 }
 0x118   :  { %2400 = vmatprep.subr.bf16.mxu0 %v3591_v48  ;;  %2440 = vmatpush1.bf16.msra.mxu1 %v3634_v56 }
 0x119   :  { %2441 = vmatprep.subr.bf16.mxu1 %v3639_v58 }
 0x11b   :  { %2401 = vmatpush1.bf16.msra.mxu0 %v3589_v50 }
 0x11c   :  { %2402 = vmatprep.subr.bf16.mxu0 %v3594_v53  ;;  %2442 = vmatpush1.bf16.msra.mxu1 %v3637_v60 }
 0x11d   :  { %2443 = vmatprep.subr.bf16.mxu1 %v3642_v62 }
 0x11f   :  { %2403 = vmatpush1.bf16.msra.mxu0 %v3592_v55 }
 0x120   :  { %2404 = vmatprep.subr.bf16.mxu0 %v3597_v57  ;;  %2444 = vmatpush1.bf16.msra.mxu1 %v3640_v0  ;;  %v3667_v0 = vld [vmem:[%s4887_s5 + $0x78] sm:$0xff]  }
 0x121   :  { %2445 = vmatprep.subr.bf16.mxu1 %v3645_v2  ;;  %v3669_v2 = vld [vmem:[%s4887_s5 + $0x70] sm:$0xff]  }
 0x123   :  { %2405 = vmatpush2.bf16.msra.mxu0 %v3595_v59 }
 0x124   :  { %2406 = vmatprep.subr.bf16.mxu0 %v3600_v61  ;;  %2446 = vmatpush2.bf16.msra.mxu1 %v3643_v4  ;;  %v3671_v4 = vld [vmem:[%s4887_s5 + $0x68] sm:$0xff]  }
 0x125   :  { %2447 = vmatprep.subr.bf16.mxu1 %v3648_v8  ;;  %v3673_v8 = vld [vmem:[%s4887_s5 + $0x60] sm:$0xff]  }
 0x127   :  { %2407 = vmatpush2.bf16.msra.mxu0 %v3598_v63 }
 0x128   :  { %2408 = vmatprep.subr.bf16.mxu0 %v3603_v1  ;;  %2448 = vmatpush2.bf16.msra.mxu1 %v3646_v10  ;;  %v3668_v1 = vld [vmem:[%s4887_s5 + $0x38] sm:$0xff]  }
 0x129   :  { %2449 = vmatprep.subr.bf16.mxu1 %v3651_v12  ;;  %v3675_v10 = vld [vmem:[%s4887_s5 + $0x58] sm:$0xff]   ;;  %v3677_v12 = vld [vmem:[%s4887_s5 + $0x50] sm:$0xff]  }
 0x12b   :  { %2409 = vmatpush2.bf16.msra.mxu0 %v3601_v3  ;;  %v3670_v3 = vld [vmem:[%s4887_s5 + $0x30] sm:$0xff]  }
 0x12c   :  { %2410 = vmatprep.subr.bf16.mxu0 %v3606_v5  ;;  %2450 = vmatpush2.bf16.msra.mxu1 %v3649_v14  ;;  %v3672_v5 = vld [vmem:[%s4887_s5 + $0x28] sm:$0xff]   ;;  %v1970_v14 = vsub.s32 2, %v4749_v27 }
 0x12d   :  { %2451 = vmatprep.subr.bf16.mxu1 %v3654_v18 }
 0x12f   :  { %2411 = vmatpush2.bf16.msra.mxu0 %v3604_v9  ;;  %v3674_v9 = vld [vmem:[%s4887_s5 + $0x20] sm:$0xff]  }
 0x130   :  { %2412 = vmatprep.subr.bf16.mxu0 %v3609_v11  ;;  %2452 = vmatpush2.bf16.msra.mxu1 %v3652_v20  ;;  %v3676_v11 = vld [vmem:[%s4887_s5 + $0x18] sm:$0xff]  }
 0x131   :  { %2453 = vmatprep.subr.bf16.mxu1 %v3657_v22  ;;  %v1971_v22 = vrot.slane %v4758_v7, %v1970_v14  ;;  %v3117_v14 = vld [vmem:[%s4892_s8] ss:$0 sm:$0xff] }
 0x133   :  { %2413 = vmatpush2.bf16.msra.mxu0 %v3607_v13  ;;  %v3678_v13 = vld [vmem:[%s4887_s5 + $0x10] sm:$0xff]  }
 0x134   :  { %2414 = vmatprep.subr.bf16.mxu0 %v3612_v15  ;;  %2454 = vmatpush2.bf16.msra.mxu1 %v3655_v25  ;;  %v1974_v15 = vsub.s32 3, %v4749_v27  ;;  %v3689_v27 = vld [vmem:[%s4888_s7 + $0x8] sm:$0xff]  }
 0x135   :  { %2455 = vmatprep.subr.bf16.mxu1 %v3660_v31 }
 0x137   :  { %2415 = vmatpush2.bf16.msra.mxu0 %v3610_v19 }
 0x138   :  { %2416 = vmatprep.subr.bf16.mxu0 %v3615_v21  ;;  %2456 = vmatpush2.bf16.msra.mxu1 %v3658_v33 }
 0x139   :  { %2457 = vmatprep.subr.bf16.mxu1 %v3663_v6 }
 0x13b   :  { %2417 = vmatpush2.bf16.msra.mxu0 %v3613_v24 }
 0x13c   :  { %2418 = vmatprep.subr.bf16.mxu0 %v3618_v26  ;;  %2458 = vmatpush2.bf16.msra.mxu1 %v3661_v43 }
 0x13d   :  { %2459 = vmatprep.subr.bf16.mxu1 %v3666_v49  ;;  %v3686_v49 = vld [vmem:[%s4888_s7 + $0x20] sm:$0xff]  }
 0x13f   :  { %2419 = vmatpush2.bf16.msra.mxu0 %v3616_v28  ;;  %v1975_v28 = vrot.slane %v4758_v7, %v1974_v15  ;;  %v3680_v7 = vld [vmem:[%s4887_s5 + $0x8] sm:$0xff]  }
 0x140   :  { %2460 = vmatpush2.bf16.msra.mxu1 %v3664_v52  ;;  %3126 = vmatprep.subr.bf16.mxu0 %v3667_v0  ;;  %v2056_v52 = vld [vmem:[%s4889_s4] sm:$0x3] }
 0x142   :  { %v1731_v16 = vpop.f32.mrf.mxu0 }
 0x143   :  { %v1772_v17 = vpop.f32.mrf.mxu1  ;;  %v1732_v37 = vadd.f32 %v1731_v16, %v4581_v47 }
 0x144   :  { %v1733_v34 = vpop.f32.mrf.mxu0 }
 0x145   :  { %v1774_v35 = vpop.f32.mrf.mxu1  ;;  %v1773_v38 = vadd.f32 %v1772_v17, %v1732_v37  ;;  %v1734_v39 = vadd.f32 %v1733_v34, %v1693_v36 }
 0x146   :  { %v1735_v29 = vpop.f32.mrf.mxu0 }
 0x147   :  { %v1776_v47 = vpop.f32.mrf.mxu1  ;;  %v1980_v41 = vadd.f32 %v1963_v32, %v1773_v38  ;;  %v1775_v42 = vadd.f32 %v1774_v35, %v1734_v39  ;;  %v3679_v29 = vld [vmem:[%s4887_s5 + $0x48] sm:$0xff]  }
 0x148   :  { %v1736_v44 = vpop.f32.mrf.mxu0 }
 0x149   :  { %v1777_v45 = vpop.f32.mrf.mxu1  ;;  %v1981_v46 = vadd.f32 %v1967_v40, %v1775_v42  ;;  %v1984_v48 = vmax.f32 %v1980_v41, 0.0  ;;  %v3681_v41 = vld [vmem:[%s4887_s5 + $0x40] sm:$0xff]   ;;  %v3691_v44 = vmov 0.0  }
 0x14a   :  { %v3682_v42 = vld [vmem:[%s4887_s5] sm:$0xff]   ;;  %3157 = vmatprep.subr.bf16.mxu1 %v3691_v44  ;;  %v3683_v45 = vld [vmem:[%s4888_s7 + $0x38] sm:$0xff]  }
 0x14b   :  { %v1985_v50 = vmax.f32 %v1981_v46, 0.0  ;;  %v1988_v54 = vpack.c.bf16 %v1984_v48, %v1984_v48  ;;  %v3684_v46 = vld [vmem:[%s4888_s7 + $0x30] sm:$0xff]   ;;  %v3685_v48 = vld [vmem:[%s4888_s7 + $0x28] sm:$0xff]  }
 0x14d   :  { %v1989_v53 = vpack.c.bf16 %v1985_v50, %v1985_v50  ;;  %v3687_v50 = vld [vmem:[%s4888_s7 + $0x18] sm:$0xff]  }
 0x14f   :  { %2420 = vmatprep.mubr.bf16.mxu0 %v1989_v53  ;;  %v2061_v53 = vrot.slane %v2056_v52, %v1962_v51  ;;  %v3688_v51 = vld [vmem:[%s4888_s7 + $0x10] sm:$0xff]  }
 0x150   :  { %2421 = vmatmul.mubr.bf16.vlgmr.msra.gmra.mxu0 %v1988_v54  ;;  %v2065_v54 = vrot.slane %v2056_v52, %v1966_v30  ;;  %v3690_v30 = vld [vmem:[%s4888_s7] sm:$0xff]  }
 0x151   :  { %3127 = vmatpush3.bf16.msra.mxu0 %v3668_v1 }
 0x152   :  { %3128 = vmatprep.subr.bf16.mxu0 %v3669_v2 }
 0x155   :  { %3129 = vmatpush3.bf16.msra.mxu0 %v3670_v3 }
 0x156   :  { %3130 = vmatprep.subr.bf16.mxu0 %v3671_v4  ;;  %v3100_v4 = vld [vmem:[%s4890_s6] ss:$0 sm:$0xff] }
 0x159   :  { %3131 = vmatpush3.bf16.msra.mxu0 %v3672_v5 }
 0x15a   :  { %3132 = vmatprep.subr.bf16.mxu0 %v3673_v8 }
 0x15d   :  { %3133 = vmatpush3.bf16.msra.mxu0 %v3674_v9 }
 0x15e   :  { %3134 = vmatprep.subr.bf16.mxu0 %v3675_v10 }
 0x161   :  { %3135 = vmatpush3.bf16.msra.mxu0 %v3676_v11 }
 0x162   :  { %3136 = vmatprep.subr.bf16.mxu0 %v3677_v12 }
 0x165   :  { %3137 = vmatpush3.bf16.msra.mxu0 %v3678_v13 }
 0x166   :  { %3138 = vmatprep.subr.bf16.mxu0 %v3679_v29 }
 0x169   :  { %3139 = vmatpush3.bf16.msra.mxu0 %v3680_v7 }
 0x16a   :  { %3140 = vmatprep.subr.bf16.mxu0 %v3681_v41 }
 0x16d   :  { %3141 = vmatpush3.bf16.msra.mxu0 %v3682_v42 }
 0x182   :  { %v1813_v55 = vpop.f32.mrf.mxu0 }
 0x183   :  { %v1854_v56 = vpop.f32.mrf.mxu1 }
 0x184   :  { %v1855_v57 = vadd.f32 %v1854_v56, %v1813_v55  ;;  %v1815_v58 = vpop.f32.mrf.mxu0 }
 0x185   :  { %v1856_v59 = vpop.f32.mrf.mxu1 }
 0x186   :  { %v1817_v60 = vpop.f32.mrf.mxu0  ;;  %v1857_v20 = vadd.f32 %v1856_v59, %v1815_v58 }
 0x187   :  { %v1858_v61 = vpop.f32.mrf.mxu1 }
 0x188   :  { %v1818_v62 = vpop.f32.mrf.mxu0 }
 0x189   :  { %v1859_v63 = vpop.f32.mrf.mxu1 }
 0x1c2   :  { %v1895_v18 = vpop.f32.mrf.mxu0 }
 0x1c3   :  { %v1936_v19 = vpop.f32.mrf.mxu1  ;;  %v1896_v21 = vadd.f32 %v1895_v18, %v1855_v57 }
 0x1c4   :  { %v1897_v23 = vpop.f32.mrf.mxu0 }
 0x1c5   :  { %v1938_v24 = vpop.f32.mrf.mxu1  ;;  %v1937_v25 = vadd.f32 %v1936_v19, %v1896_v21  ;;  %v1898_v26 = vadd.f32 %v1897_v23, %v1857_v20 }
 0x1c6   :  { %v1899_v16 = vpop.f32.mrf.mxu0 }
 0x1c7   :  { %v1940_v17 = vpop.f32.mrf.mxu1  ;;  %v1982_v31 = vadd.f32 %v1971_v22, %v1937_v25  ;;  %v1939_v36 = vadd.f32 %v1938_v24, %v1898_v26 }
 0x1c8   :  { %v1900_v37 = vpop.f32.mrf.mxu0 }
 0x1c9   :  { %v1941_v32 = vpop.f32.mrf.mxu1  ;;  %v1983_v33 = vadd.f32 %v1975_v28, %v1939_v36  ;;  %v1986_v34 = vmax.f32 %v1982_v31, 0.0 }
 0x1cb   :  { %v1987_v35 = vmax.f32 %v1983_v33, 0.0  ;;  %v1990_v39 = vpack.c.bf16 %v1986_v34, %v1986_v34 }
 0x1cd   :  { %v1991_v38 = vpack.c.bf16 %v1987_v35, %v1987_v35 }
 0x1cf   :  { %2461 = vmatprep.mubr.bf16.mxu1 %v1991_v38 }
 0x1d0   :  { %2462 = vmatmul.mubr.bf16.vlgmr.msra.gmra.mxu1 %v1990_v39 }
 0x1d1   :  { %3158 = vmatpush3.bf16.msra.mxu1 %v3683_v45  ;;  %3173 = vmatprep.mubr.msk.bf16.mxu1 %vm3692_vm0, %v3691_v44 }
 0x1d2   :  { %3159 = vmatprep.subr.bf16.mxu1 %v3691_v44 }
 0x1d5   :  { %3160 = vmatpush3.bf16.msra.mxu1 %v3684_v46 }
 0x1d6   :  { %3161 = vmatprep.subr.bf16.mxu1 %v3691_v44 }
 0x1d9   :  { %3162 = vmatpush3.bf16.msra.mxu1 %v3685_v48 }
 0x1da   :  { %3163 = vmatprep.subr.bf16.mxu1 %v3691_v44 }
 0x1dd   :  { %3164 = vmatpush3.bf16.msra.mxu1 %v3686_v49 }
 0x1de   :  { %3165 = vmatprep.subr.bf16.mxu1 %v3691_v44 }
 0x1e1   :  { %3166 = vmatpush3.bf16.msra.mxu1 %v3687_v50 }
 0x1e2   :  { %3167 = vmatprep.subr.bf16.mxu1 %v3691_v44 }
 0x1e5   :  { %3168 = vmatpush3.bf16.msra.mxu1 %v3688_v51 }
 0x1e6   :  { %3169 = vmatprep.subr.bf16.mxu1 %v3691_v44 }
 0x1e9   :  { %3170 = vmatpush3.bf16.msra.mxu1 %v3689_v27 }
 0x1ea   :  { %3171 = vmatprep.subr.bf16.mxu1 %v3691_v44 }
 0x1ed   :  { %3172 = vmatpush3.bf16.msra.mxu1 %v3690_v30 }
 0x210   :  { %v2422_v40 = vpop.f32.mrf.mxu0 }
 0x211   :  { %v2423_v55 = vadd.f32 %v2422_v40, %v2061_v53 }
 0x212   :  { %v2424_v47 = vpop.f32.mrf.mxu0 }
 0x213   :  { %v2425_v57 = vadd.f32 %v2424_v47, %v2065_v54 }
 0x214   :  { %v2426_v6 = vpop.f32.mrf.mxu0 }
 0x216   :  { %v2427_v43 = vpop.f32.mrf.mxu0 }
 0x290   :  { %v2463_v56 = vpop.f32.mrf.mxu1 }
 0x291   :  { %v2464_v58 = vadd.f32 %v2463_v56, %v2423_v55 }
 0x292   :  { %v2465_v59 = vpop.f32.mrf.mxu1 }
 0x293   :  { %v2466_v60 = vadd.f32 %v2465_v59, %v2425_v57  ;;  %v2470_v61 = vmax.f32 %v2464_v58, 0.0 }
 0x294   :  { %v2467_v62 = vpop.f32.mrf.mxu1 }
 0x295   :  { %v2471_v63 = vmax.f32 %v2466_v60, 0.0  ;;  %v2472_v2 = vpack.c.bf16 %v2470_v61, %v2470_v61 }
 0x296   :  { %v2468_v0 = vpop.f32.mrf.mxu1 }
 0x297   :  { %v2473_v1 = vpack.c.bf16 %v2471_v63, %v2471_v63 }
 0x299   :  { %2641 = vmatprep.mubr.bf16.mxu0 %v2473_v1 }
 0x29a   :  { %2642 = vmatmul.mubr.bf16.vlgmr.msra.gmra.mxu0 %v2472_v2 }
 0x35a   :  { %v3142_v3 = vpop.f32.mrf.mxu0 }
 0x35c   :  { %v3143_v5 = vpop.f32.mrf.mxu0 }
 0x35d   :  { %v3144_v8 = vadd.f32 %v3143_v5, %v3142_v3 }
 0x35e   :  { %v3145_v9 = vpop.f32.mrf.mxu0 }
 0x35f   :  { %v2644_v10 = vadd.f32 %v3144_v8, %v3100_v4 }
 0x360   :  { %v3146_v11 = vpop.f32.mrf.mxu0 }
 0x361   :  { %v2649_v12 = vmax.f32 %v2644_v10, 0.0 }
 0x363   :  { %2650 = vst [vmem:[%s4891_s9] sm:$0xff] %v2649_v12  ;;  %v2651_v13 = vpack.c.bf16 %v2649_v12, %v2649_v12 }
 0x365   :  { %3174 = vmatmul.mubr.bf16.vlgmr.msra.gmra.mxu1 %v2651_v13 }
 0x425   :  { %v2757_v15 = vpop.f32.mrf.mxu1 }
 0x426   :  { %v2758_v18 = vadd.f32 %v3117_v14, %v2757_v15 }
 0x427   :  { %v3175_v19 = vpop.f32.mrf.mxu1 }
 0x428   :  { %2763 = vst [vmem:[%s4893_s10] sm:$0xff] %v2758_v18 }
 0x429   :  { %v2760_v20 = vpop.f32.mrf.mxu1 }
 0x42b   :  { %v3176_v21 = vpop.f32.mrf.mxu1 }

</bundles_post_ra>
